<compile_context>
chip_gen: v7x
topology: tpu7x:2x2x1
jax: 0.10.0
libtpu: 0.0.40
codegen_flags: <defaults>
</compile_context>

<pallas_src>
import math

import jax
import jax.numpy as jnp
from jax.experimental import pallas as pl
from jax.experimental.pallas import tpu as pltpu

_VMEM_LIMIT = 32 * 1024 * 1024   # leaves headroom on v7x (64 MiB VMEM/TC); fine on v5e/v6e
_MAX_ROW_TILE = 1024


def _row_tile(P, max_tile=_MAX_ROW_TILE):
    """Largest multiple-of-8 divisor of P that is <= max_tile (else P itself)."""
    if P <= max_tile:
        return P
    best = 0
    for t in range(8, max_tile + 1, 8):
        if P % t == 0:
            best = t
    return best if best > 0 else P


def _cparams(*sems):
    return pltpu.CompilerParams(dimension_semantics=tuple(sems),
                                vmem_limit_bytes=_VMEM_LIMIT)


# ----------------------------------------------------------------------------
# Pallas kernels
# ----------------------------------------------------------------------------

def _make_affine_matmul_kernel(do_affine, do_relu, contract_rows):
    # y = act(x * scale + shift);  out = y @ W + b   (or y^T @ W when contract_rows)
    dims = (((0,), (0,)), ((), ())) if contract_rows else (((1,), (0,)), ((), ()))

    def _finish(y, w_ref, b_ref, o_ref):
        if do_relu:
            y = jnp.maximum(y, 0.0)
        acc = jax.lax.dot_general(y.astype(jnp.bfloat16), w_ref[...], dims,
                                  preferred_element_type=jnp.float32)
        o_ref[...] = (acc + b_ref[...])[None]

    if do_affine:
        def kernel(x_ref, s_ref, t_ref, w_ref, b_ref, o_ref):
            _finish(x_ref[0] * s_ref[0] + t_ref[0], w_ref, b_ref, o_ref)
    else:
        def kernel(x_ref, w_ref, b_ref, o_ref):
            _finish(x_ref[0], w_ref, b_ref, o_ref)
    return kernel


def affine_matmul(x, scale, shift, W, b, *, relu):
    """Fused (IN/BN scale-shift) -> optional ReLU -> 1x1 conv.  Tiled over (B, P)."""
    B, P, Cin = x.shape
    Cout = W.shape[1]
    TP = _row_tile(P)
    do_affine = scale is not None
    kernel = _make_affine_matmul_kernel(do_affine, relu, contract_rows=False)

    in_specs = [pl.BlockSpec((1, TP, Cin), lambda i, j: (i, j, 0))]
    args = [x]
    if do_affine:
        in_specs += [pl.BlockSpec((1, 1, Cin), lambda i, j: (i, 0, 0)),
                     pl.BlockSpec((1, 1, Cin), lambda i, j: (i, 0, 0))]
        args += [scale, shift]
    in_specs += [pl.BlockSpec((Cin, Cout), lambda i, j: (0, 0)),
                 pl.BlockSpec((1, Cout), lambda i, j: (0, 0))]
    args += [W.astype(jnp.bfloat16), b.reshape(1, Cout).astype(jnp.float32)]

    return pl.pallas_call(
        kernel,
        out_shape=jax.ShapeDtypeStruct((B, P, Cout), jnp.float32),
        grid=(B, P // TP),
        in_specs=in_specs,
        out_specs=pl.BlockSpec((1, TP, Cout), lambda i, j: (i, j, 0)),
        compiler_params=_cparams("parallel", "parallel"),
    )(*args)


def affine_matmul_t(x, scale, shift, W, b, *, relu):
    """Like affine_matmul but contracts the ROW axis of x:
       out[b] = act(x[b]*scale[b]+shift[b])^T @ W + b.
    Used for OAFilter's 'conv over clusters' stage without materializing transposes."""
    B, R, L = x.shape
    Cout = W.shape[1]
    do_affine = scale is not None
    kernel = _make_affine_matmul_kernel(do_affine, relu, contract_rows=True)

    in_specs = [pl.BlockSpec((1, R, L), lambda i: (i, 0, 0))]
    args = [x]
    if do_affine:
        in_specs += [pl.BlockSpec((1, 1, L), lambda i: (i, 0, 0)),
                     pl.BlockSpec((1, 1, L), lambda i: (i, 0, 0))]
        args += [scale, shift]
    in_specs += [pl.BlockSpec((R, Cout), lambda i: (0, 0)),
                 pl.BlockSpec((1, Cout), lambda i: (0, 0))]
    args += [W.astype(jnp.bfloat16), b.reshape(1, Cout).astype(jnp.float32)]

    return pl.pallas_call(
        kernel,
        out_shape=jax.ShapeDtypeStruct((B, L, Cout), jnp.float32),
        grid=(B,),
        in_specs=in_specs,
        out_specs=pl.BlockSpec((1, L, Cout), lambda i: (i, 0, 0)),
        compiler_params=_cparams("parallel"),
    )(*args)


def _aff_apply_kernel(xl_ref, s_ref, t_ref, xg_ref, cat_ref, o_ref):
    # fused: BN of local branch + add global branch + sigmoid + (wei * cat)
    wei = jax.nn.sigmoid(xl_ref[0] * s_ref[0] + t_ref[0] + xg_ref[0])
    o_ref[...] = (wei * cat_ref[0])[None]


def aff_apply(xl, s, t, xg, cat):
    B, P, C = xl.shape
    TP = _row_tile(P)
    return pl.pallas_call(
        _aff_apply_kernel,
        out_shape=jax.ShapeDtypeStruct((B, P, C), jnp.float32),
        grid=(B, P // TP),
        in_specs=[pl.BlockSpec((1, TP, C), lambda i, j: (i, j, 0)),
                  pl.BlockSpec((1, 1, C), lambda i, j: (i, 0, 0)),
                  pl.BlockSpec((1, 1, C), lambda i, j: (i, 0, 0)),
                  pl.BlockSpec((1, 1, C), lambda i, j: (i, 0, 0)),
                  pl.BlockSpec((1, TP, C), lambda i, j: (i, j, 0))],
        out_specs=pl.BlockSpec((1, TP, C), lambda i, j: (i, j, 0)),
        compiler_params=_cparams("parallel", "parallel"),
    )(xl, s, t, xg, cat)


def _pool_kernel(e_ref, x_ref, o_ref):
    e = e_ref[0]                                       # [P, K]
    m = jnp.max(e, axis=0, keepdims=True)
    p = jnp.exp(e - m)
    s = p / jnp.sum(p, axis=0, keepdims=True)          # softmax over points (torch dim=2)
    o_ref[...] = jax.lax.dot_general(
        s.astype(jnp.bfloat16), x_ref[0].astype(jnp.bfloat16),
        (((0,), (0,)), ((), ())), preferred_element_type=jnp.float32)[None]


def pool_matmul(embed, x):
    B, P, K = embed.shape
    C = x.shape[2]
    return pl.pallas_call(
        _pool_kernel,
        out_shape=jax.ShapeDtypeStruct((B, K, C), jnp.float32),
        grid=(B,),
        in_specs=[pl.BlockSpec((1, P, K), lambda i: (i, 0, 0)),
                  pl.BlockSpec((1, P, C), lambda i: (i, 0, 0))],
        out_specs=pl.BlockSpec((1, K, C), lambda i: (i, 0, 0)),
        compiler_params=_cparams("parallel"),
    )(embed, x)


def _unpool_kernel(e_ref, xd_ref, o_ref):
    e = e_ref[0]                                       # [TP, K]
    m = jnp.max(e, axis=1, keepdims=True)
    p = jnp.exp(e - m)
    s = p / jnp.sum(p, axis=1, keepdims=True)          # softmax over clusters (torch dim=1)
    o_ref[...] = jnp.dot(s.astype(jnp.bfloat16), xd_ref[0],
                         preferred_element_type=jnp.float32)[None]


def unpool_matmul(embed, x_down):
    B, P, K = embed.shape
    C = x_down.shape[2]
    TP = _row_tile(P)
    return pl.pallas_call(
        _unpool_kernel,
        out_shape=jax.ShapeDtypeStruct((B, P, C), jnp.float32),
        grid=(B, P // TP),
        in_specs=[pl.BlockSpec((1, TP, K), lambda i, j: (i, j, 0)),
                  pl.BlockSpec((1, K, C), lambda i, j: (i, 0, 0))],
        out_specs=pl.BlockSpec((1, TP, C), lambda i, j: (i, j, 0)),
        compiler_params=_cparams("parallel", "parallel"),
    )(embed, x_down.astype(jnp.bfloat16))


def _gram_kernel(xt_ref, lg_ref, o_ref):
    # fused: w = relu(tanh(logits)); XwX = X^T diag(w) X  with X laid out lane-dense [9, N]
    xt = xt_ref[0]                                     # [9, N]
    w = jnp.maximum(jnp.tanh(lg_ref[0]), 0.0)          # [1, N]
    o_ref[...] = jax.lax.dot_general(
        xt * w, xt, (((1,), (1,)), ((), ())),
        preferred_element_type=jnp.float32)[None]


def gram_matmul(Xt, logits3):
    B, _, N = Xt.shape
    return pl.pallas_call(
        _gram_kernel,
        out_shape=jax.ShapeDtypeStruct((B, 9, 9), jnp.float32),
        grid=(B,),
        in_specs=[pl.BlockSpec((1, 9, N), lambda i: (i, 0, 0)),
                  pl.BlockSpec((1, 1, N), lambda i: (i, 0, 0))],
        out_specs=pl.BlockSpec((1, 9, 9), lambda i: (i, 0, 0)),
        compiler_params=_cparams("parallel"),
    )(Xt, logits3)


# ----------------------------------------------------------------------------
# Normalization statistics (tiny XLA reductions -> per-(b,c) scale/shift)
# ----------------------------------------------------------------------------

def norm_affine(x, do_in, eps_in=1e-3, eps_bn=1e-5):
    """Reduce InstanceNorm(optional)+BatchNorm (training stats, gamma=1, beta=0) to a
    per-(batch, channel) affine (scale, shift), each of shape [B, 1, C]."""
    B, _, C = x.shape
    x = x.astype(jnp.float32)
    if do_in:
        m = jnp.mean(x, axis=1, keepdims=True)                       # [B,1,C]
        v = jnp.mean(jnp.square(x - m), axis=1, keepdims=True)       # [B,1,C]
        r_in = jax.lax.rsqrt(v + eps_in)
        # after IN each (b,c) slice has mean 0 over P, so BN mean == 0 and
        # BN var == mean_b( v / (v + eps_in) ).
        bn_var = jnp.mean(v * r_in * r_in, axis=0, keepdims=True)    # [1,1,C]
        r_bn = jax.lax.rsqrt(bn_var + eps_bn)
        scale = r_in * r_bn
        shift = -m * scale
    else:
        m = jnp.mean(x, axis=(0, 1), keepdims=True)
        v = jnp.mean(jnp.square(x - m), axis=(0, 1), keepdims=True)
        r = jax.lax.rsqrt(v + eps_bn)
        scale = jnp.broadcast_to(r, (B, 1, C))
        shift = jnp.broadcast_to(-m * r, (B, 1, C))
    return scale, shift


def _bn_rows(y, eps=1e-5):
    # BatchNorm over a tiny [B, 1, C] tensor (AFF global branch), training stats.
    m = jnp.mean(y, axis=(0, 1), keepdims=True)
    v = jnp.mean(jnp.square(y - m), axis=(0, 1), keepdims=True)
    return (y - m) * jax.lax.rsqrt(v + eps)


# ----------------------------------------------------------------------------
# Module forwards (mirroring the PyTorch graph)
# ----------------------------------------------------------------------------

def aff_mul(p, xa):
    """AFF(xa) followed by wei * xa (both PointCN and OANBlock use it this way)."""
    # local branch: conv -> [BN+ReLU fused into next conv] -> conv -> [final BN fused below]
    xl1 = affine_matmul(xa, None, None, p["l1"]["W"], p["l1"]["b"], relu=False)
    s1, t1 = norm_affine(xl1, do_in=False)
    xl2 = affine_matmul(xl1, s1, t1, p["l2"]["W"], p["l2"]["b"], relu=True)
    s2, t2 = norm_affine(xl2, do_in=False)
    # global branch: [B,1,C] tensors -> plain jnp (no Pallas dispatch on 1-row data)
    g = jnp.mean(xa, axis=1, keepdims=True)                              # AdaptiveAvgPool2d(1)
    g = jnp.einsum('boc,ci->boi', g, p["g1"]["W"]) + p["g1"]["b"]
    g = jnp.maximum(_bn_rows(g), 0.0)
    g = jnp.einsum('boc,ci->boi', g, p["g2"]["W"]) + p["g2"]["b"]
    g = _bn_rows(g)                                                      # [B,1,C]
    # fused: sigmoid(BN(xl2) + g) * xa
    return aff_apply(xl2, s2, t2, g, xa)


def _branch(prev, conv_p):
    # PointCN branch: InstanceNorm -> BatchNorm -> ReLU -> Conv1x1, all in one kernel.
    s, t = norm_affine(prev, do_in=True)
    return affine_matmul(prev, s, t, conv_p["W"], conv_p["b"], relu=True)


def _plain_conv(x, conv_p):
    return affine_matmul(x, None, None, conv_p["W"], conv_p["b"], relu=False)


def pointcn_forward(p, x):
    i1 = _branch(x, p["c1"]); i2 = _branch(i1, p["c2"])
    i3 = _branch(i2, p["c3"]); i4 = _branch(i3, p["c4"])
    cat = jnp.concatenate([i1, i2, i3, i4], axis=-1)
    out = aff_mul(p["aff"], cat)                          # wei * cat, fused
    o1 = _branch(out, p["c5"]); o2 = _branch(o1, p["c6"])
    o3 = _branch(o2, p["c7"]); o4 = _branch(o3, p["c8"])
    res = jnp.concatenate([o1, o2, o3, o4], axis=-1)
    if p["shot_cut"] is not None:
        return res + _plain_conv(x, p["shot_cut"])
    return res + x


def oafilter_forward(p, x):
    # x: [B, K, C]   (K = clusters, C = channels)
    i1 = _plain_conv(x, p["c1"]); i2 = _plain_conv(i1, p["c2"])
    i3 = _plain_conv(i2, p["c3"]); i4 = _plain_conv(i3, p["c4"])
    cat_i = jnp.concatenate([i1, i2, i3, i4], axis=-1)                    # [B,K,C]
    s_i, t_i = norm_affine(cat_i, do_in=True)                             # normalinit stats

    # "conv over clusters" stage: contract the K axis directly (no HBM transpose).
    # m1 = relu(normalinit(cat_i))^T @ W9  -> [B, C, Kq]
    m1 = affine_matmul_t(cat_i, s_i, t_i, p["c9"]["W"], p["c9"]["b"], relu=True)
    m2 = _plain_conv(m1, p["c10"]); m3 = _plain_conv(m2, p["c11"]); m4 = _plain_conv(m3, p["c12"])
    mid = jnp.concatenate([m1, m2, m3, m4], axis=-1)                      # [B, C, K]
    s_m, t_m = norm_affine(mid, do_in=False)                              # normalmiddle (BN over (B,C))

    # conv5((out + relu(BN(mid))^T)) = out@W5 + b5  +  relu(BN(mid))^T @ W5
    # (transpose-back folded algebraically; nothing transposed in HBM)
    o1a = affine_matmul(cat_i, s_i, t_i, p["c5"]["W"], p["c5"]["b"], relu=True)
    o1b = affine_matmul_t(mid, s_m, t_m, p["c5"]["W"],
                          jnp.zeros_like(p["c5"]["b"]), relu=True)
    o1 = o1a + o1b
    o2 = _plain_conv(o1, p["c6"]); o3 = _plain_conv(o2, p["c7"]); o4 = _plain_conv(o3, p["c8"])
    cat_o = jnp.concatenate([o1, o2, o3, o4], axis=-1)
    s_o, t_o = norm_affine(cat_o, do_in=True)                             # normalend
    out = jnp.maximum(cat_o * s_o + t_o, 0.0)
    if p["shot_cut"] is not None:
        return out + _plain_conv(x, p["shot_cut"])
    return out + x


def diff_pool_forward(p, x):
    s, t = norm_affine(x, do_in=True)
    embed = affine_matmul(x, s, t, p["conv"]["W"], p["conv"]["b"], relu=True)   # [B, N, K]
    return pool_matmul(embed, x)                                                # [B, K, C]


def diff_unpool_forward(p, x_up, x_down):
    s, t = norm_affine(x_up, do_in=True)
    embed = affine_matmul(x_up, s, t, p["conv"]["W"], p["conv"]["b"], relu=True)  # [B, N, K]
    return unpool_matmul(embed, x_down)                                           # [B, N, C]


def batch_episym(x1, x2, F):
    # x1, x2: [B, N, 2]; F: [B, 9] -> [B, N]
    B, N, _ = x1.shape
    ones = jnp.ones((B, N, 1), x1.dtype)
    x1h = jnp.concatenate([x1, ones], axis=-1)
    x2h = jnp.concatenate([x2, ones], axis=-1)
    Fm = F.reshape(B, 3, 3)
    Fx1 = jnp.einsum('bij,bnj->bni', Fm, x1h)
    Ftx2 = jnp.einsum('bji,bnj->bni', Fm, x2h)
    x2Fx1 = jnp.sum(x2h * Fx1, axis=-1)
    ys = x2Fx1 ** 2 * (1.0 / (Fx1[..., 0] ** 2 + Fx1[..., 1] ** 2 + 1e-15)
                       + 1.0 / (Ftx2[..., 0] ** 2 + Ftx2[..., 1] ** 2 + 1e-15))
    return ys


def weighted_8points(xs, logits):
    # xs: [B, 1, N, 4]; logits: [B, N]
    B, _, N, _ = xs.shape
    xx = xs[:, 0]                                        # [B, N, 4]
    x1x, x1y, x2x, x2y = xx[..., 0], xx[..., 1], xx[..., 2], xx[..., 3]
    ones = jnp.ones_like(x1x)
    # lane-dense [B, 9, N] layout (N on lanes); torch column order preserved on axis 1
    Xt = jnp.stack([x2x * x1x, x2x * x1y, x2x,
                    x2y * x1x, x2y * x1y, x2y,
                    x1x, x1y, ones], axis=1)
    XwX = gram_matmul(Xt, logits.reshape(B, 1, N))       # [B, 9, 9] (Pallas, fused weights)
    # TODO(synk): torch.linalg.eigh (batch_symeig) has no Pallas equivalent; use jnp.linalg.eigh.
    _, v = jnp.linalg.eigh(XwX)                          # ascending eigenvalues
    e = v[:, :, 0]                                       # eigenvector of smallest eigenvalue
    return e / jnp.linalg.norm(e, axis=1, keepdims=True)


def oanblock_forward(p, data, xs):
    # data: [B, N, Cin]; xs: [B, 1, N, 4]
    B, N, _ = data.shape
    x1_1 = _plain_conv(data, p["conv1"])
    for lp in p["l1_1"]:
        x1_1 = pointcn_forward(lp, x1_1)
    x_down = diff_pool_forward(p["down1"], x1_1)
    x2 = x_down
    for lp in p["l2"]:
        x2 = oafilter_forward(lp, x2)
    x_up = diff_unpool_forward(p["up1"], x1_1, x2)
    cat = jnp.concatenate([x1_1, x_up], axis=-1)
    out = aff_mul(p["aff"], cat)
    for lp in p["l1_2"]:
        out = pointcn_forward(lp, out)
    logits = _plain_conv(out, p["output"])[:, :, 0]                   # [B, N]
    e_hat = weighted_8points(xs, logits)
    x1c, x2c = xs[:, 0, :, :2], xs[:, 0, :, 2:4]
    residual = batch_episym(x1c, x2c, e_hat).reshape(B, N, 1)         # [B, N, 1]
    return logits, e_hat, residual


def oanet_forward(params, xs):
    # xs: [B, 1, N, 4]; xs.transpose(1,3) in NCHW == channel-last [B, N, 4] here
    data = xs[:, 0, :, :]
    res_logits, res_e_hat = [], []
    logits, e_hat, residual = oanblock_forward(params["init"], data, xs)
    res_logits.append(logits); res_e_hat.append(e_hat)
    for p_iter in params["iter"]:
        w = jnp.maximum(jnp.tanh(logits), 0.0)[..., None]             # [B, N, 1]
        data_iter = jnp.concatenate([data, residual, w], axis=-1)     # [B, N, 6]
        logits, e_hat, residual = oanblock_forward(p_iter, data_iter, xs)
        res_logits.append(logits); res_e_hat.append(e_hat)
    return res_logits, res_e_hat


# ----------------------------------------------------------------------------
# Deterministic parameter initialization (shapes mirror the PyTorch __init__)
# ----------------------------------------------------------------------------

class ParamGen:
    def __init__(self, seed=0):
        self._key = jax.random.PRNGKey(seed)

    def _next(self):
        self._key, k = jax.random.split(self._key)
        return k

    def conv(self, cin, cout):
        bound = 1.0 / math.sqrt(cin)
        W = jax.random.uniform(self._next(), (cin, cout), jnp.float32, -bound, bound)
        b = jax.random.uniform(self._next(), (cout,), jnp.float32, -bound, bound)
        return {"W": W, "b": b}


def init_aff(pg, channels, r=4):
    inter = channels // r
    return {"l1": pg.conv(channels, inter), "l2": pg.conv(inter, channels),
            "g1": pg.conv(channels, inter), "g2": pg.conv(inter, channels)}


def init_pointcn(pg, channels, out_channels=None):
    out = out_channels or channels
    q = out // 4
    return {"c1": pg.conv(channels, q), "c2": pg.conv(q, q), "c3": pg.conv(q, q), "c4": pg.conv(q, q),
            "c5": pg.conv(out, q), "c6": pg.conv(q, q), "c7": pg.conv(q, q), "c8": pg.conv(q, q),
            "aff": init_aff(pg, out),
            "shot_cut": pg.conv(channels, out) if out != channels else None}


def init_oafilter(pg, channels, points, out_channels=None):
    out = out_channels or channels
    q, pq = out // 4, points // 4
    return {"c1": pg.conv(channels, q), "c2": pg.conv(q, q), "c3": pg.conv(q, q), "c4": pg.conv(q, q),
            "c5": pg.conv(out, q), "c6": pg.conv(q, q), "c7": pg.conv(q, q), "c8": pg.conv(q, q),
            "c9": pg.conv(points, pq), "c10": pg.conv(pq, pq), "c11": pg.conv(pq, pq), "c12": pg.conv(pq, pq),
            "shot_cut": pg.conv(channels, out) if out != channels else None}


def init_diffpool(pg, in_channel, output_points):
    return {"conv": pg.conv(in_channel, output_points)}


def init_oanblock(pg, net_channels, input_channel, depth, clusters):
    ch, half = net_channels, depth // 2
    return {"conv1": pg.conv(input_channel, ch),
            "l1_1": [init_pointcn(pg, ch) for _ in range(half)],
            "down1": init_diffpool(pg, ch, clusters),
            "l2": [init_oafilter(pg, ch, clusters) for _ in range(half)],
            "up1": init_diffpool(pg, ch, clusters),
            "l1_2": [init_pointcn(pg, 2 * ch, ch)] + [init_pointcn(pg, ch) for _ in range(half - 1)],
            "aff": init_aff(pg, 2 * ch),
            "output": pg.conv(ch, 1)}


def init_oanet(pg, net_channels, clusters, iter_num=1):
    depth_each_stage = 12 // (1 + 1)          # = 6, as in the PyTorch __init__
    side_channel = 0
    return {"init": init_oanblock(pg, net_channels, 4 + side_channel, depth_each_stage, clusters),
            "iter": [init_oanblock(pg, net_channels, 6 + side_channel, depth_each_stage, clusters)
                     for _ in range(iter_num)]}


# ----------------------------------------------------------------------------

if __name__ == "__main__":
    # Small demo shapes (the original module uses net_channels=128, clusters=500, N~2000;
    # reduced here for a fast synthetic run — the architecture/graph is identical).
    B, N = 2, 64
    NET_CHANNELS, CLUSTERS = 32, 16

    pg = ParamGen(seed=0)
    params = init_oanet(pg, NET_CHANNELS, CLUSTERS, iter_num=1)

    key = jax.random.PRNGKey(0)
    xs = jax.random.normal(key, (B, 1, N, 4), dtype=jnp.float32)

    fwd = jax.jit(oanet_forward)
    res_logits, res_e_hat = fwd(params, xs)
    for t in res_logits + res_e_hat:
        jax.block_until_ready(t)

    assert res_logits[0].shape == (B, N) and res_e_hat[0].shape == (B, 9)
    assert len(res_logits) == 2 and len(res_e_hat) == 2
    assert all(bool(jnp.all(jnp.isfinite(t))) for t in res_logits + res_e_hat)
    print("KERNEL_OK")
</pallas_src>

<mosaic_0001>
module attributes {stable_mosaic.version = 11 : i64} {
  func.func @kernel(%arg0: i32, %arg1: i32, %arg2: memref<1x64x4xf32, #tpu.memory_space<vmem>>, %arg3: memref<4x32xbf16, #tpu.memory_space<vmem>>, %arg4: memref<1x32xf32, #tpu.memory_space<vmem>>, %arg5: memref<1x64x32xf32, #tpu.memory_space<vmem>>) attributes {dimension_semantics = [#tpu.dimension_semantics<parallel>, #tpu.dimension_semantics<parallel>], iteration_bounds = array<i64: 2, 1>, scalar_prefetch = 0 : i64, scratch_operands = 0 : i64, tpu.core_type = #tpu.core_type<tc>, window_params = [{transform_indices = @transform_0, window_bounds = array<i64: 1, 64, 4>}, {pipeline_mode = #tpu.pipeline_mode<synchronous>, transform_indices = @transform_1, window_bounds = array<i64: 4, 32>}, {pipeline_mode = #tpu.pipeline_mode<synchronous>, transform_indices = @transform_2, window_bounds = array<i64: 1, 32>}, {transform_indices = @transform_3, window_bounds = array<i64: 1, 64, 32>}]} {
    %c0 = arith.constant 0 : index
    %c0_0 = arith.constant 0 : index
    %c0_1 = arith.constant 0 : index
    %0 = vector.load %arg2[%c0, %c0_0, %c0_1] : memref<1x64x4xf32, #tpu.memory_space<vmem>>, vector<1x64x4xf32>
    %1 = vector.shape_cast %0 : vector<1x64x4xf32> to vector<64x4xf32>
    %2 = arith.truncf %1 : vector<64x4xf32> to vector<64x4xbf16>
    %c0_2 = arith.constant 0 : index
    %c0_3 = arith.constant 0 : index
    %3 = vector.load %arg3[%c0_2, %c0_3] : memref<4x32xbf16, #tpu.memory_space<vmem>>, vector<4x32xbf16>
    %cst = arith.constant dense<0.000000e+00> : vector<64x32xf32>
    %4 = tpu.matmul %2, %3, %cst {dimension_numbers = #tpu.dot_dimension_numbers<[1], [0], [0], [1], [0, 0, 1, 1], [], []>} : vector<64x4xbf16>, vector<4x32xbf16>, vector<64x32xf32> -> vector<64x32xf32>
    %c0_4 = arith.constant 0 : index
    %c0_5 = arith.constant 0 : index
    %5 = vector.load %arg4[%c0_4, %c0_5] : memref<1x32xf32, #tpu.memory_space<vmem>>, vector<1x32xf32>
    %6 = vector.broadcast %5 : vector<1x32xf32> to vector<64x32xf32>
    %7 = arith.addf %4, %6 : vector<64x32xf32>
    %8 = vector.shape_cast %7 : vector<64x32xf32> to vector<1x64x32xf32>
    %c0_6 = arith.constant 0 : index
    %c0_7 = arith.constant 0 : index
    %c0_8 = arith.constant 0 : index
    %9 = vector.load %arg5[%c0_6, %c0_7, %c0_8] : memref<1x64x32xf32, #tpu.memory_space<vmem>>, vector<1x64x32xf32>
    tpu.vector_store %arg5[%c0_6, %c0_7, %c0_8], %8 {strides = array<i32>} : memref<1x64x32xf32, #tpu.memory_space<vmem>>, vector<1x64x32xf32>,
    return
  }
  func.func @transform_0(%arg0: i32, %arg1: i32) -> (i32, i32, i32) {
    %c0_i32 = arith.constant 0 : i32
    %c0_i32_0 = arith.constant 0 : i32
    return %arg0, %arg1, %c0_i32 : i32, i32, i32
  }
  func.func @transform_1(%arg0: i32, %arg1: i32) -> (i32, i32) {
    %c0_i32 = arith.constant 0 : i32
    %c0_i32_0 = arith.constant 0 : i32
    %c0_i32_1 = arith.constant 0 : i32
    return %c0_i32, %c0_i32_0 : i32, i32
  }
  func.func @transform_2(%arg0: i32, %arg1: i32) -> (i32, i32) {
    %c0_i32 = arith.constant 0 : i32
    %c0_i32_0 = arith.constant 0 : i32
    %c0_i32_1 = arith.constant 0 : i32
    return %c0_i32, %c0_i32_0 : i32, i32
  }
  func.func @transform_3(%arg0: i32, %arg1: i32) -> (i32, i32, i32) {
    %c0_i32 = arith.constant 0 : i32
    %c0_i32_0 = arith.constant 0 : i32
    return %arg0, %arg1, %c0_i32 : i32, i32, i32
  }
}

module attributes {stable_mosaic.version = 11 : i64} {
  func.func @kernel(%arg0: i32, %arg1: i32, %arg2: memref<1x64x32xf32, #tpu.memory_space<vmem>>, %arg3: memref<1x1x32xf32, #tpu.memory_space<vmem>>, %arg4: memref<1x1x32xf32, #tpu.memory_space<vmem>>, %arg5: memref<32x8xbf16, #tpu.memory_space<vmem>>, %arg6: memref<1x8xf32, #tpu.memory_space<vmem>>, %arg7: memref<1x64x8xf32, #tpu.memory_space<vmem>>) attributes {dimension_semantics = [#tpu.dimension_semantics<parallel>, #tpu.dimension_semantics<parallel>], iteration_bounds = array<i64: 2, 1>, scalar_prefetch = 0 : i64, scratch_operands = 0 : i64, tpu.core_type = #tpu.core_type<tc>, window_params = [{transform_indices = @transform_0, window_bounds = array<i64: 1, 64, 32>}, {transform_indices = @transform_1, window_bounds = array<i64: 1, 1, 32>}, {transform_indices = @transform_2, window_bounds = array<i64: 1, 1, 32>}, {pipeline_mode = #tpu.pipeline_mode<synchronous>, transform_indices = @transform_3, window_bounds = array<i64: 32, 8>}, {pipeline_mode = #tpu.pipeline_mode<synchronous>, transform_indices = @transform_4, window_bounds = array<i64: 1, 8>}, {transform_indices = @transform_5, window_bounds = array<i64: 1, 64, 8>}]} {
    %c0 = arith.constant 0 : index
    %c0_0 = arith.constant 0 : index
    %c0_1 = arith.constant 0 : index
    %0 = vector.load %arg2[%c0, %c0_0, %c0_1] : memref<1x64x32xf32, #tpu.memory_space<vmem>>, vector<1x64x32xf32>
    %1 = vector.shape_cast %0 : vector<1x64x32xf32> to vector<64x32xf32>
    %c0_2 = arith.constant 0 : index
    %c0_3 = arith.constant 0 : index
    %c0_4 = arith.constant 0 : index
    %2 = vector.load %arg3[%c0_2, %c0_3, %c0_4] : memref<1x1x32xf32, #tpu.memory_space<vmem>>, vector<1x1x32xf32>
    %3 = vector.shape_cast %2 : vector<1x1x32xf32> to vector<1x32xf32>
    %4 = vector.broadcast %3 : vector<1x32xf32> to vector<64x32xf32>
    %5 = arith.mulf %1, %4 : vector<64x32xf32>
    %c0_5 = arith.constant 0 : index
    %c0_6 = arith.constant 0 : index
    %c0_7 = arith.constant 0 : index
    %6 = vector.load %arg4[%c0_5, %c0_6, %c0_7] : memref<1x1x32xf32, #tpu.memory_space<vmem>>, vector<1x1x32xf32>
    %7 = vector.shape_cast %6 : vector<1x1x32xf32> to vector<1x32xf32>
    %8 = vector.broadcast %7 : vector<1x32xf32> to vector<64x32xf32>
    %9 = arith.addf %5, %8 : vector<64x32xf32>
    %cst = arith.constant 0.000000e+00 : f32
    %10 = vector.broadcast %cst : f32 to vector<64x32xf32>
    %11 = arith.maximumf %9, %10 : vector<64x32xf32>
    %12 = arith.truncf %11 : vector<64x32xf32> to vector<64x32xbf16>
    %c0_8 = arith.constant 0 : index
    %c0_9 = arith.constant 0 : index
    %13 = vector.load %arg5[%c0_8, %c0_9] : memref<32x8xbf16, #tpu.memory_space<vmem>>, vector<32x8xbf16>
    %cst_10 = arith.constant dense<0.000000e+00> : vector<64x8xf32>
    %14 = tpu.matmul %12, %13, %cst_10 {dimension_numbers = #tpu.dot_dimension_numbers<[1], [0], [0], [1], [0, 0, 1, 1], [], []>} : vector<64x32xbf16>, vector<32x8xbf16>, vector<64x8xf32> -> vector<64x8xf32>
    %c0_11 = arith.constant 0 : index
    %c0_12 = arith.constant 0 : index
    %15 = vector.load %arg6[%c0_11, %c0_12] : memref<1x8xf32, #tpu.memory_space<vmem>>, vector<1x8xf32>
    %16 = vector.broadcast %15 : vector<1x8xf32> to vector<64x8xf32>
    %17 = arith.addf %14, %16 : vector<64x8xf32>
    %18 = vector.shape_cast %17 : vector<64x8xf32> to vector<1x64x8xf32>
    %c0_13 = arith.constant 0 : index
    %c0_14 = arith.constant 0 : index
    %c0_15 = arith.constant 0 : index
    %19 = vector.load %arg7[%c0_13, %c0_14, %c0_15] : memref<1x64x8xf32, #tpu.memory_space<vmem>>, vector<1x64x8xf32>
    tpu.vector_store %arg7[%c0_13, %c0_14, %c0_15], %18 {strides = array<i32>} : memref<1x64x8xf32, #tpu.memory_space<vmem>>, vector<1x64x8xf32>,
    return
  }
  func.func @transform_0(%arg0: i32, %arg1: i32) -> (i32, i32, i32) {
    %c0_i32 = arith.constant 0 : i32
    %c0_i32_0 = arith.constant 0 : i32
    return %arg0, %arg1, %c0_i32 : i32, i32, i32
  }
  func.func @transform_1(%arg0: i32, %arg1: i32) -> (i32, i32, i32) {
    %c0_i32 = arith.constant 0 : i32
    %c0_i32_0 = arith.constant 0 : i32
    %c0_i32_1 = arith.constant 0 : i32
    return %arg0, %c0_i32, %c0_i32_0 : i32, i32, i32
  }
  func.func @transform_2(%arg0: i32, %arg1: i32) -> (i32, i32, i32) {
    %c0_i32 = arith.constant 0 : i32
    %c0_i32_0 = arith.constant 0 : i32
    %c0_i32_1 = arith.constant 0 : i32
    return %arg0, %c0_i32, %c0_i32_0 : i32, i32, i32
  }
  func.func @transform_3(%arg0: i32, %arg1: i32) -> (i32, i32) {
    %c0_i32 = arith.constant 0 : i32
    %c0_i32_0 = arith.constant 0 : i32
    %c0_i32_1 = arith.constant 0 : i32
    return %c0_i32, %c0_i32_0 : i32, i32
  }
  func.func @transform_4(%arg0: i32, %arg1: i32) -> (i32, i32) {
    %c0_i32 = arith.constant 0 : i32
    %c0_i32_0 = arith.constant 0 : i32
    %c0_i32_1 = arith.constant 0 : i32
    return %c0_i32, %c0_i32_0 : i32, i32
  }
  func.func @transform_5(%arg0: i32, %arg1: i32) -> (i32, i32, i32) {
    %c0_i32 = arith.constant 0 : i32
    %c0_i32_0 = arith.constant 0 : i32
    return %arg0, %arg1, %c0_i32 : i32, i32, i32
  }
}

module attributes {stable_mosaic.version = 11 : i64} {
  func.func @kernel(%arg0: i32, %arg1: i32, %arg2: memref<1x64x8xf32, #tpu.memory_space<vmem>>, %arg3: memref<1x1x8xf32, #tpu.memory_space<vmem>>, %arg4: memref<1x1x8xf32, #tpu.memory_space<vmem>>, %arg5: memref<8x8xbf16, #tpu.memory_space<vmem>>, %arg6: memref<1x8xf32, #tpu.memory_space<vmem>>, %arg7: memref<1x64x8xf32, #tpu.memory_space<vmem>>) attributes {dimension_semantics = [#tpu.dimension_semantics<parallel>, #tpu.dimension_semantics<parallel>], iteration_bounds = array<i64: 2, 1>, scalar_prefetch = 0 : i64, scratch_operands = 0 : i64, tpu.core_type = #tpu.core_type<tc>, window_params = [{transform_indices = @transform_0, window_bounds = array<i64: 1, 64, 8>}, {transform_indices = @transform_1, window_bounds = array<i64: 1, 1, 8>}, {transform_indices = @transform_2, window_bounds = array<i64: 1, 1, 8>}, {pipeline_mode = #tpu.pipeline_mode<synchronous>, transform_indices = @transform_3, window_bounds = array<i64: 8, 8>}, {pipeline_mode = #tpu.pipeline_mode<synchronous>, transform_indices = @transform_4, window_bounds = array<i64: 1, 8>}, {transform_indices = @transform_5, window_bounds = array<i64: 1, 64, 8>}]} {
    %c0 = arith.constant 0 : index
    %c0_0 = arith.constant 0 : index
    %c0_1 = arith.constant 0 : index
    %0 = vector.load %arg2[%c0, %c0_0, %c0_1] : memref<1x64x8xf32, #tpu.memory_space<vmem>>, vector<1x64x8xf32>
    %1 = vector.shape_cast %0 : vector<1x64x8xf32> to vector<64x8xf32>
    %c0_2 = arith.constant 0 : index
    %c0_3 = arith.constant 0 : index
    %c0_4 = arith.constant 0 : index
    %2 = vector.load %arg3[%c0_2, %c0_3, %c0_4] : memref<1x1x8xf32, #tpu.memory_space<vmem>>, vector<1x1x8xf32>
    %3 = vector.shape_cast %2 : vector<1x1x8xf32> to vector<1x8xf32>
    %4 = vector.broadcast %3 : vector<1x8xf32> to vector<64x8xf32>
    %5 = arith.mulf %1, %4 : vector<64x8xf32>
    %c0_5 = arith.constant 0 : index
    %c0_6 = arith.constant 0 : index
    %c0_7 = arith.constant 0 : index
    %6 = vector.load %arg4[%c0_5, %c0_6, %c0_7] : memref<1x1x8xf32, #tpu.memory_space<vmem>>, vector<1x1x8xf32>
    %7 = vector.shape_cast %6 : vector<1x1x8xf32> to vector<1x8xf32>
    %8 = vector.broadcast %7 : vector<1x8xf32> to vector<64x8xf32>
    %9 = arith.addf %5, %8 : vector<64x8xf32>
    %cst = arith.constant 0.000000e+00 : f32
    %10 = vector.broadcast %cst : f32 to vector<64x8xf32>
    %11 = arith.maximumf %9, %10 : vector<64x8xf32>
    %12 = arith.truncf %11 : vector<64x8xf32> to vector<64x8xbf16>
    %c0_8 = arith.constant 0 : index
    %c0_9 = arith.constant 0 : index
    %13 = vector.load %arg5[%c0_8, %c0_9] : memref<8x8xbf16, #tpu.memory_space<vmem>>, vector<8x8xbf16>
    %cst_10 = arith.constant dense<0.000000e+00> : vector<64x8xf32>
    %14 = tpu.matmul %12, %13, %cst_10 {dimension_numbers = #tpu.dot_dimension_numbers<[1], [0], [0], [1], [0, 0, 1, 1], [], []>} : vector<64x8xbf16>, vector<8x8xbf16>, vector<64x8xf32> -> vector<64x8xf32>
    %c0_11 = arith.constant 0 : index
    %c0_12 = arith.constant 0 : index
    %15 = vector.load %arg6[%c0_11, %c0_12] : memref<1x8xf32, #tpu.memory_space<vmem>>, vector<1x8xf32>
    %16 = vector.broadcast %15 : vector<1x8xf32> to vector<64x8xf32>
    %17 = arith.addf %14, %16 : vector<64x8xf32>
    %18 = vector.shape_cast %17 : vector<64x8xf32> to vector<1x64x8xf32>
    %c0_13 = arith.constant 0 : index
    %c0_14 = arith.constant 0 : index
    %c0_15 = arith.constant 0 : index
    %19 = vector.load %arg7[%c0_13, %c0_14, %c0_15] : memref<1x64x8xf32, #tpu.memory_space<vmem>>, vector<1x64x8xf32>
    tpu.vector_store %arg7[%c0_13, %c0_14, %c0_15], %18 {strides = array<i32>} : memref<1x64x8xf32, #tpu.memory_space<vmem>>, vector<1x64x8xf32>,
    return
  }
  func.func @transform_0(%arg0: i32, %arg1: i32) -> (i32, i32, i32) {
    %c0_i32 = arith.constant 0 : i32
    %c0_i32_0 = arith.constant 0 : i32
    return %arg0, %arg1, %c0_i32 : i32, i32, i32
  }
  func.func @transform_1(%arg0: i32, %arg1: i32) -> (i32, i32, i32) {
    %c0_i32 = arith.constant 0 : i32
    %c0_i32_0 = arith.constant 0 : i32
    %c0_i32_1 = arith.constant 0 : i32
    return %arg0, %c0_i32, %c0_i32_0 : i32, i32, i32
  }
  func.func @transform_2(%arg0: i32, %arg1: i32) -> (i32, i32, i32) {
    %c0_i32 = arith.constant 0 : i32
    %c0_i32_0 = arith.constant 0 : i32
    %c0_i32_1 = arith.constant 0 : i32
    return %arg0, %c0_i32, %c0_i32_0 : i32, i32, i32
  }
  func.func @transform_3(%arg0: i32, %arg1: i32) -> (i32, i32) {
    %c0_i32 = arith.constant 0 : i32
    %c0_i32_0 = arith.constant 0 : i32
    %c0_i32_1 = arith.constant 0 : i32
    return %c0_i32, %c0_i32_0 : i32, i32
  }
  func.func @transform_4(%arg0: i32, %arg1: i32) -> (i32, i32) {
    %c0_i32 = arith.constant 0 : i32
    %c0_i32_0 = arith.constant 0 : i32
    %c0_i32_1 = arith.constant 0 : i32
    return %c0_i32, %c0_i32_0 : i32, i32
  }
  func.func @transform_5(%arg0: i32, %arg1: i32) -> (i32, i32, i32) {
    %c0_i32 = arith.constant 0 : i32
    %c0_i32_0 = arith.constant 0 : i32
    return %arg0, %arg1, %c0_i32 : i32, i32, i32
  }
}

module attributes {stable_mosaic.version = 11 : i64} {
  func.func @kernel(%arg0: i32, %arg1: i32, %arg2: memref<1x64x32xf32, #tpu.memory_space<vmem>>, %arg3: memref<32x8xbf16, #tpu.memory_space<vmem>>, %arg4: memref<1x8xf32, #tpu.memory_space<vmem>>, %arg5: memref<1x64x8xf32, #tpu.memory_space<vmem>>) attributes {dimension_semantics = [#tpu.dimension_semantics<parallel>, #tpu.dimension_semantics<parallel>], iteration_bounds = array<i64: 2, 1>, scalar_prefetch = 0 : i64, scratch_operands = 0 : i64, tpu.core_type = #tpu.core_type<tc>, window_params = [{transform_indices = @transform_0, window_bounds = array<i64: 1, 64, 32>}, {pipeline_mode = #tpu.pipeline_mode<synchronous>, transform_indices = @transform_1, window_bounds = array<i64: 32, 8>}, {pipeline_mode = #tpu.pipeline_mode<synchronous>, transform_indices = @transform_2, window_bounds = array<i64: 1, 8>}, {transform_indices = @transform_3, window_bounds = array<i64: 1, 64, 8>}]} {
    %c0 = arith.constant 0 : index
    %c0_0 = arith.constant 0 : index
    %c0_1 = arith.constant 0 : index
    %0 = vector.load %arg2[%c0, %c0_0, %c0_1] : memref<1x64x32xf32, #tpu.memory_space<vmem>>, vector<1x64x32xf32>
    %1 = vector.shape_cast %0 : vector<1x64x32xf32> to vector<64x32xf32>
    %2 = arith.truncf %1 : vector<64x32xf32> to vector<64x32xbf16>
    %c0_2 = arith.constant 0 : index
    %c0_3 = arith.constant 0 : index
    %3 = vector.load %arg3[%c0_2, %c0_3] : memref<32x8xbf16, #tpu.memory_space<vmem>>, vector<32x8xbf16>
    %cst = arith.constant dense<0.000000e+00> : vector<64x8xf32>
    %4 = tpu.matmul %2, %3, %cst {dimension_numbers = #tpu.dot_dimension_numbers<[1], [0], [0], [1], [0, 0, 1, 1], [], []>} : vector<64x32xbf16>, vector<32x8xbf16>, vector<64x8xf32> -> vector<64x8xf32>
    %c0_4 = arith.constant 0 : index
    %c0_5 = arith.constant 0 : index
    %5 = vector.load %arg4[%c0_4, %c0_5] : memref<1x8xf32, #tpu.memory_space<vmem>>, vector<1x8xf32>
    %6 = vector.broadcast %5 : vector<1x8xf32> to vector<64x8xf32>
    %7 = arith.addf %4, %6 : vector<64x8xf32>
    %8 = vector.shape_cast %7 : vector<64x8xf32> to vector<1x64x8xf32>
    %c0_6 = arith.constant 0 : index
    %c0_7 = arith.constant 0 : index
    %c0_8 = arith.constant 0 : index
    %9 = vector.load %arg5[%c0_6, %c0_7, %c0_8] : memref<1x64x8xf32, #tpu.memory_space<vmem>>, vector<1x64x8xf32>
    tpu.vector_store %arg5[%c0_6, %c0_7, %c0_8], %8 {strides = array<i32>} : memref<1x64x8xf32, #tpu.memory_space<vmem>>, vector<1x64x8xf32>,
    return
  }
  func.func @transform_0(%arg0: i32, %arg1: i32) -> (i32, i32, i32) {
    %c0_i32 = arith.constant 0 : i32
    %c0_i32_0 = arith.constant 0 : i32
    return %arg0, %arg1, %c0_i32 : i32, i32, i32
  }
  func.func @transform_1(%arg0: i32, %arg1: i32) -> (i32, i32) {
    %c0_i32 = arith.constant 0 : i32
    %c0_i32_0 = arith.constant 0 : i32
    %c0_i32_1 = arith.constant 0 : i32
    return %c0_i32, %c0_i32_0 : i32, i32
  }
  func.func @transform_2(%arg0: i32, %arg1: i32) -> (i32, i32) {
    %c0_i32 = arith.constant 0 : i32
    %c0_i32_0 = arith.constant 0 : i32
    %c0_i32_1 = arith.constant 0 : i32
    return %c0_i32, %c0_i32_0 : i32, i32
  }
  func.func @transform_3(%arg0: i32, %arg1: i32) -> (i32, i32, i32) {
    %c0_i32 = arith.constant 0 : i32
    %c0_i32_0 = arith.constant 0 : i32
    return %arg0, %arg1, %c0_i32 : i32, i32, i32
  }
}

module attributes {stable_mosaic.version = 11 : i64} {
  func.func @kernel(%arg0: i32, %arg1: i32, %arg2: memref<1x64x8xf32, #tpu.memory_space<vmem>>, %arg3: memref<1x1x8xf32, #tpu.memory_space<vmem>>, %arg4: memref<1x1x8xf32, #tpu.memory_space<vmem>>, %arg5: memref<8x32xbf16, #tpu.memory_space<vmem>>, %arg6: memref<1x32xf32, #tpu.memory_space<vmem>>, %arg7: memref<1x64x32xf32, #tpu.memory_space<vmem>>) attributes {dimension_semantics = [#tpu.dimension_semantics<parallel>, #tpu.dimension_semantics<parallel>], iteration_bounds = array<i64: 2, 1>, scalar_prefetch = 0 : i64, scratch_operands = 0 : i64, tpu.core_type = #tpu.core_type<tc>, window_params = [{transform_indices = @transform_0, window_bounds = array<i64: 1, 64, 8>}, {transform_indices = @transform_1, window_bounds = array<i64: 1, 1, 8>}, {transform_indices = @transform_2, window_bounds = array<i64: 1, 1, 8>}, {pipeline_mode = #tpu.pipeline_mode<synchronous>, transform_indices = @transform_3, window_bounds = array<i64: 8, 32>}, {pipeline_mode = #tpu.pipeline_mode<synchronous>, transform_indices = @transform_4, window_bounds = array<i64: 1, 32>}, {transform_indices = @transform_5, window_bounds = array<i64: 1, 64, 32>}]} {
    %c0 = arith.constant 0 : index
    %c0_0 = arith.constant 0 : index
    %c0_1 = arith.constant 0 : index
    %0 = vector.load %arg2[%c0, %c0_0, %c0_1] : memref<1x64x8xf32, #tpu.memory_space<vmem>>, vector<1x64x8xf32>
    %1 = vector.shape_cast %0 : vector<1x64x8xf32> to vector<64x8xf32>
    %c0_2 = arith.constant 0 : index
    %c0_3 = arith.constant 0 : index
    %c0_4 = arith.constant 0 : index
    %2 = vector.load %arg3[%c0_2, %c0_3, %c0_4] : memref<1x1x8xf32, #tpu.memory_space<vmem>>, vector<1x1x8xf32>
    %3 = vector.shape_cast %2 : vector<1x1x8xf32> to vector<1x8xf32>
    %4 = vector.broadcast %3 : vector<1x8xf32> to vector<64x8xf32>
    %5 = arith.mulf %1, %4 : vector<64x8xf32>
    %c0_5 = arith.constant 0 : index
    %c0_6 = arith.constant 0 : index
    %c0_7 = arith.constant 0 : index
    %6 = vector.load %arg4[%c0_5, %c0_6, %c0_7] : memref<1x1x8xf32, #tpu.memory_space<vmem>>, vector<1x1x8xf32>
    %7 = vector.shape_cast %6 : vector<1x1x8xf32> to vector<1x8xf32>
    %8 = vector.broadcast %7 : vector<1x8xf32> to vector<64x8xf32>
    %9 = arith.addf %5, %8 : vector<64x8xf32>
    %cst = arith.constant 0.000000e+00 : f32
    %10 = vector.broadcast %cst : f32 to vector<64x8xf32>
    %11 = arith.maximumf %9, %10 : vector<64x8xf32>
    %12 = arith.truncf %11 : vector<64x8xf32> to vector<64x8xbf16>
    %c0_8 = arith.constant 0 : index
    %c0_9 = arith.constant 0 : index
    %13 = vector.load %arg5[%c0_8, %c0_9] : memref<8x32xbf16, #tpu.memory_space<vmem>>, vector<8x32xbf16>
    %cst_10 = arith.constant dense<0.000000e+00> : vector<64x32xf32>
    %14 = tpu.matmul %12, %13, %cst_10 {dimension_numbers = #tpu.dot_dimension_numbers<[1], [0], [0], [1], [0, 0, 1, 1], [], []>} : vector<64x8xbf16>, vector<8x32xbf16>, vector<64x32xf32> -> vector<64x32xf32>
    %c0_11 = arith.constant 0 : index
    %c0_12 = arith.constant 0 : index
    %15 = vector.load %arg6[%c0_11, %c0_12] : memref<1x32xf32, #tpu.memory_space<vmem>>, vector<1x32xf32>
    %16 = vector.broadcast %15 : vector<1x32xf32> to vector<64x32xf32>
    %17 = arith.addf %14, %16 : vector<64x32xf32>
    %18 = vector.shape_cast %17 : vector<64x32xf32> to vector<1x64x32xf32>
    %c0_13 = arith.constant 0 : index
    %c0_14 = arith.constant 0 : index
    %c0_15 = arith.constant 0 : index
    %19 = vector.load %arg7[%c0_13, %c0_14, %c0_15] : memref<1x64x32xf32, #tpu.memory_space<vmem>>, vector<1x64x32xf32>
    tpu.vector_store %arg7[%c0_13, %c0_14, %c0_15], %18 {strides = array<i32>} : memref<1x64x32xf32, #tpu.memory_space<vmem>>, vector<1x64x32xf32>,
    return
  }
  func.func @transform_0(%arg0: i32, %arg1: i32) -> (i32, i32, i32) {
    %c0_i32 = arith.constant 0 : i32
    %c0_i32_0 = arith.constant 0 : i32
    return %arg0, %arg1, %c0_i32 : i32, i32, i32
  }
  func.func @transform_1(%arg0: i32, %arg1: i32) -> (i32, i32, i32) {
    %c0_i32 = arith.constant 0 : i32
    %c0_i32_0 = arith.constant 0 : i32
    %c0_i32_1 = arith.constant 0 : i32
    return %arg0, %c0_i32, %c0_i32_0 : i32, i32, i32
  }
  func.func @transform_2(%arg0: i32, %arg1: i32) -> (i32, i32, i32) {
    %c0_i32 = arith.constant 0 : i32
    %c0_i32_0 = arith.constant 0 : i32
    %c0_i32_1 = arith.constant 0 : i32
    return %arg0, %c0_i32, %c0_i32_0 : i32, i32, i32
  }
  func.func @transform_3(%arg0: i32, %arg1: i32) -> (i32, i32) {
    %c0_i32 = arith.constant 0 : i32
    %c0_i32_0 = arith.constant 0 : i32
    %c0_i32_1 = arith.constant 0 : i32
    return %c0_i32, %c0_i32_0 : i32, i32
  }
  func.func @transform_4(%arg0: i32, %arg1: i32) -> (i32, i32) {
    %c0_i32 = arith.constant 0 : i32
    %c0_i32_0 = arith.constant 0 : i32
    %c0_i32_1 = arith.constant 0 : i32
    return %c0_i32, %c0_i32_0 : i32, i32
  }
  func.func @transform_5(%arg0: i32, %arg1: i32) -> (i32, i32, i32) {
    %c0_i32 = arith.constant 0 : i32
    %c0_i32_0 = arith.constant 0 : i32
    return %arg0, %arg1, %c0_i32 : i32, i32, i32
  }
}

module attributes {stable_mosaic.version = 11 : i64} {
  func.func @_aff_apply_kernel(%arg0: i32, %arg1: i32, %arg2: memref<1x64x32xf32, #tpu.memory_space<vmem>>, %arg3: memref<1x1x32xf32, #tpu.memory_space<vmem>>, %arg4: memref<1x1x32xf32, #tpu.memory_space<vmem>>, %arg5: memref<1x1x32xf32, #tpu.memory_space<vmem>>, %arg6: memref<1x64x32xf32, #tpu.memory_space<vmem>>, %arg7: memref<1x64x32xf32, #tpu.memory_space<vmem>>) attributes {dimension_semantics = [#tpu.dimension_semantics<parallel>, #tpu.dimension_semantics<parallel>], iteration_bounds = array<i64: 2, 1>, scalar_prefetch = 0 : i64, scratch_operands = 0 : i64, tpu.core_type = #tpu.core_type<tc>, window_params = [{transform_indices = @transform_0, window_bounds = array<i64: 1, 64, 32>}, {transform_indices = @transform_1, window_bounds = array<i64: 1, 1, 32>}, {transform_indices = @transform_2, window_bounds = array<i64: 1, 1, 32>}, {transform_indices = @transform_3, window_bounds = array<i64: 1, 1, 32>}, {transform_indices = @transform_4, window_bounds = array<i64: 1, 64, 32>}, {transform_indices = @transform_5, window_bounds = array<i64: 1, 64, 32>}]} {
    %c0 = arith.constant 0 : index
    %c0_0 = arith.constant 0 : index
    %c0_1 = arith.constant 0 : index
    %0 = vector.load %arg2[%c0, %c0_0, %c0_1] : memref<1x64x32xf32, #tpu.memory_space<vmem>>, vector<1x64x32xf32>
    %1 = vector.shape_cast %0 : vector<1x64x32xf32> to vector<64x32xf32>
    %c0_2 = arith.constant 0 : index
    %c0_3 = arith.constant 0 : index
    %c0_4 = arith.constant 0 : index
    %2 = vector.load %arg3[%c0_2, %c0_3, %c0_4] : memref<1x1x32xf32, #tpu.memory_space<vmem>>, vector<1x1x32xf32>
    %3 = vector.shape_cast %2 : vector<1x1x32xf32> to vector<1x32xf32>
    %4 = vector.broadcast %3 : vector<1x32xf32> to vector<64x32xf32>
    %5 = arith.mulf %1, %4 : vector<64x32xf32>
    %c0_5 = arith.constant 0 : index
    %c0_6 = arith.constant 0 : index
    %c0_7 = arith.constant 0 : index
    %6 = vector.load %arg4[%c0_5, %c0_6, %c0_7] : memref<1x1x32xf32, #tpu.memory_space<vmem>>, vector<1x1x32xf32>
    %7 = vector.shape_cast %6 : vector<1x1x32xf32> to vector<1x32xf32>
    %8 = vector.broadcast %7 : vector<1x32xf32> to vector<64x32xf32>
    %9 = arith.addf %5, %8 : vector<64x32xf32>
    %c0_8 = arith.constant 0 : index
    %c0_9 = arith.constant 0 : index
    %c0_10 = arith.constant 0 : index
    %10 = vector.load %arg5[%c0_8, %c0_9, %c0_10] : memref<1x1x32xf32, #tpu.memory_space<vmem>>, vector<1x1x32xf32>
    %11 = vector.shape_cast %10 : vector<1x1x32xf32> to vector<1x32xf32>
    %12 = vector.broadcast %11 : vector<1x32xf32> to vector<64x32xf32>
    %13 = arith.addf %9, %12 : vector<64x32xf32>
    %14 = arith.negf %13 : vector<64x32xf32>
    %15 = math.exp %14 : vector<64x32xf32>
    %cst = arith.constant 1.000000e+00 : f32
    %16 = vector.broadcast %cst : f32 to vector<64x32xf32>
    %17 = arith.addf %16, %15 : vector<64x32xf32>
    %18 = arith.divf %16, %17 : vector<64x32xf32>
    %c0_11 = arith.constant 0 : index
    %c0_12 = arith.constant 0 : index
    %c0_13 = arith.constant 0 : index
    %19 = vector.load %arg6[%c0_11, %c0_12, %c0_13] : memref<1x64x32xf32, #tpu.memory_space<vmem>>, vector<1x64x32xf32>
    %20 = vector.shape_cast %19 : vector<1x64x32xf32> to vector<64x32xf32>
    %21 = arith.mulf %18, %20 : vector<64x32xf32>
    %22 = vector.shape_cast %21 : vector<64x32xf32> to vector<1x64x32xf32>
    %c0_14 = arith.constant 0 : index
    %c0_15 = arith.constant 0 : index
    %c0_16 = arith.constant 0 : index
    %23 = vector.load %arg7[%c0_14, %c0_15, %c0_16] : memref<1x64x32xf32, #tpu.memory_space<vmem>>, vector<1x64x32xf32>
    tpu.vector_store %arg7[%c0_14, %c0_15, %c0_16], %22 {strides = array<i32>} : memref<1x64x32xf32, #tpu.memory_space<vmem>>, vector<1x64x32xf32>,
    return
  }
  func.func @transform_0(%arg0: i32, %arg1: i32) -> (i32, i32, i32) {
    %c0_i32 = arith.constant 0 : i32
    %c0_i32_0 = arith.constant 0 : i32
    return %arg0, %arg1, %c0_i32 : i32, i32, i32
  }
  func.func @transform_1(%arg0: i32, %arg1: i32) -> (i32, i32, i32) {
    %c0_i32 = arith.constant 0 : i32
    %c0_i32_0 = arith.constant 0 : i32
    %c0_i32_1 = arith.constant 0 : i32
    return %arg0, %c0_i32, %c0_i32_0 : i32, i32, i32
  }
  func.func @transform_2(%arg0: i32, %arg1: i32) -> (i32, i32, i32) {
    %c0_i32 = arith.constant 0 : i32
    %c0_i32_0 = arith.constant 0 : i32
    %c0_i32_1 = arith.constant 0 : i32
    return %arg0, %c0_i32, %c0_i32_0 : i32, i32, i32
  }
  func.func @transform_3(%arg0: i32, %arg1: i32) -> (i32, i32, i32) {
    %c0_i32 = arith.constant 0 : i32
    %c0_i32_0 = arith.constant 0 : i32
    %c0_i32_1 = arith.constant 0 : i32
    return %arg0, %c0_i32, %c0_i32_0 : i32, i32, i32
  }
  func.func @transform_4(%arg0: i32, %arg1: i32) -> (i32, i32, i32) {
    %c0_i32 = arith.constant 0 : i32
    %c0_i32_0 = arith.constant 0 : i32
    return %arg0, %arg1, %c0_i32 : i32, i32, i32
  }
  func.func @transform_5(%arg0: i32, %arg1: i32) -> (i32, i32, i32) {
    %c0_i32 = arith.constant 0 : i32
    %c0_i32_0 = arith.constant 0 : i32
    return %arg0, %arg1, %c0_i32 : i32, i32, i32
  }
}

module attributes {stable_mosaic.version = 11 : i64} {
  func.func @_pool_kernel(%arg0: i32, %arg1: memref<1x64x16xf32, #tpu.memory_space<vmem>>, %arg2: memref<1x64x32xf32, #tpu.memory_space<vmem>>, %arg3: memref<1x16x32xf32, #tpu.memory_space<vmem>>) attributes {dimension_semantics = [#tpu.dimension_semantics<parallel>], iteration_bounds = array<i64: 2>, scalar_prefetch = 0 : i64, scratch_operands = 0 : i64, tpu.core_type = #tpu.core_type<tc>, window_params = [{transform_indices = @transform_0, window_bounds = array<i64: 1, 64, 16>}, {transform_indices = @transform_1, window_bounds = array<i64: 1, 64, 32>}, {transform_indices = @transform_2, window_bounds = array<i64: 1, 16, 32>}]} {
    %c0 = arith.constant 0 : index
    %c0_0 = arith.constant 0 : index
    %c0_1 = arith.constant 0 : index
    %0 = vector.load %arg1[%c0, %c0_0, %c0_1] : memref<1x64x16xf32, #tpu.memory_space<vmem>>, vector<1x64x16xf32>
    %1 = vector.shape_cast %0 : vector<1x64x16xf32> to vector<64x16xf32>
    %cst = arith.constant dense<0xFF800000> : vector<16xf32>
    %2 = vector.multi_reduction <maximumf>, %1, %cst [0] : vector<64x16xf32> to vector<16xf32>
    %3 = vector.shape_cast %2 : vector<16xf32> to vector<1x16xf32>
    %4 = vector.broadcast %3 : vector<1x16xf32> to vector<64x16xf32>
    %5 = arith.subf %1, %4 : vector<64x16xf32>
    %6 = math.exp %5 : vector<64x16xf32>
    %cst_2 = arith.constant dense<0.000000e+00> : vector<16xf32>
    %7 = vector.multi_reduction <add>, %6, %cst_2 [0] : vector<64x16xf32> to vector<16xf32>
    %8 = vector.shape_cast %7 : vector<16xf32> to vector<1x16xf32>
    %9 = vector.broadcast %8 : vector<1x16xf32> to vector<64x16xf32>
    %10 = arith.divf %6, %9 : vector<64x16xf32>
    %11 = arith.truncf %10 : vector<64x16xf32> to vector<64x16xbf16>
    %c0_3 = arith.constant 0 : index
    %c0_4 = arith.constant 0 : index
    %c0_5 = arith.constant 0 : index
    %12 = vector.load %arg2[%c0_3, %c0_4, %c0_5] : memref<1x64x32xf32, #tpu.memory_space<vmem>>, vector<1x64x32xf32>
    %13 = vector.shape_cast %12 : vector<1x64x32xf32> to vector<64x32xf32>
    %14 = arith.truncf %13 : vector<64x32xf32> to vector<64x32xbf16>
    %cst_6 = arith.constant dense<0.000000e+00> : vector<16x32xf32>
    %15 = tpu.matmul %11, %14, %cst_6 {dimension_numbers = #tpu.dot_dimension_numbers<[0], [0], [1], [1], [0, 1, 1, 1], [], []>} : vector<64x16xbf16>, vector<64x32xbf16>, vector<16x32xf32> -> vector<16x32xf32>
    %16 = vector.shape_cast %15 : vector<16x32xf32> to vector<1x16x32xf32>
    %c0_7 = arith.constant 0 : index
    %c0_8 = arith.constant 0 : index
    %c0_9 = arith.constant 0 : index
    %17 = vector.load %arg3[%c0_7, %c0_8, %c0_9] : memref<1x16x32xf32, #tpu.memory_space<vmem>>, vector<1x16x32xf32>
    tpu.vector_store %arg3[%c0_7, %c0_8, %c0_9], %16 {strides = array<i32>} : memref<1x16x32xf32, #tpu.memory_space<vmem>>, vector<1x16x32xf32>,
    return
  }
  func.func @transform_0(%arg0: i32) -> (i32, i32, i32) {
    %c0_i32 = arith.constant 0 : i32
    %c0_i32_0 = arith.constant 0 : i32
    %c0_i32_1 = arith.constant 0 : i32
    return %arg0, %c0_i32, %c0_i32_0 : i32, i32, i32
  }
  func.func @transform_1(%arg0: i32) -> (i32, i32, i32) {
    %c0_i32 = arith.constant 0 : i32
    %c0_i32_0 = arith.constant 0 : i32
    %c0_i32_1 = arith.constant 0 : i32
    return %arg0, %c0_i32, %c0_i32_0 : i32, i32, i32
  }
  func.func @transform_2(%arg0: i32) -> (i32, i32, i32) {
    %c0_i32 = arith.constant 0 : i32
    %c0_i32_0 = arith.constant 0 : i32
    %c0_i32_1 = arith.constant 0 : i32
    return %arg0, %c0_i32, %c0_i32_0 : i32, i32, i32
  }
}

module attributes {stable_mosaic.version = 11 : i64} {
  func.func @kernel(%arg0: i32, %arg1: i32, %arg2: memref<1x64x32xf32, #tpu.memory_space<vmem>>, %arg3: memref<1x1x32xf32, #tpu.memory_space<vmem>>, %arg4: memref<1x1x32xf32, #tpu.memory_space<vmem>>, %arg5: memref<32x16xbf16, #tpu.memory_space<vmem>>, %arg6: memref<1x16xf32, #tpu.memory_space<vmem>>, %arg7: memref<1x64x16xf32, #tpu.memory_space<vmem>>) attributes {dimension_semantics = [#tpu.dimension_semantics<parallel>, #tpu.dimension_semantics<parallel>], iteration_bounds = array<i64: 2, 1>, scalar_prefetch = 0 : i64, scratch_operands = 0 : i64, tpu.core_type = #tpu.core_type<tc>, window_params = [{transform_indices = @transform_0, window_bounds = array<i64: 1, 64, 32>}, {transform_indices = @transform_1, window_bounds = array<i64: 1, 1, 32>}, {transform_indices = @transform_2, window_bounds = array<i64: 1, 1, 32>}, {pipeline_mode = #tpu.pipeline_mode<synchronous>, transform_indices = @transform_3, window_bounds = array<i64: 32, 16>}, {pipeline_mode = #tpu.pipeline_mode<synchronous>, transform_indices = @transform_4, window_bounds = array<i64: 1, 16>}, {transform_indices = @transform_5, window_bounds = array<i64: 1, 64, 16>}]} {
    %c0 = arith.constant 0 : index
    %c0_0 = arith.constant 0 : index
    %c0_1 = arith.constant 0 : index
    %0 = vector.load %arg2[%c0, %c0_0, %c0_1] : memref<1x64x32xf32, #tpu.memory_space<vmem>>, vector<1x64x32xf32>
    %1 = vector.shape_cast %0 : vector<1x64x32xf32> to vector<64x32xf32>
    %c0_2 = arith.constant 0 : index
    %c0_3 = arith.constant 0 : index
    %c0_4 = arith.constant 0 : index
    %2 = vector.load %arg3[%c0_2, %c0_3, %c0_4] : memref<1x1x32xf32, #tpu.memory_space<vmem>>, vector<1x1x32xf32>
    %3 = vector.shape_cast %2 : vector<1x1x32xf32> to vector<1x32xf32>
    %4 = vector.broadcast %3 : vector<1x32xf32> to vector<64x32xf32>
    %5 = arith.mulf %1, %4 : vector<64x32xf32>
    %c0_5 = arith.constant 0 : index
    %c0_6 = arith.constant 0 : index
    %c0_7 = arith.constant 0 : index
    %6 = vector.load %arg4[%c0_5, %c0_6, %c0_7] : memref<1x1x32xf32, #tpu.memory_space<vmem>>, vector<1x1x32xf32>
    %7 = vector.shape_cast %6 : vector<1x1x32xf32> to vector<1x32xf32>
    %8 = vector.broadcast %7 : vector<1x32xf32> to vector<64x32xf32>
    %9 = arith.addf %5, %8 : vector<64x32xf32>
    %cst = arith.constant 0.000000e+00 : f32
    %10 = vector.broadcast %cst : f32 to vector<64x32xf32>
    %11 = arith.maximumf %9, %10 : vector<64x32xf32>
    %12 = arith.truncf %11 : vector<64x32xf32> to vector<64x32xbf16>
    %c0_8 = arith.constant 0 : index
    %c0_9 = arith.constant 0 : index
    %13 = vector.load %arg5[%c0_8, %c0_9] : memref<32x16xbf16, #tpu.memory_space<vmem>>, vector<32x16xbf16>
    %cst_10 = arith.constant dense<0.000000e+00> : vector<64x16xf32>
    %14 = tpu.matmul %12, %13, %cst_10 {dimension_numbers = #tpu.dot_dimension_numbers<[1], [0], [0], [1], [0, 0, 1, 1], [], []>} : vector<64x32xbf16>, vector<32x16xbf16>, vector<64x16xf32> -> vector<64x16xf32>
    %c0_11 = arith.constant 0 : index
    %c0_12 = arith.constant 0 : index
    %15 = vector.load %arg6[%c0_11, %c0_12] : memref<1x16xf32, #tpu.memory_space<vmem>>, vector<1x16xf32>
    %16 = vector.broadcast %15 : vector<1x16xf32> to vector<64x16xf32>
    %17 = arith.addf %14, %16 : vector<64x16xf32>
    %18 = vector.shape_cast %17 : vector<64x16xf32> to vector<1x64x16xf32>
    %c0_13 = arith.constant 0 : index
    %c0_14 = arith.constant 0 : index
    %c0_15 = arith.constant 0 : index
    %19 = vector.load %arg7[%c0_13, %c0_14, %c0_15] : memref<1x64x16xf32, #tpu.memory_space<vmem>>, vector<1x64x16xf32>
    tpu.vector_store %arg7[%c0_13, %c0_14, %c0_15], %18 {strides = array<i32>} : memref<1x64x16xf32, #tpu.memory_space<vmem>>, vector<1x64x16xf32>,
    return
  }
  func.func @transform_0(%arg0: i32, %arg1: i32) -> (i32, i32, i32) {
    %c0_i32 = arith.constant 0 : i32
    %c0_i32_0 = arith.constant 0 : i32
    return %arg0, %arg1, %c0_i32 : i32, i32, i32
  }
  func.func @transform_1(%arg0: i32, %arg1: i32) -> (i32, i32, i32) {
    %c0_i32 = arith.constant 0 : i32
    %c0_i32_0 = arith.constant 0 : i32
    %c0_i32_1 = arith.constant 0 : i32
    return %arg0, %c0_i32, %c0_i32_0 : i32, i32, i32
  }
  func.func @transform_2(%arg0: i32, %arg1: i32) -> (i32, i32, i32) {
    %c0_i32 = arith.constant 0 : i32
    %c0_i32_0 = arith.constant 0 : i32
    %c0_i32_1 = arith.constant 0 : i32
    return %arg0, %c0_i32, %c0_i32_0 : i32, i32, i32
  }
  func.func @transform_3(%arg0: i32, %arg1: i32) -> (i32, i32) {
    %c0_i32 = arith.constant 0 : i32
    %c0_i32_0 = arith.constant 0 : i32
    %c0_i32_1 = arith.constant 0 : i32
    return %c0_i32, %c0_i32_0 : i32, i32
  }
  func.func @transform_4(%arg0: i32, %arg1: i32) -> (i32, i32) {
    %c0_i32 = arith.constant 0 : i32
    %c0_i32_0 = arith.constant 0 : i32
    %c0_i32_1 = arith.constant 0 : i32
    return %c0_i32, %c0_i32_0 : i32, i32
  }
  func.func @transform_5(%arg0: i32, %arg1: i32) -> (i32, i32, i32) {
    %c0_i32 = arith.constant 0 : i32
    %c0_i32_0 = arith.constant 0 : i32
    return %arg0, %arg1, %c0_i32 : i32, i32, i32
  }
}

module attributes {stable_mosaic.version = 11 : i64} {
  func.func @kernel(%arg0: i32, %arg1: i32, %arg2: memref<1x16x32xf32, #tpu.memory_space<vmem>>, %arg3: memref<32x8xbf16, #tpu.memory_space<vmem>>, %arg4: memref<1x8xf32, #tpu.memory_space<vmem>>, %arg5: memref<1x16x8xf32, #tpu.memory_space<vmem>>) attributes {dimension_semantics = [#tpu.dimension_semantics<parallel>, #tpu.dimension_semantics<parallel>], iteration_bounds = array<i64: 2, 1>, scalar_prefetch = 0 : i64, scratch_operands = 0 : i64, tpu.core_type = #tpu.core_type<tc>, window_params = [{transform_indices = @transform_0, window_bounds = array<i64: 1, 16, 32>}, {pipeline_mode = #tpu.pipeline_mode<synchronous>, transform_indices = @transform_1, window_bounds = array<i64: 32, 8>}, {pipeline_mode = #tpu.pipeline_mode<synchronous>, transform_indices = @transform_2, window_bounds = array<i64: 1, 8>}, {transform_indices = @transform_3, window_bounds = array<i64: 1, 16, 8>}]} {
    %c0 = arith.constant 0 : index
    %c0_0 = arith.constant 0 : index
    %c0_1 = arith.constant 0 : index
    %0 = vector.load %arg2[%c0, %c0_0, %c0_1] : memref<1x16x32xf32, #tpu.memory_space<vmem>>, vector<1x16x32xf32>
    %1 = vector.shape_cast %0 : vector<1x16x32xf32> to vector<16x32xf32>
    %2 = arith.truncf %1 : vector<16x32xf32> to vector<16x32xbf16>
    %c0_2 = arith.constant 0 : index
    %c0_3 = arith.constant 0 : index
    %3 = vector.load %arg3[%c0_2, %c0_3] : memref<32x8xbf16, #tpu.memory_space<vmem>>, vector<32x8xbf16>
    %cst = arith.constant dense<0.000000e+00> : vector<16x8xf32>
    %4 = tpu.matmul %2, %3, %cst {dimension_numbers = #tpu.dot_dimension_numbers<[1], [0], [0], [1], [0, 0, 1, 1], [], []>} : vector<16x32xbf16>, vector<32x8xbf16>, vector<16x8xf32> -> vector<16x8xf32>
    %c0_4 = arith.constant 0 : index
    %c0_5 = arith.constant 0 : index
    %5 = vector.load %arg4[%c0_4, %c0_5] : memref<1x8xf32, #tpu.memory_space<vmem>>, vector<1x8xf32>
    %6 = vector.broadcast %5 : vector<1x8xf32> to vector<16x8xf32>
    %7 = arith.addf %4, %6 : vector<16x8xf32>
    %8 = vector.shape_cast %7 : vector<16x8xf32> to vector<1x16x8xf32>
    %c0_6 = arith.constant 0 : index
    %c0_7 = arith.constant 0 : index
    %c0_8 = arith.constant 0 : index
    %9 = vector.load %arg5[%c0_6, %c0_7, %c0_8] : memref<1x16x8xf32, #tpu.memory_space<vmem>>, vector<1x16x8xf32>
    tpu.vector_store %arg5[%c0_6, %c0_7, %c0_8], %8 {strides = array<i32>} : memref<1x16x8xf32, #tpu.memory_space<vmem>>, vector<1x16x8xf32>,
    return
  }
  func.func @transform_0(%arg0: i32, %arg1: i32) -> (i32, i32, i32) {
    %c0_i32 = arith.constant 0 : i32
    %c0_i32_0 = arith.constant 0 : i32
    return %arg0, %arg1, %c0_i32 : i32, i32, i32
  }
  func.func @transform_1(%arg0: i32, %arg1: i32) -> (i32, i32) {
    %c0_i32 = arith.constant 0 : i32
    %c0_i32_0 = arith.constant 0 : i32
    %c0_i32_1 = arith.constant 0 : i32
    return %c0_i32, %c0_i32_0 : i32, i32
  }
  func.func @transform_2(%arg0: i32, %arg1: i32) -> (i32, i32) {
    %c0_i32 = arith.constant 0 : i32
    %c0_i32_0 = arith.constant 0 : i32
    %c0_i32_1 = arith.constant 0 : i32
    return %c0_i32, %c0_i32_0 : i32, i32
  }
  func.func @transform_3(%arg0: i32, %arg1: i32) -> (i32, i32, i32) {
    %c0_i32 = arith.constant 0 : i32
    %c0_i32_0 = arith.constant 0 : i32
    return %arg0, %arg1, %c0_i32 : i32, i32, i32
  }
}

module attributes {stable_mosaic.version = 11 : i64} {
  func.func @kernel(%arg0: i32, %arg1: i32, %arg2: memref<1x16x8xf32, #tpu.memory_space<vmem>>, %arg3: memref<8x8xbf16, #tpu.memory_space<vmem>>, %arg4: memref<1x8xf32, #tpu.memory_space<vmem>>, %arg5: memref<1x16x8xf32, #tpu.memory_space<vmem>>) attributes {dimension_semantics = [#tpu.dimension_semantics<parallel>, #tpu.dimension_semantics<parallel>], iteration_bounds = array<i64: 2, 1>, scalar_prefetch = 0 : i64, scratch_operands = 0 : i64, tpu.core_type = #tpu.core_type<tc>, window_params = [{transform_indices = @transform_0, window_bounds = array<i64: 1, 16, 8>}, {pipeline_mode = #tpu.pipeline_mode<synchronous>, transform_indices = @transform_1, window_bounds = array<i64: 8, 8>}, {pipeline_mode = #tpu.pipeline_mode<synchronous>, transform_indices = @transform_2, window_bounds = array<i64: 1, 8>}, {transform_indices = @transform_3, window_bounds = array<i64: 1, 16, 8>}]} {
    %c0 = arith.constant 0 : index
    %c0_0 = arith.constant 0 : index
    %c0_1 = arith.constant 0 : index
    %0 = vector.load %arg2[%c0, %c0_0, %c0_1] : memref<1x16x8xf32, #tpu.memory_space<vmem>>, vector<1x16x8xf32>
    %1 = vector.shape_cast %0 : vector<1x16x8xf32> to vector<16x8xf32>
    %2 = arith.truncf %1 : vector<16x8xf32> to vector<16x8xbf16>
    %c0_2 = arith.constant 0 : index
    %c0_3 = arith.constant 0 : index
    %3 = vector.load %arg3[%c0_2, %c0_3] : memref<8x8xbf16, #tpu.memory_space<vmem>>, vector<8x8xbf16>
    %cst = arith.constant dense<0.000000e+00> : vector<16x8xf32>
    %4 = tpu.matmul %2, %3, %cst {dimension_numbers = #tpu.dot_dimension_numbers<[1], [0], [0], [1], [0, 0, 1, 1], [], []>} : vector<16x8xbf16>, vector<8x8xbf16>, vector<16x8xf32> -> vector<16x8xf32>
    %c0_4 = arith.constant 0 : index
    %c0_5 = arith.constant 0 : index
    %5 = vector.load %arg4[%c0_4, %c0_5] : memref<1x8xf32, #tpu.memory_space<vmem>>, vector<1x8xf32>
    %6 = vector.broadcast %5 : vector<1x8xf32> to vector<16x8xf32>
    %7 = arith.addf %4, %6 : vector<16x8xf32>
    %8 = vector.shape_cast %7 : vector<16x8xf32> to vector<1x16x8xf32>
    %c0_6 = arith.constant 0 : index
    %c0_7 = arith.constant 0 : index
    %c0_8 = arith.constant 0 : index
    %9 = vector.load %arg5[%c0_6, %c0_7, %c0_8] : memref<1x16x8xf32, #tpu.memory_space<vmem>>, vector<1x16x8xf32>
    tpu.vector_store %arg5[%c0_6, %c0_7, %c0_8], %8 {strides = array<i32>} : memref<1x16x8xf32, #tpu.memory_space<vmem>>, vector<1x16x8xf32>,
    return
  }
  func.func @transform_0(%arg0: i32, %arg1: i32) -> (i32, i32, i32) {
    %c0_i32 = arith.constant 0 : i32
    %c0_i32_0 = arith.constant 0 : i32
    return %arg0, %arg1, %c0_i32 : i32, i32, i32
  }
  func.func @transform_1(%arg0: i32, %arg1: i32) -> (i32, i32) {
    %c0_i32 = arith.constant 0 : i32
    %c0_i32_0 = arith.constant 0 : i32
    %c0_i32_1 = arith.constant 0 : i32
    return %c0_i32, %c0_i32_0 : i32, i32
  }
  func.func @transform_2(%arg0: i32, %arg1: i32) -> (i32, i32) {
    %c0_i32 = arith.constant 0 : i32
    %c0_i32_0 = arith.constant 0 : i32
    %c0_i32_1 = arith.constant 0 : i32
    return %c0_i32, %c0_i32_0 : i32, i32
  }
  func.func @transform_3(%arg0: i32, %arg1: i32) -> (i32, i32, i32) {
    %c0_i32 = arith.constant 0 : i32
    %c0_i32_0 = arith.constant 0 : i32
    return %arg0, %arg1, %c0_i32 : i32, i32, i32
  }
}

module attributes {stable_mosaic.version = 11 : i64} {
  func.func @kernel(%arg0: i32, %arg1: i32, %arg2: memref<1x16x32xf32, #tpu.memory_space<vmem>>, %arg3: memref<1x1x32xf32, #tpu.memory_space<vmem>>, %arg4: memref<1x1x32xf32, #tpu.memory_space<vmem>>, %arg5: memref<32x8xbf16, #tpu.memory_space<vmem>>, %arg6: memref<1x8xf32, #tpu.memory_space<vmem>>, %arg7: memref<1x16x8xf32, #tpu.memory_space<vmem>>) attributes {dimension_semantics = [#tpu.dimension_semantics<parallel>, #tpu.dimension_semantics<parallel>], iteration_bounds = array<i64: 2, 1>, scalar_prefetch = 0 : i64, scratch_operands = 0 : i64, tpu.core_type = #tpu.core_type<tc>, window_params = [{transform_indices = @transform_0, window_bounds = array<i64: 1, 16, 32>}, {transform_indices = @transform_1, window_bounds = array<i64: 1, 1, 32>}, {transform_indices = @transform_2, window_bounds = array<i64: 1, 1, 32>}, {pipeline_mode = #tpu.pipeline_mode<synchronous>, transform_indices = @transform_3, window_bounds = array<i64: 32, 8>}, {pipeline_mode = #tpu.pipeline_mode<synchronous>, transform_indices = @transform_4, window_bounds = array<i64: 1, 8>}, {transform_indices = @transform_5, window_bounds = array<i64: 1, 16, 8>}]} {
    %c0 = arith.constant 0 : index
    %c0_0 = arith.constant 0 : index
    %c0_1 = arith.constant 0 : index
    %0 = vector.load %arg2[%c0, %c0_0, %c0_1] : memref<1x16x32xf32, #tpu.memory_space<vmem>>, vector<1x16x32xf32>
    %1 = vector.shape_cast %0 : vector<1x16x32xf32> to vector<16x32xf32>
    %c0_2 = arith.constant 0 : index
    %c0_3 = arith.constant 0 : index
    %c0_4 = arith.constant 0 : index
    %2 = vector.load %arg3[%c0_2, %c0_3, %c0_4] : memref<1x1x32xf32, #tpu.memory_space<vmem>>, vector<1x1x32xf32>
    %3 = vector.shape_cast %2 : vector<1x1x32xf32> to vector<1x32xf32>
    %4 = vector.broadcast %3 : vector<1x32xf32> to vector<16x32xf32>
    %5 = arith.mulf %1, %4 : vector<16x32xf32>
    %c0_5 = arith.constant 0 : index
    %c0_6 = arith.constant 0 : index
    %c0_7 = arith.constant 0 : index
    %6 = vector.load %arg4[%c0_5, %c0_6, %c0_7] : memref<1x1x32xf32, #tpu.memory_space<vmem>>, vector<1x1x32xf32>
    %7 = vector.shape_cast %6 : vector<1x1x32xf32> to vector<1x32xf32>
    %8 = vector.broadcast %7 : vector<1x32xf32> to vector<16x32xf32>
    %9 = arith.addf %5, %8 : vector<16x32xf32>
    %cst = arith.constant 0.000000e+00 : f32
    %10 = vector.broadcast %cst : f32 to vector<16x32xf32>
    %11 = arith.maximumf %9, %10 : vector<16x32xf32>
    %12 = arith.truncf %11 : vector<16x32xf32> to vector<16x32xbf16>
    %c0_8 = arith.constant 0 : index
    %c0_9 = arith.constant 0 : index
    %13 = vector.load %arg5[%c0_8, %c0_9] : memref<32x8xbf16, #tpu.memory_space<vmem>>, vector<32x8xbf16>
    %cst_10 = arith.constant dense<0.000000e+00> : vector<16x8xf32>
    %14 = tpu.matmul %12, %13, %cst_10 {dimension_numbers = #tpu.dot_dimension_numbers<[1], [0], [0], [1], [0, 0, 1, 1], [], []>} : vector<16x32xbf16>, vector<32x8xbf16>, vector<16x8xf32> -> vector<16x8xf32>
    %c0_11 = arith.constant 0 : index
    %c0_12 = arith.constant 0 : index
    %15 = vector.load %arg6[%c0_11, %c0_12] : memref<1x8xf32, #tpu.memory_space<vmem>>, vector<1x8xf32>
    %16 = vector.broadcast %15 : vector<1x8xf32> to vector<16x8xf32>
    %17 = arith.addf %14, %16 : vector<16x8xf32>
    %18 = vector.shape_cast %17 : vector<16x8xf32> to vector<1x16x8xf32>
    %c0_13 = arith.constant 0 : index
    %c0_14 = arith.constant 0 : index
    %c0_15 = arith.constant 0 : index
    %19 = vector.load %arg7[%c0_13, %c0_14, %c0_15] : memref<1x16x8xf32, #tpu.memory_space<vmem>>, vector<1x16x8xf32>
    tpu.vector_store %arg7[%c0_13, %c0_14, %c0_15], %18 {strides = array<i32>} : memref<1x16x8xf32, #tpu.memory_space<vmem>>, vector<1x16x8xf32>,
    return
  }
  func.func @transform_0(%arg0: i32, %arg1: i32) -> (i32, i32, i32) {
    %c0_i32 = arith.constant 0 : i32
    %c0_i32_0 = arith.constant 0 : i32
    return %arg0, %arg1, %c0_i32 : i32, i32, i32
  }
  func.func @transform_1(%arg0: i32, %arg1: i32) -> (i32, i32, i32) {
    %c0_i32 = arith.constant 0 : i32
    %c0_i32_0 = arith.constant 0 : i32
    %c0_i32_1 = arith.constant 0 : i32
    return %arg0, %c0_i32, %c0_i32_0 : i32, i32, i32
  }
  func.func @transform_2(%arg0: i32, %arg1: i32) -> (i32, i32, i32) {
    %c0_i32 = arith.constant 0 : i32
    %c0_i32_0 = arith.constant 0 : i32
    %c0_i32_1 = arith.constant 0 : i32
    return %arg0, %c0_i32, %c0_i32_0 : i32, i32, i32
  }
  func.func @transform_3(%arg0: i32, %arg1: i32) -> (i32, i32) {
    %c0_i32 = arith.constant 0 : i32
    %c0_i32_0 = arith.constant 0 : i32
    %c0_i32_1 = arith.constant 0 : i32
    return %c0_i32, %c0_i32_0 : i32, i32
  }
  func.func @transform_4(%arg0: i32, %arg1: i32) -> (i32, i32) {
    %c0_i32 = arith.constant 0 : i32
    %c0_i32_0 = arith.constant 0 : i32
    %c0_i32_1 = arith.constant 0 : i32
    return %c0_i32, %c0_i32_0 : i32, i32
  }
  func.func @transform_5(%arg0: i32, %arg1: i32) -> (i32, i32, i32) {
    %c0_i32 = arith.constant 0 : i32
    %c0_i32_0 = arith.constant 0 : i32
    return %arg0, %arg1, %c0_i32 : i32, i32, i32
  }
}

module attributes {stable_mosaic.version = 11 : i64} {
  func.func @kernel(%arg0: i32, %arg1: i32, %arg2: memref<1x32x4xf32, #tpu.memory_space<vmem>>, %arg3: memref<4x4xbf16, #tpu.memory_space<vmem>>, %arg4: memref<1x4xf32, #tpu.memory_space<vmem>>, %arg5: memref<1x32x4xf32, #tpu.memory_space<vmem>>) attributes {dimension_semantics = [#tpu.dimension_semantics<parallel>, #tpu.dimension_semantics<parallel>], iteration_bounds = array<i64: 2, 1>, scalar_prefetch = 0 : i64, scratch_operands = 0 : i64, tpu.core_type = #tpu.core_type<tc>, window_params = [{transform_indices = @transform_0, window_bounds = array<i64: 1, 32, 4>}, {pipeline_mode = #tpu.pipeline_mode<synchronous>, transform_indices = @transform_1, window_bounds = array<i64: 4, 4>}, {pipeline_mode = #tpu.pipeline_mode<synchronous>, transform_indices = @transform_2, window_bounds = array<i64: 1, 4>}, {transform_indices = @transform_3, window_bounds = array<i64: 1, 32, 4>}]} {
    %c0 = arith.constant 0 : index
    %c0_0 = arith.constant 0 : index
    %c0_1 = arith.constant 0 : index
    %0 = vector.load %arg2[%c0, %c0_0, %c0_1] : memref<1x32x4xf32, #tpu.memory_space<vmem>>, vector<1x32x4xf32>
    %1 = vector.shape_cast %0 : vector<1x32x4xf32> to vector<32x4xf32>
    %2 = arith.truncf %1 : vector<32x4xf32> to vector<32x4xbf16>
    %c0_2 = arith.constant 0 : index
    %c0_3 = arith.constant 0 : index
    %3 = vector.load %arg3[%c0_2, %c0_3] : memref<4x4xbf16, #tpu.memory_space<vmem>>, vector<4x4xbf16>
    %cst = arith.constant dense<0.000000e+00> : vector<32x4xf32>
    %4 = tpu.matmul %2, %3, %cst {dimension_numbers = #tpu.dot_dimension_numbers<[1], [0], [0], [1], [0, 0, 1, 1], [], []>} : vector<32x4xbf16>, vector<4x4xbf16>, vector<32x4xf32> -> vector<32x4xf32>
    %c0_4 = arith.constant 0 : index
    %c0_5 = arith.constant 0 : index
    %5 = vector.load %arg4[%c0_4, %c0_5] : memref<1x4xf32, #tpu.memory_space<vmem>>, vector<1x4xf32>
    %6 = vector.broadcast %5 : vector<1x4xf32> to vector<32x4xf32>
    %7 = arith.addf %4, %6 : vector<32x4xf32>
    %8 = vector.shape_cast %7 : vector<32x4xf32> to vector<1x32x4xf32>
    %c0_6 = arith.constant 0 : index
    %c0_7 = arith.constant 0 : index
    %c0_8 = arith.constant 0 : index
    %9 = vector.load %arg5[%c0_6, %c0_7, %c0_8] : memref<1x32x4xf32, #tpu.memory_space<vmem>>, vector<1x32x4xf32>
    tpu.vector_store %arg5[%c0_6, %c0_7, %c0_8], %8 {strides = array<i32>} : memref<1x32x4xf32, #tpu.memory_space<vmem>>, vector<1x32x4xf32>,
    return
  }
  func.func @transform_0(%arg0: i32, %arg1: i32) -> (i32, i32, i32) {
    %c0_i32 = arith.constant 0 : i32
    %c0_i32_0 = arith.constant 0 : i32
    return %arg0, %arg1, %c0_i32 : i32, i32, i32
  }
  func.func @transform_1(%arg0: i32, %arg1: i32) -> (i32, i32) {
    %c0_i32 = arith.constant 0 : i32
    %c0_i32_0 = arith.constant 0 : i32
    %c0_i32_1 = arith.constant 0 : i32
    return %c0_i32, %c0_i32_0 : i32, i32
  }
  func.func @transform_2(%arg0: i32, %arg1: i32) -> (i32, i32) {
    %c0_i32 = arith.constant 0 : i32
    %c0_i32_0 = arith.constant 0 : i32
    %c0_i32_1 = arith.constant 0 : i32
    return %c0_i32, %c0_i32_0 : i32, i32
  }
  func.func @transform_3(%arg0: i32, %arg1: i32) -> (i32, i32, i32) {
    %c0_i32 = arith.constant 0 : i32
    %c0_i32_0 = arith.constant 0 : i32
    return %arg0, %arg1, %c0_i32 : i32, i32, i32
  }
}

module attributes {stable_mosaic.version = 11 : i64} {
  func.func @kernel(%arg0: i32, %arg1: memref<1x16x32xf32, #tpu.memory_space<vmem>>, %arg2: memref<1x1x32xf32, #tpu.memory_space<vmem>>, %arg3: memref<1x1x32xf32, #tpu.memory_space<vmem>>, %arg4: memref<16x4xbf16, #tpu.memory_space<vmem>>, %arg5: memref<1x4xf32, #tpu.memory_space<vmem>>, %arg6: memref<1x32x4xf32, #tpu.memory_space<vmem>>) attributes {dimension_semantics = [#tpu.dimension_semantics<parallel>], iteration_bounds = array<i64: 2>, scalar_prefetch = 0 : i64, scratch_operands = 0 : i64, tpu.core_type = #tpu.core_type<tc>, window_params = [{transform_indices = @transform_0, window_bounds = array<i64: 1, 16, 32>}, {transform_indices = @transform_1, window_bounds = array<i64: 1, 1, 32>}, {transform_indices = @transform_2, window_bounds = array<i64: 1, 1, 32>}, {pipeline_mode = #tpu.pipeline_mode<synchronous>, transform_indices = @transform_3, window_bounds = array<i64: 16, 4>}, {pipeline_mode = #tpu.pipeline_mode<synchronous>, transform_indices = @transform_4, window_bounds = array<i64: 1, 4>}, {transform_indices = @transform_5, window_bounds = array<i64: 1, 32, 4>}]} {
    %c0 = arith.constant 0 : index
    %c0_0 = arith.constant 0 : index
    %c0_1 = arith.constant 0 : index
    %0 = vector.load %arg1[%c0, %c0_0, %c0_1] : memref<1x16x32xf32, #tpu.memory_space<vmem>>, vector<1x16x32xf32>
    %1 = vector.shape_cast %0 : vector<1x16x32xf32> to vector<16x32xf32>
    %c0_2 = arith.constant 0 : index
    %c0_3 = arith.constant 0 : index
    %c0_4 = arith.constant 0 : index
    %2 = vector.load %arg2[%c0_2, %c0_3, %c0_4] : memref<1x1x32xf32, #tpu.memory_space<vmem>>, vector<1x1x32xf32>
    %3 = vector.shape_cast %2 : vector<1x1x32xf32> to vector<1x32xf32>
    %4 = vector.broadcast %3 : vector<1x32xf32> to vector<16x32xf32>
    %5 = arith.mulf %1, %4 : vector<16x32xf32>
    %c0_5 = arith.constant 0 : index
    %c0_6 = arith.constant 0 : index
    %c0_7 = arith.constant 0 : index
    %6 = vector.load %arg3[%c0_5, %c0_6, %c0_7] : memref<1x1x32xf32, #tpu.memory_space<vmem>>, vector<1x1x32xf32>
    %7 = vector.shape_cast %6 : vector<1x1x32xf32> to vector<1x32xf32>
    %8 = vector.broadcast %7 : vector<1x32xf32> to vector<16x32xf32>
    %9 = arith.addf %5, %8 : vector<16x32xf32>
    %cst = arith.constant 0.000000e+00 : f32
    %10 = vector.broadcast %cst : f32 to vector<16x32xf32>
    %11 = arith.maximumf %9, %10 : vector<16x32xf32>
    %12 = arith.truncf %11 : vector<16x32xf32> to vector<16x32xbf16>
    %c0_8 = arith.constant 0 : index
    %c0_9 = arith.constant 0 : index
    %13 = vector.load %arg4[%c0_8, %c0_9] : memref<16x4xbf16, #tpu.memory_space<vmem>>, vector<16x4xbf16>
    %cst_10 = arith.constant dense<0.000000e+00> : vector<32x4xf32>
    %14 = tpu.matmul %12, %13, %cst_10 {dimension_numbers = #tpu.dot_dimension_numbers<[0], [0], [1], [1], [0, 1, 1, 1], [], []>} : vector<16x32xbf16>, vector<16x4xbf16>, vector<32x4xf32> -> vector<32x4xf32>
    %c0_11 = arith.constant 0 : index
    %c0_12 = arith.constant 0 : index
    %15 = vector.load %arg5[%c0_11, %c0_12] : memref<1x4xf32, #tpu.memory_space<vmem>>, vector<1x4xf32>
    %16 = vector.broadcast %15 : vector<1x4xf32> to vector<32x4xf32>
    %17 = arith.addf %14, %16 : vector<32x4xf32>
    %18 = vector.shape_cast %17 : vector<32x4xf32> to vector<1x32x4xf32>
    %c0_13 = arith.constant 0 : index
    %c0_14 = arith.constant 0 : index
    %c0_15 = arith.constant 0 : index
    %19 = vector.load %arg6[%c0_13, %c0_14, %c0_15] : memref<1x32x4xf32, #tpu.memory_space<vmem>>, vector<1x32x4xf32>
    tpu.vector_store %arg6[%c0_13, %c0_14, %c0_15], %18 {strides = array<i32>} : memref<1x32x4xf32, #tpu.memory_space<vmem>>, vector<1x32x4xf32>,
    return
  }
  func.func @transform_0(%arg0: i32) -> (i32, i32, i32) {
    %c0_i32 = arith.constant 0 : i32
    %c0_i32_0 = arith.constant 0 : i32
    %c0_i32_1 = arith.constant 0 : i32
    return %arg0, %c0_i32, %c0_i32_0 : i32, i32, i32
  }
  func.func @transform_1(%arg0: i32) -> (i32, i32, i32) {
    %c0_i32 = arith.constant 0 : i32
    %c0_i32_0 = arith.constant 0 : i32
    %c0_i32_1 = arith.constant 0 : i32
    return %arg0, %c0_i32, %c0_i32_0 : i32, i32, i32
  }
  func.func @transform_2(%arg0: i32) -> (i32, i32, i32) {
    %c0_i32 = arith.constant 0 : i32
    %c0_i32_0 = arith.constant 0 : i32
    %c0_i32_1 = arith.constant 0 : i32
    return %arg0, %c0_i32, %c0_i32_0 : i32, i32, i32
  }
  func.func @transform_3(%arg0: i32) -> (i32, i32) {
    %c0_i32 = arith.constant 0 : i32
    %c0_i32_0 = arith.constant 0 : i32
    %c0_i32_1 = arith.constant 0 : i32
    return %c0_i32, %c0_i32_0 : i32, i32
  }
  func.func @transform_4(%arg0: i32) -> (i32, i32) {
    %c0_i32 = arith.constant 0 : i32
    %c0_i32_0 = arith.constant 0 : i32
    %c0_i32_1 = arith.constant 0 : i32
    return %c0_i32, %c0_i32_0 : i32, i32
  }
  func.func @transform_5(%arg0: i32) -> (i32, i32, i32) {
    %c0_i32 = arith.constant 0 : i32
    %c0_i32_0 = arith.constant 0 : i32
    %c0_i32_1 = arith.constant 0 : i32
    return %arg0, %c0_i32, %c0_i32_0 : i32, i32, i32
  }
}

module attributes {stable_mosaic.version = 11 : i64} {
  func.func @kernel(%arg0: i32, %arg1: memref<1x32x16xf32, #tpu.memory_space<vmem>>, %arg2: memref<1x1x16xf32, #tpu.memory_space<vmem>>, %arg3: memref<1x1x16xf32, #tpu.memory_space<vmem>>, %arg4: memref<32x8xbf16, #tpu.memory_space<vmem>>, %arg5: memref<1x8xf32, #tpu.memory_space<vmem>>, %arg6: memref<1x16x8xf32, #tpu.memory_space<vmem>>) attributes {dimension_semantics = [#tpu.dimension_semantics<parallel>], iteration_bounds = array<i64: 2>, scalar_prefetch = 0 : i64, scratch_operands = 0 : i64, tpu.core_type = #tpu.core_type<tc>, window_params = [{transform_indices = @transform_0, window_bounds = array<i64: 1, 32, 16>}, {transform_indices = @transform_1, window_bounds = array<i64: 1, 1, 16>}, {transform_indices = @transform_2, window_bounds = array<i64: 1, 1, 16>}, {pipeline_mode = #tpu.pipeline_mode<synchronous>, transform_indices = @transform_3, window_bounds = array<i64: 32, 8>}, {pipeline_mode = #tpu.pipeline_mode<synchronous>, transform_indices = @transform_4, window_bounds = array<i64: 1, 8>}, {transform_indices = @transform_5, window_bounds = array<i64: 1, 16, 8>}]} {
    %c0 = arith.constant 0 : index
    %c0_0 = arith.constant 0 : index
    %c0_1 = arith.constant 0 : index
    %0 = vector.load %arg1[%c0, %c0_0, %c0_1] : memref<1x32x16xf32, #tpu.memory_space<vmem>>, vector<1x32x16xf32>
    %1 = vector.shape_cast %0 : vector<1x32x16xf32> to vector<32x16xf32>
    %c0_2 = arith.constant 0 : index
    %c0_3 = arith.constant 0 : index
    %c0_4 = arith.constant 0 : index
    %2 = vector.load %arg2[%c0_2, %c0_3, %c0_4] : memref<1x1x16xf32, #tpu.memory_space<vmem>>, vector<1x1x16xf32>
    %3 = vector.shape_cast %2 : vector<1x1x16xf32> to vector<1x16xf32>
    %4 = vector.broadcast %3 : vector<1x16xf32> to vector<32x16xf32>
    %5 = arith.mulf %1, %4 : vector<32x16xf32>
    %c0_5 = arith.constant 0 : index
    %c0_6 = arith.constant 0 : index
    %c0_7 = arith.constant 0 : index
    %6 = vector.load %arg3[%c0_5, %c0_6, %c0_7] : memref<1x1x16xf32, #tpu.memory_space<vmem>>, vector<1x1x16xf32>
    %7 = vector.shape_cast %6 : vector<1x1x16xf32> to vector<1x16xf32>
    %8 = vector.broadcast %7 : vector<1x16xf32> to vector<32x16xf32>
    %9 = arith.addf %5, %8 : vector<32x16xf32>
    %cst = arith.constant 0.000000e+00 : f32
    %10 = vector.broadcast %cst : f32 to vector<32x16xf32>
    %11 = arith.maximumf %9, %10 : vector<32x16xf32>
    %12 = arith.truncf %11 : vector<32x16xf32> to vector<32x16xbf16>
    %c0_8 = arith.constant 0 : index
    %c0_9 = arith.constant 0 : index
    %13 = vector.load %arg4[%c0_8, %c0_9] : memref<32x8xbf16, #tpu.memory_space<vmem>>, vector<32x8xbf16>
    %cst_10 = arith.constant dense<0.000000e+00> : vector<16x8xf32>
    %14 = tpu.matmul %12, %13, %cst_10 {dimension_numbers = #tpu.dot_dimension_numbers<[0], [0], [1], [1], [0, 1, 1, 1], [], []>} : vector<32x16xbf16>, vector<32x8xbf16>, vector<16x8xf32> -> vector<16x8xf32>
    %c0_11 = arith.constant 0 : index
    %c0_12 = arith.constant 0 : index
    %15 = vector.load %arg5[%c0_11, %c0_12] : memref<1x8xf32, #tpu.memory_space<vmem>>, vector<1x8xf32>
    %16 = vector.broadcast %15 : vector<1x8xf32> to vector<16x8xf32>
    %17 = arith.addf %14, %16 : vector<16x8xf32>
    %18 = vector.shape_cast %17 : vector<16x8xf32> to vector<1x16x8xf32>
    %c0_13 = arith.constant 0 : index
    %c0_14 = arith.constant 0 : index
    %c0_15 = arith.constant 0 : index
    %19 = vector.load %arg6[%c0_13, %c0_14, %c0_15] : memref<1x16x8xf32, #tpu.memory_space<vmem>>, vector<1x16x8xf32>
    tpu.vector_store %arg6[%c0_13, %c0_14, %c0_15], %18 {strides = array<i32>} : memref<1x16x8xf32, #tpu.memory_space<vmem>>, vector<1x16x8xf32>,
    return
  }
  func.func @transform_0(%arg0: i32) -> (i32, i32, i32) {
    %c0_i32 = arith.constant 0 : i32
    %c0_i32_0 = arith.constant 0 : i32
    %c0_i32_1 = arith.constant 0 : i32
    return %arg0, %c0_i32, %c0_i32_0 : i32, i32, i32
  }
  func.func @transform_1(%arg0: i32) -> (i32, i32, i32) {
    %c0_i32 = arith.constant 0 : i32
    %c0_i32_0 = arith.constant 0 : i32
    %c0_i32_1 = arith.constant 0 : i32
    return %arg0, %c0_i32, %c0_i32_0 : i32, i32, i32
  }
  func.func @transform_2(%arg0: i32) -> (i32, i32, i32) {
    %c0_i32 = arith.constant 0 : i32
    %c0_i32_0 = arith.constant 0 : i32
    %c0_i32_1 = arith.constant 0 : i32
    return %arg0, %c0_i32, %c0_i32_0 : i32, i32, i32
  }
  func.func @transform_3(%arg0: i32) -> (i32, i32) {
    %c0_i32 = arith.constant 0 : i32
    %c0_i32_0 = arith.constant 0 : i32
    %c0_i32_1 = arith.constant 0 : i32
    return %c0_i32, %c0_i32_0 : i32, i32
  }
  func.func @transform_4(%arg0: i32) -> (i32, i32) {
    %c0_i32 = arith.constant 0 : i32
    %c0_i32_0 = arith.constant 0 : i32
    %c0_i32_1 = arith.constant 0 : i32
    return %c0_i32, %c0_i32_0 : i32, i32
  }
  func.func @transform_5(%arg0: i32) -> (i32, i32, i32) {
    %c0_i32 = arith.constant 0 : i32
    %c0_i32_0 = arith.constant 0 : i32
    %c0_i32_1 = arith.constant 0 : i32
    return %arg0, %c0_i32, %c0_i32_0 : i32, i32, i32
  }
}

module attributes {stable_mosaic.version = 11 : i64} {
  func.func @_unpool_kernel(%arg0: i32, %arg1: i32, %arg2: memref<1x64x16xf32, #tpu.memory_space<vmem>>, %arg3: memref<1x16x32xbf16, #tpu.memory_space<vmem>>, %arg4: memref<1x64x32xf32, #tpu.memory_space<vmem>>) attributes {dimension_semantics = [#tpu.dimension_semantics<parallel>, #tpu.dimension_semantics<parallel>], iteration_bounds = array<i64: 2, 1>, scalar_prefetch = 0 : i64, scratch_operands = 0 : i64, tpu.core_type = #tpu.core_type<tc>, window_params = [{transform_indices = @transform_0, window_bounds = array<i64: 1, 64, 16>}, {transform_indices = @transform_1, window_bounds = array<i64: 1, 16, 32>}, {transform_indices = @transform_2, window_bounds = array<i64: 1, 64, 32>}]} {
    %c0 = arith.constant 0 : index
    %c0_0 = arith.constant 0 : index
    %c0_1 = arith.constant 0 : index
    %0 = vector.load %arg2[%c0, %c0_0, %c0_1] : memref<1x64x16xf32, #tpu.memory_space<vmem>>, vector<1x64x16xf32>
    %1 = vector.shape_cast %0 : vector<1x64x16xf32> to vector<64x16xf32>
    %cst = arith.constant dense<0xFF800000> : vector<64xf32>
    %2 = vector.multi_reduction <maximumf>, %1, %cst [1] : vector<64x16xf32> to vector<64xf32>
    %3 = vector.shape_cast %2 : vector<64xf32> to vector<64x1xf32>
    %4 = vector.broadcast %3 : vector<64x1xf32> to vector<64x16xf32>
    %5 = arith.subf %1, %4 : vector<64x16xf32>
    %6 = math.exp %5 : vector<64x16xf32>
    %cst_2 = arith.constant dense<0.000000e+00> : vector<64xf32>
    %7 = vector.multi_reduction <add>, %6, %cst_2 [1] : vector<64x16xf32> to vector<64xf32>
    %8 = vector.shape_cast %7 : vector<64xf32> to vector<64x1xf32>
    %9 = vector.broadcast %8 : vector<64x1xf32> to vector<64x16xf32>
    %10 = arith.divf %6, %9 : vector<64x16xf32>
    %11 = arith.truncf %10 : vector<64x16xf32> to vector<64x16xbf16>
    %c0_3 = arith.constant 0 : index
    %c0_4 = arith.constant 0 : index
    %c0_5 = arith.constant 0 : index
    %12 = vector.load %arg3[%c0_3, %c0_4, %c0_5] : memref<1x16x32xbf16, #tpu.memory_space<vmem>>, vector<1x16x32xbf16>
    %13 = vector.shape_cast %12 : vector<1x16x32xbf16> to vector<16x32xbf16>
    %cst_6 = arith.constant dense<0.000000e+00> : vector<64x32xf32>
    %14 = tpu.matmul %11, %13, %cst_6 {dimension_numbers = #tpu.dot_dimension_numbers<[1], [0], [0], [1], [0, 0, 1, 1], [], []>} : vector<64x16xbf16>, vector<16x32xbf16>, vector<64x32xf32> -> vector<64x32xf32>
    %15 = vector.shape_cast %14 : vector<64x32xf32> to vector<1x64x32xf32>
    %c0_7 = arith.constant 0 : index
    %c0_8 = arith.constant 0 : index
    %c0_9 = arith.constant 0 : index
    %16 = vector.load %arg4[%c0_7, %c0_8, %c0_9] : memref<1x64x32xf32, #tpu.memory_space<vmem>>, vector<1x64x32xf32>
    tpu.vector_store %arg4[%c0_7, %c0_8, %c0_9], %15 {strides = array<i32>} : memref<1x64x32xf32, #tpu.memory_space<vmem>>, vector<1x64x32xf32>,
    return
  }
  func.func @transform_0(%arg0: i32, %arg1: i32) -> (i32, i32, i32) {
    %c0_i32 = arith.constant 0 : i32
    %c0_i32_0 = arith.constant 0 : i32
    return %arg0, %arg1, %c0_i32 : i32, i32, i32
  }
  func.func @transform_1(%arg0: i32, %arg1: i32) -> (i32, i32, i32) {
    %c0_i32 = arith.constant 0 : i32
    %c0_i32_0 = arith.constant 0 : i32
    %c0_i32_1 = arith.constant 0 : i32
    return %arg0, %c0_i32, %c0_i32_0 : i32, i32, i32
  }
  func.func @transform_2(%arg0: i32, %arg1: i32) -> (i32, i32, i32) {
    %c0_i32 = arith.constant 0 : i32
    %c0_i32_0 = arith.constant 0 : i32
    return %arg0, %arg1, %c0_i32 : i32, i32, i32
  }
}

module attributes {stable_mosaic.version = 11 : i64} {
  func.func @kernel(%arg0: i32, %arg1: i32, %arg2: memref<1x64x64xf32, #tpu.memory_space<vmem>>, %arg3: memref<64x16xbf16, #tpu.memory_space<vmem>>, %arg4: memref<1x16xf32, #tpu.memory_space<vmem>>, %arg5: memref<1x64x16xf32, #tpu.memory_space<vmem>>) attributes {dimension_semantics = [#tpu.dimension_semantics<parallel>, #tpu.dimension_semantics<parallel>], iteration_bounds = array<i64: 2, 1>, scalar_prefetch = 0 : i64, scratch_operands = 0 : i64, tpu.core_type = #tpu.core_type<tc>, window_params = [{transform_indices = @transform_0, window_bounds = array<i64: 1, 64, 64>}, {pipeline_mode = #tpu.pipeline_mode<synchronous>, transform_indices = @transform_1, window_bounds = array<i64: 64, 16>}, {pipeline_mode = #tpu.pipeline_mode<synchronous>, transform_indices = @transform_2, window_bounds = array<i64: 1, 16>}, {transform_indices = @transform_3, window_bounds = array<i64: 1, 64, 16>}]} {
    %c0 = arith.constant 0 : index
    %c0_0 = arith.constant 0 : index
    %c0_1 = arith.constant 0 : index
    %0 = vector.load %arg2[%c0, %c0_0, %c0_1] : memref<1x64x64xf32, #tpu.memory_space<vmem>>, vector<1x64x64xf32>
    %1 = vector.shape_cast %0 : vector<1x64x64xf32> to vector<64x64xf32>
    %2 = arith.truncf %1 : vector<64x64xf32> to vector<64x64xbf16>
    %c0_2 = arith.constant 0 : index
    %c0_3 = arith.constant 0 : index
    %3 = vector.load %arg3[%c0_2, %c0_3] : memref<64x16xbf16, #tpu.memory_space<vmem>>, vector<64x16xbf16>
    %cst = arith.constant dense<0.000000e+00> : vector<64x16xf32>
    %4 = tpu.matmul %2, %3, %cst {dimension_numbers = #tpu.dot_dimension_numbers<[1], [0], [0], [1], [0, 0, 1, 1], [], []>} : vector<64x64xbf16>, vector<64x16xbf16>, vector<64x16xf32> -> vector<64x16xf32>
    %c0_4 = arith.constant 0 : index
    %c0_5 = arith.constant 0 : index
    %5 = vector.load %arg4[%c0_4, %c0_5] : memref<1x16xf32, #tpu.memory_space<vmem>>, vector<1x16xf32>
    %6 = vector.broadcast %5 : vector<1x16xf32> to vector<64x16xf32>
    %7 = arith.addf %4, %6 : vector<64x16xf32>
    %8 = vector.shape_cast %7 : vector<64x16xf32> to vector<1x64x16xf32>
    %c0_6 = arith.constant 0 : index
    %c0_7 = arith.constant 0 : index
    %c0_8 = arith.constant 0 : index
    %9 = vector.load %arg5[%c0_6, %c0_7, %c0_8] : memref<1x64x16xf32, #tpu.memory_space<vmem>>, vector<1x64x16xf32>
    tpu.vector_store %arg5[%c0_6, %c0_7, %c0_8], %8 {strides = array<i32>} : memref<1x64x16xf32, #tpu.memory_space<vmem>>, vector<1x64x16xf32>,
    return
  }
  func.func @transform_0(%arg0: i32, %arg1: i32) -> (i32, i32, i32) {
    %c0_i32 = arith.constant 0 : i32
    %c0_i32_0 = arith.constant 0 : i32
    return %arg0, %arg1, %c0_i32 : i32, i32, i32
  }
  func.func @transform_1(%arg0: i32, %arg1: i32) -> (i32, i32) {
    %c0_i32 = arith.constant 0 : i32
    %c0_i32_0 = arith.constant 0 : i32
    %c0_i32_1 = arith.constant 0 : i32
    return %c0_i32, %c0_i32_0 : i32, i32
  }
  func.func @transform_2(%arg0: i32, %arg1: i32) -> (i32, i32) {
    %c0_i32 = arith.constant 0 : i32
    %c0_i32_0 = arith.constant 0 : i32
    %c0_i32_1 = arith.constant 0 : i32
    return %c0_i32, %c0_i32_0 : i32, i32
  }
  func.func @transform_3(%arg0: i32, %arg1: i32) -> (i32, i32, i32) {
    %c0_i32 = arith.constant 0 : i32
    %c0_i32_0 = arith.constant 0 : i32
    return %arg0, %arg1, %c0_i32 : i32, i32, i32
  }
}

module attributes {stable_mosaic.version = 11 : i64} {
  func.func @kernel(%arg0: i32, %arg1: i32, %arg2: memref<1x64x16xf32, #tpu.memory_space<vmem>>, %arg3: memref<1x1x16xf32, #tpu.memory_space<vmem>>, %arg4: memref<1x1x16xf32, #tpu.memory_space<vmem>>, %arg5: memref<16x64xbf16, #tpu.memory_space<vmem>>, %arg6: memref<1x64xf32, #tpu.memory_space<vmem>>, %arg7: memref<1x64x64xf32, #tpu.memory_space<vmem>>) attributes {dimension_semantics = [#tpu.dimension_semantics<parallel>, #tpu.dimension_semantics<parallel>], iteration_bounds = array<i64: 2, 1>, scalar_prefetch = 0 : i64, scratch_operands = 0 : i64, tpu.core_type = #tpu.core_type<tc>, window_params = [{transform_indices = @transform_0, window_bounds = array<i64: 1, 64, 16>}, {transform_indices = @transform_1, window_bounds = array<i64: 1, 1, 16>}, {transform_indices = @transform_2, window_bounds = array<i64: 1, 1, 16>}, {pipeline_mode = #tpu.pipeline_mode<synchronous>, transform_indices = @transform_3, window_bounds = array<i64: 16, 64>}, {pipeline_mode = #tpu.pipeline_mode<synchronous>, transform_indices = @transform_4, window_bounds = array<i64: 1, 64>}, {transform_indices = @transform_5, window_bounds = array<i64: 1, 64, 64>}]} {
    %c0 = arith.constant 0 : index
    %c0_0 = arith.constant 0 : index
    %c0_1 = arith.constant 0 : index
    %0 = vector.load %arg2[%c0, %c0_0, %c0_1] : memref<1x64x16xf32, #tpu.memory_space<vmem>>, vector<1x64x16xf32>
    %1 = vector.shape_cast %0 : vector<1x64x16xf32> to vector<64x16xf32>
    %c0_2 = arith.constant 0 : index
    %c0_3 = arith.constant 0 : index
    %c0_4 = arith.constant 0 : index
    %2 = vector.load %arg3[%c0_2, %c0_3, %c0_4] : memref<1x1x16xf32, #tpu.memory_space<vmem>>, vector<1x1x16xf32>
    %3 = vector.shape_cast %2 : vector<1x1x16xf32> to vector<1x16xf32>
    %4 = vector.broadcast %3 : vector<1x16xf32> to vector<64x16xf32>
    %5 = arith.mulf %1, %4 : vector<64x16xf32>
    %c0_5 = arith.constant 0 : index
    %c0_6 = arith.constant 0 : index
    %c0_7 = arith.constant 0 : index
    %6 = vector.load %arg4[%c0_5, %c0_6, %c0_7] : memref<1x1x16xf32, #tpu.memory_space<vmem>>, vector<1x1x16xf32>
    %7 = vector.shape_cast %6 : vector<1x1x16xf32> to vector<1x16xf32>
    %8 = vector.broadcast %7 : vector<1x16xf32> to vector<64x16xf32>
    %9 = arith.addf %5, %8 : vector<64x16xf32>
    %cst = arith.constant 0.000000e+00 : f32
    %10 = vector.broadcast %cst : f32 to vector<64x16xf32>
    %11 = arith.maximumf %9, %10 : vector<64x16xf32>
    %12 = arith.truncf %11 : vector<64x16xf32> to vector<64x16xbf16>
    %c0_8 = arith.constant 0 : index
    %c0_9 = arith.constant 0 : index
    %13 = vector.load %arg5[%c0_8, %c0_9] : memref<16x64xbf16, #tpu.memory_space<vmem>>, vector<16x64xbf16>
    %cst_10 = arith.constant dense<0.000000e+00> : vector<64x64xf32>
    %14 = tpu.matmul %12, %13, %cst_10 {dimension_numbers = #tpu.dot_dimension_numbers<[1], [0], [0], [1], [0, 0, 1, 1], [], []>} : vector<64x16xbf16>, vector<16x64xbf16>, vector<64x64xf32> -> vector<64x64xf32>
    %c0_11 = arith.constant 0 : index
    %c0_12 = arith.constant 0 : index
    %15 = vector.load %arg6[%c0_11, %c0_12] : memref<1x64xf32, #tpu.memory_space<vmem>>, vector<1x64xf32>
    %16 = vector.broadcast %15 : vector<1x64xf32> to vector<64x64xf32>
    %17 = arith.addf %14, %16 : vector<64x64xf32>
    %18 = vector.shape_cast %17 : vector<64x64xf32> to vector<1x64x64xf32>
    %c0_13 = arith.constant 0 : index
    %c0_14 = arith.constant 0 : index
    %c0_15 = arith.constant 0 : index
    %19 = vector.load %arg7[%c0_13, %c0_14, %c0_15] : memref<1x64x64xf32, #tpu.memory_space<vmem>>, vector<1x64x64xf32>
    tpu.vector_store %arg7[%c0_13, %c0_14, %c0_15], %18 {strides = array<i32>} : memref<1x64x64xf32, #tpu.memory_space<vmem>>, vector<1x64x64xf32>,
    return
  }
  func.func @transform_0(%arg0: i32, %arg1: i32) -> (i32, i32, i32) {
    %c0_i32 = arith.constant 0 : i32
    %c0_i32_0 = arith.constant 0 : i32
    return %arg0, %arg1, %c0_i32 : i32, i32, i32
  }
  func.func @transform_1(%arg0: i32, %arg1: i32) -> (i32, i32, i32) {
    %c0_i32 = arith.constant 0 : i32
    %c0_i32_0 = arith.constant 0 : i32
    %c0_i32_1 = arith.constant 0 : i32
    return %arg0, %c0_i32, %c0_i32_0 : i32, i32, i32
  }
  func.func @transform_2(%arg0: i32, %arg1: i32) -> (i32, i32, i32) {
    %c0_i32 = arith.constant 0 : i32
    %c0_i32_0 = arith.constant 0 : i32
    %c0_i32_1 = arith.constant 0 : i32
    return %arg0, %c0_i32, %c0_i32_0 : i32, i32, i32
  }
  func.func @transform_3(%arg0: i32, %arg1: i32) -> (i32, i32) {
    %c0_i32 = arith.constant 0 : i32
    %c0_i32_0 = arith.constant 0 : i32
    %c0_i32_1 = arith.constant 0 : i32
    return %c0_i32, %c0_i32_0 : i32, i32
  }
  func.func @transform_4(%arg0: i32, %arg1: i32) -> (i32, i32) {
    %c0_i32 = arith.constant 0 : i32
    %c0_i32_0 = arith.constant 0 : i32
    %c0_i32_1 = arith.constant 0 : i32
    return %c0_i32, %c0_i32_0 : i32, i32
  }
  func.func @transform_5(%arg0: i32, %arg1: i32) -> (i32, i32, i32) {
    %c0_i32 = arith.constant 0 : i32
    %c0_i32_0 = arith.constant 0 : i32
    return %arg0, %arg1, %c0_i32 : i32, i32, i32
  }
}

module attributes {stable_mosaic.version = 11 : i64} {
  func.func @_aff_apply_kernel(%arg0: i32, %arg1: i32, %arg2: memref<1x64x64xf32, #tpu.memory_space<vmem>>, %arg3: memref<1x1x64xf32, #tpu.memory_space<vmem>>, %arg4: memref<1x1x64xf32, #tpu.memory_space<vmem>>, %arg5: memref<1x1x64xf32, #tpu.memory_space<vmem>>, %arg6: memref<1x64x64xf32, #tpu.memory_space<vmem>>, %arg7: memref<1x64x64xf32, #tpu.memory_space<vmem>>) attributes {dimension_semantics = [#tpu.dimension_semantics<parallel>, #tpu.dimension_semantics<parallel>], iteration_bounds = array<i64: 2, 1>, scalar_prefetch = 0 : i64, scratch_operands = 0 : i64, tpu.core_type = #tpu.core_type<tc>, window_params = [{transform_indices = @transform_0, window_bounds = array<i64: 1, 64, 64>}, {transform_indices = @transform_1, window_bounds = array<i64: 1, 1, 64>}, {transform_indices = @transform_2, window_bounds = array<i64: 1, 1, 64>}, {transform_indices = @transform_3, window_bounds = array<i64: 1, 1, 64>}, {transform_indices = @transform_4, window_bounds = array<i64: 1, 64, 64>}, {transform_indices = @transform_5, window_bounds = array<i64: 1, 64, 64>}]} {
    %c0 = arith.constant 0 : index
    %c0_0 = arith.constant 0 : index
    %c0_1 = arith.constant 0 : index
    %0 = vector.load %arg2[%c0, %c0_0, %c0_1] : memref<1x64x64xf32, #tpu.memory_space<vmem>>, vector<1x64x64xf32>
    %1 = vector.shape_cast %0 : vector<1x64x64xf32> to vector<64x64xf32>
    %c0_2 = arith.constant 0 : index
    %c0_3 = arith.constant 0 : index
    %c0_4 = arith.constant 0 : index
    %2 = vector.load %arg3[%c0_2, %c0_3, %c0_4] : memref<1x1x64xf32, #tpu.memory_space<vmem>>, vector<1x1x64xf32>
    %3 = vector.shape_cast %2 : vector<1x1x64xf32> to vector<1x64xf32>
    %4 = vector.broadcast %3 : vector<1x64xf32> to vector<64x64xf32>
    %5 = arith.mulf %1, %4 : vector<64x64xf32>
    %c0_5 = arith.constant 0 : index
    %c0_6 = arith.constant 0 : index
    %c0_7 = arith.constant 0 : index
    %6 = vector.load %arg4[%c0_5, %c0_6, %c0_7] : memref<1x1x64xf32, #tpu.memory_space<vmem>>, vector<1x1x64xf32>
    %7 = vector.shape_cast %6 : vector<1x1x64xf32> to vector<1x64xf32>
    %8 = vector.broadcast %7 : vector<1x64xf32> to vector<64x64xf32>
    %9 = arith.addf %5, %8 : vector<64x64xf32>
    %c0_8 = arith.constant 0 : index
    %c0_9 = arith.constant 0 : index
    %c0_10 = arith.constant 0 : index
    %10 = vector.load %arg5[%c0_8, %c0_9, %c0_10] : memref<1x1x64xf32, #tpu.memory_space<vmem>>, vector<1x1x64xf32>
    %11 = vector.shape_cast %10 : vector<1x1x64xf32> to vector<1x64xf32>
    %12 = vector.broadcast %11 : vector<1x64xf32> to vector<64x64xf32>
    %13 = arith.addf %9, %12 : vector<64x64xf32>
    %14 = arith.negf %13 : vector<64x64xf32>
    %15 = math.exp %14 : vector<64x64xf32>
    %cst = arith.constant 1.000000e+00 : f32
    %16 = vector.broadcast %cst : f32 to vector<64x64xf32>
    %17 = arith.addf %16, %15 : vector<64x64xf32>
    %18 = arith.divf %16, %17 : vector<64x64xf32>
    %c0_11 = arith.constant 0 : index
    %c0_12 = arith.constant 0 : index
    %c0_13 = arith.constant 0 : index
    %19 = vector.load %arg6[%c0_11, %c0_12, %c0_13] : memref<1x64x64xf32, #tpu.memory_space<vmem>>, vector<1x64x64xf32>
    %20 = vector.shape_cast %19 : vector<1x64x64xf32> to vector<64x64xf32>
    %21 = arith.mulf %18, %20 : vector<64x64xf32>
    %22 = vector.shape_cast %21 : vector<64x64xf32> to vector<1x64x64xf32>
    %c0_14 = arith.constant 0 : index
    %c0_15 = arith.constant 0 : index
    %c0_16 = arith.constant 0 : index
    %23 = vector.load %arg7[%c0_14, %c0_15, %c0_16] : memref<1x64x64xf32, #tpu.memory_space<vmem>>, vector<1x64x64xf32>
    tpu.vector_store %arg7[%c0_14, %c0_15, %c0_16], %22 {strides = array<i32>} : memref<1x64x64xf32, #tpu.memory_space<vmem>>, vector<1x64x64xf32>,
    return
  }
  func.func @transform_0(%arg0: i32, %arg1: i32) -> (i32, i32, i32) {
    %c0_i32 = arith.constant 0 : i32
    %c0_i32_0 = arith.constant 0 : i32
    return %arg0, %arg1, %c0_i32 : i32, i32, i32
  }
  func.func @transform_1(%arg0: i32, %arg1: i32) -> (i32, i32, i32) {
    %c0_i32 = arith.constant 0 : i32
    %c0_i32_0 = arith.constant 0 : i32
    %c0_i32_1 = arith.constant 0 : i32
    return %arg0, %c0_i32, %c0_i32_0 : i32, i32, i32
  }
  func.func @transform_2(%arg0: i32, %arg1: i32) -> (i32, i32, i32) {
    %c0_i32 = arith.constant 0 : i32
    %c0_i32_0 = arith.constant 0 : i32
    %c0_i32_1 = arith.constant 0 : i32
    return %arg0, %c0_i32, %c0_i32_0 : i32, i32, i32
  }
  func.func @transform_3(%arg0: i32, %arg1: i32) -> (i32, i32, i32) {
    %c0_i32 = arith.constant 0 : i32
    %c0_i32_0 = arith.constant 0 : i32
    %c0_i32_1 = arith.constant 0 : i32
    return %arg0, %c0_i32, %c0_i32_0 : i32, i32, i32
  }
  func.func @transform_4(%arg0: i32, %arg1: i32) -> (i32, i32, i32) {
    %c0_i32 = arith.constant 0 : i32
    %c0_i32_0 = arith.constant 0 : i32
    return %arg0, %arg1, %c0_i32 : i32, i32, i32
  }
  func.func @transform_5(%arg0: i32, %arg1: i32) -> (i32, i32, i32) {
    %c0_i32 = arith.constant 0 : i32
    %c0_i32_0 = arith.constant 0 : i32
    return %arg0, %arg1, %c0_i32 : i32, i32, i32
  }
}

module attributes {stable_mosaic.version = 11 : i64} {
  func.func @kernel(%arg0: i32, %arg1: i32, %arg2: memref<1x64x64xf32, #tpu.memory_space<vmem>>, %arg3: memref<64x32xbf16, #tpu.memory_space<vmem>>, %arg4: memref<1x32xf32, #tpu.memory_space<vmem>>, %arg5: memref<1x64x32xf32, #tpu.memory_space<vmem>>) attributes {dimension_semantics = [#tpu.dimension_semantics<parallel>, #tpu.dimension_semantics<parallel>], iteration_bounds = array<i64: 2, 1>, scalar_prefetch = 0 : i64, scratch_operands = 0 : i64, tpu.core_type = #tpu.core_type<tc>, window_params = [{transform_indices = @transform_0, window_bounds = array<i64: 1, 64, 64>}, {pipeline_mode = #tpu.pipeline_mode<synchronous>, transform_indices = @transform_1, window_bounds = array<i64: 64, 32>}, {pipeline_mode = #tpu.pipeline_mode<synchronous>, transform_indices = @transform_2, window_bounds = array<i64: 1, 32>}, {transform_indices = @transform_3, window_bounds = array<i64: 1, 64, 32>}]} {
    %c0 = arith.constant 0 : index
    %c0_0 = arith.constant 0 : index
    %c0_1 = arith.constant 0 : index
    %0 = vector.load %arg2[%c0, %c0_0, %c0_1] : memref<1x64x64xf32, #tpu.memory_space<vmem>>, vector<1x64x64xf32>
    %1 = vector.shape_cast %0 : vector<1x64x64xf32> to vector<64x64xf32>
    %2 = arith.truncf %1 : vector<64x64xf32> to vector<64x64xbf16>
    %c0_2 = arith.constant 0 : index
    %c0_3 = arith.constant 0 : index
    %3 = vector.load %arg3[%c0_2, %c0_3] : memref<64x32xbf16, #tpu.memory_space<vmem>>, vector<64x32xbf16>
    %cst = arith.constant dense<0.000000e+00> : vector<64x32xf32>
    %4 = tpu.matmul %2, %3, %cst {dimension_numbers = #tpu.dot_dimension_numbers<[1], [0], [0], [1], [0, 0, 1, 1], [], []>} : vector<64x64xbf16>, vector<64x32xbf16>, vector<64x32xf32> -> vector<64x32xf32>
    %c0_4 = arith.constant 0 : index
    %c0_5 = arith.constant 0 : index
    %5 = vector.load %arg4[%c0_4, %c0_5] : memref<1x32xf32, #tpu.memory_space<vmem>>, vector<1x32xf32>
    %6 = vector.broadcast %5 : vector<1x32xf32> to vector<64x32xf32>
    %7 = arith.addf %4, %6 : vector<64x32xf32>
    %8 = vector.shape_cast %7 : vector<64x32xf32> to vector<1x64x32xf32>
    %c0_6 = arith.constant 0 : index
    %c0_7 = arith.constant 0 : index
    %c0_8 = arith.constant 0 : index
    %9 = vector.load %arg5[%c0_6, %c0_7, %c0_8] : memref<1x64x32xf32, #tpu.memory_space<vmem>>, vector<1x64x32xf32>
    tpu.vector_store %arg5[%c0_6, %c0_7, %c0_8], %8 {strides = array<i32>} : memref<1x64x32xf32, #tpu.memory_space<vmem>>, vector<1x64x32xf32>,
    return
  }
  func.func @transform_0(%arg0: i32, %arg1: i32) -> (i32, i32, i32) {
    %c0_i32 = arith.constant 0 : i32
    %c0_i32_0 = arith.constant 0 : i32
    return %arg0, %arg1, %c0_i32 : i32, i32, i32
  }
  func.func @transform_1(%arg0: i32, %arg1: i32) -> (i32, i32) {
    %c0_i32 = arith.constant 0 : i32
    %c0_i32_0 = arith.constant 0 : i32
    %c0_i32_1 = arith.constant 0 : i32
    return %c0_i32, %c0_i32_0 : i32, i32
  }
  func.func @transform_2(%arg0: i32, %arg1: i32) -> (i32, i32) {
    %c0_i32 = arith.constant 0 : i32
    %c0_i32_0 = arith.constant 0 : i32
    %c0_i32_1 = arith.constant 0 : i32
    return %c0_i32, %c0_i32_0 : i32, i32
  }
  func.func @transform_3(%arg0: i32, %arg1: i32) -> (i32, i32, i32) {
    %c0_i32 = arith.constant 0 : i32
    %c0_i32_0 = arith.constant 0 : i32
    return %arg0, %arg1, %c0_i32 : i32, i32, i32
  }
}

module attributes {stable_mosaic.version = 11 : i64} {
  func.func @kernel(%arg0: i32, %arg1: i32, %arg2: memref<1x64x64xf32, #tpu.memory_space<vmem>>, %arg3: memref<1x1x64xf32, #tpu.memory_space<vmem>>, %arg4: memref<1x1x64xf32, #tpu.memory_space<vmem>>, %arg5: memref<64x8xbf16, #tpu.memory_space<vmem>>, %arg6: memref<1x8xf32, #tpu.memory_space<vmem>>, %arg7: memref<1x64x8xf32, #tpu.memory_space<vmem>>) attributes {dimension_semantics = [#tpu.dimension_semantics<parallel>, #tpu.dimension_semantics<parallel>], iteration_bounds = array<i64: 2, 1>, scalar_prefetch = 0 : i64, scratch_operands = 0 : i64, tpu.core_type = #tpu.core_type<tc>, window_params = [{transform_indices = @transform_0, window_bounds = array<i64: 1, 64, 64>}, {transform_indices = @transform_1, window_bounds = array<i64: 1, 1, 64>}, {transform_indices = @transform_2, window_bounds = array<i64: 1, 1, 64>}, {pipeline_mode = #tpu.pipeline_mode<synchronous>, transform_indices = @transform_3, window_bounds = array<i64: 64, 8>}, {pipeline_mode = #tpu.pipeline_mode<synchronous>, transform_indices = @transform_4, window_bounds = array<i64: 1, 8>}, {transform_indices = @transform_5, window_bounds = array<i64: 1, 64, 8>}]} {
    %c0 = arith.constant 0 : index
    %c0_0 = arith.constant 0 : index
    %c0_1 = arith.constant 0 : index
    %0 = vector.load %arg2[%c0, %c0_0, %c0_1] : memref<1x64x64xf32, #tpu.memory_space<vmem>>, vector<1x64x64xf32>
    %1 = vector.shape_cast %0 : vector<1x64x64xf32> to vector<64x64xf32>
    %c0_2 = arith.constant 0 : index
    %c0_3 = arith.constant 0 : index
    %c0_4 = arith.constant 0 : index
    %2 = vector.load %arg3[%c0_2, %c0_3, %c0_4] : memref<1x1x64xf32, #tpu.memory_space<vmem>>, vector<1x1x64xf32>
    %3 = vector.shape_cast %2 : vector<1x1x64xf32> to vector<1x64xf32>
    %4 = vector.broadcast %3 : vector<1x64xf32> to vector<64x64xf32>
    %5 = arith.mulf %1, %4 : vector<64x64xf32>
    %c0_5 = arith.constant 0 : index
    %c0_6 = arith.constant 0 : index
    %c0_7 = arith.constant 0 : index
    %6 = vector.load %arg4[%c0_5, %c0_6, %c0_7] : memref<1x1x64xf32, #tpu.memory_space<vmem>>, vector<1x1x64xf32>
    %7 = vector.shape_cast %6 : vector<1x1x64xf32> to vector<1x64xf32>
    %8 = vector.broadcast %7 : vector<1x64xf32> to vector<64x64xf32>
    %9 = arith.addf %5, %8 : vector<64x64xf32>
    %cst = arith.constant 0.000000e+00 : f32
    %10 = vector.broadcast %cst : f32 to vector<64x64xf32>
    %11 = arith.maximumf %9, %10 : vector<64x64xf32>
    %12 = arith.truncf %11 : vector<64x64xf32> to vector<64x64xbf16>
    %c0_8 = arith.constant 0 : index
    %c0_9 = arith.constant 0 : index
    %13 = vector.load %arg5[%c0_8, %c0_9] : memref<64x8xbf16, #tpu.memory_space<vmem>>, vector<64x8xbf16>
    %cst_10 = arith.constant dense<0.000000e+00> : vector<64x8xf32>
    %14 = tpu.matmul %12, %13, %cst_10 {dimension_numbers = #tpu.dot_dimension_numbers<[1], [0], [0], [1], [0, 0, 1, 1], [], []>} : vector<64x64xbf16>, vector<64x8xbf16>, vector<64x8xf32> -> vector<64x8xf32>
    %c0_11 = arith.constant 0 : index
    %c0_12 = arith.constant 0 : index
    %15 = vector.load %arg6[%c0_11, %c0_12] : memref<1x8xf32, #tpu.memory_space<vmem>>, vector<1x8xf32>
    %16 = vector.broadcast %15 : vector<1x8xf32> to vector<64x8xf32>
    %17 = arith.addf %14, %16 : vector<64x8xf32>
    %18 = vector.shape_cast %17 : vector<64x8xf32> to vector<1x64x8xf32>
    %c0_13 = arith.constant 0 : index
    %c0_14 = arith.constant 0 : index
    %c0_15 = arith.constant 0 : index
    %19 = vector.load %arg7[%c0_13, %c0_14, %c0_15] : memref<1x64x8xf32, #tpu.memory_space<vmem>>, vector<1x64x8xf32>
    tpu.vector_store %arg7[%c0_13, %c0_14, %c0_15], %18 {strides = array<i32>} : memref<1x64x8xf32, #tpu.memory_space<vmem>>, vector<1x64x8xf32>,
    return
  }
  func.func @transform_0(%arg0: i32, %arg1: i32) -> (i32, i32, i32) {
    %c0_i32 = arith.constant 0 : i32
    %c0_i32_0 = arith.constant 0 : i32
    return %arg0, %arg1, %c0_i32 : i32, i32, i32
  }
  func.func @transform_1(%arg0: i32, %arg1: i32) -> (i32, i32, i32) {
    %c0_i32 = arith.constant 0 : i32
    %c0_i32_0 = arith.constant 0 : i32
    %c0_i32_1 = arith.constant 0 : i32
    return %arg0, %c0_i32, %c0_i32_0 : i32, i32, i32
  }
  func.func @transform_2(%arg0: i32, %arg1: i32) -> (i32, i32, i32) {
    %c0_i32 = arith.constant 0 : i32
    %c0_i32_0 = arith.constant 0 : i32
    %c0_i32_1 = arith.constant 0 : i32
    return %arg0, %c0_i32, %c0_i32_0 : i32, i32, i32
  }
  func.func @transform_3(%arg0: i32, %arg1: i32) -> (i32, i32) {
    %c0_i32 = arith.constant 0 : i32
    %c0_i32_0 = arith.constant 0 : i32
    %c0_i32_1 = arith.constant 0 : i32
    return %c0_i32, %c0_i32_0 : i32, i32
  }
  func.func @transform_4(%arg0: i32, %arg1: i32) -> (i32, i32) {
    %c0_i32 = arith.constant 0 : i32
    %c0_i32_0 = arith.constant 0 : i32
    %c0_i32_1 = arith.constant 0 : i32
    return %c0_i32, %c0_i32_0 : i32, i32
  }
  func.func @transform_5(%arg0: i32, %arg1: i32) -> (i32, i32, i32) {
    %c0_i32 = arith.constant 0 : i32
    %c0_i32_0 = arith.constant 0 : i32
    return %arg0, %arg1, %c0_i32 : i32, i32, i32
  }
}

module attributes {stable_mosaic.version = 11 : i64} {
  func.func @kernel(%arg0: i32, %arg1: i32, %arg2: memref<1x64x32xf32, #tpu.memory_space<vmem>>, %arg3: memref<32x1xbf16, #tpu.memory_space<vmem>>, %arg4: memref<1x1xf32, #tpu.memory_space<vmem>>, %arg5: memref<1x64x1xf32, #tpu.memory_space<vmem>>) attributes {dimension_semantics = [#tpu.dimension_semantics<parallel>, #tpu.dimension_semantics<parallel>], iteration_bounds = array<i64: 2, 1>, scalar_prefetch = 0 : i64, scratch_operands = 0 : i64, tpu.core_type = #tpu.core_type<tc>, window_params = [{transform_indices = @transform_0, window_bounds = array<i64: 1, 64, 32>}, {pipeline_mode = #tpu.pipeline_mode<synchronous>, transform_indices = @transform_1, window_bounds = array<i64: 32, 1>}, {pipeline_mode = #tpu.pipeline_mode<synchronous>, transform_indices = @transform_2, window_bounds = array<i64: 1, 1>}, {transform_indices = @transform_3, window_bounds = array<i64: 1, 64, 1>}]} {
    %c0 = arith.constant 0 : index
    %c0_0 = arith.constant 0 : index
    %c0_1 = arith.constant 0 : index
    %0 = vector.load %arg2[%c0, %c0_0, %c0_1] : memref<1x64x32xf32, #tpu.memory_space<vmem>>, vector<1x64x32xf32>
    %1 = vector.shape_cast %0 : vector<1x64x32xf32> to vector<64x32xf32>
    %2 = arith.truncf %1 : vector<64x32xf32> to vector<64x32xbf16>
    %c0_2 = arith.constant 0 : index
    %c0_3 = arith.constant 0 : index
    %3 = vector.load %arg3[%c0_2, %c0_3] : memref<32x1xbf16, #tpu.memory_space<vmem>>, vector<32x1xbf16>
    %cst = arith.constant dense<0.000000e+00> : vector<64x1xf32>
    %4 = tpu.matmul %2, %3, %cst {dimension_numbers = #tpu.dot_dimension_numbers<[1], [0], [0], [1], [0, 0, 1, 1], [], []>} : vector<64x32xbf16>, vector<32x1xbf16>, vector<64x1xf32> -> vector<64x1xf32>
    %c0_4 = arith.constant 0 : index
    %c0_5 = arith.constant 0 : index
    %5 = vector.load %arg4[%c0_4, %c0_5] : memref<1x1xf32, #tpu.memory_space<vmem>>, vector<1x1xf32>
    %6 = vector.broadcast %5 : vector<1x1xf32> to vector<64x1xf32>
    %7 = arith.addf %4, %6 : vector<64x1xf32>
    %8 = vector.shape_cast %7 : vector<64x1xf32> to vector<1x64x1xf32>
    %c0_6 = arith.constant 0 : index
    %c0_7 = arith.constant 0 : index
    %c0_8 = arith.constant 0 : index
    %9 = vector.load %arg5[%c0_6, %c0_7, %c0_8] : memref<1x64x1xf32, #tpu.memory_space<vmem>>, vector<1x64x1xf32>
    tpu.vector_store %arg5[%c0_6, %c0_7, %c0_8], %8 {strides = array<i32>} : memref<1x64x1xf32, #tpu.memory_space<vmem>>, vector<1x64x1xf32>,
    return
  }
  func.func @transform_0(%arg0: i32, %arg1: i32) -> (i32, i32, i32) {
    %c0_i32 = arith.constant 0 : i32
    %c0_i32_0 = arith.constant 0 : i32
    return %arg0, %arg1, %c0_i32 : i32, i32, i32
  }
  func.func @transform_1(%arg0: i32, %arg1: i32) -> (i32, i32) {
    %c0_i32 = arith.constant 0 : i32
    %c0_i32_0 = arith.constant 0 : i32
    %c0_i32_1 = arith.constant 0 : i32
    return %c0_i32, %c0_i32_0 : i32, i32
  }
  func.func @transform_2(%arg0: i32, %arg1: i32) -> (i32, i32) {
    %c0_i32 = arith.constant 0 : i32
    %c0_i32_0 = arith.constant 0 : i32
    %c0_i32_1 = arith.constant 0 : i32
    return %c0_i32, %c0_i32_0 : i32, i32
  }
  func.func @transform_3(%arg0: i32, %arg1: i32) -> (i32, i32, i32) {
    %c0_i32 = arith.constant 0 : i32
    %c0_i32_0 = arith.constant 0 : i32
    return %arg0, %arg1, %c0_i32 : i32, i32, i32
  }
}

module attributes {stable_mosaic.version = 11 : i64} {
  func.func @_gram_kernel(%arg0: i32, %arg1: memref<1x9x64xf32, #tpu.memory_space<vmem>>, %arg2: memref<1x1x64xf32, #tpu.memory_space<vmem>>, %arg3: memref<1x9x9xf32, #tpu.memory_space<vmem>>) attributes {dimension_semantics = [#tpu.dimension_semantics<parallel>], iteration_bounds = array<i64: 2>, scalar_prefetch = 0 : i64, scratch_operands = 0 : i64, tpu.core_type = #tpu.core_type<tc>, window_params = [{transform_indices = @transform_0, window_bounds = array<i64: 1, 9, 64>}, {transform_indices = @transform_1, window_bounds = array<i64: 1, 1, 64>}, {transform_indices = @transform_2, window_bounds = array<i64: 1, 9, 9>}]} {
    %c0 = arith.constant 0 : index
    %c0_0 = arith.constant 0 : index
    %c0_1 = arith.constant 0 : index
    %0 = vector.load %arg1[%c0, %c0_0, %c0_1] : memref<1x9x64xf32, #tpu.memory_space<vmem>>, vector<1x9x64xf32>
    %1 = vector.shape_cast %0 : vector<1x9x64xf32> to vector<9x64xf32>
    %c0_2 = arith.constant 0 : index
    %c0_3 = arith.constant 0 : index
    %c0_4 = arith.constant 0 : index
    %2 = vector.load %arg2[%c0_2, %c0_3, %c0_4] : memref<1x1x64xf32, #tpu.memory_space<vmem>>, vector<1x1x64xf32>
    %3 = vector.shape_cast %2 : vector<1x1x64xf32> to vector<1x64xf32>
    %4 = math.tanh %3 : vector<1x64xf32>
    %cst = arith.constant 0.000000e+00 : f32
    %5 = vector.broadcast %cst : f32 to vector<1x64xf32>
    %6 = arith.maximumf %4, %5 : vector<1x64xf32>
    %7 = vector.broadcast %6 : vector<1x64xf32> to vector<9x64xf32>
    %8 = arith.mulf %1, %7 : vector<9x64xf32>
    %cst_5 = arith.constant dense<0.000000e+00> : vector<9x9xf32>
    %9 = tpu.matmul %8, %1, %cst_5 {dimension_numbers = #tpu.dot_dimension_numbers<[1], [1], [0], [0], [0, 0, 1, 0], [], []>} : vector<9x64xf32>, vector<9x64xf32>, vector<9x9xf32> -> vector<9x9xf32>
    %10 = vector.shape_cast %9 : vector<9x9xf32> to vector<1x9x9xf32>
    %c0_6 = arith.constant 0 : index
    %c0_7 = arith.constant 0 : index
    %c0_8 = arith.constant 0 : index
    %11 = vector.load %arg3[%c0_6, %c0_7, %c0_8] : memref<1x9x9xf32, #tpu.memory_space<vmem>>, vector<1x9x9xf32>
    tpu.vector_store %arg3[%c0_6, %c0_7, %c0_8], %10 {strides = array<i32>} : memref<1x9x9xf32, #tpu.memory_space<vmem>>, vector<1x9x9xf32>,
    return
  }
  func.func @transform_0(%arg0: i32) -> (i32, i32, i32) {
    %c0_i32 = arith.constant 0 : i32
    %c0_i32_0 = arith.constant 0 : i32
    %c0_i32_1 = arith.constant 0 : i32
    return %arg0, %c0_i32, %c0_i32_0 : i32, i32, i32
  }
  func.func @transform_1(%arg0: i32) -> (i32, i32, i32) {
    %c0_i32 = arith.constant 0 : i32
    %c0_i32_0 = arith.constant 0 : i32
    %c0_i32_1 = arith.constant 0 : i32
    return %arg0, %c0_i32, %c0_i32_0 : i32, i32, i32
  }
  func.func @transform_2(%arg0: i32) -> (i32, i32, i32) {
    %c0_i32 = arith.constant 0 : i32
    %c0_i32_0 = arith.constant 0 : i32
    %c0_i32_1 = arith.constant 0 : i32
    return %arg0, %c0_i32, %c0_i32_0 : i32, i32, i32
  }
}

module attributes {stable_mosaic.version = 11 : i64} {
  func.func @kernel(%arg0: i32, %arg1: i32, %arg2: memref<1x64x6xf32, #tpu.memory_space<vmem>>, %arg3: memref<6x32xbf16, #tpu.memory_space<vmem>>, %arg4: memref<1x32xf32, #tpu.memory_space<vmem>>, %arg5: memref<1x64x32xf32, #tpu.memory_space<vmem>>) attributes {dimension_semantics = [#tpu.dimension_semantics<parallel>, #tpu.dimension_semantics<parallel>], iteration_bounds = array<i64: 2, 1>, scalar_prefetch = 0 : i64, scratch_operands = 0 : i64, tpu.core_type = #tpu.core_type<tc>, window_params = [{transform_indices = @transform_0, window_bounds = array<i64: 1, 64, 6>}, {pipeline_mode = #tpu.pipeline_mode<synchronous>, transform_indices = @transform_1, window_bounds = array<i64: 6, 32>}, {pipeline_mode = #tpu.pipeline_mode<synchronous>, transform_indices = @transform_2, window_bounds = array<i64: 1, 32>}, {transform_indices = @transform_3, window_bounds = array<i64: 1, 64, 32>}]} {
    %c0 = arith.constant 0 : index
    %c0_0 = arith.constant 0 : index
    %c0_1 = arith.constant 0 : index
    %0 = vector.load %arg2[%c0, %c0_0, %c0_1] : memref<1x64x6xf32, #tpu.memory_space<vmem>>, vector<1x64x6xf32>
    %1 = vector.shape_cast %0 : vector<1x64x6xf32> to vector<64x6xf32>
    %2 = arith.truncf %1 : vector<64x6xf32> to vector<64x6xbf16>
    %c0_2 = arith.constant 0 : index
    %c0_3 = arith.constant 0 : index
    %3 = vector.load %arg3[%c0_2, %c0_3] : memref<6x32xbf16, #tpu.memory_space<vmem>>, vector<6x32xbf16>
    %cst = arith.constant dense<0.000000e+00> : vector<64x32xf32>
    %4 = tpu.matmul %2, %3, %cst {dimension_numbers = #tpu.dot_dimension_numbers<[1], [0], [0], [1], [0, 0, 1, 1], [], []>} : vector<64x6xbf16>, vector<6x32xbf16>, vector<64x32xf32> -> vector<64x32xf32>
    %c0_4 = arith.constant 0 : index
    %c0_5 = arith.constant 0 : index
    %5 = vector.load %arg4[%c0_4, %c0_5] : memref<1x32xf32, #tpu.memory_space<vmem>>, vector<1x32xf32>
    %6 = vector.broadcast %5 : vector<1x32xf32> to vector<64x32xf32>
    %7 = arith.addf %4, %6 : vector<64x32xf32>
    %8 = vector.shape_cast %7 : vector<64x32xf32> to vector<1x64x32xf32>
    %c0_6 = arith.constant 0 : index
    %c0_7 = arith.constant 0 : index
    %c0_8 = arith.constant 0 : index
    %9 = vector.load %arg5[%c0_6, %c0_7, %c0_8] : memref<1x64x32xf32, #tpu.memory_space<vmem>>, vector<1x64x32xf32>
    tpu.vector_store %arg5[%c0_6, %c0_7, %c0_8], %8 {strides = array<i32>} : memref<1x64x32xf32, #tpu.memory_space<vmem>>, vector<1x64x32xf32>,
    return
  }
  func.func @transform_0(%arg0: i32, %arg1: i32) -> (i32, i32, i32) {
    %c0_i32 = arith.constant 0 : i32
    %c0_i32_0 = arith.constant 0 : i32
    return %arg0, %arg1, %c0_i32 : i32, i32, i32
  }
  func.func @transform_1(%arg0: i32, %arg1: i32) -> (i32, i32) {
    %c0_i32 = arith.constant 0 : i32
    %c0_i32_0 = arith.constant 0 : i32
    %c0_i32_1 = arith.constant 0 : i32
    return %c0_i32, %c0_i32_0 : i32, i32
  }
  func.func @transform_2(%arg0: i32, %arg1: i32) -> (i32, i32) {
    %c0_i32 = arith.constant 0 : i32
    %c0_i32_0 = arith.constant 0 : i32
    %c0_i32_1 = arith.constant 0 : i32
    return %c0_i32, %c0_i32_0 : i32, i32
  }
  func.func @transform_3(%arg0: i32, %arg1: i32) -> (i32, i32, i32) {
    %c0_i32 = arith.constant 0 : i32
    %c0_i32_0 = arith.constant 0 : i32
    return %arg0, %arg1, %c0_i32 : i32, i32, i32
  }
}

</mosaic_0001>

<bundles_post_ra>
// kernel: oanet_forward.232
= control target key start
LH: loop header
LB: loop body
LE: loop exit
PB: predicated region body
PF: predicated region fallthrough
CT: control target
= control target key end

     0   :  { %s514_s12 = smov 0   ;;  %s516_s13 = smov 0   ;;  %s561_s0 = inlined_call_operand.vmem [shape: f32[2,64,4], index: 0, kind: input, shape index: {}]   ;;  %s562_s1 = inlined_call_operand.vmem [shape: bf16[4,32], index: 1, kind: input, shape index: {}]   ;;  %s563_s2 = inlined_call_operand.vmem [shape: f32[1,32], index: 2, kind: input, shape index: {}]   ;;  %s564_s3 = inlined_call_operand.vmem [shape: f32[2,64,32], index: 3, kind: output, shape index: {}]  }
   0x1   :  { %s518_s14 = smov 0  }
   0x2 LB: > { %s25_s15 = sadd.s32 1, %s488_s13  ;;  %p413_p0 = scmp.ge.s32.totalorder %s492_s14, 1  ;;  %s492_s14 = sphi %s518_s14, %s13_s14   ;;  %s488_s13 = sphi %s516_s13, %s566_s13   ;;  %s484_s12 = sphi %s514_s12, %s565_s12  }
   0x3   : > { %p27_p1 = scmp.ge.s32.totalorder %s25_s15, 2  ;;  %p158_p2 = scmp.lt.s32.totalorder %s492_s14, 3 }
   0x5   : > { %s568_s15 = smov (%p27_p1, %s25_s15), 0  ;;  %p159_p3 = pnand %p413_p0, %p158_p2 }
   0x6   : > { %v223_v0 = vld [vmem:[%s562_s1] sm:$0x3] (!%p159_p3)  ;;  %vm244_vm0 = vcmask (!%p159_p3), 1041408   ;;  %p191_p4 = scmp.lt.s32.totalorder (!%p159_p3), %s484_s12, 1  ;;  %vm231_vm1 = vcmask (!%p159_p3), 31744   ;;  %vm313_vm2 = vcmask (!%p159_p3), 261120  }
   0x7   : > { %162 = sbr.rel (%p159_p3) target bundleno = 240 (0xf0), region = 32  ;;  %444 = vmatprep.subr.msk.bf16.mxu0 (!%p159_p3), %vm244_vm0, %v223_v0  ;;  %445 = vmatprep.subr.msk.bf16.mxu1 (!%p159_p3), %vm244_vm0, %v223_v0  ;;  %v246_v1 = vsel (!%p159_p3), %vm244_vm0, %v223_v0, 0  ;;  %v418_v14 = vld [vmem:[%s563_s2] ss:$0 sm:$0xff] (!%p159_p3) }
   0x8   : > { %433 = vmatpush3.bf16.msra.mxu0 (!%p159_p3), %v246_v1  ;;  %443 = vmatpush3.bf16.msra.mxu1 (!%p159_p3), %v246_v1 }
   0xe   : > { %s570_s12 = smov (!%p191_p4, %s484_s12), 1 }
   0xf   : > { %s425_s18 = sshll.u32 %s570_s12, 6 }
  0x10   : > { %s198_s21 = scalar_lea.vmem %s561_s0, %s425_s18  ;;  %s208_s26 = scalar_lea.vmem %s564_s3, %s425_s18 }
  0x11   : > { %v211_v2 = vld [vmem:[%s198_s21] sm:$0xff]  ;;  %v212_v3 = vld [vmem:[%s198_s21 + $0x8] sm:$0xff]  ;;  %v213_v7 = vld [vmem:[%s198_s21 + $0x10] sm:$0xff] }
  0x12   : > { %v215_v4 = vld [vmem:[%s198_s21 + $0x20] sm:$0xff]  ;;  %v219_v5 = vpack.c.bf16 %v212_v3, %v211_v2  ;;  %v216_v6 = vld [vmem:[%s198_s21 + $0x28] sm:$0xff]  ;;  %v214_v8 = vld [vmem:[%s198_s21 + $0x18] sm:$0xff] }
  0x13   : > { %v221_v9 = vpack.c.bf16 %v216_v6, %v215_v4  ;;  %v220_v10 = vpack.c.bf16 %v214_v8, %v213_v7  ;;  %v217_v11 = vld [vmem:[%s198_s21 + $0x30] sm:$0xff]  ;;  %v218_v12 = vld [vmem:[%s198_s21 + $0x38] sm:$0xff] }
  0x14   : > { %434 = vmatprep.mubr.msk.bf16.mxu0 %vm231_vm1, %v219_v5  ;;  %v222_v13 = vpack.c.bf16 %v218_v12, %v217_v11 }
  0x15   : > { %438 = vmatprep.mubr.msk.bf16.mxu1 %vm231_vm1, %v221_v9  ;;  %435 = vmatmul.mubr.msk.bf16.vlgmr.msra.gmra.mrb[0].mxu0 %vm231_vm1, %v220_v10 }
  0x16   : > { %439 = vmatmul.mubr.msk.bf16.vlgmr.msra.gmra.mrb[0].mxu1 %vm231_vm1, %v222_v13 }
  0xe8   : > { %v436_v15 = vpop.f32.mrb[0].mxu0 }
  0xe9   : > { %v291_v16 = vadd.f32 %v436_v15, %v418_v14  ;;  %v440_v17 = vpop.f32.mrb[0].mxu1  ;;  %v282_v18 = vpop.f32.mrb[1].mxu0 }
  0xea   : > { %v307_v19 = vadd.f32 %v440_v17, %v418_v14  ;;  %v283_v20 = vadd.f32 %v418_v14, %v282_v18  ;;  %v298_v21 = vpop.f32.mrb[1].mxu1  ;;  %v437_v22 = vpop.f32.mrb[2].mxu0 }
  0xeb   : > { %316 = vst.msk [vmem:[%s208_s26 + $0x10] sm:$0xff] %vm313_vm2, %v291_v16  ;;  %v299_v23 = vadd.f32 %v418_v14, %v298_v21  ;;  %v294_v24 = vadd.f32 %v437_v22, %v418_v14  ;;  %v441_v25 = vpop.f32.mrb[2].mxu1  ;;  %v285_v26 = vpop.f32.mrb[3].mxu0 }
  0xec   : > { %320 = vst.msk [vmem:[%s208_s26 + $0x30] sm:$0xff] %vm313_vm2, %v307_v19  ;;  %314 = vst.msk [vmem:[%s208_s26] sm:$0xff] %vm313_vm2, %v283_v20  ;;  %v310_v27 = vadd.f32 %v441_v25, %v418_v14  ;;  %v286_v28 = vadd.f32 %v418_v14, %v285_v26  ;;  %v301_v29 = vpop.f32.mrb[3].mxu1 }
  0xed   : > { %318 = vst.msk [vmem:[%s208_s26 + $0x20] sm:$0xff] %vm313_vm2, %v299_v23  ;;  %317 = vst.msk [vmem:[%s208_s26 + $0x18] sm:$0xff] %vm313_vm2, %v294_v24  ;;  %v302_v30 = vadd.f32 %v418_v14, %v301_v29 }
  0xee   : > { %321 = vst.msk [vmem:[%s208_s26 + $0x38] sm:$0xff] %vm313_vm2, %v310_v27  ;;  %315 = vst.msk [vmem:[%s208_s26 + $0x8] sm:$0xff] %vm313_vm2, %v286_v28 }
  0xef   : > { %319 = vst.msk [vmem:[%s208_s26 + $0x28] sm:$0xff] %vm313_vm2, %v302_v30 }
  0xf0 PF: > { %s13_s14 = sadd.s32 1, %s492_s14   ;;  %s565_s12 = smov %s488_s13 }
  0xf1   : > { %p10_p5 = scmp.ge.s32.totalorder %s13_s14, 4   ;;  %s566_s13 = smov %s568_s15 }
  0xf3   :  { %12 = sbr.rel (!%p10_p5) target bundleno = 2 (0x2), region = 62 }

// kernel: oanet_forward.234
= control target key start
LH: loop header
LB: loop body
LE: loop exit
PB: predicated region body
PF: predicated region fallthrough
CT: control target
= control target key end

     0   :  { %s663_s18 = smov 0   ;;  %s665_s19 = smov 0   ;;  %s729_s0 = inlined_call_operand.vmem [shape: f32[2,64,8], index: 0, kind: input, shape index: {}]   ;;  %s730_s1 = inlined_call_operand.vmem [shape: f32[2,1,8], index: 1, kind: input, shape index: {}]   ;;  %s731_s2 = inlined_call_operand.vmem [shape: f32[2,1,8], index: 2, kind: input, shape index: {}]   ;;  %s732_s3 = inlined_call_operand.vmem [shape: bf16[8,8], index: 3, kind: input, shape index: {}]   ;;  %s733_s4 = inlined_call_operand.vmem [shape: f32[1,8], index: 4, kind: input, shape index: {}]   ;;  %s734_s5 = inlined_call_operand.vmem [shape: f32[2,64,8], index: 5, kind: output, shape index: {}]  }
   0x1   :  { %s667_s20 = smov 0  }
   0x2 LB: > { %s27_s21 = sadd.s32 1, %s627_s19  ;;  %p550_p0 = scmp.ge.s32.totalorder %s631_s20, 1  ;;  %s631_s20 = sphi %s667_s20, %s15_s20   ;;  %s627_s19 = sphi %s665_s19, %s736_s19   ;;  %s623_s18 = sphi %s663_s18, %s735_s18  }
   0x3   : > { %p29_p1 = scmp.ge.s32.totalorder %s27_s21, 2  ;;  %p224_p2 = scmp.lt.s32.totalorder %s631_s20, 3 }
   0x5   : > { %s738_s21 = smov (%p29_p1, %s27_s21), 0  ;;  %p225_p3 = pnand %p550_p0, %p224_p2 }
   0x6   : > { %v343_v0 = vld [vmem:[%s732_s3] sm:$0xf] (!%p225_p3)  ;;  %vm364_vm0 = vcmask (!%p225_p3), 1043456   ;;  %p267_p4 = scmp.lt.s32.totalorder (!%p225_p3), %s623_s18, 1  ;;  %vm351_vm1 = vcmask (!%p225_p3), 64512  }
   0x7   : > { %228 = sbr.rel (%p225_p3) target bundleno = 247 (0xf7), region = 40  ;;  %583 = vmatprep.subr.msk.bf16.mxu0 (!%p225_p3), %vm364_vm0, %v343_v0  ;;  %584 = vmatprep.subr.msk.bf16.mxu1 (!%p225_p3), %vm364_vm0, %v343_v0  ;;  %v366_v1 = vsel (!%p225_p3), %vm364_vm0, %v343_v0, 0  ;;  %v557_v40 = vld [vmem:[%s733_s4] ss:$0 sm:$0xff] (!%p225_p3) }
   0x8   : > { %572 = vmatpush3.bf16.msra.mxu0 (!%p225_p3), %v366_v1  ;;  %582 = vmatpush3.bf16.msra.mxu1 (!%p225_p3), %v366_v1 }
   0xe   : > { %s740_s18 = smov (!%p267_p4, %s623_s18), 1 }
   0xf   : > { %s564_s24 = sshll.u32 %s740_s18, 6  ;;  %s278_s27 = scalar_lea.vmem %s730_s1, %s740_s18 }
  0x10   : > { %s274_s30 = scalar_lea.vmem %s729_s0, %s564_s24  ;;  %s281_s8 = scalar_lea.vmem %s731_s2, %s740_s18  ;;  %v555_v2 = vld [vmem:[%s278_s27] ss:$0 sm:$0xff] }
  0x11   : > { %v293_v3 = vld [vmem:[%s274_s30] sm:$0xff]  ;;  %v294_v4 = vld [vmem:[%s274_s30 + $0x8] sm:$0xff]  ;;  %v295_v10 = vld [vmem:[%s274_s30 + $0x10] sm:$0xff]  ;;  %s290_s13 = scalar_lea.vmem %s734_s5, %s564_s24 }
  0x12   : > { %v556_v5 = vld [vmem:[%s281_s8] ss:$0 sm:$0xff]  ;;  %v308_v6 = vmul.f32 %v555_v2, %v293_v3  ;;  %v309_v7 = vmul.f32 %v555_v2, %v294_v4  ;;  %v298_v9 = vld [vmem:[%s274_s30 + $0x28] sm:$0xff]  ;;  %v296_v13 = vld [vmem:[%s274_s30 + $0x18] sm:$0xff]  ;;  %v310_v14 = vmul.f32 %v555_v2, %v295_v10 }
  0x13   : > { %v297_v8 = vld [vmem:[%s274_s30 + $0x20] sm:$0xff]  ;;  %v313_v12 = vmul.f32 %v555_v2, %v298_v9  ;;  %v299_v15 = vld [vmem:[%s274_s30 + $0x30] sm:$0xff]  ;;  %v300_v16 = vld [vmem:[%s274_s30 + $0x38] sm:$0xff]  ;;  %v311_v19 = vmul.f32 %v555_v2, %v296_v13 }
  0x14   : > { %v312_v11 = vmul.f32 %v555_v2, %v297_v8  ;;  %v323_v17 = vadd.f32 %v556_v5, %v308_v6  ;;  %v324_v18 = vadd.f32 %v556_v5, %v309_v7  ;;  %v314_v20 = vmul.f32 %v555_v2, %v299_v15 }
  0x15   : > { %v328_v22 = vadd.f32 %v556_v5, %v313_v12  ;;  %v325_v23 = vadd.f32 %v556_v5, %v310_v14  ;;  %v315_v24 = vmul.f32 %v555_v2, %v300_v16  ;;  %v326_v27 = vadd.f32 %v556_v5, %v311_v19 }
  0x16   : > { %v327_v21 = vadd.f32 %v556_v5, %v312_v11  ;;  %v331_v25 = vmax.f32 %v323_v17, 0.0  ;;  %v332_v26 = vmax.f32 %v324_v18, 0.0  ;;  %v329_v28 = vadd.f32 %v556_v5, %v314_v20 }
  0x17   : > { %v336_v30 = vmax.f32 %v328_v22, 0.0  ;;  %v333_v31 = vmax.f32 %v325_v23, 0.0  ;;  %v330_v32 = vadd.f32 %v556_v5, %v315_v24  ;;  %v334_v34 = vmax.f32 %v326_v27, 0.0 }
  0x18   : > { %v335_v29 = vmax.f32 %v327_v21, 0.0  ;;  %v339_v33 = vpack.c.bf16 %v332_v26, %v331_v25  ;;  %v337_v35 = vmax.f32 %v329_v28, 0.0 }
  0x19   : > { %v338_v37 = vmax.f32 %v330_v32, 0.0  ;;  %v340_v38 = vpack.c.bf16 %v334_v34, %v333_v31 }
  0x1a   : > { %v341_v36 = vpack.c.bf16 %v336_v30, %v335_v29  ;;  %573 = vmatprep.mubr.msk.bf16.mxu0 %vm351_vm1, %v339_v33 }
  0x1b   : > { %v342_v39 = vpack.c.bf16 %v338_v37, %v337_v35  ;;  %574 = vmatmul.mubr.msk.bf16.vlgmr.msra.gmra.mrb[0].mxu0 %vm351_vm1, %v340_v38 }
  0x1c   : > { %577 = vmatprep.mubr.msk.bf16.mxu1 %vm351_vm1, %v341_v36 }
  0x1d   : > { %578 = vmatmul.mubr.msk.bf16.vlgmr.msra.gmra.mrb[0].mxu1 %vm351_vm1, %v342_v39 }
  0xee   : > { %v575_v41 = vpop.f32.mrb[0].mxu0 }
  0xef   : > { %v411_v42 = vadd.f32 %v575_v41, %v557_v40  ;;  %v402_v44 = vpop.f32.mrb[1].mxu0 }
  0xf0   : > { %v579_v43 = vpop.f32.mrb[0].mxu1  ;;  %v403_v46 = vadd.f32 %v557_v40, %v402_v44  ;;  %v576_v48 = vpop.f32.mrb[2].mxu0 }
  0xf1   : > { %v427_v45 = vadd.f32 %v579_v43, %v557_v40  ;;  %v418_v47 = vpop.f32.mrb[1].mxu1  ;;  %435 = vst.msk [vmem:[%s290_s13 + $0x10] sm:$0xff] %vm351_vm1, %v411_v42  ;;  %v414_v50 = vadd.f32 %v576_v48, %v557_v40  ;;  %v405_v52 = vpop.f32.mrb[3].mxu0 }
  0xf2   : > { %v419_v49 = vadd.f32 %v557_v40, %v418_v47  ;;  %v580_v51 = vpop.f32.mrb[2].mxu1  ;;  %433 = vst.msk [vmem:[%s290_s13] sm:$0xff] %vm351_vm1, %v403_v46  ;;  %v406_v54 = vadd.f32 %v557_v40, %v405_v52 }
  0xf3   : > { %439 = vst.msk [vmem:[%s290_s13 + $0x30] sm:$0xff] %vm351_vm1, %v427_v45  ;;  %v430_v53 = vadd.f32 %v580_v51, %v557_v40  ;;  %v421_v55 = vpop.f32.mrb[3].mxu1  ;;  %436 = vst.msk [vmem:[%s290_s13 + $0x18] sm:$0xff] %vm351_vm1, %v414_v50 }
  0xf4   : > { %437 = vst.msk [vmem:[%s290_s13 + $0x20] sm:$0xff] %vm351_vm1, %v419_v49  ;;  %v422_v56 = vadd.f32 %v557_v40, %v421_v55  ;;  %434 = vst.msk [vmem:[%s290_s13 + $0x8] sm:$0xff] %vm351_vm1, %v406_v54 }
  0xf5   : > { %440 = vst.msk [vmem:[%s290_s13 + $0x38] sm:$0xff] %vm351_vm1, %v430_v53 }
  0xf6   : > { %438 = vst.msk [vmem:[%s290_s13 + $0x28] sm:$0xff] %vm351_vm1, %v422_v56 }
  0xf7 PF: > { %s15_s20 = sadd.s32 1, %s631_s20   ;;  %s735_s18 = smov %s627_s19 }
  0xf8   : > { %p12_p5 = scmp.ge.s32.totalorder %s15_s20, 4   ;;  %s736_s19 = smov %s738_s21 }
  0xfa   :  { %14 = sbr.rel (!%p12_p5) target bundleno = 2 (0x2), region = 76 }

// kernel: oanet_forward.233
= control target key start
LH: loop header
LB: loop body
LE: loop exit
PB: predicated region body
PF: predicated region fallthrough
CT: control target
= control target key end

     0   :  { %s682_s18 = smov 0   ;;  %s684_s19 = smov 0   ;;  %s751_s0 = inlined_call_operand.vmem [shape: f32[2,64,32], index: 0, kind: input, shape index: {}]   ;;  %s752_s1 = inlined_call_operand.vmem [shape: f32[2,1,32], index: 1, kind: input, shape index: {}]   ;;  %s753_s2 = inlined_call_operand.vmem [shape: f32[2,1,32], index: 2, kind: input, shape index: {}]   ;;  %s754_s3 = inlined_call_operand.vmem [shape: bf16[32,8], index: 3, kind: input, shape index: {}]   ;;  %s755_s4 = inlined_call_operand.vmem [shape: f32[1,8], index: 4, kind: input, shape index: {}]   ;;  %s756_s5 = inlined_call_operand.vmem [shape: f32[2,64,8], index: 5, kind: output, shape index: {}]  }
   0x1   :  { %s686_s20 = smov 0  }
   0x2 LB: > { %s27_s21 = sadd.s32 1, %s646_s19  ;;  %p562_p0 = scmp.ge.s32.totalorder %s650_s20, 1  ;;  %s650_s20 = sphi %s686_s20, %s15_s20   ;;  %s646_s19 = sphi %s684_s19, %s758_s19   ;;  %s642_s18 = sphi %s682_s18, %s757_s18  }
   0x3   : > { %p29_p1 = scmp.ge.s32.totalorder %s27_s21, 2  ;;  %p224_p2 = scmp.lt.s32.totalorder %s650_s20, 3 }
   0x5   : > { %s760_s21 = smov (%p29_p1, %s27_s21), 0  ;;  %p225_p3 = pnand %p562_p0, %p224_p2 }
   0x6   : > { %v626_v0 = vld [vmem:[%s754_s3] sm:$0xff] (!%p225_p3)   ;;  %p267_p4 = scmp.lt.s32.totalorder (!%p225_p3), %s642_s18, 1  ;;  %v627_v1 = vld [vmem:[%s754_s3 + $0x8] sm:$0xff] (!%p225_p3)   ;;  %vm366_vm0 = vcmask (!%p225_p3), 261120   ;;  %vm444_vm1 = vcmask (!%p225_p3), 64512  }
   0x7   : > { %228 = sbr.rel (%p225_p3) target bundleno = 247 (0xf7), region = 40  ;;  %586 = vmatprep.subr.bf16.mxu0 (!%p225_p3), %v626_v0  ;;  %598 = vmatprep.subr.bf16.mxu1 (!%p225_p3), %v626_v0  ;;  %v569_v40 = vld [vmem:[%s755_s4] ss:$0 sm:$0xff] (!%p225_p3) }
   0x8   : > { %587 = vmatpush3.bf16.msra.mxu0 (!%p225_p3), %v626_v0  ;;  %600 = vmatpush3.bf16.msra.mxu1 (!%p225_p3), %v626_v0 }
   0x9   : > { %588 = vmatprep.subr.bf16.mxu0 (!%p225_p3), %v627_v1  ;;  %599 = vmatprep.subr.bf16.mxu1 (!%p225_p3), %v627_v1 }
   0xc   : > { %589 = vmatpush3.bf16.msra.mxu0 (!%p225_p3), %v627_v1  ;;  %601 = vmatpush3.bf16.msra.mxu1 (!%p225_p3), %v627_v1 }
   0xe   : > { %s762_s18 = smov (!%p267_p4, %s642_s18), 1 }
   0xf   : > { %s578_s26 = sshll.u32 %s762_s18, 6  ;;  %s278_s29 = scalar_lea.vmem %s752_s1, %s762_s18 }
  0x10   : > { %s274_s7 = scalar_lea.vmem %s751_s0, %s578_s26  ;;  %s281_s10 = scalar_lea.vmem %s753_s2, %s762_s18  ;;  %v567_v2 = vld [vmem:[%s278_s29] ss:$0 sm:$0xff] }
  0x11   : > { %v293_v3 = vld [vmem:[%s274_s7] sm:$0xff]  ;;  %v294_v4 = vld [vmem:[%s274_s7 + $0x8] sm:$0xff]  ;;  %v295_v10 = vld [vmem:[%s274_s7 + $0x10] sm:$0xff]  ;;  %s290_s15 = scalar_lea.vmem %s756_s5, %s578_s26 }
  0x12   : > { %v568_v5 = vld [vmem:[%s281_s10] ss:$0 sm:$0xff]  ;;  %v308_v6 = vmul.f32 %v567_v2, %v293_v3  ;;  %v309_v7 = vmul.f32 %v567_v2, %v294_v4  ;;  %v298_v9 = vld [vmem:[%s274_s7 + $0x28] sm:$0xff]  ;;  %v296_v13 = vld [vmem:[%s274_s7 + $0x18] sm:$0xff]  ;;  %v310_v14 = vmul.f32 %v567_v2, %v295_v10 }
  0x13   : > { %v297_v8 = vld [vmem:[%s274_s7 + $0x20] sm:$0xff]  ;;  %v313_v12 = vmul.f32 %v567_v2, %v298_v9  ;;  %v299_v15 = vld [vmem:[%s274_s7 + $0x30] sm:$0xff]  ;;  %v300_v16 = vld [vmem:[%s274_s7 + $0x38] sm:$0xff]  ;;  %v311_v19 = vmul.f32 %v567_v2, %v296_v13 }
  0x14   : > { %v312_v11 = vmul.f32 %v567_v2, %v297_v8  ;;  %v323_v17 = vadd.f32 %v568_v5, %v308_v6  ;;  %v324_v18 = vadd.f32 %v568_v5, %v309_v7  ;;  %v314_v20 = vmul.f32 %v567_v2, %v299_v15 }
  0x15   : > { %v328_v22 = vadd.f32 %v568_v5, %v313_v12  ;;  %v325_v23 = vadd.f32 %v568_v5, %v310_v14  ;;  %v315_v24 = vmul.f32 %v567_v2, %v300_v16  ;;  %v326_v27 = vadd.f32 %v568_v5, %v311_v19 }
  0x16   : > { %v327_v21 = vadd.f32 %v568_v5, %v312_v11  ;;  %v331_v25 = vmax.f32 %v323_v17, 0.0  ;;  %v332_v26 = vmax.f32 %v324_v18, 0.0  ;;  %v329_v28 = vadd.f32 %v568_v5, %v314_v20 }
  0x17   : > { %v336_v30 = vmax.f32 %v328_v22, 0.0  ;;  %v333_v31 = vmax.f32 %v325_v23, 0.0  ;;  %v330_v32 = vadd.f32 %v568_v5, %v315_v24  ;;  %v334_v34 = vmax.f32 %v326_v27, 0.0 }
  0x18   : > { %v335_v29 = vmax.f32 %v327_v21, 0.0  ;;  %v339_v33 = vpack.c.bf16 %v332_v26, %v331_v25  ;;  %v337_v35 = vmax.f32 %v329_v28, 0.0 }
  0x19   : > { %v338_v37 = vmax.f32 %v330_v32, 0.0  ;;  %v340_v38 = vpack.c.bf16 %v334_v34, %v333_v31 }
  0x1a   : > { %v341_v36 = vpack.c.bf16 %v336_v30, %v335_v29  ;;  %590 = vmatprep.mubr.msk.bf16.mxu0 %vm366_vm0, %v339_v33 }
  0x1b   : > { %v342_v39 = vpack.c.bf16 %v338_v37, %v337_v35  ;;  %591 = vmatmul.mubr.msk.bf16.vlgmr.msra.gmra.mrb[0].mxu0 %vm366_vm0, %v340_v38 }
  0x1c   : > { %594 = vmatprep.mubr.msk.bf16.mxu1 %vm366_vm0, %v341_v36 }
  0x1d   : > { %595 = vmatmul.mubr.msk.bf16.vlgmr.msra.gmra.mrb[0].mxu1 %vm366_vm0, %v342_v39 }
  0xee   : > { %v592_v41 = vpop.f32.mrb[0].mxu0 }
  0xef   : > { %v422_v42 = vadd.f32 %v592_v41, %v569_v40  ;;  %v413_v44 = vpop.f32.mrb[1].mxu0 }
  0xf0   : > { %v596_v43 = vpop.f32.mrb[0].mxu1  ;;  %v414_v46 = vadd.f32 %v569_v40, %v413_v44  ;;  %v593_v48 = vpop.f32.mrb[2].mxu0 }
  0xf1   : > { %v438_v45 = vadd.f32 %v596_v43, %v569_v40  ;;  %v429_v47 = vpop.f32.mrb[1].mxu1  ;;  %447 = vst.msk [vmem:[%s290_s15 + $0x10] sm:$0xff] %vm444_vm1, %v422_v42  ;;  %v425_v50 = vadd.f32 %v593_v48, %v569_v40  ;;  %v416_v52 = vpop.f32.mrb[3].mxu0 }
  0xf2   : > { %v430_v49 = vadd.f32 %v569_v40, %v429_v47  ;;  %v597_v51 = vpop.f32.mrb[2].mxu1  ;;  %445 = vst.msk [vmem:[%s290_s15] sm:$0xff] %vm444_vm1, %v414_v46  ;;  %v417_v54 = vadd.f32 %v569_v40, %v416_v52 }
  0xf3   : > { %451 = vst.msk [vmem:[%s290_s15 + $0x30] sm:$0xff] %vm444_vm1, %v438_v45  ;;  %v441_v53 = vadd.f32 %v597_v51, %v569_v40  ;;  %v432_v55 = vpop.f32.mrb[3].mxu1  ;;  %448 = vst.msk [vmem:[%s290_s15 + $0x18] sm:$0xff] %vm444_vm1, %v425_v50 }
  0xf4   : > { %449 = vst.msk [vmem:[%s290_s15 + $0x20] sm:$0xff] %vm444_vm1, %v430_v49  ;;  %v433_v56 = vadd.f32 %v569_v40, %v432_v55  ;;  %446 = vst.msk [vmem:[%s290_s15 + $0x8] sm:$0xff] %vm444_vm1, %v417_v54 }
  0xf5   : > { %452 = vst.msk [vmem:[%s290_s15 + $0x38] sm:$0xff] %vm444_vm1, %v441_v53 }
  0xf6   : > { %450 = vst.msk [vmem:[%s290_s15 + $0x28] sm:$0xff] %vm444_vm1, %v433_v56 }
  0xf7 PF: > { %s15_s20 = sadd.s32 1, %s650_s20   ;;  %s757_s18 = smov %s646_s19 }
  0xf8   : > { %p12_p5 = scmp.ge.s32.totalorder %s15_s20, 4   ;;  %s758_s19 = smov %s760_s21 }
  0xfa   :  { %14 = sbr.rel (!%p12_p5) target bundleno = 2 (0x2), region = 76 }

// kernel: oanet_forward.237
= control target key start
LH: loop header
LB: loop body
LE: loop exit
PB: predicated region body
PF: predicated region fallthrough
CT: control target
= control target key end

     0   :  { %s532_s12 = smov 0   ;;  %s534_s13 = smov 0   ;;  %s586_s0 = inlined_call_operand.vmem [shape: f32[2,64,32], index: 0, kind: input, shape index: {}]   ;;  %s587_s1 = inlined_call_operand.vmem [shape: bf16[32,8], index: 1, kind: input, shape index: {}]   ;;  %s588_s2 = inlined_call_operand.vmem [shape: f32[1,8], index: 2, kind: input, shape index: {}]   ;;  %s589_s3 = inlined_call_operand.vmem [shape: f32[2,64,8], index: 3, kind: output, shape index: {}]  }
   0x1   :  { %s536_s14 = smov 0  }
   0x2 LB: > { %s25_s15 = sadd.s32 1, %s506_s13  ;;  %p424_p0 = scmp.ge.s32.totalorder %s510_s14, 1  ;;  %s510_s14 = sphi %s536_s14, %s13_s14   ;;  %s506_s13 = sphi %s534_s13, %s591_s13   ;;  %s502_s12 = sphi %s532_s12, %s590_s12  }
   0x3   : > { %p27_p1 = scmp.ge.s32.totalorder %s25_s15, 2  ;;  %p158_p2 = scmp.lt.s32.totalorder %s510_s14, 3 }
   0x5   : > { %s593_s15 = smov (%p27_p1, %s25_s15), 0  ;;  %p159_p3 = pnand %p424_p0, %p158_p2 }
   0x6   : > { %v486_v0 = vld [vmem:[%s587_s1] sm:$0xff] (!%p159_p3)   ;;  %p191_p4 = scmp.lt.s32.totalorder (!%p159_p3), %s502_s12, 1  ;;  %v487_v1 = vld [vmem:[%s587_s1 + $0x8] sm:$0xff] (!%p159_p3)   ;;  %vm246_vm0 = vcmask (!%p159_p3), 261120   ;;  %vm324_vm1 = vcmask (!%p159_p3), 64512  }
   0x7   : > { %162 = sbr.rel (%p159_p3) target bundleno = 240 (0xf0), region = 32  ;;  %446 = vmatprep.subr.bf16.mxu0 (!%p159_p3), %v486_v0  ;;  %458 = vmatprep.subr.bf16.mxu1 (!%p159_p3), %v486_v0  ;;  %v429_v14 = vld [vmem:[%s588_s2] ss:$0 sm:$0xff] (!%p159_p3) }
   0x8   : > { %447 = vmatpush3.bf16.msra.mxu0 (!%p159_p3), %v486_v0  ;;  %460 = vmatpush3.bf16.msra.mxu1 (!%p159_p3), %v486_v0 }
   0x9   : > { %448 = vmatprep.subr.bf16.mxu0 (!%p159_p3), %v487_v1  ;;  %459 = vmatprep.subr.bf16.mxu1 (!%p159_p3), %v487_v1 }
   0xc   : > { %449 = vmatpush3.bf16.msra.mxu0 (!%p159_p3), %v487_v1  ;;  %461 = vmatpush3.bf16.msra.mxu1 (!%p159_p3), %v487_v1 }
   0xe   : > { %s595_s12 = smov (!%p191_p4, %s502_s12), 1 }
   0xf   : > { %s438_s20 = sshll.u32 %s595_s12, 6 }
  0x10   : > { %s198_s23 = scalar_lea.vmem %s586_s0, %s438_s20  ;;  %s208_s28 = scalar_lea.vmem %s589_s3, %s438_s20 }
  0x11   : > { %v211_v2 = vld [vmem:[%s198_s23] sm:$0xff]  ;;  %v212_v3 = vld [vmem:[%s198_s23 + $0x8] sm:$0xff]  ;;  %v213_v7 = vld [vmem:[%s198_s23 + $0x10] sm:$0xff] }
  0x12   : > { %v215_v4 = vld [vmem:[%s198_s23 + $0x20] sm:$0xff]  ;;  %v219_v5 = vpack.c.bf16 %v212_v3, %v211_v2  ;;  %v216_v6 = vld [vmem:[%s198_s23 + $0x28] sm:$0xff]  ;;  %v214_v8 = vld [vmem:[%s198_s23 + $0x18] sm:$0xff] }
  0x13   : > { %v221_v9 = vpack.c.bf16 %v216_v6, %v215_v4  ;;  %v220_v10 = vpack.c.bf16 %v214_v8, %v213_v7  ;;  %v217_v11 = vld [vmem:[%s198_s23 + $0x30] sm:$0xff]  ;;  %v218_v12 = vld [vmem:[%s198_s23 + $0x38] sm:$0xff] }
  0x14   : > { %450 = vmatprep.mubr.msk.bf16.mxu0 %vm246_vm0, %v219_v5  ;;  %v222_v13 = vpack.c.bf16 %v218_v12, %v217_v11 }
  0x15   : > { %454 = vmatprep.mubr.msk.bf16.mxu1 %vm246_vm0, %v221_v9  ;;  %451 = vmatmul.mubr.msk.bf16.vlgmr.msra.gmra.mrb[0].mxu0 %vm246_vm0, %v220_v10 }
  0x16   : > { %455 = vmatmul.mubr.msk.bf16.vlgmr.msra.gmra.mrb[0].mxu1 %vm246_vm0, %v222_v13 }
  0xe8   : > { %v452_v15 = vpop.f32.mrb[0].mxu0 }
  0xe9   : > { %v302_v16 = vadd.f32 %v452_v15, %v429_v14  ;;  %v456_v17 = vpop.f32.mrb[0].mxu1  ;;  %v293_v18 = vpop.f32.mrb[1].mxu0 }
  0xea   : > { %v318_v19 = vadd.f32 %v456_v17, %v429_v14  ;;  %v294_v20 = vadd.f32 %v429_v14, %v293_v18  ;;  %v309_v21 = vpop.f32.mrb[1].mxu1  ;;  %v453_v22 = vpop.f32.mrb[2].mxu0 }
  0xeb   : > { %327 = vst.msk [vmem:[%s208_s28 + $0x10] sm:$0xff] %vm324_vm1, %v302_v16  ;;  %v310_v23 = vadd.f32 %v429_v14, %v309_v21  ;;  %v305_v24 = vadd.f32 %v453_v22, %v429_v14  ;;  %v457_v25 = vpop.f32.mrb[2].mxu1  ;;  %v296_v26 = vpop.f32.mrb[3].mxu0 }
  0xec   : > { %331 = vst.msk [vmem:[%s208_s28 + $0x30] sm:$0xff] %vm324_vm1, %v318_v19  ;;  %325 = vst.msk [vmem:[%s208_s28] sm:$0xff] %vm324_vm1, %v294_v20  ;;  %v321_v27 = vadd.f32 %v457_v25, %v429_v14  ;;  %v297_v28 = vadd.f32 %v429_v14, %v296_v26  ;;  %v312_v29 = vpop.f32.mrb[3].mxu1 }
  0xed   : > { %329 = vst.msk [vmem:[%s208_s28 + $0x20] sm:$0xff] %vm324_vm1, %v310_v23  ;;  %328 = vst.msk [vmem:[%s208_s28 + $0x18] sm:$0xff] %vm324_vm1, %v305_v24  ;;  %v313_v30 = vadd.f32 %v429_v14, %v312_v29 }
  0xee   : > { %332 = vst.msk [vmem:[%s208_s28 + $0x38] sm:$0xff] %vm324_vm1, %v321_v27  ;;  %326 = vst.msk [vmem:[%s208_s28 + $0x8] sm:$0xff] %vm324_vm1, %v297_v28 }
  0xef   : > { %330 = vst.msk [vmem:[%s208_s28 + $0x28] sm:$0xff] %vm324_vm1, %v313_v30 }
  0xf0 PF: > { %s13_s14 = sadd.s32 1, %s510_s14   ;;  %s590_s12 = smov %s506_s13 }
  0xf1   : > { %p10_p5 = scmp.ge.s32.totalorder %s13_s14, 4   ;;  %s591_s13 = smov %s593_s15 }
  0xf3   :  { %12 = sbr.rel (!%p10_p5) target bundleno = 2 (0x2), region = 62 }

// kernel: oanet_forward.238
= control target key start
LH: loop header
LB: loop body
LE: loop exit
PB: predicated region body
PF: predicated region fallthrough
CT: control target
= control target key end

     0   :  { %s664_s18 = smov 0   ;;  %s666_s19 = smov 0   ;;  %s730_s0 = inlined_call_operand.vmem [shape: f32[2,64,8], index: 0, kind: input, shape index: {}]   ;;  %s731_s1 = inlined_call_operand.vmem [shape: f32[2,1,8], index: 1, kind: input, shape index: {}]   ;;  %s732_s2 = inlined_call_operand.vmem [shape: f32[2,1,8], index: 2, kind: input, shape index: {}]   ;;  %s733_s3 = inlined_call_operand.vmem [shape: bf16[8,32], index: 3, kind: input, shape index: {}]   ;;  %s734_s4 = inlined_call_operand.vmem [shape: f32[1,32], index: 4, kind: input, shape index: {}]   ;;  %s735_s5 = inlined_call_operand.vmem [shape: f32[2,64,32], index: 5, kind: output, shape index: {}]  }
   0x1   :  { %s668_s20 = smov 0  }
   0x2 LB: > { %s27_s21 = sadd.s32 1, %s628_s19  ;;  %p551_p0 = scmp.ge.s32.totalorder %s632_s20, 1  ;;  %s632_s20 = sphi %s668_s20, %s15_s20   ;;  %s628_s19 = sphi %s666_s19, %s737_s19   ;;  %s624_s18 = sphi %s664_s18, %s736_s18  }
   0x3   : > { %p29_p1 = scmp.ge.s32.totalorder %s27_s21, 2  ;;  %p224_p2 = scmp.lt.s32.totalorder %s632_s20, 3 }
   0x5   : > { %s739_s21 = smov (%p29_p1, %s27_s21), 0  ;;  %p225_p3 = pnand %p551_p0, %p224_p2 }
   0x6   : > { %v343_v0 = vld [vmem:[%s733_s3] sm:$0xf] (!%p225_p3)  ;;  %vm364_vm0 = vcmask (!%p225_p3), 1043456   ;;  %p267_p4 = scmp.lt.s32.totalorder (!%p225_p3), %s624_s18, 1  ;;  %vm351_vm1 = vcmask (!%p225_p3), 64512   ;;  %vm433_vm2 = vcmask (!%p225_p3), 261120  }
   0x7   : > { %228 = sbr.rel (%p225_p3) target bundleno = 247 (0xf7), region = 40  ;;  %584 = vmatprep.subr.msk.bf16.mxu0 (!%p225_p3), %vm364_vm0, %v343_v0  ;;  %585 = vmatprep.subr.msk.bf16.mxu1 (!%p225_p3), %vm364_vm0, %v343_v0  ;;  %v366_v1 = vsel (!%p225_p3), %vm364_vm0, %v343_v0, 0  ;;  %v558_v40 = vld [vmem:[%s734_s4] ss:$0 sm:$0xff] (!%p225_p3) }
   0x8   : > { %573 = vmatpush3.bf16.msra.mxu0 (!%p225_p3), %v366_v1  ;;  %583 = vmatpush3.bf16.msra.mxu1 (!%p225_p3), %v366_v1 }
   0xe   : > { %s741_s18 = smov (!%p267_p4, %s624_s18), 1 }
   0xf   : > { %s565_s24 = sshll.u32 %s741_s18, 6  ;;  %s278_s27 = scalar_lea.vmem %s731_s1, %s741_s18 }
  0x10   : > { %s274_s30 = scalar_lea.vmem %s730_s0, %s565_s24  ;;  %s281_s8 = scalar_lea.vmem %s732_s2, %s741_s18  ;;  %v556_v2 = vld [vmem:[%s278_s27] ss:$0 sm:$0xff] }
  0x11   : > { %v293_v3 = vld [vmem:[%s274_s30] sm:$0xff]  ;;  %v294_v4 = vld [vmem:[%s274_s30 + $0x8] sm:$0xff]  ;;  %v295_v10 = vld [vmem:[%s274_s30 + $0x10] sm:$0xff]  ;;  %s290_s13 = scalar_lea.vmem %s735_s5, %s565_s24 }
  0x12   : > { %v557_v5 = vld [vmem:[%s281_s8] ss:$0 sm:$0xff]  ;;  %v308_v6 = vmul.f32 %v556_v2, %v293_v3  ;;  %v309_v7 = vmul.f32 %v556_v2, %v294_v4  ;;  %v298_v9 = vld [vmem:[%s274_s30 + $0x28] sm:$0xff]  ;;  %v296_v13 = vld [vmem:[%s274_s30 + $0x18] sm:$0xff]  ;;  %v310_v14 = vmul.f32 %v556_v2, %v295_v10 }
  0x13   : > { %v297_v8 = vld [vmem:[%s274_s30 + $0x20] sm:$0xff]  ;;  %v313_v12 = vmul.f32 %v556_v2, %v298_v9  ;;  %v299_v15 = vld [vmem:[%s274_s30 + $0x30] sm:$0xff]  ;;  %v300_v16 = vld [vmem:[%s274_s30 + $0x38] sm:$0xff]  ;;  %v311_v19 = vmul.f32 %v556_v2, %v296_v13 }
  0x14   : > { %v312_v11 = vmul.f32 %v556_v2, %v297_v8  ;;  %v323_v17 = vadd.f32 %v557_v5, %v308_v6  ;;  %v324_v18 = vadd.f32 %v557_v5, %v309_v7  ;;  %v314_v20 = vmul.f32 %v556_v2, %v299_v15 }
  0x15   : > { %v328_v22 = vadd.f32 %v557_v5, %v313_v12  ;;  %v325_v23 = vadd.f32 %v557_v5, %v310_v14  ;;  %v315_v24 = vmul.f32 %v556_v2, %v300_v16  ;;  %v326_v27 = vadd.f32 %v557_v5, %v311_v19 }
  0x16   : > { %v327_v21 = vadd.f32 %v557_v5, %v312_v11  ;;  %v331_v25 = vmax.f32 %v323_v17, 0.0  ;;  %v332_v26 = vmax.f32 %v324_v18, 0.0  ;;  %v329_v28 = vadd.f32 %v557_v5, %v314_v20 }
  0x17   : > { %v336_v30 = vmax.f32 %v328_v22, 0.0  ;;  %v333_v31 = vmax.f32 %v325_v23, 0.0  ;;  %v330_v32 = vadd.f32 %v557_v5, %v315_v24  ;;  %v334_v34 = vmax.f32 %v326_v27, 0.0 }
  0x18   : > { %v335_v29 = vmax.f32 %v327_v21, 0.0  ;;  %v339_v33 = vpack.c.bf16 %v332_v26, %v331_v25  ;;  %v337_v35 = vmax.f32 %v329_v28, 0.0 }
  0x19   : > { %v338_v37 = vmax.f32 %v330_v32, 0.0  ;;  %v340_v38 = vpack.c.bf16 %v334_v34, %v333_v31 }
  0x1a   : > { %v341_v36 = vpack.c.bf16 %v336_v30, %v335_v29  ;;  %574 = vmatprep.mubr.msk.bf16.mxu0 %vm351_vm1, %v339_v33 }
  0x1b   : > { %v342_v39 = vpack.c.bf16 %v338_v37, %v337_v35  ;;  %575 = vmatmul.mubr.msk.bf16.vlgmr.msra.gmra.mrb[0].mxu0 %vm351_vm1, %v340_v38 }
  0x1c   : > { %578 = vmatprep.mubr.msk.bf16.mxu1 %vm351_vm1, %v341_v36 }
  0x1d   : > { %579 = vmatmul.mubr.msk.bf16.vlgmr.msra.gmra.mrb[0].mxu1 %vm351_vm1, %v342_v39 }
  0xee   : > { %v576_v41 = vpop.f32.mrb[0].mxu0 }
  0xef   : > { %v411_v42 = vadd.f32 %v576_v41, %v558_v40  ;;  %v402_v44 = vpop.f32.mrb[1].mxu0 }
  0xf0   : > { %v580_v43 = vpop.f32.mrb[0].mxu1  ;;  %v403_v46 = vadd.f32 %v558_v40, %v402_v44  ;;  %v577_v48 = vpop.f32.mrb[2].mxu0 }
  0xf1   : > { %v427_v45 = vadd.f32 %v580_v43, %v558_v40  ;;  %v418_v47 = vpop.f32.mrb[1].mxu1  ;;  %436 = vst.msk [vmem:[%s290_s13 + $0x10] sm:$0xff] %vm433_vm2, %v411_v42  ;;  %v414_v50 = vadd.f32 %v577_v48, %v558_v40  ;;  %v405_v52 = vpop.f32.mrb[3].mxu0 }
  0xf2   : > { %v419_v49 = vadd.f32 %v558_v40, %v418_v47  ;;  %v581_v51 = vpop.f32.mrb[2].mxu1  ;;  %434 = vst.msk [vmem:[%s290_s13] sm:$0xff] %vm433_vm2, %v403_v46  ;;  %v406_v54 = vadd.f32 %v558_v40, %v405_v52 }
  0xf3   : > { %440 = vst.msk [vmem:[%s290_s13 + $0x30] sm:$0xff] %vm433_vm2, %v427_v45  ;;  %v430_v53 = vadd.f32 %v581_v51, %v558_v40  ;;  %v421_v55 = vpop.f32.mrb[3].mxu1  ;;  %437 = vst.msk [vmem:[%s290_s13 + $0x18] sm:$0xff] %vm433_vm2, %v414_v50 }
  0xf4   : > { %438 = vst.msk [vmem:[%s290_s13 + $0x20] sm:$0xff] %vm433_vm2, %v419_v49  ;;  %v422_v56 = vadd.f32 %v558_v40, %v421_v55  ;;  %435 = vst.msk [vmem:[%s290_s13 + $0x8] sm:$0xff] %vm433_vm2, %v406_v54 }
  0xf5   : > { %441 = vst.msk [vmem:[%s290_s13 + $0x38] sm:$0xff] %vm433_vm2, %v430_v53 }
  0xf6   : > { %439 = vst.msk [vmem:[%s290_s13 + $0x28] sm:$0xff] %vm433_vm2, %v422_v56 }
  0xf7 PF: > { %s15_s20 = sadd.s32 1, %s632_s20   ;;  %s736_s18 = smov %s628_s19 }
  0xf8   : > { %p12_p5 = scmp.ge.s32.totalorder %s15_s20, 4   ;;  %s737_s19 = smov %s739_s21 }
  0xfa   :  { %14 = sbr.rel (!%p12_p5) target bundleno = 2 (0x2), region = 76 }

// kernel: oanet_forward.239
= control target key start
LH: loop header
LB: loop body
LE: loop exit
PB: predicated region body
PF: predicated region fallthrough
CT: control target
= control target key end

     0   :  { %s737_s18 = smov 0   ;;  %s739_s19 = smov 0   ;;  %s795_s0 = inlined_call_operand.vmem [shape: f32[2,64,32], index: 0, kind: input, shape index: {}]   ;;  %s796_s1 = inlined_call_operand.vmem [shape: f32[2,1,32], index: 1, kind: input, shape index: {}]   ;;  %s797_s2 = inlined_call_operand.vmem [shape: f32[2,1,32], index: 2, kind: input, shape index: {}]   ;;  %s798_s3 = inlined_call_operand.vmem [shape: f32[2,1,32], index: 3, kind: input, shape index: {}]   ;;  %s799_s4 = inlined_call_operand.vmem [shape: f32[2,64,32], index: 4, kind: input, shape index: {}]   ;;  %s800_s5 = inlined_call_operand.vmem [shape: f32[2,64,32], index: 5, kind: output, shape index: {}]  }
   0x1   :  { %s741_s20 = smov 0  }
   0x2 LB: > { %s27_s21 = sadd.s32 1, %s701_s19  ;;  %p604_p0 = scmp.ge.s32.totalorder %s705_s20, 1  ;;  %s705_s20 = sphi %s741_s20, %s15_s20   ;;  %s701_s19 = sphi %s739_s19, %s802_s19   ;;  %s697_s18 = sphi %s737_s18, %s801_s18  }
   0x3   : > { %p29_p1 = scmp.ge.s32.totalorder %s27_s21, 2  ;;  %p249_p2 = scmp.lt.s32.totalorder %s705_s20, 3 }
   0x5   : > { %s804_s21 = smov (%p29_p1, %s27_s21), 0  ;;  %p250_p3 = pnand %p604_p0, %p249_p2 }
   0x6   : > { %p304_p4 = scmp.lt.s32.totalorder (!%p250_p3), %s697_s18, 1  ;;  %vm459_vm0 = vcmask (!%p250_p3), 261120  }
   0x7   : > { %253 = sbr.rel (%p250_p3) target bundleno = 60 (0x3c), region = 40 }
   0xe   : > { %s806_s18 = smov (!%p304_p4, %s697_s18), 1 }
   0xf   : > { %s755_s22 = sshll.u32 %s806_s18, 6  ;;  %s315_s25 = scalar_lea.vmem %s796_s1, %s806_s18 }
  0x10   : > { %s311_s28 = scalar_lea.vmem %s795_s0, %s755_s22  ;;  %s318_s6 = scalar_lea.vmem %s797_s2, %s806_s18  ;;  %v611_v0 = vld [vmem:[%s315_s25] ss:$0 sm:$0xff] }
  0x11   : > { %s321_s9 = scalar_lea.vmem %s798_s3, %s806_s18  ;;  %v342_v1 = vld [vmem:[%s311_s28] sm:$0xff]  ;;  %v343_v3 = vld [vmem:[%s311_s28 + $0x8] sm:$0xff]  ;;  %v344_v7 = vld [vmem:[%s311_s28 + $0x10] sm:$0xff]  ;;  %s330_s12 = scalar_lea.vmem %s799_s4, %s755_s22 }
  0x12   : > { %v612_v2 = vld [vmem:[%s318_s6] ss:$0 sm:$0xff]  ;;  %v357_v4 = vmul.f32 %v611_v0, %v342_v1  ;;  %v358_v5 = vmul.f32 %v611_v0, %v343_v3  ;;  %v345_v8 = vld [vmem:[%s311_s28 + $0x18] sm:$0xff]  ;;  %v359_v11 = vmul.f32 %v611_v0, %v344_v7  ;;  %v347_v15 = vld [vmem:[%s311_s28 + $0x28] sm:$0xff]  ;;  %s340_s15 = scalar_lea.vmem %s800_s5, %s755_s22 }
  0x13   : > { %v613_v6 = vld [vmem:[%s321_s9] ss:$0 sm:$0xff]  ;;  %v360_v12 = vmul.f32 %v611_v0, %v345_v8  ;;  %v348_v16 = vld [vmem:[%s311_s28 + $0x30] sm:$0xff]  ;;  %v349_v21 = vld [vmem:[%s311_s28 + $0x38] sm:$0xff]  ;;  %v362_v23 = vmul.f32 %v611_v0, %v347_v15 }
  0x14   : > { %v372_v9 = vadd.f32 %v612_v2, %v357_v4  ;;  %v373_v10 = vadd.f32 %v612_v2, %v358_v5  ;;  %v346_v13 = vld [vmem:[%s311_s28 + $0x20] sm:$0xff]  ;;  %v374_v19 = vadd.f32 %v612_v2, %v359_v11  ;;  %v363_v24 = vmul.f32 %v611_v0, %v348_v16  ;;  %v444_v60 = vld [vmem:[%s330_s12 + $0x8] sm:$0xff]  ;;  %v445_v62 = vld [vmem:[%s330_s12 + $0x10] sm:$0xff] }
  0x15   : > { %v361_v14 = vmul.f32 %v611_v0, %v346_v13  ;;  %v375_v20 = vadd.f32 %v612_v2, %v360_v12  ;;  %v364_v25 = vmul.f32 %v611_v0, %v349_v21  ;;  %v377_v31 = vadd.f32 %v612_v2, %v362_v23  ;;  %v443_v59 = vld [vmem:[%s330_s12] sm:$0xff]  ;;  %v446_v1 = vld [vmem:[%s330_s12 + $0x18] sm:$0xff]  ;;  %v448_v7 = vld [vmem:[%s330_s12 + $0x28] sm:$0xff] }
  0x16   : > { %v387_v17 = vadd.f32 %v613_v6, %v372_v9  ;;  %v388_v18 = vadd.f32 %v613_v6, %v373_v10  ;;  %v389_v28 = vadd.f32 %v613_v6, %v374_v19  ;;  %v378_v32 = vadd.f32 %v612_v2, %v363_v24  ;;  %v447_v4 = vld [vmem:[%s330_s12 + $0x20] sm:$0xff]  ;;  %v449_v10 = vld [vmem:[%s330_s12 + $0x30] sm:$0xff]  ;;  %v450_v13 = vld [vmem:[%s330_s12 + $0x38] sm:$0xff] }
  0x17   : > { %v376_v22 = vadd.f32 %v612_v2, %v361_v14  ;;  %v390_v29 = vadd.f32 %v613_v6, %v375_v20  ;;  %v379_v33 = vadd.f32 %v612_v2, %v364_v25  ;;  %v392_v37 = vadd.f32 %v613_v6, %v377_v31 }
  0x18   : > { %v614_v26 = vmul.f32 -1.442695, %v387_v17  ;;  %v615_v27 = vmul.f32 -1.442695, %v388_v18  ;;  %v616_v34 = vmul.f32 -1.442695, %v389_v28  ;;  %v393_v38 = vadd.f32 %v613_v6, %v378_v32 }
  0x19   : > { %v391_v30 = vadd.f32 %v613_v6, %v376_v22  ;;  %v617_v35 = vmul.f32 -1.442695, %v390_v29  ;;  %v394_v39 = vadd.f32 %v613_v6, %v379_v33  ;;  %v619_v40 = vmul.f32 -1.442695, %v392_v37 }
  0x1a   : > { %651 = vpow2.f32 %v614_v26  ;;  %v620_v41 = vmul.f32 -1.442695, %v393_v38 }
  0x1b   : > { %653 = vpow2.f32 %v615_v27  ;;  %v618_v36 = vmul.f32 -1.442695, %v391_v30  ;;  %v621_v42 = vmul.f32 -1.442695, %v394_v39 }
  0x1c   : > { %655 = vpow2.f32 %v616_v34 }
  0x1d   : > { %657 = vpow2.f32 %v617_v35 }
  0x1e   : > { %659 = vpow2.f32 %v618_v36 }
  0x1f   : > { %661 = vpow2.f32 %v619_v40 }
  0x20   : > { %663 = vpow2.f32 %v620_v41 }
  0x21   : > { %665 = vpow2.f32 %v621_v42 }
  0x24   : > { %v652_v43 = vpop.eup %651 }
  0x25   : > { %v654_v44 = vpop.eup %653  ;;  %v419_v45 = vadd.f32 1.0, %v652_v43 }
  0x26   : > { %v656_v46 = vpop.eup %655  ;;  %v420_v47 = vadd.f32 1.0, %v654_v44 }
  0x27   : > { %v658_v48 = vpop.eup %657  ;;  %667 = vrcp.f32 %v419_v45  ;;  %v421_v49 = vadd.f32 1.0, %v656_v46 }
  0x28   : > { %v660_v50 = vpop.eup %659  ;;  %669 = vrcp.f32 %v420_v47  ;;  %v422_v51 = vadd.f32 1.0, %v658_v48 }
  0x29   : > { %v662_v52 = vpop.eup %661  ;;  %671 = vrcp.f32 %v421_v49  ;;  %v423_v53 = vadd.f32 1.0, %v660_v50 }
  0x2a   : > { %v664_v54 = vpop.eup %663  ;;  %673 = vrcp.f32 %v422_v51  ;;  %v424_v55 = vadd.f32 1.0, %v662_v52 }
  0x2b   : > { %v666_v56 = vpop.eup %665  ;;  %675 = vrcp.f32 %v423_v53  ;;  %v425_v57 = vadd.f32 1.0, %v664_v54 }
  0x2c   : > { %677 = vrcp.f32 %v424_v55  ;;  %v426_v58 = vadd.f32 1.0, %v666_v56 }
  0x2d   : > { %679 = vrcp.f32 %v425_v57 }
  0x2e   : > { %681 = vrcp.f32 %v426_v58 }
  0x31   : > { %v668_v61 = vpop.eup %667 }
  0x32   : > { %v670_v63 = vpop.eup %669  ;;  %v451_v0 = vmul.f32 %v668_v61, %v443_v59 }
  0x33   : > { %v672_v2 = vpop.eup %671  ;;  %v452_v3 = vmul.f32 %v670_v63, %v444_v60 }
  0x34   : > { %v674_v5 = vpop.eup %673  ;;  %460 = vst.msk [vmem:[%s340_s15] sm:$0xff] %vm459_vm0, %v451_v0  ;;  %v453_v6 = vmul.f32 %v672_v2, %v445_v62 }
  0x35   : > { %v676_v8 = vpop.eup %675  ;;  %461 = vst.msk [vmem:[%s340_s15 + $0x8] sm:$0xff] %vm459_vm0, %v452_v3  ;;  %v454_v9 = vmul.f32 %v674_v5, %v446_v1 }
  0x36   : > { %v678_v11 = vpop.eup %677  ;;  %462 = vst.msk [vmem:[%s340_s15 + $0x10] sm:$0xff] %vm459_vm0, %v453_v6  ;;  %v455_v12 = vmul.f32 %v676_v8, %v447_v4 }
  0x37   : > { %v680_v14 = vpop.eup %679  ;;  %463 = vst.msk [vmem:[%s340_s15 + $0x18] sm:$0xff] %vm459_vm0, %v454_v9  ;;  %v456_v15 = vmul.f32 %v678_v11, %v448_v7 }
  0x38   : > { %v682_v16 = vpop.eup %681  ;;  %464 = vst.msk [vmem:[%s340_s15 + $0x20] sm:$0xff] %vm459_vm0, %v455_v12  ;;  %v457_v17 = vmul.f32 %v680_v14, %v449_v10 }
  0x39   : > { %465 = vst.msk [vmem:[%s340_s15 + $0x28] sm:$0xff] %vm459_vm0, %v456_v15  ;;  %v458_v18 = vmul.f32 %v682_v16, %v450_v13 }
  0x3a   : > { %466 = vst.msk [vmem:[%s340_s15 + $0x30] sm:$0xff] %vm459_vm0, %v457_v17 }
  0x3b   : > { %467 = vst.msk [vmem:[%s340_s15 + $0x38] sm:$0xff] %vm459_vm0, %v458_v18 }
  0x3c PF: > { %s15_s20 = sadd.s32 1, %s705_s20   ;;  %s801_s18 = smov %s701_s19 }
  0x3d   : > { %p12_p5 = scmp.ge.s32.totalorder %s15_s20, 4   ;;  %s802_s19 = smov %s804_s21 }
  0x3f   :  { %14 = sbr.rel (!%p12_p5) target bundleno = 2 (0x2), region = 82 }

// kernel: oanet_forward.267
= control target key start
LH: loop header
LB: loop body
LE: loop exit
PB: predicated region body
PF: predicated region fallthrough
CT: control target
= control target key end

     0   :  { %s484_s9 = smov 0   ;;  %s534_s0 = inlined_call_operand.vmem [shape: f32[2,64,16], index: 0, kind: input, shape index: {}]   ;;  %s535_s1 = inlined_call_operand.vmem [shape: f32[2,64,32], index: 1, kind: input, shape index: {}]   ;;  %s536_s2 = inlined_call_operand.vmem [shape: f32[2,16,32], index: 2, kind: output, shape index: {}]  }
   0x1 LB: > { %s396_s10 = sadd.s32 4294967295, %s465_s9   ;;  %p400_p0 = scmp.ge.s32.totalorder %s465_s9, 1  ;;  %s465_s9 = sphi %s484_s9, %s12_s9  }
   0x2   : > { %p122_p1 = scmp.lt.s32.totalorder %s465_s9, 3 }
   0x4   : > { %p123_p2 = pnand %p400_p0, %p122_p1 }
   0x5   : > { %p149_p3 = scmp.lt.s32.totalorder (!%p123_p2), %s396_s10, 1  ;;  %v467_v0 = vmov (!%p123_p2), 0.0   ;;  %vm468_vm0 = vmmov (!%p123_p2), 0   ;;  %vm173_vm1 = vcmask (!%p123_p2), 130048   ;;  %vm281_vm2 = vcmask (!%p123_p2), 523264  }
   0x6   : > { %126 = sbr.rel (%p123_p2) target bundleno = 414 (0x19e), region = 28  ;;  %418 = vmatprep.subr.bf16.mxu0 (!%p123_p2), %v467_v0  ;;  %426 = vmatprep.mubr.msk.bf16.mxu0 (!%p123_p2), %vm468_vm0, %v467_v0  ;;  %vm326_vm3 = vcmask (!%p123_p2), 261120  }
   0xd   : > { %s538_s10 = smov (!%p149_p3, %s396_s10), 1 }
   0xe   : > { %s410_s11 = sshll.u32 %s538_s10, 6  ;;  %s412_s18 = sshll.u32 %s538_s10, 4 }
   0xf   : > { %s153_s14 = scalar_lea.vmem %s534_s0, %s410_s11  ;;  %s501_s17 = scalar_lea.vmem %s535_s1, %s410_s11 }
  0x10   : > { %v165_v1 = vld [vmem:[%s153_s14] sm:$0xff]  ;;  %v166_v2 = vld [vmem:[%s153_s14 + $0x8] sm:$0xff]  ;;  %v167_v3 = vld [vmem:[%s153_s14 + $0x10] sm:$0xff]  ;;  %s163_s21 = scalar_lea.vmem %s536_s2, %s412_s18 }
  0x11   : > { %v168_v4 = vld [vmem:[%s153_s14 + $0x18] sm:$0xff]  ;;  %v169_v5 = vld [vmem:[%s153_s14 + $0x20] sm:$0xff]  ;;  %v170_v6 = vld [vmem:[%s153_s14 + $0x28] sm:$0xff]  ;;  %v174_v7 = vsel %vm173_vm1, %v165_v1, -inf  ;;  %v175_v8 = vsel %vm173_vm1, %v166_v2, -inf  ;;  %v176_v9 = vsel %vm173_vm1, %v167_v3, -inf }
  0x12   : > { %v171_v10 = vld [vmem:[%s153_s14 + $0x30] sm:$0xff]  ;;  %v172_v11 = vld [vmem:[%s153_s14 + $0x38] sm:$0xff]  ;;  %v177_v12 = vsel %vm173_vm1, %v168_v4, -inf  ;;  %v178_v13 = vsel %vm173_vm1, %v169_v5, -inf  ;;  %v180_v14 = vsel %vm173_vm1, %v170_v6, -inf  ;;  %v253_v15 = vld [vmem:[%s501_s17] sm:$0xff] }
  0x13   : > { %v179_v16 = vmax.f32 %v174_v7, %v178_v13  ;;  %v181_v17 = vmax.f32 %v175_v8, %v180_v14  ;;  %v182_v18 = vsel %vm173_vm1, %v171_v10, -inf  ;;  %v184_v19 = vsel %vm173_vm1, %v172_v11, -inf  ;;  %v254_v20 = vld [vmem:[%s501_s17 + $0x8] sm:$0xff]  ;;  %v255_v21 = vld [vmem:[%s501_s17 + $0x10] sm:$0xff]  ;;  %v256_v22 = vld [vmem:[%s501_s17 + $0x18] sm:$0xff] }
  0x14   : > { %v183_v23 = vmax.f32 %v176_v9, %v182_v18  ;;  %v185_v24 = vmax.f32 %v177_v12, %v184_v19  ;;  %v261_v25 = vpack.c.bf16 %v254_v20, %v253_v15  ;;  %v262_v28 = vpack.c.bf16 %v256_v22, %v255_v21  ;;  %v257_v29 = vld [vmem:[%s501_s17 + $0x20] sm:$0xff]  ;;  %v258_v30 = vld [vmem:[%s501_s17 + $0x28] sm:$0xff]  ;;  %v259_v34 = vld [vmem:[%s501_s17 + $0x30] sm:$0xff] }
  0x15   : > { %v186_v26 = vmax.f32 %v179_v16, %v181_v17  ;;  %v263_v33 = vpack.c.bf16 %v258_v30, %v257_v29  ;;  %v260_v35 = vld [vmem:[%s501_s17 + $0x38] sm:$0xff] }
  0x16   : > { %v187_v27 = vmax.f32 %v183_v23, %v185_v24  ;;  %419 = vmatpush3.bf16.msra.mxu0 %v261_v25  ;;  %v264_v38 = vpack.c.bf16 %v260_v35, %v259_v34 }
  0x17   : > { %420 = vmatprep.subr.bf16.mxu0 %v467_v0 }
  0x18   : > { %v188_v31 = vmax.f32 %v186_v26, %v187_v27 }
  0x1a   : > { %v189_v32 = vrot.slane %v188_v31, 4  ;;  %421 = vmatpush3.bf16.msra.mxu0 %v262_v28 }
  0x1b   : > { %422 = vmatprep.subr.bf16.mxu0 %v467_v0 }
  0x1c   : > { %v190_v36 = vmax.f32 %v188_v31, %v189_v32 }
  0x1e   : > { %v191_v37 = vrot.slane %v190_v36, 2  ;;  %423 = vmatpush3.bf16.msra.mxu0 %v263_v33 }
  0x1f   : > { %424 = vmatprep.subr.bf16.mxu0 %v467_v0 }
  0x20   : > { %v192_v39 = vmax.f32 %v190_v36, %v191_v37 }
  0x22   : > { %v193_v40 = vrot.slane %v192_v39, 1  ;;  %425 = vmatpush3.bf16.msra.mxu0 %v264_v38 }
  0x24   : > { %v194_v41 = vmax.f32 %v192_v39, %v193_v40 }
  0x26   : > { %v195_v42 = vsub.f32 %v165_v1, %v194_v41  ;;  %v196_v43 = vsub.f32 %v166_v2, %v194_v41  ;;  %v197_v44 = vsub.f32 %v167_v3, %v194_v41  ;;  %v198_v45 = vsub.f32 %v168_v4, %v194_v41 }
  0x27   : > { %v199_v46 = vsub.f32 %v169_v5, %v194_v41  ;;  %v200_v47 = vsub.f32 %v170_v6, %v194_v41  ;;  %v201_v51 = vsub.f32 %v171_v10, %v194_v41  ;;  %v202_v54 = vsub.f32 %v172_v11, %v194_v41 }
  0x28   : > { %v203_v48 = vmul.f32 1.442695, %v195_v42  ;;  %v205_v49 = vmul.f32 1.442695, %v196_v43  ;;  %v207_v50 = vmul.f32 1.442695, %v197_v44 }
  0x29   : > { %v209_v52 = vmul.f32 1.442695, %v198_v45  ;;  %v211_v53 = vmul.f32 1.442695, %v199_v46  ;;  %v213_v55 = vmul.f32 1.442695, %v200_v47 }
  0x2a   : > { %441 = vpow2.f32 %v203_v48  ;;  %v215_v56 = vmul.f32 1.442695, %v201_v51  ;;  %v217_v57 = vmul.f32 1.442695, %v202_v54 }
  0x2b   : > { %443 = vpow2.f32 %v205_v49 }
  0x2c   : > { %445 = vpow2.f32 %v207_v50 }
  0x2d   : > { %447 = vpow2.f32 %v209_v52 }
  0x2e   : > { %449 = vpow2.f32 %v211_v53 }
  0x2f   : > { %451 = vpow2.f32 %v213_v55 }
  0x30   : > { %453 = vpow2.f32 %v215_v56 }
  0x31   : > { %455 = vpow2.f32 %v217_v57 }
  0x34   : > { %v442_v58 = vpop.eup %441 }
  0x35   : > { %v444_v59 = vpop.eup %443  ;;  %v219_v60 = vsel %vm173_vm1, %v442_v58, 0.0 }
  0x36   : > { %v446_v61 = vpop.eup %445  ;;  %v220_v62 = vsel %vm173_vm1, %v444_v59, 0.0 }
  0x37   : > { %v448_v63 = vpop.eup %447  ;;  %v221_v0 = vadd.f32 %v220_v62, %v219_v60  ;;  %v222_v1 = vsel %vm173_vm1, %v446_v61, 0.0 }
  0x38   : > { %v450_v2 = vpop.eup %449  ;;  %v224_v3 = vsel %vm173_vm1, %v448_v63, 0.0 }
  0x39   : > { %v452_v4 = vpop.eup %451  ;;  %v223_v5 = vadd.f32 %v222_v1, %v221_v0  ;;  %v226_v6 = vsel %vm173_vm1, %v450_v2, 0.0 }
  0x3a   : > { %v454_v7 = vpop.eup %453  ;;  %v228_v9 = vsel %vm173_vm1, %v452_v4, 0.0 }
  0x3b   : > { %v225_v8 = vadd.f32 %v224_v3, %v223_v5  ;;  %v456_v10 = vpop.eup %455  ;;  %v230_v12 = vsel %vm173_vm1, %v454_v7, 0.0 }
  0x3c   : > { %v232_v14 = vsel %vm173_vm1, %v456_v10, 0.0 }
  0x3d   : > { %v227_v11 = vadd.f32 %v226_v6, %v225_v8 }
  0x3f   : > { %v229_v13 = vadd.f32 %v228_v9, %v227_v11 }
  0x41   : > { %v231_v15 = vadd.f32 %v230_v12, %v229_v13 }
  0x43   : > { %v233_v16 = vadd.f32 %v232_v14, %v231_v15 }
  0x45   : > { %v234_v17 = vrot.slane %v233_v16, 4 }
  0x47   : > { %v235_v18 = vadd.f32 %v234_v17, %v233_v16 }
  0x49   : > { %v236_v19 = vrot.slane %v235_v18, 2 }
  0x4b   : > { %v237_v20 = vadd.f32 %v236_v19, %v235_v18 }
  0x4d   : > { %v238_v21 = vrot.slane %v237_v20, 1 }
  0x4f   : > { %v239_v22 = vadd.f32 %v238_v21, %v237_v20 }
  0x51   : > { %457 = vrcp.f32 %v239_v22 }
  0x5b   : > { %v458_v23 = vpop.eup %457 }
  0x5c   : > { %v241_v24 = vmul.f32 %v458_v23, %v442_v58  ;;  %v242_v25 = vmul.f32 %v458_v23, %v444_v59  ;;  %v243_v26 = vmul.f32 %v458_v23, %v446_v61  ;;  %v244_v27 = vmul.f32 %v458_v23, %v448_v63 }
  0x5d   : > { %v245_v30 = vmul.f32 %v458_v23, %v450_v2  ;;  %v246_v31 = vmul.f32 %v458_v23, %v452_v4  ;;  %v247_v33 = vmul.f32 %v458_v23, %v454_v7  ;;  %v248_v34 = vmul.f32 %v458_v23, %v456_v10 }
  0x5e   : > { %v249_v28 = vpack.c.bf16 %v242_v25, %v241_v24  ;;  %v250_v29 = vpack.c.bf16 %v244_v27, %v243_v26 }
  0x5f   : > { %v251_v32 = vpack.c.bf16 %v246_v31, %v245_v30  ;;  %v252_v35 = vpack.c.bf16 %v248_v34, %v247_v33 }
  0x60   : > { %265 = vxpose.xlu0.c.b16.start [1/4] (short) (narrow) %v249_v28, 16 }
  0x64   : > { %266 = vxpose.xlu0.c.b16.cont [2/4] (short) (narrow) %v250_v29, 16 }
  0x68   : > { %267 = vxpose.xlu0.c.b16.cont [3/4] (short) (narrow) %v251_v32, 16 }
  0x6c   : > { %268 = vxpose.xlu0.c.b16.end [4/4] (short) (narrow) %v252_v35, 16 }
  0xc6   : > { %v273_v36 = vpop.trf.xlu0 }
  0xc7   : > { %427 = vmatmul.mubr.msk.bf16.vlgmr.msra.gmra.mrb[0].mxu0 %vm281_vm2, %v273_v36 }
 0x19a   : > { %v319_v37 = vpop.f32.mrb[0].mxu0 }
 0x19b   : > { %327 = vst.msk [vmem:[%s163_s21] sm:$0xff] %vm326_vm3, %v319_v37  ;;  %v428_v38 = vpop.f32.mrb[1].mxu0 }
 0x19c   : > { %v322_v39 = vpop.f32.mrb[2].mxu0 }
 0x19d   : > { %328 = vst.msk [vmem:[%s163_s21 + $0x8] sm:$0xff] %vm326_vm3, %v322_v39  ;;  %v429_v40 = vpop.f32.mrb[3].mxu0 }
 0x19e PF: > { %s12_s9 = sadd.s32 1, %s465_s9  }
 0x19f   : > { %p9_p4 = scmp.ge.s32.totalorder %s12_s9, 4  }
 0x1a1   :  { %11 = sbr.rel (!%p9_p4) target bundleno = 1 (0x1), region = 61 }

// kernel: oanet_forward.307
= control target key start
LH: loop header
LB: loop body
LE: loop exit
PB: predicated region body
PF: predicated region fallthrough
CT: control target
= control target key end

     0   :  { %s682_s18 = smov 0   ;;  %s684_s19 = smov 0   ;;  %s751_s0 = inlined_call_operand.vmem [shape: f32[2,64,32], index: 0, kind: input, shape index: {}]   ;;  %s752_s1 = inlined_call_operand.vmem [shape: f32[2,1,32], index: 1, kind: input, shape index: {}]   ;;  %s753_s2 = inlined_call_operand.vmem [shape: f32[2,1,32], index: 2, kind: input, shape index: {}]   ;;  %s754_s3 = inlined_call_operand.vmem [shape: bf16[32,16], index: 3, kind: input, shape index: {}]   ;;  %s755_s4 = inlined_call_operand.vmem [shape: f32[1,16], index: 4, kind: input, shape index: {}]   ;;  %s756_s5 = inlined_call_operand.vmem [shape: f32[2,64,16], index: 5, kind: output, shape index: {}]  }
   0x1   :  { %s686_s20 = smov 0  }
   0x2 LB: > { %s27_s21 = sadd.s32 1, %s646_s19  ;;  %p562_p0 = scmp.ge.s32.totalorder %s650_s20, 1  ;;  %s650_s20 = sphi %s686_s20, %s15_s20   ;;  %s646_s19 = sphi %s684_s19, %s758_s19   ;;  %s642_s18 = sphi %s682_s18, %s757_s18  }
   0x3   : > { %p29_p1 = scmp.ge.s32.totalorder %s27_s21, 2  ;;  %p224_p2 = scmp.lt.s32.totalorder %s650_s20, 3 }
   0x5   : > { %s760_s21 = smov (%p29_p1, %s27_s21), 0  ;;  %p225_p3 = pnand %p562_p0, %p224_p2 }
   0x6   : > { %v626_v0 = vld [vmem:[%s754_s3] sm:$0xff] (!%p225_p3)   ;;  %p267_p4 = scmp.lt.s32.totalorder (!%p225_p3), %s642_s18, 1  ;;  %v627_v1 = vld [vmem:[%s754_s3 + $0x8] sm:$0xff] (!%p225_p3)   ;;  %vm366_vm0 = vcmask (!%p225_p3), 261120   ;;  %vm444_vm1 = vcmask (!%p225_p3), 130048  }
   0x7   : > { %228 = sbr.rel (%p225_p3) target bundleno = 247 (0xf7), region = 40  ;;  %586 = vmatprep.subr.bf16.mxu0 (!%p225_p3), %v626_v0  ;;  %598 = vmatprep.subr.bf16.mxu1 (!%p225_p3), %v626_v0  ;;  %v569_v40 = vld [vmem:[%s755_s4] ss:$0 sm:$0xff] (!%p225_p3) }
   0x8   : > { %587 = vmatpush3.bf16.msra.mxu0 (!%p225_p3), %v626_v0  ;;  %600 = vmatpush3.bf16.msra.mxu1 (!%p225_p3), %v626_v0 }
   0x9   : > { %588 = vmatprep.subr.bf16.mxu0 (!%p225_p3), %v627_v1  ;;  %599 = vmatprep.subr.bf16.mxu1 (!%p225_p3), %v627_v1 }
   0xc   : > { %589 = vmatpush3.bf16.msra.mxu0 (!%p225_p3), %v627_v1  ;;  %601 = vmatpush3.bf16.msra.mxu1 (!%p225_p3), %v627_v1 }
   0xe   : > { %s762_s18 = smov (!%p267_p4, %s642_s18), 1 }
   0xf   : > { %s578_s26 = sshll.u32 %s762_s18, 6  ;;  %s278_s29 = scalar_lea.vmem %s752_s1, %s762_s18 }
  0x10   : > { %s274_s7 = scalar_lea.vmem %s751_s0, %s578_s26  ;;  %s281_s10 = scalar_lea.vmem %s753_s2, %s762_s18  ;;  %v567_v2 = vld [vmem:[%s278_s29] ss:$0 sm:$0xff] }
  0x11   : > { %v293_v3 = vld [vmem:[%s274_s7] sm:$0xff]  ;;  %v294_v4 = vld [vmem:[%s274_s7 + $0x8] sm:$0xff]  ;;  %v295_v10 = vld [vmem:[%s274_s7 + $0x10] sm:$0xff]  ;;  %s290_s15 = scalar_lea.vmem %s756_s5, %s578_s26 }
  0x12   : > { %v568_v5 = vld [vmem:[%s281_s10] ss:$0 sm:$0xff]  ;;  %v308_v6 = vmul.f32 %v567_v2, %v293_v3  ;;  %v309_v7 = vmul.f32 %v567_v2, %v294_v4  ;;  %v298_v9 = vld [vmem:[%s274_s7 + $0x28] sm:$0xff]  ;;  %v296_v13 = vld [vmem:[%s274_s7 + $0x18] sm:$0xff]  ;;  %v310_v14 = vmul.f32 %v567_v2, %v295_v10 }
  0x13   : > { %v297_v8 = vld [vmem:[%s274_s7 + $0x20] sm:$0xff]  ;;  %v313_v12 = vmul.f32 %v567_v2, %v298_v9  ;;  %v299_v15 = vld [vmem:[%s274_s7 + $0x30] sm:$0xff]  ;;  %v300_v16 = vld [vmem:[%s274_s7 + $0x38] sm:$0xff]  ;;  %v311_v19 = vmul.f32 %v567_v2, %v296_v13 }
  0x14   : > { %v312_v11 = vmul.f32 %v567_v2, %v297_v8  ;;  %v323_v17 = vadd.f32 %v568_v5, %v308_v6  ;;  %v324_v18 = vadd.f32 %v568_v5, %v309_v7  ;;  %v314_v20 = vmul.f32 %v567_v2, %v299_v15 }
  0x15   : > { %v328_v22 = vadd.f32 %v568_v5, %v313_v12  ;;  %v325_v23 = vadd.f32 %v568_v5, %v310_v14  ;;  %v315_v24 = vmul.f32 %v567_v2, %v300_v16  ;;  %v326_v27 = vadd.f32 %v568_v5, %v311_v19 }
  0x16   : > { %v327_v21 = vadd.f32 %v568_v5, %v312_v11  ;;  %v331_v25 = vmax.f32 %v323_v17, 0.0  ;;  %v332_v26 = vmax.f32 %v324_v18, 0.0  ;;  %v329_v28 = vadd.f32 %v568_v5, %v314_v20 }
  0x17   : > { %v336_v30 = vmax.f32 %v328_v22, 0.0  ;;  %v333_v31 = vmax.f32 %v325_v23, 0.0  ;;  %v330_v32 = vadd.f32 %v568_v5, %v315_v24  ;;  %v334_v34 = vmax.f32 %v326_v27, 0.0 }
  0x18   : > { %v335_v29 = vmax.f32 %v327_v21, 0.0  ;;  %v339_v33 = vpack.c.bf16 %v332_v26, %v331_v25  ;;  %v337_v35 = vmax.f32 %v329_v28, 0.0 }
  0x19   : > { %v338_v37 = vmax.f32 %v330_v32, 0.0  ;;  %v340_v38 = vpack.c.bf16 %v334_v34, %v333_v31 }
  0x1a   : > { %v341_v36 = vpack.c.bf16 %v336_v30, %v335_v29  ;;  %590 = vmatprep.mubr.msk.bf16.mxu0 %vm366_vm0, %v339_v33 }
  0x1b   : > { %v342_v39 = vpack.c.bf16 %v338_v37, %v337_v35  ;;  %591 = vmatmul.mubr.msk.bf16.vlgmr.msra.gmra.mrb[0].mxu0 %vm366_vm0, %v340_v38 }
  0x1c   : > { %594 = vmatprep.mubr.msk.bf16.mxu1 %vm366_vm0, %v341_v36 }
  0x1d   : > { %595 = vmatmul.mubr.msk.bf16.vlgmr.msra.gmra.mrb[0].mxu1 %vm366_vm0, %v342_v39 }
  0xee   : > { %v592_v41 = vpop.f32.mrb[0].mxu0 }
  0xef   : > { %v422_v42 = vadd.f32 %v592_v41, %v569_v40  ;;  %v413_v44 = vpop.f32.mrb[1].mxu0 }
  0xf0   : > { %v596_v43 = vpop.f32.mrb[0].mxu1  ;;  %v414_v46 = vadd.f32 %v569_v40, %v413_v44  ;;  %v593_v48 = vpop.f32.mrb[2].mxu0 }
  0xf1   : > { %v438_v45 = vadd.f32 %v596_v43, %v569_v40  ;;  %v429_v47 = vpop.f32.mrb[1].mxu1  ;;  %447 = vst.msk [vmem:[%s290_s15 + $0x10] sm:$0xff] %vm444_vm1, %v422_v42  ;;  %v425_v50 = vadd.f32 %v593_v48, %v569_v40  ;;  %v416_v52 = vpop.f32.mrb[3].mxu0 }
  0xf2   : > { %v430_v49 = vadd.f32 %v569_v40, %v429_v47  ;;  %v597_v51 = vpop.f32.mrb[2].mxu1  ;;  %445 = vst.msk [vmem:[%s290_s15] sm:$0xff] %vm444_vm1, %v414_v46  ;;  %v417_v54 = vadd.f32 %v569_v40, %v416_v52 }
  0xf3   : > { %451 = vst.msk [vmem:[%s290_s15 + $0x30] sm:$0xff] %vm444_vm1, %v438_v45  ;;  %v441_v53 = vadd.f32 %v597_v51, %v569_v40  ;;  %v432_v55 = vpop.f32.mrb[3].mxu1  ;;  %448 = vst.msk [vmem:[%s290_s15 + $0x18] sm:$0xff] %vm444_vm1, %v425_v50 }
  0xf4   : > { %449 = vst.msk [vmem:[%s290_s15 + $0x20] sm:$0xff] %vm444_vm1, %v430_v49  ;;  %v433_v56 = vadd.f32 %v569_v40, %v432_v55  ;;  %446 = vst.msk [vmem:[%s290_s15 + $0x8] sm:$0xff] %vm444_vm1, %v417_v54 }
  0xf5   : > { %452 = vst.msk [vmem:[%s290_s15 + $0x38] sm:$0xff] %vm444_vm1, %v441_v53 }
  0xf6   : > { %450 = vst.msk [vmem:[%s290_s15 + $0x28] sm:$0xff] %vm444_vm1, %v433_v56 }
  0xf7 PF: > { %s15_s20 = sadd.s32 1, %s650_s20   ;;  %s757_s18 = smov %s646_s19 }
  0xf8   : > { %p12_p5 = scmp.ge.s32.totalorder %s15_s20, 4   ;;  %s758_s19 = smov %s760_s21 }
  0xfa   :  { %14 = sbr.rel (!%p12_p5) target bundleno = 2 (0x2), region = 76 }

// kernel: oanet_forward.268
= control target key start
LH: loop header
LB: loop body
LE: loop exit
PB: predicated region body
PF: predicated region fallthrough
CT: control target
= control target key end

     0   :  { %s474_s12 = smov 0   ;;  %s476_s13 = smov 0   ;;  %s516_s0 = inlined_call_operand.vmem [shape: f32[2,16,32], index: 0, kind: input, shape index: {}]   ;;  %s517_s1 = inlined_call_operand.vmem [shape: bf16[32,8], index: 1, kind: input, shape index: {}]   ;;  %s518_s2 = inlined_call_operand.vmem [shape: f32[1,8], index: 2, kind: input, shape index: {}]   ;;  %s519_s3 = inlined_call_operand.vmem [shape: f32[2,16,8], index: 3, kind: output, shape index: {}]  }
   0x1   :  { %s478_s14 = smov 0  }
   0x2 LB: > { %s25_s15 = sadd.s32 1, %s446_s13  ;;  %p376_p0 = scmp.ge.s32.totalorder %s450_s14, 1  ;;  %s450_s14 = sphi %s478_s14, %s13_s14   ;;  %s446_s13 = sphi %s476_s13, %s521_s13   ;;  %s442_s12 = sphi %s474_s12, %s520_s12  }
   0x3   : > { %p27_p1 = scmp.ge.s32.totalorder %s25_s15, 2  ;;  %p158_p2 = scmp.lt.s32.totalorder %s450_s14, 3 }
   0x5   : > { %s523_s15 = smov (%p27_p1, %s25_s15), 0  ;;  %p159_p3 = pnand %p376_p0, %p158_p2 }
   0x6   : > { %v426_v0 = vld [vmem:[%s517_s1] sm:$0xff] (!%p159_p3)   ;;  %v452_v1 = vmov (!%p159_p3), 0.0   ;;  %v427_v2 = vld [vmem:[%s517_s1 + $0x8] sm:$0xff] (!%p159_p3)   ;;  %vm453_vm0 = vmmov (!%p159_p3), 0   ;;  %p191_p4 = scmp.lt.s32.totalorder (!%p159_p3), %s442_s12, 1  ;;  %vm237_vm1 = vcmask (!%p159_p3), 261120  }
   0x7   : > { %162 = sbr.rel (%p159_p3) target bundleno = 237 (0xed), region = 32  ;;  %392 = vmatprep.subr.bf16.mxu0 (!%p159_p3), %v452_v1  ;;  %396 = vmatprep.mubr.msk.bf16.mxu0 (!%p159_p3), %vm453_vm0, %v452_v1  ;;  %v381_v6 = vld [vmem:[%s518_s2] ss:$0 sm:$0xff] (!%p159_p3)  ;;  %vm282_vm2 = vcmask (!%p159_p3), 64512  }
   0x8   : > { %393 = vmatpush3.bf16.msra.mxu0 (!%p159_p3), %v426_v0 }
   0x9   : > { %394 = vmatprep.subr.bf16.mxu0 (!%p159_p3), %v452_v1 }
   0xc   : > { %395 = vmatpush3.bf16.msra.mxu0 (!%p159_p3), %v427_v2 }
   0xe   : > { %s525_s12 = smov (!%p191_p4, %s442_s12), 1 }
   0xf   : > { %s387_s20 = sshll.u32 %s525_s12, 4 }
  0x10   : > { %s198_s23 = scalar_lea.vmem %s516_s0, %s387_s20  ;;  %s208_s28 = scalar_lea.vmem %s519_s3, %s387_s20 }
  0x11   : > { %v211_v3 = vld [vmem:[%s198_s23] sm:$0xff]  ;;  %v212_v4 = vld [vmem:[%s198_s23 + $0x8] sm:$0xff] }
  0x12   : > { %v213_v5 = vpack.c.bf16 %v212_v4, %v211_v3 }
  0x14   : > { %397 = vmatmul.mubr.msk.bf16.vlgmr.msra.gmra.mrb[0].mxu0 %vm237_vm1, %v213_v5 }
  0xe7   : > { %v275_v7 = vpop.f32.mrb[0].mxu0 }
  0xe8   : > { %v276_v8 = vadd.f32 %v381_v6, %v275_v7  ;;  %v398_v9 = vpop.f32.mrb[1].mxu0 }
  0xe9   : > { %v278_v10 = vpop.f32.mrb[2].mxu0 }
  0xea   : > { %283 = vst.msk [vmem:[%s208_s28] sm:$0xff] %vm282_vm2, %v276_v8  ;;  %v279_v11 = vadd.f32 %v381_v6, %v278_v10  ;;  %v399_v12 = vpop.f32.mrb[3].mxu0 }
  0xec   : > { %284 = vst.msk [vmem:[%s208_s28 + $0x8] sm:$0xff] %vm282_vm2, %v279_v11 }
  0xed PF: > { %s13_s14 = sadd.s32 1, %s450_s14   ;;  %s520_s12 = smov %s446_s13 }
  0xee   : > { %p10_p5 = scmp.ge.s32.totalorder %s13_s14, 4   ;;  %s521_s13 = smov %s523_s15 }
  0xf0   :  { %12 = sbr.rel (!%p10_p5) target bundleno = 2 (0x2), region = 62 }

// kernel: oanet_forward.269
= control target key start
LH: loop header
LB: loop body
LE: loop exit
PB: predicated region body
PF: predicated region fallthrough
CT: control target
= control target key end

     0   :  { %s455_s12 = smov 0   ;;  %s457_s13 = smov 0   ;;  %s494_s0 = inlined_call_operand.vmem [shape: f32[2,16,8], index: 0, kind: input, shape index: {}]   ;;  %s495_s1 = inlined_call_operand.vmem [shape: bf16[8,8], index: 1, kind: input, shape index: {}]   ;;  %s496_s2 = inlined_call_operand.vmem [shape: f32[1,8], index: 2, kind: input, shape index: {}]   ;;  %s497_s3 = inlined_call_operand.vmem [shape: f32[2,16,8], index: 3, kind: output, shape index: {}]  }
   0x1   :  { %s459_s14 = smov 0  }
   0x2 LB: > { %s25_s15 = sadd.s32 1, %s427_s13  ;;  %p364_p0 = scmp.ge.s32.totalorder %s431_s14, 1  ;;  %s431_s14 = sphi %s459_s14, %s13_s14   ;;  %s427_s13 = sphi %s457_s13, %s499_s13   ;;  %s423_s12 = sphi %s455_s12, %s498_s12  }
   0x3   : > { %p27_p1 = scmp.ge.s32.totalorder %s25_s15, 2  ;;  %p158_p2 = scmp.lt.s32.totalorder %s431_s14, 3 }
   0x5   : > { %s501_s15 = smov (%p27_p1, %s25_s15), 0  ;;  %p159_p3 = pnand %p364_p0, %p158_p2 }
   0x6   : > { %v214_v0 = vld [vmem:[%s495_s1] sm:$0xf] (!%p159_p3)  ;;  %vm226_vm0 = vcmask (!%p159_p3), 1043456   ;;  %p191_p4 = scmp.lt.s32.totalorder (!%p159_p3), %s423_s12, 1  ;;  %v433_v1 = vmov (!%p159_p3), 0.0   ;;  %vm434_vm1 = vmmov (!%p159_p3), 0  }
   0x7   : > { %162 = sbr.rel (%p159_p3) target bundleno = 237 (0xed), region = 32  ;;  %377 = vmatprep.subr.bf16.mxu0 (!%p159_p3), %v433_v1  ;;  %v228_v2 = vsel (!%p159_p3), %vm226_vm0, %v214_v0, 0  ;;  %379 = vmatprep.mubr.msk.bf16.mxu0 (!%p159_p3), %vm434_vm1, %v433_v1  ;;  %vm222_vm2 = vcmask (!%p159_p3), 64512   ;;  %v369_v6 = vld [vmem:[%s496_s2] ss:$0 sm:$0xff] (!%p159_p3) }
   0x8   : > { %378 = vmatpush3.bf16.msra.mxu0 (!%p159_p3), %v228_v2 }
   0xe   : > { %s503_s12 = smov (!%p191_p4, %s423_s12), 1 }
   0xf   : > { %s373_s18 = sshll.u32 %s503_s12, 4 }
  0x10   : > { %s198_s21 = scalar_lea.vmem %s494_s0, %s373_s18  ;;  %s208_s26 = scalar_lea.vmem %s497_s3, %s373_s18 }
  0x11   : > { %v211_v3 = vld [vmem:[%s198_s21] sm:$0xff]  ;;  %v212_v4 = vld [vmem:[%s198_s21 + $0x8] sm:$0xff] }
  0x12   : > { %v213_v5 = vpack.c.bf16 %v212_v4, %v211_v3 }
  0x14   : > { %380 = vmatmul.mubr.msk.bf16.vlgmr.msra.gmra.mrb[0].mxu0 %vm222_vm2, %v213_v5 }
  0xe7   : > { %v264_v7 = vpop.f32.mrb[0].mxu0 }
  0xe8   : > { %v265_v8 = vadd.f32 %v369_v6, %v264_v7  ;;  %v381_v9 = vpop.f32.mrb[1].mxu0 }
  0xe9   : > { %v267_v10 = vpop.f32.mrb[2].mxu0 }
  0xea   : > { %271 = vst.msk [vmem:[%s208_s26] sm:$0xff] %vm222_vm2, %v265_v8  ;;  %v268_v11 = vadd.f32 %v369_v6, %v267_v10  ;;  %v382_v12 = vpop.f32.mrb[3].mxu0 }
  0xec   : > { %272 = vst.msk [vmem:[%s208_s26 + $0x8] sm:$0xff] %vm222_vm2, %v268_v11 }
  0xed PF: > { %s13_s14 = sadd.s32 1, %s431_s14   ;;  %s498_s12 = smov %s427_s13 }
  0xee   : > { %p10_p5 = scmp.ge.s32.totalorder %s13_s14, 4   ;;  %s499_s13 = smov %s501_s15 }
  0xf0   :  { %12 = sbr.rel (!%p10_p5) target bundleno = 2 (0x2), region = 62 }

// kernel: oanet_forward.276
= control target key start
LH: loop header
LB: loop body
LE: loop exit
PB: predicated region body
PF: predicated region fallthrough
CT: control target
= control target key end

     0   :  { %s606_s18 = smov 0   ;;  %s608_s19 = smov 0   ;;  %s654_s0 = inlined_call_operand.vmem [shape: f32[2,16,32], index: 0, kind: input, shape index: {}]   ;;  %s655_s1 = inlined_call_operand.vmem [shape: f32[2,1,32], index: 1, kind: input, shape index: {}]   ;;  %s656_s2 = inlined_call_operand.vmem [shape: f32[2,1,32], index: 2, kind: input, shape index: {}]   ;;  %s657_s3 = inlined_call_operand.vmem [shape: bf16[32,8], index: 3, kind: input, shape index: {}]   ;;  %s658_s4 = inlined_call_operand.vmem [shape: f32[1,8], index: 4, kind: input, shape index: {}]   ;;  %s659_s5 = inlined_call_operand.vmem [shape: f32[2,16,8], index: 5, kind: output, shape index: {}]  }
   0x1   :  { %s610_s20 = smov 0  }
   0x2 LB: > { %s27_s21 = sadd.s32 1, %s568_s19  ;;  %p496_p0 = scmp.ge.s32.totalorder %s572_s20, 1  ;;  %s572_s20 = sphi %s610_s20, %s15_s20   ;;  %s568_s19 = sphi %s608_s19, %s661_s19   ;;  %s564_s18 = sphi %s606_s18, %s660_s18  }
   0x3   : > { %p29_p1 = scmp.ge.s32.totalorder %s27_s21, 2  ;;  %p224_p2 = scmp.lt.s32.totalorder %s572_s20, 3 }
   0x5   : > { %s663_s21 = smov (%p29_p1, %s27_s21), 0  ;;  %p225_p3 = pnand %p496_p0, %p224_p2 }
   0x6   : > { %v548_v0 = vld [vmem:[%s657_s3] sm:$0xff] (!%p225_p3)   ;;  %v574_v1 = vmov (!%p225_p3), 0.0   ;;  %v549_v2 = vld [vmem:[%s657_s3 + $0x8] sm:$0xff] (!%p225_p3)   ;;  %vm575_vm0 = vmmov (!%p225_p3), 0   ;;  %p267_p4 = scmp.lt.s32.totalorder (!%p225_p3), %s564_s18, 1  ;;  %vm339_vm1 = vcmask (!%p225_p3), 261120  }
   0x7   : > { %228 = sbr.rel (%p225_p3) target bundleno = 243 (0xf3), region = 40  ;;  %514 = vmatprep.subr.bf16.mxu0 (!%p225_p3), %v574_v1  ;;  %518 = vmatprep.mubr.msk.bf16.mxu0 (!%p225_p3), %vm575_vm0, %v574_v1  ;;  %v503_v14 = vld [vmem:[%s658_s4] ss:$0 sm:$0xff] (!%p225_p3)  ;;  %vm384_vm2 = vcmask (!%p225_p3), 64512  }
   0x8   : > { %515 = vmatpush3.bf16.msra.mxu0 (!%p225_p3), %v548_v0 }
   0x9   : > { %516 = vmatprep.subr.bf16.mxu0 (!%p225_p3), %v574_v1 }
   0xc   : > { %517 = vmatpush3.bf16.msra.mxu0 (!%p225_p3), %v549_v2 }
   0xe   : > { %s665_s18 = smov (!%p267_p4, %s564_s18), 1 }
   0xf   : > { %s509_s26 = sshll.u32 %s665_s18, 4  ;;  %s278_s29 = scalar_lea.vmem %s655_s1, %s665_s18 }
  0x10   : > { %s274_s7 = scalar_lea.vmem %s654_s0, %s509_s26  ;;  %s281_s10 = scalar_lea.vmem %s656_s2, %s665_s18  ;;  %v501_v3 = vld [vmem:[%s278_s29] ss:$0 sm:$0xff] }
  0x11   : > { %v293_v4 = vld [vmem:[%s274_s7] sm:$0xff]  ;;  %v294_v5 = vld [vmem:[%s274_s7 + $0x8] sm:$0xff]  ;;  %s290_s15 = scalar_lea.vmem %s659_s5, %s509_s26 }
  0x12   : > { %v502_v6 = vld [vmem:[%s281_s10] ss:$0 sm:$0xff]  ;;  %v302_v7 = vmul.f32 %v501_v3, %v293_v4  ;;  %v303_v8 = vmul.f32 %v501_v3, %v294_v5 }
  0x14   : > { %v311_v9 = vadd.f32 %v502_v6, %v302_v7  ;;  %v312_v10 = vadd.f32 %v502_v6, %v303_v8 }
  0x16   : > { %v313_v11 = vmax.f32 %v311_v9, 0.0  ;;  %v314_v12 = vmax.f32 %v312_v10, 0.0 }
  0x18   : > { %v315_v13 = vpack.c.bf16 %v314_v12, %v313_v11 }
  0x1a   : > { %519 = vmatmul.mubr.msk.bf16.vlgmr.msra.gmra.mrb[0].mxu0 %vm339_vm1, %v315_v13 }
  0xed   : > { %v377_v15 = vpop.f32.mrb[0].mxu0 }
  0xee   : > { %v378_v16 = vadd.f32 %v503_v14, %v377_v15  ;;  %v520_v17 = vpop.f32.mrb[1].mxu0 }
  0xef   : > { %v380_v18 = vpop.f32.mrb[2].mxu0 }
  0xf0   : > { %385 = vst.msk [vmem:[%s290_s15] sm:$0xff] %vm384_vm2, %v378_v16  ;;  %v381_v19 = vadd.f32 %v503_v14, %v380_v18  ;;  %v521_v20 = vpop.f32.mrb[3].mxu0 }
  0xf2   : > { %386 = vst.msk [vmem:[%s290_s15 + $0x8] sm:$0xff] %vm384_vm2, %v381_v19 }
  0xf3 PF: > { %s15_s20 = sadd.s32 1, %s572_s20   ;;  %s660_s18 = smov %s568_s19 }
  0xf4   : > { %p12_p5 = scmp.ge.s32.totalorder %s15_s20, 4   ;;  %s661_s19 = smov %s663_s21 }
  0xf6   :  { %14 = sbr.rel (!%p12_p5) target bundleno = 2 (0x2), region = 76 }

// kernel: oanet_forward.272
= control target key start
LH: loop header
LB: loop body
LE: loop exit
PB: predicated region body
PF: predicated region fallthrough
CT: control target
= control target key end

     0   :  { %s518_s18 = smov 0   ;;  %s547_s0 = inlined_call_operand.vmem [shape: f32[2,16,32], index: 0, kind: input, shape index: {}]   ;;  %s548_s1 = inlined_call_operand.vmem [shape: f32[2,1,32], index: 1, kind: input, shape index: {}]   ;;  %s549_s2 = inlined_call_operand.vmem [shape: f32[2,1,32], index: 2, kind: input, shape index: {}]   ;;  %s550_s3 = inlined_call_operand.vmem [shape: bf16[16,4], index: 3, kind: input, shape index: {}]   ;;  %s551_s4 = inlined_call_operand.vmem [shape: f32[1,4], index: 4, kind: input, shape index: {}]   ;;  %s552_s5 = inlined_call_operand.vmem [shape: f32[2,32,4], index: 5, kind: output, shape index: {}]  }
   0x1 LB: > { %s442_s19 = sadd.s32 4294967295, %s486_s18   ;;  %p446_p0 = scmp.ge.s32.totalorder %s486_s18, 1  ;;  %s486_s18 = sphi %s518_s18, %s15_s18  }
   0x2   : > { %p203_p1 = scmp.lt.s32.totalorder %s486_s18, 3 }
   0x4   : > { %p204_p2 = pnand %p446_p0, %p203_p1 }
   0x5   : > { %p237_p3 = scmp.lt.s32.totalorder (!%p204_p2), %s442_s19, 1  ;;  %v479_v0 = vld [vmem:[%s550_s3] sm:$0xff] (!%p204_p2)   ;;  %vm308_vm0 = vcmask (!%p204_p2), 130048   ;;  %vm364_vm1 = vcmask (!%p204_p2), 31744  }
   0x6   : > { %207 = sbr.rel (%p204_p2) target bundleno = 350 (0x15e), region = 40  ;;  %464 = vmatprep.subr.bf16.mxu0 (!%p204_p2), %v479_v0  ;;  %v453_v14 = vld [vmem:[%s551_s4] ss:$0 sm:$0xff] (!%p204_p2) }
   0x7   : > { %465 = vmatpush3.bf16.msra.mxu0 (!%p204_p2), %v479_v0 }
   0xd   : > { %s554_s19 = smov (!%p237_p3, %s442_s19), 1 }
   0xe   : > { %s459_s22 = sshll.u32 %s554_s19, 4  ;;  %s244_s25 = scalar_lea.vmem %s548_s1, %s554_s19 }
   0xf   : > { %s241_s28 = scalar_lea.vmem %s547_s0, %s459_s22  ;;  %s247_s6 = scalar_lea.vmem %s549_s2, %s554_s19  ;;  %v451_v1 = vld [vmem:[%s244_s25] ss:$0 sm:$0xff] }
  0x10   : > { %v254_v2 = vld [vmem:[%s241_s28] sm:$0xff]  ;;  %v255_v3 = vld [vmem:[%s241_s28 + $0x8] sm:$0xff]  ;;  %s460_s7 = sshll.u32 %s554_s19, 5 }
  0x11   : > { %v452_v4 = vld [vmem:[%s247_s6] ss:$0 sm:$0xff]  ;;  %v263_v5 = vmul.f32 %v451_v1, %v254_v2  ;;  %v264_v6 = vmul.f32 %v451_v1, %v255_v3  ;;  %s252_s12 = scalar_lea.vmem %s552_s5, %s460_s7 }
  0x13   : > { %v272_v7 = vadd.f32 %v452_v4, %v263_v5  ;;  %v273_v8 = vadd.f32 %v452_v4, %v264_v6 }
  0x15   : > { %v274_v9 = vmax.f32 %v272_v7, 0.0  ;;  %v275_v10 = vmax.f32 %v273_v8, 0.0 }
  0x17   : > { %v276_v11 = vpack.c.bf16 %v275_v10, %v274_v9 }
  0x19   : > { %286 = vxpose.xlu0.c.b16.start.end [1/1] (short) (narrow) %v276_v11, 32 }
  0x7f   : > { %v294_v12 = vpop.trf.xlu0 }
  0x80   : > { %466 = vmatprep.mubr.msk.bf16.mxu0 %vm308_vm0, %v294_v12 }
  0x83   : > { %v295_v13 = vpop.trf.xlu0 }
  0x84   : > { %467 = vmatmul.mubr.msk.bf16.vlgmr.msra.gmra.mrb[0].mxu0 %vm308_vm0, %v295_v13 }
 0x157   : > { %v468_v15 = vpop.f32.mrb[0].mxu0 }
 0x158   : > { %v358_v16 = vadd.f32 %v468_v15, %v453_v14  ;;  %v349_v17 = vpop.f32.mrb[1].mxu0 }
 0x159   : > { %v350_v18 = vadd.f32 %v453_v14, %v349_v17  ;;  %v469_v19 = vpop.f32.mrb[2].mxu0 }
 0x15a   : > { %367 = vst.msk [vmem:[%s252_s12 + $0x10] sm:$0xff] %vm364_vm1, %v358_v16  ;;  %v361_v20 = vadd.f32 %v469_v19, %v453_v14  ;;  %v352_v21 = vpop.f32.mrb[3].mxu0 }
 0x15b   : > { %365 = vst.msk [vmem:[%s252_s12] sm:$0xff] %vm364_vm1, %v350_v18  ;;  %v353_v22 = vadd.f32 %v453_v14, %v352_v21 }
 0x15c   : > { %368 = vst.msk [vmem:[%s252_s12 + $0x18] sm:$0xff] %vm364_vm1, %v361_v20 }
 0x15d   : > { %366 = vst.msk [vmem:[%s252_s12 + $0x8] sm:$0xff] %vm364_vm1, %v353_v22 }
 0x15e PF: > { %s15_s18 = sadd.s32 1, %s486_s18  }
 0x15f   : > { %p12_p4 = scmp.ge.s32.totalorder %s15_s18, 4  }
 0x161   :  { %14 = sbr.rel (!%p12_p4) target bundleno = 1 (0x1), region = 76 }

// kernel: oanet_forward.273
= control target key start
LH: loop header
LB: loop body
LE: loop exit
PB: predicated region body
PF: predicated region fallthrough
CT: control target
= control target key end

     0   :  { %s470_s12 = smov 0   ;;  %s472_s13 = smov 0   ;;  %s515_s0 = inlined_call_operand.vmem [shape: f32[2,32,4], index: 0, kind: input, shape index: {}]   ;;  %s516_s1 = inlined_call_operand.vmem [shape: bf16[4,4], index: 1, kind: input, shape index: {}]   ;;  %s517_s2 = inlined_call_operand.vmem [shape: f32[1,4], index: 2, kind: input, shape index: {}]   ;;  %s518_s3 = inlined_call_operand.vmem [shape: f32[2,32,4], index: 3, kind: output, shape index: {}]  }
   0x1   :  { %s474_s14 = smov 0  }
   0x2 LB: > { %s25_s15 = sadd.s32 1, %s444_s13  ;;  %p380_p0 = scmp.ge.s32.totalorder %s448_s14, 1  ;;  %s448_s14 = sphi %s474_s14, %s13_s14   ;;  %s444_s13 = sphi %s472_s13, %s520_s13   ;;  %s440_s12 = sphi %s470_s12, %s519_s12  }
   0x3   : > { %p27_p1 = scmp.ge.s32.totalorder %s25_s15, 2  ;;  %p158_p2 = scmp.lt.s32.totalorder %s448_s14, 3 }
   0x5   : > { %s522_s15 = smov (%p27_p1, %s25_s15), 0  ;;  %p159_p3 = pnand %p380_p0, %p158_p2 }
   0x6   : > { %v217_v0 = vld [vmem:[%s516_s1] sm:$0x3] (!%p159_p3)  ;;  %vm232_vm0 = vcmask (!%p159_p3), 1041408   ;;  %p191_p4 = scmp.lt.s32.totalorder (!%p159_p3), %s440_s12, 1  ;;  %vm225_vm1 = vcmask (!%p159_p3), 31744  }
   0x7   : > { %162 = sbr.rel (%p159_p3) target bundleno = 239 (0xef), region = 32  ;;  %401 = vmatprep.subr.msk.bf16.mxu0 (!%p159_p3), %vm232_vm0, %v217_v0  ;;  %v234_v1 = vsel (!%p159_p3), %vm232_vm0, %v217_v0, 0  ;;  %v385_v8 = vld [vmem:[%s517_s2] ss:$0 sm:$0xff] (!%p159_p3) }
   0x8   : > { %396 = vmatpush3.bf16.msra.mxu0 (!%p159_p3), %v234_v1 }
   0xe   : > { %s524_s12 = smov (!%p191_p4, %s440_s12), 1 }
   0xf   : > { %s390_s18 = sshll.u32 %s524_s12, 5 }
  0x10   : > { %s198_s21 = scalar_lea.vmem %s515_s0, %s390_s18  ;;  %s208_s26 = scalar_lea.vmem %s518_s3, %s390_s18 }
  0x11   : > { %v211_v2 = vld [vmem:[%s198_s21] sm:$0xff]  ;;  %v212_v3 = vld [vmem:[%s198_s21 + $0x8] sm:$0xff]  ;;  %v213_v4 = vld [vmem:[%s198_s21 + $0x10] sm:$0xff] }
  0x12   : > { %v215_v5 = vpack.c.bf16 %v212_v3, %v211_v2  ;;  %v214_v6 = vld [vmem:[%s198_s21 + $0x18] sm:$0xff] }
  0x13   : > { %v216_v7 = vpack.c.bf16 %v214_v6, %v213_v4 }
  0x14   : > { %397 = vmatprep.mubr.msk.bf16.mxu0 %vm225_vm1, %v215_v5 }
  0x15   : > { %398 = vmatmul.mubr.msk.bf16.vlgmr.msra.gmra.mrb[0].mxu0 %vm225_vm1, %v216_v7 }
  0xe8   : > { %v399_v9 = vpop.f32.mrb[0].mxu0 }
  0xe9   : > { %v279_v10 = vadd.f32 %v399_v9, %v385_v8  ;;  %v270_v11 = vpop.f32.mrb[1].mxu0 }
  0xea   : > { %v271_v12 = vadd.f32 %v385_v8, %v270_v11  ;;  %v400_v13 = vpop.f32.mrb[2].mxu0 }
  0xeb   : > { %287 = vst.msk [vmem:[%s208_s26 + $0x10] sm:$0xff] %vm225_vm1, %v279_v10  ;;  %v282_v14 = vadd.f32 %v400_v13, %v385_v8  ;;  %v273_v15 = vpop.f32.mrb[3].mxu0 }
  0xec   : > { %285 = vst.msk [vmem:[%s208_s26] sm:$0xff] %vm225_vm1, %v271_v12  ;;  %v274_v16 = vadd.f32 %v385_v8, %v273_v15 }
  0xed   : > { %288 = vst.msk [vmem:[%s208_s26 + $0x18] sm:$0xff] %vm225_vm1, %v282_v14 }
  0xee   : > { %286 = vst.msk [vmem:[%s208_s26 + $0x8] sm:$0xff] %vm225_vm1, %v274_v16 }
  0xef PF: > { %s13_s14 = sadd.s32 1, %s448_s14   ;;  %s519_s12 = smov %s444_s13 }
  0xf0   : > { %p10_p5 = scmp.ge.s32.totalorder %s13_s14, 4   ;;  %s520_s13 = smov %s522_s15 }
  0xf2   :  { %12 = sbr.rel (!%p10_p5) target bundleno = 2 (0x2), region = 62 }

// kernel: oanet_forward.277
= control target key start
LH: loop header
LB: loop body
LE: loop exit
PB: predicated region body
PF: predicated region fallthrough
CT: control target
= control target key end

     0   :  { %s529_s18 = smov 0   ;;  %s567_s0 = inlined_call_operand.vmem [shape: f32[2,32,16], index: 0, kind: input, shape index: {}]   ;;  %s568_s1 = inlined_call_operand.vmem [shape: f32[2,1,16], index: 1, kind: input, shape index: {}]   ;;  %s569_s2 = inlined_call_operand.vmem [shape: f32[2,1,16], index: 2, kind: input, shape index: {}]   ;;  %s570_s3 = inlined_call_operand.vmem [shape: bf16[32,8], index: 3, kind: input, shape index: {}]   ;;  %s571_s4 = inlined_call_operand.vmem [shape: f32[1,8], index: 4, kind: input, shape index: {}]   ;;  %s572_s5 = inlined_call_operand.vmem [shape: f32[2,16,8], index: 5, kind: output, shape index: {}]  }
   0x1 LB: > { %s446_s19 = sadd.s32 4294967295, %s495_s18   ;;  %p450_p0 = scmp.ge.s32.totalorder %s495_s18, 1  ;;  %s495_s18 = sphi %s529_s18, %s15_s18  }
   0x2   : > { %p203_p1 = scmp.lt.s32.totalorder %s495_s18, 3 }
   0x4   : > { %p204_p2 = pnand %p450_p0, %p203_p1 }
   0x5   : > { %p237_p3 = scmp.lt.s32.totalorder (!%p204_p2), %s446_s19, 1  ;;  %v487_v0 = vld [vmem:[%s570_s3] sm:$0xff] (!%p204_p2)   ;;  %v497_v1 = vmov (!%p204_p2), 0.0   ;;  %v488_v2 = vld [vmem:[%s570_s3 + $0x8] sm:$0xff] (!%p204_p2)   ;;  %vm498_vm0 = vmmov (!%p204_p2), 0   ;;  %vm325_vm1 = vcmask (!%p204_p2), 261120  }
   0x6   : > { %207 = sbr.rel (%p204_p2) target bundleno = 345 (0x159), region = 40  ;;  %468 = vmatprep.subr.bf16.mxu0 (!%p204_p2), %v497_v1  ;;  %472 = vmatprep.mubr.msk.bf16.mxu0 (!%p204_p2), %vm498_vm0, %v497_v1  ;;  %v457_v24 = vld [vmem:[%s571_s4] ss:$0 sm:$0xff] (!%p204_p2)  ;;  %vm370_vm2 = vcmask (!%p204_p2), 64512  }
   0x7   : > { %469 = vmatpush3.bf16.msra.mxu0 (!%p204_p2), %v487_v0 }
   0x8   : > { %470 = vmatprep.subr.bf16.mxu0 (!%p204_p2), %v497_v1 }
   0xb   : > { %471 = vmatpush3.bf16.msra.mxu0 (!%p204_p2), %v488_v2 }
   0xd   : > { %s574_s19 = smov (!%p237_p3, %s446_s19), 1 }
   0xe   : > { %s463_s24 = sshll.u32 %s574_s19, 5  ;;  %s244_s27 = scalar_lea.vmem %s568_s1, %s574_s19 }
   0xf   : > { %s241_s30 = scalar_lea.vmem %s567_s0, %s463_s24  ;;  %s247_s8 = scalar_lea.vmem %s569_s2, %s574_s19  ;;  %v455_v3 = vld [vmem:[%s244_s27] ss:$0 sm:$0xff] }
  0x10   : > { %v254_v4 = vld [vmem:[%s241_s30] sm:$0xff]  ;;  %v255_v5 = vld [vmem:[%s241_s30 + $0x8] sm:$0xff]  ;;  %v256_v9 = vld [vmem:[%s241_s30 + $0x10] sm:$0xff]  ;;  %s464_s9 = sshll.u32 %s574_s19, 4 }
  0x11   : > { %v456_v6 = vld [vmem:[%s247_s8] ss:$0 sm:$0xff]  ;;  %v265_v7 = vmul.f32 %v455_v3, %v254_v4  ;;  %v266_v8 = vmul.f32 %v455_v3, %v255_v5  ;;  %v257_v10 = vld [vmem:[%s241_s30 + $0x18] sm:$0xff]  ;;  %v267_v11 = vmul.f32 %v455_v3, %v256_v9  ;;  %s252_s14 = scalar_lea.vmem %s572_s5, %s464_s9 }
  0x12   : > { %v268_v12 = vmul.f32 %v455_v3, %v257_v10 }
  0x13   : > { %v276_v13 = vadd.f32 %v456_v6, %v265_v7  ;;  %v277_v14 = vadd.f32 %v456_v6, %v266_v8  ;;  %v278_v15 = vadd.f32 %v456_v6, %v267_v11 }
  0x14   : > { %v279_v16 = vadd.f32 %v456_v6, %v268_v12 }
  0x15   : > { %v280_v17 = vmax.f32 %v276_v13, 0.0  ;;  %v281_v18 = vmax.f32 %v277_v14, 0.0  ;;  %v282_v19 = vmax.f32 %v278_v15, 0.0 }
  0x16   : > { %v283_v20 = vmax.f32 %v279_v16, 0.0 }
  0x17   : > { %v284_v21 = vpack.c.bf16 %v281_v18, %v280_v17 }
  0x18   : > { %v285_v22 = vpack.c.bf16 %v283_v20, %v282_v19 }
  0x19   : > { %297 = vxpose.xlu0.c.b16.start [1/2] (short) (narrow) %v284_v21, 16 }
  0x1d   : > { %298 = vxpose.xlu0.c.b16.end [2/2] (short) (narrow) %v285_v22, 16 }
  0x7f   : > { %v305_v23 = vpop.trf.xlu0 }
  0x80   : > { %473 = vmatmul.mubr.msk.bf16.vlgmr.msra.gmra.mrb[0].mxu0 %vm325_vm1, %v305_v23 }
 0x153   : > { %v363_v25 = vpop.f32.mrb[0].mxu0 }
 0x154   : > { %v364_v26 = vadd.f32 %v457_v24, %v363_v25  ;;  %v474_v27 = vpop.f32.mrb[1].mxu0 }
 0x155   : > { %v366_v28 = vpop.f32.mrb[2].mxu0 }
 0x156   : > { %371 = vst.msk [vmem:[%s252_s14] sm:$0xff] %vm370_vm2, %v364_v26  ;;  %v367_v29 = vadd.f32 %v457_v24, %v366_v28  ;;  %v475_v30 = vpop.f32.mrb[3].mxu0 }
 0x158   : > { %372 = vst.msk [vmem:[%s252_s14 + $0x8] sm:$0xff] %vm370_vm2, %v367_v29 }
 0x159 PF: > { %s15_s18 = sadd.s32 1, %s495_s18  }
 0x15a   : > { %p12_p4 = scmp.ge.s32.totalorder %s15_s18, 4  }
 0x15c   :  { %14 = sbr.rel (!%p12_p4) target bundleno = 1 (0x1), region = 76 }

// kernel: oanet_forward.308
= control target key start
LH: loop header
LB: loop body
LE: loop exit
PB: predicated region body
PF: predicated region fallthrough
CT: control target
= control target key end

     0   :  { %s632_s9 = smov 0   ;;  %s634_s10 = smov 0   ;;  %s704_s0 = inlined_call_operand.vmem [shape: f32[2,64,16], index: 0, kind: input, shape index: {}]   ;;  %s705_s1 = inlined_call_operand.vmem [shape: bf16[2,16,32], index: 1, kind: input, shape index: {}]   ;;  %s706_s2 = inlined_call_operand.vmem [shape: f32[2,64,32], index: 2, kind: output, shape index: {}]  }
   0x1   :  { %s636_s11 = smov 0  }
   0x2 LB: > { %s24_s12 = sadd.s32 1, %s611_s10  ;;  %p502_p0 = scmp.ge.s32.totalorder %s615_s11, 1  ;;  %s615_s11 = sphi %s636_s11, %s12_s11   ;;  %s611_s10 = sphi %s634_s10, %s708_s10   ;;  %s607_s9 = sphi %s632_s9, %s707_s9  }
   0x3   : > { %p26_p1 = scmp.ge.s32.totalorder %s24_s12, 2  ;;  %p143_p2 = scmp.lt.s32.totalorder %s615_s11, 3 }
   0x5   : > { %s710_s12 = smov (%p26_p1, %s24_s12), 0  ;;  %p144_p3 = pnand %p502_p0, %p143_p2 }
   0x6   : > { %p179_p4 = scmp.lt.s32.totalorder (!%p144_p3), %s607_s9, 1  ;;  %vm212_vm0 = vcmask (!%p144_p3), 130048   ;;  %vm390_vm1 = vcmask (!%p144_p3), 261120  }
   0x7   : > { %147 = sbr.rel (%p144_p3) target bundleno = 566 (0x236), region = 28 }
   0xe   : > { %s712_s9 = smov (!%p179_p4, %s607_s9), 1 }
   0xf   : > { %s516_s13 = sshll.u32 %s712_s9, 6  ;;  %s517_s17 = sshll.u32 %s712_s9, 3 }
  0x10   : > { %s186_s16 = scalar_lea.vmem %s704_s0, %s516_s13  ;;  %s192_s20 = scalar_lea.vmem %s705_s1, %s517_s17 }
  0x11   : > { %v204_v0 = vld [vmem:[%s186_s16] sm:$0xff]  ;;  %v205_v2 = vld [vmem:[%s186_s16 + $0x8] sm:$0xff]  ;;  %v206_v8 = vld [vmem:[%s186_s16 + $0x10] sm:$0xff]  ;;  %s201_s23 = scalar_lea.vmem %s706_s2, %s516_s13 }
  0x12   : > { %v208_v1 = vld [vmem:[%s186_s16 + $0x20] sm:$0xff]  ;;  %v213_v3 = vsel %vm212_vm0, %v204_v0, -inf  ;;  %v209_v5 = vld [vmem:[%s186_s16 + $0x28] sm:$0xff]  ;;  %v216_v6 = vsel %vm212_vm0, %v205_v2, -inf  ;;  %v207_v9 = vld [vmem:[%s186_s16 + $0x18] sm:$0xff]  ;;  %v219_v10 = vsel %vm212_vm0, %v206_v8, -inf }
  0x13   : > { %v225_v4 = vsel %vm212_vm0, %v208_v1, -inf  ;;  %214 = vmax.xlane.f32.xlu0 %v213_v3  ;;  %v228_v7 = vsel %vm212_vm0, %v209_v5, -inf  ;;  %v222_v11 = vsel %vm212_vm0, %v207_v9, -inf  ;;  %v210_v12 = vld [vmem:[%s186_s16 + $0x30] sm:$0xff]  ;;  %v211_v13 = vld [vmem:[%s186_s16 + $0x38] sm:$0xff]  ;;  %v560_v56 = vld [vmem:[%s192_s20] sm:$0xff]  }
  0x14   : > { %226 = vmax.xlane.f32.xlu1 %v225_v4  ;;  %v231_v14 = vsel %vm212_vm0, %v210_v12, -inf  ;;  %v234_v15 = vsel %vm212_vm0, %v211_v13, -inf  ;;  %524 = vmatprep.subr.bf16.mxu0 %v560_v56 }
  0x15   : > { %534 = vmatprep.subr.bf16.mxu1 %v560_v56  ;;  %525 = vmatpush3.bf16.msra.mxu0 %v560_v56 }
  0x16   : > { %535 = vmatpush3.bf16.msra.mxu1 %v560_v56 }
  0x17   : > { %217 = vmax.xlane.f32.xlu0 %v216_v6 }
  0x18   : > { %229 = vmax.xlane.f32.xlu1 %v228_v7 }
  0x1b   : > { %220 = vmax.xlane.f32.xlu0 %v219_v10 }
  0x1c   : > { %223 = vmax.xlane.f32.xlu1 %v222_v11 }
  0x1f   : > { %232 = vmax.xlane.f32.xlu0 %v231_v14 }
  0x20   : > { %235 = vmax.xlane.f32.xlu1 %v234_v15 }
  0xa0   : > { %v215_v16 = vpop.xlane.xlu0 %214 }
  0xa1   : > { %v227_v17 = vpop.xlane.xlu1 %226  ;;  %v237_v18 = vsub.f32 %v204_v0, %v215_v16 }
  0xa2   : > { %v241_v19 = vsub.f32 %v208_v1, %v227_v17 }
  0xa3   : > { %v245_v20 = vmul.f32 1.442695, %v237_v18 }
  0xa4   : > { %v253_v21 = vmul.f32 1.442695, %v241_v19  ;;  %v218_v22 = vpop.xlane.xlu0 %217 }
  0xa5   : > { %v230_v23 = vpop.xlane.xlu1 %229  ;;  %561 = vpow2.f32 %v245_v20  ;;  %v238_v24 = vsub.f32 %v205_v2, %v218_v22 }
  0xa6   : > { %v242_v25 = vsub.f32 %v209_v5, %v230_v23  ;;  %563 = vpow2.f32 %v253_v21 }
  0xa7   : > { %v247_v26 = vmul.f32 1.442695, %v238_v24 }
  0xa8   : > { %v255_v27 = vmul.f32 1.442695, %v242_v25  ;;  %v221_v28 = vpop.xlane.xlu0 %220 }
  0xa9   : > { %v224_v29 = vpop.xlane.xlu1 %223  ;;  %565 = vpow2.f32 %v247_v26  ;;  %v239_v30 = vsub.f32 %v206_v8, %v221_v28 }
  0xaa   : > { %v240_v31 = vsub.f32 %v207_v9, %v224_v29  ;;  %567 = vpow2.f32 %v255_v27 }
  0xab   : > { %v249_v32 = vmul.f32 1.442695, %v239_v30 }
  0xac   : > { %v251_v33 = vmul.f32 1.442695, %v240_v31  ;;  %v233_v34 = vpop.xlane.xlu0 %232 }
  0xad   : > { %v236_v35 = vpop.xlane.xlu1 %235  ;;  %569 = vpow2.f32 %v249_v32  ;;  %v243_v36 = vsub.f32 %v210_v12, %v233_v34 }
  0xae   : > { %v244_v37 = vsub.f32 %v211_v13, %v236_v35  ;;  %571 = vpow2.f32 %v251_v33 }
  0xaf   : > { %v562_v38 = vpop.eup %561  ;;  %v257_v39 = vmul.f32 1.442695, %v243_v36 }
  0xb0   : > { %v259_v40 = vmul.f32 1.442695, %v244_v37  ;;  %v564_v41 = vpop.eup %563  ;;  %v261_v42 = vsel %vm212_vm0, %v562_v38, 0.0 }
  0xb1   : > { %573 = vpow2.f32 %v257_v39  ;;  %262 = vadd.xlane.f32.xlu0 %v261_v42  ;;  %v273_v43 = vsel %vm212_vm0, %v564_v41, 0.0 }
  0xb2   : > { %575 = vpow2.f32 %v259_v40 }
  0xb3   : > { %v566_v44 = vpop.eup %565 }
  0xb4   : > { %v568_v45 = vpop.eup %567  ;;  %v264_v46 = vsel %vm212_vm0, %v566_v44, 0.0 }
  0xb5   : > { %274 = vadd.xlane.f32.xlu0 %v273_v43  ;;  %265 = vadd.xlane.f32.xlu1 %v264_v46  ;;  %v276_v47 = vsel %vm212_vm0, %v568_v45, 0.0 }
  0xb7   : > { %v570_v48 = vpop.eup %569 }
  0xb8   : > { %v572_v49 = vpop.eup %571  ;;  %v267_v50 = vsel %vm212_vm0, %v570_v48, 0.0 }
  0xb9   : > { %277 = vadd.xlane.f32.xlu1 %v276_v47  ;;  %268 = vadd.xlane.f32.xlu0 %v267_v50  ;;  %v270_v51 = vsel %vm212_vm0, %v572_v49, 0.0 }
  0xbb   : > { %v574_v52 = vpop.eup %573 }
  0xbc   : > { %v576_v53 = vpop.eup %575  ;;  %v279_v54 = vsel %vm212_vm0, %v574_v52, 0.0 }
  0xbd   : > { %271 = vadd.xlane.f32.xlu1 %v270_v51  ;;  %280 = vadd.xlane.f32.xlu0 %v279_v54  ;;  %v282_v55 = vsel %vm212_vm0, %v576_v53, 0.0 }
  0xc1   : > { %283 = vadd.xlane.f32.xlu1 %v282_v55 }
 0x13e   : > { %v263_v57 = vpop.xlane.xlu0 %262 }
 0x13f   : > { %577 = vrcp.f32 %v263_v57 }
 0x142   : > { %v266_v58 = vpop.xlane.xlu1 %265  ;;  %v275_v59 = vpop.xlane.xlu0 %274 }
 0x143   : > { %579 = vrcp.f32 %v266_v58 }
 0x144   : > { %581 = vrcp.f32 %v275_v59 }
 0x146   : > { %v278_v60 = vpop.xlane.xlu1 %277  ;;  %v269_v61 = vpop.xlane.xlu0 %268 }
 0x147   : > { %583 = vrcp.f32 %v278_v60 }
 0x148   : > { %585 = vrcp.f32 %v269_v61 }
 0x149   : > { %v578_v0 = vpop.eup %577 }
 0x14a   : > { %v272_v62 = vpop.xlane.xlu1 %271  ;;  %v281_v63 = vpop.xlane.xlu0 %280  ;;  %v286_v3 = vmul.f32 %v578_v0, %v562_v38 }
 0x14b   : > { %587 = vrcp.f32 %v272_v62 }
 0x14c   : > { %589 = vrcp.f32 %v281_v63 }
 0x14d   : > { %v580_v1 = vpop.eup %579 }
 0x14e   : > { %v284_v2 = vpop.xlane.xlu1 %283  ;;  %v288_v4 = vmul.f32 %v580_v1, %v566_v44  ;;  %v582_v5 = vpop.eup %581 }
 0x14f   : > { %591 = vrcp.f32 %v284_v2  ;;  %v294_v8 = vmul.f32 %v582_v5, %v564_v41 }
 0x150   : > { %v301_v6 = vpack.c.bf16 %v288_v4, %v286_v3 }
 0x151   : > { %v584_v7 = vpop.eup %583 }
 0x152   : > { %526 = vmatprep.mubr.msk.bf16.mxu0 %vm212_vm0, %v301_v6  ;;  %v296_v9 = vmul.f32 %v584_v7, %v568_v45  ;;  %v586_v10 = vpop.eup %585 }
 0x153   : > { %v290_v13 = vmul.f32 %v586_v10, %v570_v48 }
 0x154   : > { %v303_v11 = vpack.c.bf16 %v296_v9, %v294_v8 }
 0x155   : > { %v588_v12 = vpop.eup %587 }
 0x156   : > { %530 = vmatprep.mubr.msk.bf16.mxu1 %vm212_vm0, %v303_v11  ;;  %v292_v14 = vmul.f32 %v588_v12, %v572_v49  ;;  %v590_v15 = vpop.eup %589 }
 0x157   : > { %v298_v18 = vmul.f32 %v590_v15, %v574_v52 }
 0x158   : > { %v302_v16 = vpack.c.bf16 %v292_v14, %v290_v13 }
 0x159   : > { %v592_v17 = vpop.eup %591 }
 0x15a   : > { %527 = vmatmul.mubr.msk.bf16.vlgmr.msra.gmra.mrb[0].mxu0 %vm212_vm0, %v302_v16  ;;  %v300_v19 = vmul.f32 %v592_v17, %v576_v53 }
 0x15c   : > { %v304_v20 = vpack.c.bf16 %v300_v19, %v298_v18 }
 0x15e   : > { %531 = vmatmul.mubr.msk.bf16.vlgmr.msra.gmra.mrb[0].mxu1 %vm212_vm0, %v304_v20 }
 0x22d   : > { %v528_v21 = vpop.f32.mrb[0].mxu0 }
 0x22e   : > { %393 = vst.msk [vmem:[%s201_s23 + $0x10] sm:$0xff] %vm390_vm1, %v528_v21  ;;  %v359_v22 = vpop.f32.mrb[1].mxu0 }
 0x22f   : > { %391 = vst.msk [vmem:[%s201_s23] sm:$0xff] %vm390_vm1, %v359_v22  ;;  %v529_v23 = vpop.f32.mrb[2].mxu0 }
 0x230   : > { %394 = vst.msk [vmem:[%s201_s23 + $0x18] sm:$0xff] %vm390_vm1, %v529_v23  ;;  %v362_v24 = vpop.f32.mrb[3].mxu0 }
 0x231   : > { %392 = vst.msk [vmem:[%s201_s23 + $0x8] sm:$0xff] %vm390_vm1, %v362_v24  ;;  %v532_v25 = vpop.f32.mrb[0].mxu1 }
 0x232   : > { %397 = vst.msk [vmem:[%s201_s23 + $0x30] sm:$0xff] %vm390_vm1, %v532_v25  ;;  %v375_v26 = vpop.f32.mrb[1].mxu1 }
 0x233   : > { %395 = vst.msk [vmem:[%s201_s23 + $0x20] sm:$0xff] %vm390_vm1, %v375_v26  ;;  %v533_v27 = vpop.f32.mrb[2].mxu1 }
 0x234   : > { %398 = vst.msk [vmem:[%s201_s23 + $0x38] sm:$0xff] %vm390_vm1, %v533_v27  ;;  %v378_v28 = vpop.f32.mrb[3].mxu1 }
 0x235   : > { %396 = vst.msk [vmem:[%s201_s23 + $0x28] sm:$0xff] %vm390_vm1, %v378_v28 }
 0x236 PF: > { %s12_s11 = sadd.s32 1, %s615_s11   ;;  %s707_s9 = smov %s611_s10 }
 0x237   : > { %p9_p5 = scmp.ge.s32.totalorder %s12_s11, 4   ;;  %s708_s10 = smov %s710_s12 }
 0x239   :  { %11 = sbr.rel (!%p9_p5) target bundleno = 2 (0x2), region = 61 }

// kernel: oanet_forward.309
= control target key start
LH: loop header
LB: loop body
LE: loop exit
PB: predicated region body
PF: predicated region fallthrough
CT: control target
= control target key end

     0   :  { %s562_s12 = smov 0   ;;  %s564_s13 = smov 0   ;;  %s629_s0 = inlined_call_operand.vmem [shape: f32[2,64,64], index: 0, kind: input, shape index: {}]   ;;  %s630_s1 = inlined_call_operand.vmem [shape: bf16[64,16], index: 1, kind: input, shape index: {}]   ;;  %s631_s2 = inlined_call_operand.vmem [shape: f32[1,16], index: 2, kind: input, shape index: {}]   ;;  %s632_s3 = inlined_call_operand.vmem [shape: f32[2,64,16], index: 3, kind: output, shape index: {}]  }
   0x1   :  { %s566_s14 = smov 0  }
   0x2 LB: > { %s25_s15 = sadd.s32 1, %s536_s13  ;;  %p440_p0 = scmp.ge.s32.totalorder %s540_s14, 1  ;;  %s540_s14 = sphi %s566_s14, %s13_s14   ;;  %s536_s13 = sphi %s564_s13, %s634_s13   ;;  %s532_s12 = sphi %s562_s12, %s633_s12  }
   0x3   : > { %p27_p1 = scmp.ge.s32.totalorder %s25_s15, 2  ;;  %p158_p2 = scmp.lt.s32.totalorder %s540_s14, 3 }
   0x5   : > { %s636_s15 = smov (%p27_p1, %s25_s15), 0  ;;  %p159_p3 = pnand %p440_p0, %p158_p2 }
   0x6   : > { %v514_v0 = vld [vmem:[%s630_s1] sm:$0xff] (!%p159_p3)   ;;  %p191_p4 = scmp.lt.s32.totalorder (!%p159_p3), %s532_s12, 1  ;;  %v515_v1 = vld [vmem:[%s630_s1 + $0x8] sm:$0xff] (!%p159_p3)   ;;  %v516_v2 = vld [vmem:[%s630_s1 + $0x10] sm:$0xff] (!%p159_p3)   ;;  %vm262_vm0 = vcmask (!%p159_p3), 523264   ;;  %vm340_vm1 = vcmask (!%p159_p3), 130048  }
   0x7   : > { %162 = sbr.rel (%p159_p3) target bundleno = 242 (0xf2), region = 32  ;;  %466 = vmatprep.subr.bf16.mxu0 (!%p159_p3), %v514_v0  ;;  %482 = vmatprep.subr.bf16.mxu1 (!%p159_p3), %v514_v0  ;;  %v517_v8 = vld [vmem:[%s630_s1 + $0x18] sm:$0xff] (!%p159_p3)   ;;  %v445_v16 = vld [vmem:[%s631_s2] ss:$0 sm:$0xff] (!%p159_p3) }
   0x8   : > { %467 = vmatpush3.bf16.msra.mxu0 (!%p159_p3), %v514_v0  ;;  %486 = vmatpush3.bf16.msra.mxu1 (!%p159_p3), %v514_v0 }
   0x9   : > { %468 = vmatprep.subr.bf16.mxu0 (!%p159_p3), %v515_v1  ;;  %483 = vmatprep.subr.bf16.mxu1 (!%p159_p3), %v515_v1 }
   0xc   : > { %469 = vmatpush3.bf16.msra.mxu0 (!%p159_p3), %v515_v1  ;;  %487 = vmatpush3.bf16.msra.mxu1 (!%p159_p3), %v515_v1 }
   0xd   : > { %470 = vmatprep.subr.bf16.mxu0 (!%p159_p3), %v516_v2  ;;  %484 = vmatprep.subr.bf16.mxu1 (!%p159_p3), %v516_v2 }
   0xe   : > { %s638_s12 = smov (!%p191_p4, %s532_s12), 1 }
   0xf   : > { %s456_s22 = sshll.u32 %s638_s12, 6 }
  0x10   : > { %s198_s25 = scalar_lea.vmem %s629_s0, %s456_s22  ;;  %471 = vmatpush3.bf16.msra.mxu0 %v516_v2  ;;  %488 = vmatpush3.bf16.msra.mxu1 %v516_v2  ;;  %s208_s5 = scalar_lea.vmem %s632_s3, %s456_s22 }
  0x11   : > { %v211_v3 = vld [vmem:[%s198_s25] sm:$0xff]  ;;  %v212_v4 = vld [vmem:[%s198_s25 + $0x8] sm:$0xff]  ;;  %v213_v10 = vld [vmem:[%s198_s25 + $0x10] sm:$0xff]  ;;  %472 = vmatprep.subr.bf16.mxu0 %v517_v8  ;;  %485 = vmatprep.subr.bf16.mxu1 %v517_v8 }
  0x12   : > { %v215_v5 = vld [vmem:[%s198_s25 + $0x20] sm:$0xff]  ;;  %v219_v6 = vpack.c.bf16 %v212_v4, %v211_v3  ;;  %v216_v7 = vld [vmem:[%s198_s25 + $0x28] sm:$0xff]  ;;  %v214_v11 = vld [vmem:[%s198_s25 + $0x18] sm:$0xff] }
  0x13   : > { %v221_v9 = vpack.c.bf16 %v216_v7, %v215_v5  ;;  %v217_v12 = vld [vmem:[%s198_s25 + $0x30] sm:$0xff]  ;;  %v218_v13 = vld [vmem:[%s198_s25 + $0x38] sm:$0xff]  ;;  %v220_v14 = vpack.c.bf16 %v214_v11, %v213_v10 }
  0x14   : > { %474 = vmatprep.mubr.msk.bf16.mxu0 %vm262_vm0, %v219_v6  ;;  %v222_v15 = vpack.c.bf16 %v218_v13, %v217_v12  ;;  %473 = vmatpush3.bf16.msra.mxu0 %v517_v8 }
  0x15   : > { %478 = vmatprep.mubr.msk.bf16.mxu1 %vm262_vm0, %v221_v9  ;;  %489 = vmatpush3.bf16.msra.mxu1 %v517_v8 }
  0x17   : > { %475 = vmatmul.mubr.msk.bf16.vlgmr.msra.gmra.mrb[0].mxu0 %vm262_vm0, %v220_v14 }
  0x18   : > { %479 = vmatmul.mubr.msk.bf16.vlgmr.msra.gmra.mrb[0].mxu1 %vm262_vm0, %v222_v15 }
  0xea   : > { %v476_v17 = vpop.f32.mrb[0].mxu0 }
  0xeb   : > { %v480_v18 = vpop.f32.mrb[0].mxu1  ;;  %v318_v19 = vadd.f32 %v476_v17, %v445_v16  ;;  %v309_v21 = vpop.f32.mrb[1].mxu0 }
  0xec   : > { %v334_v20 = vadd.f32 %v480_v18, %v445_v16  ;;  %v325_v22 = vpop.f32.mrb[1].mxu1  ;;  %v310_v23 = vadd.f32 %v445_v16, %v309_v21  ;;  %v477_v25 = vpop.f32.mrb[2].mxu0 }
  0xed   : > { %v326_v24 = vadd.f32 %v445_v16, %v325_v22  ;;  %v481_v26 = vpop.f32.mrb[2].mxu1  ;;  %343 = vst.msk [vmem:[%s208_s5 + $0x10] sm:$0xff] %vm340_vm1, %v318_v19  ;;  %v321_v27 = vadd.f32 %v477_v25, %v445_v16  ;;  %v312_v29 = vpop.f32.mrb[3].mxu0 }
  0xee   : > { %347 = vst.msk [vmem:[%s208_s5 + $0x30] sm:$0xff] %vm340_vm1, %v334_v20  ;;  %v337_v28 = vadd.f32 %v481_v26, %v445_v16  ;;  %v328_v30 = vpop.f32.mrb[3].mxu1  ;;  %341 = vst.msk [vmem:[%s208_s5] sm:$0xff] %vm340_vm1, %v310_v23  ;;  %v313_v31 = vadd.f32 %v445_v16, %v312_v29 }
  0xef   : > { %345 = vst.msk [vmem:[%s208_s5 + $0x20] sm:$0xff] %vm340_vm1, %v326_v24  ;;  %v329_v32 = vadd.f32 %v445_v16, %v328_v30  ;;  %344 = vst.msk [vmem:[%s208_s5 + $0x18] sm:$0xff] %vm340_vm1, %v321_v27 }
  0xf0   : > { %348 = vst.msk [vmem:[%s208_s5 + $0x38] sm:$0xff] %vm340_vm1, %v337_v28  ;;  %342 = vst.msk [vmem:[%s208_s5 + $0x8] sm:$0xff] %vm340_vm1, %v313_v31 }
  0xf1   : > { %346 = vst.msk [vmem:[%s208_s5 + $0x28] sm:$0xff] %vm340_vm1, %v329_v32 }
  0xf2 PF: > { %s13_s14 = sadd.s32 1, %s540_s14   ;;  %s633_s12 = smov %s536_s13 }
  0xf3   : > { %p10_p5 = scmp.ge.s32.totalorder %s13_s14, 4   ;;  %s634_s13 = smov %s636_s15 }
  0xf5   :  { %12 = sbr.rel (!%p10_p5) target bundleno = 2 (0x2), region = 62 }

// kernel: oanet_forward.310
= control target key start
LH: loop header
LB: loop body
LE: loop exit
PB: predicated region body
PF: predicated region fallthrough
CT: control target
= control target key end

     0   :  { %s667_s18 = smov 0   ;;  %s669_s19 = smov 0   ;;  %s733_s0 = inlined_call_operand.vmem [shape: f32[2,64,16], index: 0, kind: input, shape index: {}]   ;;  %s734_s1 = inlined_call_operand.vmem [shape: f32[2,1,16], index: 1, kind: input, shape index: {}]   ;;  %s735_s2 = inlined_call_operand.vmem [shape: f32[2,1,16], index: 2, kind: input, shape index: {}]   ;;  %s736_s3 = inlined_call_operand.vmem [shape: bf16[16,64], index: 3, kind: input, shape index: {}]   ;;  %s737_s4 = inlined_call_operand.vmem [shape: f32[1,64], index: 4, kind: input, shape index: {}]   ;;  %s738_s5 = inlined_call_operand.vmem [shape: f32[2,64,64], index: 5, kind: output, shape index: {}]  }
   0x1   :  { %s671_s20 = smov 0  }
   0x2 LB: > { %s27_s21 = sadd.s32 1, %s631_s19  ;;  %p554_p0 = scmp.ge.s32.totalorder %s635_s20, 1  ;;  %s635_s20 = sphi %s671_s20, %s15_s20   ;;  %s631_s19 = sphi %s669_s19, %s740_s19   ;;  %s627_s18 = sphi %s667_s18, %s739_s18  }
   0x3   : > { %p29_p1 = scmp.ge.s32.totalorder %s27_s21, 2  ;;  %p224_p2 = scmp.lt.s32.totalorder %s635_s20, 3 }
   0x5   : > { %s742_s21 = smov (%p29_p1, %s27_s21), 0  ;;  %p225_p3 = pnand %p554_p0, %p224_p2 }
   0x6   : > { %v612_v0 = vld [vmem:[%s736_s3] sm:$0xff] (!%p225_p3)   ;;  %p267_p4 = scmp.lt.s32.totalorder (!%p225_p3), %s627_s18, 1  ;;  %vm358_vm0 = vcmask (!%p225_p3), 130048   ;;  %vm436_vm1 = vcmask (!%p225_p3), 523264  }
   0x7   : > { %228 = sbr.rel (%p225_p3) target bundleno = 247 (0xf7), region = 40  ;;  %576 = vmatprep.subr.bf16.mxu0 (!%p225_p3), %v612_v0  ;;  %586 = vmatprep.subr.bf16.mxu1 (!%p225_p3), %v612_v0  ;;  %v561_v39 = vld [vmem:[%s737_s4] ss:$0 sm:$0xff] (!%p225_p3) }
   0x8   : > { %577 = vmatpush3.bf16.msra.mxu0 (!%p225_p3), %v612_v0  ;;  %587 = vmatpush3.bf16.msra.mxu1 (!%p225_p3), %v612_v0 }
   0xe   : > { %s744_s18 = smov (!%p267_p4, %s627_s18), 1 }
   0xf   : > { %s569_s24 = sshll.u32 %s744_s18, 6  ;;  %s278_s27 = scalar_lea.vmem %s734_s1, %s744_s18 }
  0x10   : > { %s274_s30 = scalar_lea.vmem %s733_s0, %s569_s24  ;;  %s281_s8 = scalar_lea.vmem %s735_s2, %s744_s18  ;;  %v559_v1 = vld [vmem:[%s278_s27] ss:$0 sm:$0xff] }
  0x11   : > { %v293_v2 = vld [vmem:[%s274_s30] sm:$0xff]  ;;  %v294_v3 = vld [vmem:[%s274_s30 + $0x8] sm:$0xff]  ;;  %v295_v9 = vld [vmem:[%s274_s30 + $0x10] sm:$0xff]  ;;  %s290_s13 = scalar_lea.vmem %s738_s5, %s569_s24 }
  0x12   : > { %v560_v4 = vld [vmem:[%s281_s8] ss:$0 sm:$0xff]  ;;  %v308_v5 = vmul.f32 %v559_v1, %v293_v2  ;;  %v309_v6 = vmul.f32 %v559_v1, %v294_v3  ;;  %v298_v8 = vld [vmem:[%s274_s30 + $0x28] sm:$0xff]  ;;  %v296_v12 = vld [vmem:[%s274_s30 + $0x18] sm:$0xff]  ;;  %v310_v13 = vmul.f32 %v559_v1, %v295_v9 }
  0x13   : > { %v297_v7 = vld [vmem:[%s274_s30 + $0x20] sm:$0xff]  ;;  %v313_v11 = vmul.f32 %v559_v1, %v298_v8  ;;  %v299_v14 = vld [vmem:[%s274_s30 + $0x30] sm:$0xff]  ;;  %v300_v15 = vld [vmem:[%s274_s30 + $0x38] sm:$0xff]  ;;  %v311_v18 = vmul.f32 %v559_v1, %v296_v12 }
  0x14   : > { %v312_v10 = vmul.f32 %v559_v1, %v297_v7  ;;  %v323_v16 = vadd.f32 %v560_v4, %v308_v5  ;;  %v324_v17 = vadd.f32 %v560_v4, %v309_v6  ;;  %v314_v19 = vmul.f32 %v559_v1, %v299_v14 }
  0x15   : > { %v328_v21 = vadd.f32 %v560_v4, %v313_v11  ;;  %v325_v22 = vadd.f32 %v560_v4, %v310_v13  ;;  %v315_v23 = vmul.f32 %v559_v1, %v300_v15  ;;  %v326_v26 = vadd.f32 %v560_v4, %v311_v18 }
  0x16   : > { %v327_v20 = vadd.f32 %v560_v4, %v312_v10  ;;  %v331_v24 = vmax.f32 %v323_v16, 0.0  ;;  %v332_v25 = vmax.f32 %v324_v17, 0.0  ;;  %v329_v27 = vadd.f32 %v560_v4, %v314_v19 }
  0x17   : > { %v336_v29 = vmax.f32 %v328_v21, 0.0  ;;  %v333_v30 = vmax.f32 %v325_v22, 0.0  ;;  %v330_v31 = vadd.f32 %v560_v4, %v315_v23  ;;  %v334_v33 = vmax.f32 %v326_v26, 0.0 }
  0x18   : > { %v335_v28 = vmax.f32 %v327_v20, 0.0  ;;  %v339_v32 = vpack.c.bf16 %v332_v25, %v331_v24  ;;  %v337_v34 = vmax.f32 %v329_v27, 0.0 }
  0x19   : > { %v338_v36 = vmax.f32 %v330_v31, 0.0  ;;  %v340_v37 = vpack.c.bf16 %v334_v33, %v333_v30 }
  0x1a   : > { %v341_v35 = vpack.c.bf16 %v336_v29, %v335_v28  ;;  %578 = vmatprep.mubr.msk.bf16.mxu0 %vm358_vm0, %v339_v32 }
  0x1b   : > { %v342_v38 = vpack.c.bf16 %v338_v36, %v337_v34  ;;  %579 = vmatmul.mubr.msk.bf16.vlgmr.msra.gmra.mrb[0].mxu0 %vm358_vm0, %v340_v37 }
  0x1c   : > { %582 = vmatprep.mubr.msk.bf16.mxu1 %vm358_vm0, %v341_v35 }
  0x1d   : > { %583 = vmatmul.mubr.msk.bf16.vlgmr.msra.gmra.mrb[0].mxu1 %vm358_vm0, %v342_v38 }
  0xee   : > { %v580_v40 = vpop.f32.mrb[0].mxu0 }
  0xef   : > { %v414_v41 = vadd.f32 %v580_v40, %v561_v39  ;;  %v405_v43 = vpop.f32.mrb[1].mxu0 }
  0xf0   : > { %v584_v42 = vpop.f32.mrb[0].mxu1  ;;  %v406_v45 = vadd.f32 %v561_v39, %v405_v43  ;;  %v581_v47 = vpop.f32.mrb[2].mxu0 }
  0xf1   : > { %v430_v44 = vadd.f32 %v584_v42, %v561_v39  ;;  %v421_v46 = vpop.f32.mrb[1].mxu1  ;;  %439 = vst.msk [vmem:[%s290_s13 + $0x10] sm:$0xff] %vm436_vm1, %v414_v41  ;;  %v417_v49 = vadd.f32 %v581_v47, %v561_v39  ;;  %v408_v51 = vpop.f32.mrb[3].mxu0 }
  0xf2   : > { %v422_v48 = vadd.f32 %v561_v39, %v421_v46  ;;  %v585_v50 = vpop.f32.mrb[2].mxu1  ;;  %437 = vst.msk [vmem:[%s290_s13] sm:$0xff] %vm436_vm1, %v406_v45  ;;  %v409_v53 = vadd.f32 %v561_v39, %v408_v51 }
  0xf3   : > { %443 = vst.msk [vmem:[%s290_s13 + $0x30] sm:$0xff] %vm436_vm1, %v430_v44  ;;  %v433_v52 = vadd.f32 %v585_v50, %v561_v39  ;;  %v424_v54 = vpop.f32.mrb[3].mxu1  ;;  %440 = vst.msk [vmem:[%s290_s13 + $0x18] sm:$0xff] %vm436_vm1, %v417_v49 }
  0xf4   : > { %441 = vst.msk [vmem:[%s290_s13 + $0x20] sm:$0xff] %vm436_vm1, %v422_v48  ;;  %v425_v55 = vadd.f32 %v561_v39, %v424_v54  ;;  %438 = vst.msk [vmem:[%s290_s13 + $0x8] sm:$0xff] %vm436_vm1, %v409_v53 }
  0xf5   : > { %444 = vst.msk [vmem:[%s290_s13 + $0x38] sm:$0xff] %vm436_vm1, %v433_v52 }
  0xf6   : > { %442 = vst.msk [vmem:[%s290_s13 + $0x28] sm:$0xff] %vm436_vm1, %v425_v55 }
  0xf7 PF: > { %s15_s20 = sadd.s32 1, %s635_s20   ;;  %s739_s18 = smov %s631_s19 }
  0xf8   : > { %p12_p5 = scmp.ge.s32.totalorder %s15_s20, 4   ;;  %s740_s19 = smov %s742_s21 }
  0xfa   :  { %14 = sbr.rel (!%p12_p5) target bundleno = 2 (0x2), region = 76 }

// kernel: oanet_forward.311
= control target key start
LH: loop header
LB: loop body
LE: loop exit
PB: predicated region body
PF: predicated region fallthrough
CT: control target
= control target key end

     0   :  { %s737_s18 = smov 0   ;;  %s739_s19 = smov 0   ;;  %s795_s0 = inlined_call_operand.vmem [shape: f32[2,64,64], index: 0, kind: input, shape index: {}]   ;;  %s796_s1 = inlined_call_operand.vmem [shape: f32[2,1,64], index: 1, kind: input, shape index: {}]   ;;  %s797_s2 = inlined_call_operand.vmem [shape: f32[2,1,64], index: 2, kind: input, shape index: {}]   ;;  %s798_s3 = inlined_call_operand.vmem [shape: f32[2,1,64], index: 3, kind: input, shape index: {}]   ;;  %s799_s4 = inlined_call_operand.vmem [shape: f32[2,64,64], index: 4, kind: input, shape index: {}]   ;;  %s800_s5 = inlined_call_operand.vmem [shape: f32[2,64,64], index: 5, kind: output, shape index: {}]  }
   0x1   :  { %s741_s20 = smov 0  }
   0x2 LB: > { %s27_s21 = sadd.s32 1, %s701_s19  ;;  %p604_p0 = scmp.ge.s32.totalorder %s705_s20, 1  ;;  %s705_s20 = sphi %s741_s20, %s15_s20   ;;  %s701_s19 = sphi %s739_s19, %s802_s19   ;;  %s697_s18 = sphi %s737_s18, %s801_s18  }
   0x3   : > { %p29_p1 = scmp.ge.s32.totalorder %s27_s21, 2  ;;  %p249_p2 = scmp.lt.s32.totalorder %s705_s20, 3 }
   0x5   : > { %s804_s21 = smov (%p29_p1, %s27_s21), 0  ;;  %p250_p3 = pnand %p604_p0, %p249_p2 }
   0x6   : > { %p304_p4 = scmp.lt.s32.totalorder (!%p250_p3), %s697_s18, 1  ;;  %vm459_vm0 = vcmask (!%p250_p3), 523264  }
   0x7   : > { %253 = sbr.rel (%p250_p3) target bundleno = 60 (0x3c), region = 40 }
   0xe   : > { %s806_s18 = smov (!%p304_p4, %s697_s18), 1 }
   0xf   : > { %s755_s22 = sshll.u32 %s806_s18, 6  ;;  %s315_s25 = scalar_lea.vmem %s796_s1, %s806_s18 }
  0x10   : > { %s311_s28 = scalar_lea.vmem %s795_s0, %s755_s22  ;;  %s318_s6 = scalar_lea.vmem %s797_s2, %s806_s18  ;;  %v611_v0 = vld [vmem:[%s315_s25] ss:$0 sm:$0xff] }
  0x11   : > { %s321_s9 = scalar_lea.vmem %s798_s3, %s806_s18  ;;  %v342_v1 = vld [vmem:[%s311_s28] sm:$0xff]  ;;  %v343_v3 = vld [vmem:[%s311_s28 + $0x8] sm:$0xff]  ;;  %v344_v7 = vld [vmem:[%s311_s28 + $0x10] sm:$0xff]  ;;  %s330_s12 = scalar_lea.vmem %s799_s4, %s755_s22 }
  0x12   : > { %v612_v2 = vld [vmem:[%s318_s6] ss:$0 sm:$0xff]  ;;  %v357_v4 = vmul.f32 %v611_v0, %v342_v1  ;;  %v358_v5 = vmul.f32 %v611_v0, %v343_v3  ;;  %v345_v8 = vld [vmem:[%s311_s28 + $0x18] sm:$0xff]  ;;  %v359_v11 = vmul.f32 %v611_v0, %v344_v7  ;;  %v347_v15 = vld [vmem:[%s311_s28 + $0x28] sm:$0xff]  ;;  %s340_s15 = scalar_lea.vmem %s800_s5, %s755_s22 }
  0x13   : > { %v613_v6 = vld [vmem:[%s321_s9] ss:$0 sm:$0xff]  ;;  %v360_v12 = vmul.f32 %v611_v0, %v345_v8  ;;  %v348_v16 = vld [vmem:[%s311_s28 + $0x30] sm:$0xff]  ;;  %v349_v21 = vld [vmem:[%s311_s28 + $0x38] sm:$0xff]  ;;  %v362_v23 = vmul.f32 %v611_v0, %v347_v15 }
  0x14   : > { %v372_v9 = vadd.f32 %v612_v2, %v357_v4  ;;  %v373_v10 = vadd.f32 %v612_v2, %v358_v5  ;;  %v346_v13 = vld [vmem:[%s311_s28 + $0x20] sm:$0xff]  ;;  %v374_v19 = vadd.f32 %v612_v2, %v359_v11  ;;  %v363_v24 = vmul.f32 %v611_v0, %v348_v16  ;;  %v444_v60 = vld [vmem:[%s330_s12 + $0x8] sm:$0xff]  ;;  %v445_v62 = vld [vmem:[%s330_s12 + $0x10] sm:$0xff] }
  0x15   : > { %v361_v14 = vmul.f32 %v611_v0, %v346_v13  ;;  %v375_v20 = vadd.f32 %v612_v2, %v360_v12  ;;  %v364_v25 = vmul.f32 %v611_v0, %v349_v21  ;;  %v377_v31 = vadd.f32 %v612_v2, %v362_v23  ;;  %v443_v59 = vld [vmem:[%s330_s12] sm:$0xff]  ;;  %v446_v1 = vld [vmem:[%s330_s12 + $0x18] sm:$0xff]  ;;  %v448_v7 = vld [vmem:[%s330_s12 + $0x28] sm:$0xff] }
  0x16   : > { %v387_v17 = vadd.f32 %v613_v6, %v372_v9  ;;  %v388_v18 = vadd.f32 %v613_v6, %v373_v10  ;;  %v389_v28 = vadd.f32 %v613_v6, %v374_v19  ;;  %v378_v32 = vadd.f32 %v612_v2, %v363_v24  ;;  %v447_v4 = vld [vmem:[%s330_s12 + $0x20] sm:$0xff]  ;;  %v449_v10 = vld [vmem:[%s330_s12 + $0x30] sm:$0xff]  ;;  %v450_v13 = vld [vmem:[%s330_s12 + $0x38] sm:$0xff] }
  0x17   : > { %v376_v22 = vadd.f32 %v612_v2, %v361_v14  ;;  %v390_v29 = vadd.f32 %v613_v6, %v375_v20  ;;  %v379_v33 = vadd.f32 %v612_v2, %v364_v25  ;;  %v392_v37 = vadd.f32 %v613_v6, %v377_v31 }
  0x18   : > { %v614_v26 = vmul.f32 -1.442695, %v387_v17  ;;  %v615_v27 = vmul.f32 -1.442695, %v388_v18  ;;  %v616_v34 = vmul.f32 -1.442695, %v389_v28  ;;  %v393_v38 = vadd.f32 %v613_v6, %v378_v32 }
  0x19   : > { %v391_v30 = vadd.f32 %v613_v6, %v376_v22  ;;  %v617_v35 = vmul.f32 -1.442695, %v390_v29  ;;  %v394_v39 = vadd.f32 %v613_v6, %v379_v33  ;;  %v619_v40 = vmul.f32 -1.442695, %v392_v37 }
  0x1a   : > { %651 = vpow2.f32 %v614_v26  ;;  %v620_v41 = vmul.f32 -1.442695, %v393_v38 }
  0x1b   : > { %653 = vpow2.f32 %v615_v27  ;;  %v618_v36 = vmul.f32 -1.442695, %v391_v30  ;;  %v621_v42 = vmul.f32 -1.442695, %v394_v39 }
  0x1c   : > { %655 = vpow2.f32 %v616_v34 }
  0x1d   : > { %657 = vpow2.f32 %v617_v35 }
  0x1e   : > { %659 = vpow2.f32 %v618_v36 }
  0x1f   : > { %661 = vpow2.f32 %v619_v40 }
  0x20   : > { %663 = vpow2.f32 %v620_v41 }
  0x21   : > { %665 = vpow2.f32 %v621_v42 }
  0x24   : > { %v652_v43 = vpop.eup %651 }
  0x25   : > { %v654_v44 = vpop.eup %653  ;;  %v419_v45 = vadd.f32 1.0, %v652_v43 }
  0x26   : > { %v656_v46 = vpop.eup %655  ;;  %v420_v47 = vadd.f32 1.0, %v654_v44 }
  0x27   : > { %v658_v48 = vpop.eup %657  ;;  %667 = vrcp.f32 %v419_v45  ;;  %v421_v49 = vadd.f32 1.0, %v656_v46 }
  0x28   : > { %v660_v50 = vpop.eup %659  ;;  %669 = vrcp.f32 %v420_v47  ;;  %v422_v51 = vadd.f32 1.0, %v658_v48 }
  0x29   : > { %v662_v52 = vpop.eup %661  ;;  %671 = vrcp.f32 %v421_v49  ;;  %v423_v53 = vadd.f32 1.0, %v660_v50 }
  0x2a   : > { %v664_v54 = vpop.eup %663  ;;  %673 = vrcp.f32 %v422_v51  ;;  %v424_v55 = vadd.f32 1.0, %v662_v52 }
  0x2b   : > { %v666_v56 = vpop.eup %665  ;;  %675 = vrcp.f32 %v423_v53  ;;  %v425_v57 = vadd.f32 1.0, %v664_v54 }
  0x2c   : > { %677 = vrcp.f32 %v424_v55  ;;  %v426_v58 = vadd.f32 1.0, %v666_v56 }
  0x2d   : > { %679 = vrcp.f32 %v425_v57 }
  0x2e   : > { %681 = vrcp.f32 %v426_v58 }
  0x31   : > { %v668_v61 = vpop.eup %667 }
  0x32   : > { %v670_v63 = vpop.eup %669  ;;  %v451_v0 = vmul.f32 %v668_v61, %v443_v59 }
  0x33   : > { %v672_v2 = vpop.eup %671  ;;  %v452_v3 = vmul.f32 %v670_v63, %v444_v60 }
  0x34   : > { %v674_v5 = vpop.eup %673  ;;  %460 = vst.msk [vmem:[%s340_s15] sm:$0xff] %vm459_vm0, %v451_v0  ;;  %v453_v6 = vmul.f32 %v672_v2, %v445_v62 }
  0x35   : > { %v676_v8 = vpop.eup %675  ;;  %461 = vst.msk [vmem:[%s340_s15 + $0x8] sm:$0xff] %vm459_vm0, %v452_v3  ;;  %v454_v9 = vmul.f32 %v674_v5, %v446_v1 }
  0x36   : > { %v678_v11 = vpop.eup %677  ;;  %462 = vst.msk [vmem:[%s340_s15 + $0x10] sm:$0xff] %vm459_vm0, %v453_v6  ;;  %v455_v12 = vmul.f32 %v676_v8, %v447_v4 }
  0x37   : > { %v680_v14 = vpop.eup %679  ;;  %463 = vst.msk [vmem:[%s340_s15 + $0x18] sm:$0xff] %vm459_vm0, %v454_v9  ;;  %v456_v15 = vmul.f32 %v678_v11, %v448_v7 }
  0x38   : > { %v682_v16 = vpop.eup %681  ;;  %464 = vst.msk [vmem:[%s340_s15 + $0x20] sm:$0xff] %vm459_vm0, %v455_v12  ;;  %v457_v17 = vmul.f32 %v680_v14, %v449_v10 }
  0x39   : > { %465 = vst.msk [vmem:[%s340_s15 + $0x28] sm:$0xff] %vm459_vm0, %v456_v15  ;;  %v458_v18 = vmul.f32 %v682_v16, %v450_v13 }
  0x3a   : > { %466 = vst.msk [vmem:[%s340_s15 + $0x30] sm:$0xff] %vm459_vm0, %v457_v17 }
  0x3b   : > { %467 = vst.msk [vmem:[%s340_s15 + $0x38] sm:$0xff] %vm459_vm0, %v458_v18 }
  0x3c PF: > { %s15_s20 = sadd.s32 1, %s705_s20   ;;  %s801_s18 = smov %s701_s19 }
  0x3d   : > { %p12_p5 = scmp.ge.s32.totalorder %s15_s20, 4   ;;  %s802_s19 = smov %s804_s21 }
  0x3f   :  { %14 = sbr.rel (!%p12_p5) target bundleno = 2 (0x2), region = 82 }

// kernel: oanet_forward.323
= control target key start
LH: loop header
LB: loop body
LE: loop exit
PB: predicated region body
PF: predicated region fallthrough
CT: control target
= control target key end

     0   :  { %s562_s12 = smov 0   ;;  %s564_s13 = smov 0   ;;  %s629_s0 = inlined_call_operand.vmem [shape: f32[2,64,64], index: 0, kind: input, shape index: {}]   ;;  %s630_s1 = inlined_call_operand.vmem [shape: bf16[64,32], index: 1, kind: input, shape index: {}]   ;;  %s631_s2 = inlined_call_operand.vmem [shape: f32[1,32], index: 2, kind: input, shape index: {}]   ;;  %s632_s3 = inlined_call_operand.vmem [shape: f32[2,64,32], index: 3, kind: output, shape index: {}]  }
   0x1   :  { %s566_s14 = smov 0  }
   0x2 LB: > { %s25_s15 = sadd.s32 1, %s536_s13  ;;  %p440_p0 = scmp.ge.s32.totalorder %s540_s14, 1  ;;  %s540_s14 = sphi %s566_s14, %s13_s14   ;;  %s536_s13 = sphi %s564_s13, %s634_s13   ;;  %s532_s12 = sphi %s562_s12, %s633_s12  }
   0x3   : > { %p27_p1 = scmp.ge.s32.totalorder %s25_s15, 2  ;;  %p158_p2 = scmp.lt.s32.totalorder %s540_s14, 3 }
   0x5   : > { %s636_s15 = smov (%p27_p1, %s25_s15), 0  ;;  %p159_p3 = pnand %p440_p0, %p158_p2 }
   0x6   : > { %v514_v0 = vld [vmem:[%s630_s1] sm:$0xff] (!%p159_p3)   ;;  %p191_p4 = scmp.lt.s32.totalorder (!%p159_p3), %s532_s12, 1  ;;  %v515_v1 = vld [vmem:[%s630_s1 + $0x8] sm:$0xff] (!%p159_p3)   ;;  %v516_v2 = vld [vmem:[%s630_s1 + $0x10] sm:$0xff] (!%p159_p3)   ;;  %vm262_vm0 = vcmask (!%p159_p3), 523264   ;;  %vm340_vm1 = vcmask (!%p159_p3), 261120  }
   0x7   : > { %162 = sbr.rel (%p159_p3) target bundleno = 242 (0xf2), region = 32  ;;  %466 = vmatprep.subr.bf16.mxu0 (!%p159_p3), %v514_v0  ;;  %482 = vmatprep.subr.bf16.mxu1 (!%p159_p3), %v514_v0  ;;  %v517_v8 = vld [vmem:[%s630_s1 + $0x18] sm:$0xff] (!%p159_p3)   ;;  %v445_v16 = vld [vmem:[%s631_s2] ss:$0 sm:$0xff] (!%p159_p3) }
   0x8   : > { %467 = vmatpush3.bf16.msra.mxu0 (!%p159_p3), %v514_v0  ;;  %486 = vmatpush3.bf16.msra.mxu1 (!%p159_p3), %v514_v0 }
   0x9   : > { %468 = vmatprep.subr.bf16.mxu0 (!%p159_p3), %v515_v1  ;;  %483 = vmatprep.subr.bf16.mxu1 (!%p159_p3), %v515_v1 }
   0xc   : > { %469 = vmatpush3.bf16.msra.mxu0 (!%p159_p3), %v515_v1  ;;  %487 = vmatpush3.bf16.msra.mxu1 (!%p159_p3), %v515_v1 }
   0xd   : > { %470 = vmatprep.subr.bf16.mxu0 (!%p159_p3), %v516_v2  ;;  %484 = vmatprep.subr.bf16.mxu1 (!%p159_p3), %v516_v2 }
   0xe   : > { %s638_s12 = smov (!%p191_p4, %s532_s12), 1 }
   0xf   : > { %s456_s22 = sshll.u32 %s638_s12, 6 }
  0x10   : > { %s198_s25 = scalar_lea.vmem %s629_s0, %s456_s22  ;;  %471 = vmatpush3.bf16.msra.mxu0 %v516_v2  ;;  %488 = vmatpush3.bf16.msra.mxu1 %v516_v2  ;;  %s208_s5 = scalar_lea.vmem %s632_s3, %s456_s22 }
  0x11   : > { %v211_v3 = vld [vmem:[%s198_s25] sm:$0xff]  ;;  %v212_v4 = vld [vmem:[%s198_s25 + $0x8] sm:$0xff]  ;;  %v213_v10 = vld [vmem:[%s198_s25 + $0x10] sm:$0xff]  ;;  %472 = vmatprep.subr.bf16.mxu0 %v517_v8  ;;  %485 = vmatprep.subr.bf16.mxu1 %v517_v8 }
  0x12   : > { %v215_v5 = vld [vmem:[%s198_s25 + $0x20] sm:$0xff]  ;;  %v219_v6 = vpack.c.bf16 %v212_v4, %v211_v3  ;;  %v216_v7 = vld [vmem:[%s198_s25 + $0x28] sm:$0xff]  ;;  %v214_v11 = vld [vmem:[%s198_s25 + $0x18] sm:$0xff] }
  0x13   : > { %v221_v9 = vpack.c.bf16 %v216_v7, %v215_v5  ;;  %v217_v12 = vld [vmem:[%s198_s25 + $0x30] sm:$0xff]  ;;  %v218_v13 = vld [vmem:[%s198_s25 + $0x38] sm:$0xff]  ;;  %v220_v14 = vpack.c.bf16 %v214_v11, %v213_v10 }
  0x14   : > { %474 = vmatprep.mubr.msk.bf16.mxu0 %vm262_vm0, %v219_v6  ;;  %v222_v15 = vpack.c.bf16 %v218_v13, %v217_v12  ;;  %473 = vmatpush3.bf16.msra.mxu0 %v517_v8 }
  0x15   : > { %478 = vmatprep.mubr.msk.bf16.mxu1 %vm262_vm0, %v221_v9  ;;  %489 = vmatpush3.bf16.msra.mxu1 %v517_v8 }
  0x17   : > { %475 = vmatmul.mubr.msk.bf16.vlgmr.msra.gmra.mrb[0].mxu0 %vm262_vm0, %v220_v14 }
  0x18   : > { %479 = vmatmul.mubr.msk.bf16.vlgmr.msra.gmra.mrb[0].mxu1 %vm262_vm0, %v222_v15 }
  0xea   : > { %v476_v17 = vpop.f32.mrb[0].mxu0 }
  0xeb   : > { %v480_v18 = vpop.f32.mrb[0].mxu1  ;;  %v318_v19 = vadd.f32 %v476_v17, %v445_v16  ;;  %v309_v21 = vpop.f32.mrb[1].mxu0 }
  0xec   : > { %v334_v20 = vadd.f32 %v480_v18, %v445_v16  ;;  %v325_v22 = vpop.f32.mrb[1].mxu1  ;;  %v310_v23 = vadd.f32 %v445_v16, %v309_v21  ;;  %v477_v25 = vpop.f32.mrb[2].mxu0 }
  0xed   : > { %v326_v24 = vadd.f32 %v445_v16, %v325_v22  ;;  %v481_v26 = vpop.f32.mrb[2].mxu1  ;;  %343 = vst.msk [vmem:[%s208_s5 + $0x10] sm:$0xff] %vm340_vm1, %v318_v19  ;;  %v321_v27 = vadd.f32 %v477_v25, %v445_v16  ;;  %v312_v29 = vpop.f32.mrb[3].mxu0 }
  0xee   : > { %347 = vst.msk [vmem:[%s208_s5 + $0x30] sm:$0xff] %vm340_vm1, %v334_v20  ;;  %v337_v28 = vadd.f32 %v481_v26, %v445_v16  ;;  %v328_v30 = vpop.f32.mrb[3].mxu1  ;;  %341 = vst.msk [vmem:[%s208_s5] sm:$0xff] %vm340_vm1, %v310_v23  ;;  %v313_v31 = vadd.f32 %v445_v16, %v312_v29 }
  0xef   : > { %345 = vst.msk [vmem:[%s208_s5 + $0x20] sm:$0xff] %vm340_vm1, %v326_v24  ;;  %v329_v32 = vadd.f32 %v445_v16, %v328_v30  ;;  %344 = vst.msk [vmem:[%s208_s5 + $0x18] sm:$0xff] %vm340_vm1, %v321_v27 }
  0xf0   : > { %348 = vst.msk [vmem:[%s208_s5 + $0x38] sm:$0xff] %vm340_vm1, %v337_v28  ;;  %342 = vst.msk [vmem:[%s208_s5 + $0x8] sm:$0xff] %vm340_vm1, %v313_v31 }
  0xf1   : > { %346 = vst.msk [vmem:[%s208_s5 + $0x28] sm:$0xff] %vm340_vm1, %v329_v32 }
  0xf2 PF: > { %s13_s14 = sadd.s32 1, %s540_s14   ;;  %s633_s12 = smov %s536_s13 }
  0xf3   : > { %p10_p5 = scmp.ge.s32.totalorder %s13_s14, 4   ;;  %s634_s13 = smov %s636_s15 }
  0xf5   :  { %12 = sbr.rel (!%p10_p5) target bundleno = 2 (0x2), region = 62 }

// kernel: oanet_forward.312
= control target key start
LH: loop header
LB: loop body
LE: loop exit
PB: predicated region body
PF: predicated region fallthrough
CT: control target
= control target key end

     0   :  { %s712_s18 = smov 0   ;;  %s714_s19 = smov 0   ;;  %s783_s0 = inlined_call_operand.vmem [shape: f32[2,64,64], index: 0, kind: input, shape index: {}]   ;;  %s784_s1 = inlined_call_operand.vmem [shape: f32[2,1,64], index: 1, kind: input, shape index: {}]   ;;  %s785_s2 = inlined_call_operand.vmem [shape: f32[2,1,64], index: 2, kind: input, shape index: {}]   ;;  %s786_s3 = inlined_call_operand.vmem [shape: bf16[64,8], index: 3, kind: input, shape index: {}]   ;;  %s787_s4 = inlined_call_operand.vmem [shape: f32[1,8], index: 4, kind: input, shape index: {}]   ;;  %s788_s5 = inlined_call_operand.vmem [shape: f32[2,64,8], index: 5, kind: output, shape index: {}]  }
   0x1   :  { %s716_s20 = smov 0  }
   0x2 LB: > { %s27_s21 = sadd.s32 1, %s676_s19  ;;  %p578_p0 = scmp.ge.s32.totalorder %s680_s20, 1  ;;  %s680_s20 = sphi %s716_s20, %s15_s20   ;;  %s676_s19 = sphi %s714_s19, %s790_s19   ;;  %s672_s18 = sphi %s712_s18, %s789_s18  }
   0x3   : > { %p29_p1 = scmp.ge.s32.totalorder %s27_s21, 2  ;;  %p224_p2 = scmp.lt.s32.totalorder %s680_s20, 3 }
   0x5   : > { %s792_s21 = smov (%p29_p1, %s27_s21), 0  ;;  %p225_p3 = pnand %p578_p0, %p224_p2 }
   0x6   : > { %v654_v0 = vld [vmem:[%s786_s3] sm:$0xff] (!%p225_p3)   ;;  %p267_p4 = scmp.lt.s32.totalorder (!%p225_p3), %s672_s18, 1  ;;  %v655_v1 = vld [vmem:[%s786_s3 + $0x8] sm:$0xff] (!%p225_p3)   ;;  %v656_v2 = vld [vmem:[%s786_s3 + $0x10] sm:$0xff] (!%p225_p3)   ;;  %vm382_vm0 = vcmask (!%p225_p3), 523264   ;;  %vm460_vm1 = vcmask (!%p225_p3), 64512  }
   0x7   : > { %228 = sbr.rel (%p225_p3) target bundleno = 247 (0xf7), region = 40  ;;  %606 = vmatprep.subr.bf16.mxu0 (!%p225_p3), %v654_v0  ;;  %622 = vmatprep.subr.bf16.mxu1 (!%p225_p3), %v654_v0  ;;  %v657_v4 = vld [vmem:[%s786_s3 + $0x18] sm:$0xff] (!%p225_p3)   ;;  %v585_v42 = vld [vmem:[%s787_s4] ss:$0 sm:$0xff] (!%p225_p3) }
   0x8   : > { %607 = vmatpush3.bf16.msra.mxu0 (!%p225_p3), %v654_v0  ;;  %626 = vmatpush3.bf16.msra.mxu1 (!%p225_p3), %v654_v0 }
   0x9   : > { %608 = vmatprep.subr.bf16.mxu0 (!%p225_p3), %v655_v1  ;;  %623 = vmatprep.subr.bf16.mxu1 (!%p225_p3), %v655_v1 }
   0xc   : > { %609 = vmatpush3.bf16.msra.mxu0 (!%p225_p3), %v655_v1  ;;  %627 = vmatpush3.bf16.msra.mxu1 (!%p225_p3), %v655_v1 }
   0xd   : > { %610 = vmatprep.subr.bf16.mxu0 (!%p225_p3), %v656_v2  ;;  %624 = vmatprep.subr.bf16.mxu1 (!%p225_p3), %v656_v2 }
   0xe   : > { %s794_s18 = smov (!%p267_p4, %s672_s18), 1 }
   0xf   : > { %s596_s28 = sshll.u32 %s794_s18, 6  ;;  %s278_s6 = scalar_lea.vmem %s784_s1, %s794_s18 }
  0x10   : > { %s274_s9 = scalar_lea.vmem %s783_s0, %s596_s28  ;;  %s281_s12 = scalar_lea.vmem %s785_s2, %s794_s18  ;;  %v583_v3 = vld [vmem:[%s278_s6] ss:$0 sm:$0xff]  ;;  %611 = vmatpush3.bf16.msra.mxu0 %v656_v2  ;;  %628 = vmatpush3.bf16.msra.mxu1 %v656_v2 }
  0x11   : > { %v293_v5 = vld [vmem:[%s274_s9] sm:$0xff]  ;;  %v294_v6 = vld [vmem:[%s274_s9 + $0x8] sm:$0xff]  ;;  %v295_v12 = vld [vmem:[%s274_s9 + $0x10] sm:$0xff]  ;;  %612 = vmatprep.subr.bf16.mxu0 %v657_v4  ;;  %625 = vmatprep.subr.bf16.mxu1 %v657_v4  ;;  %s290_s23 = scalar_lea.vmem %s788_s5, %s596_s28 }
  0x12   : > { %v584_v7 = vld [vmem:[%s281_s12] ss:$0 sm:$0xff]  ;;  %v308_v8 = vmul.f32 %v583_v3, %v293_v5  ;;  %v309_v9 = vmul.f32 %v583_v3, %v294_v6  ;;  %v298_v11 = vld [vmem:[%s274_s9 + $0x28] sm:$0xff]  ;;  %v296_v15 = vld [vmem:[%s274_s9 + $0x18] sm:$0xff]  ;;  %v310_v16 = vmul.f32 %v583_v3, %v295_v12 }
  0x13   : > { %v297_v10 = vld [vmem:[%s274_s9 + $0x20] sm:$0xff]  ;;  %v313_v14 = vmul.f32 %v583_v3, %v298_v11  ;;  %v299_v17 = vld [vmem:[%s274_s9 + $0x30] sm:$0xff]  ;;  %v300_v18 = vld [vmem:[%s274_s9 + $0x38] sm:$0xff]  ;;  %v311_v21 = vmul.f32 %v583_v3, %v296_v15 }
  0x14   : > { %v312_v13 = vmul.f32 %v583_v3, %v297_v10  ;;  %v323_v19 = vadd.f32 %v584_v7, %v308_v8  ;;  %v324_v20 = vadd.f32 %v584_v7, %v309_v9  ;;  %v314_v22 = vmul.f32 %v583_v3, %v299_v17  ;;  %613 = vmatpush3.bf16.msra.mxu0 %v657_v4 }
  0x15   : > { %v328_v24 = vadd.f32 %v584_v7, %v313_v14  ;;  %v325_v25 = vadd.f32 %v584_v7, %v310_v16  ;;  %v315_v26 = vmul.f32 %v583_v3, %v300_v18  ;;  %v326_v29 = vadd.f32 %v584_v7, %v311_v21  ;;  %629 = vmatpush3.bf16.msra.mxu1 %v657_v4 }
  0x16   : > { %v327_v23 = vadd.f32 %v584_v7, %v312_v13  ;;  %v331_v27 = vmax.f32 %v323_v19, 0.0  ;;  %v332_v28 = vmax.f32 %v324_v20, 0.0  ;;  %v329_v30 = vadd.f32 %v584_v7, %v314_v22 }
  0x17   : > { %v336_v32 = vmax.f32 %v328_v24, 0.0  ;;  %v333_v33 = vmax.f32 %v325_v25, 0.0  ;;  %v330_v34 = vadd.f32 %v584_v7, %v315_v26  ;;  %v334_v36 = vmax.f32 %v326_v29, 0.0 }
  0x18   : > { %v335_v31 = vmax.f32 %v327_v23, 0.0  ;;  %v339_v35 = vpack.c.bf16 %v332_v28, %v331_v27  ;;  %v337_v37 = vmax.f32 %v329_v30, 0.0 }
  0x19   : > { %v338_v39 = vmax.f32 %v330_v34, 0.0  ;;  %v340_v40 = vpack.c.bf16 %v334_v36, %v333_v33 }
  0x1a   : > { %v341_v38 = vpack.c.bf16 %v336_v32, %v335_v31  ;;  %614 = vmatprep.mubr.msk.bf16.mxu0 %vm382_vm0, %v339_v35 }
  0x1b   : > { %v342_v41 = vpack.c.bf16 %v338_v39, %v337_v37  ;;  %615 = vmatmul.mubr.msk.bf16.vlgmr.msra.gmra.mrb[0].mxu0 %vm382_vm0, %v340_v40 }
  0x1c   : > { %618 = vmatprep.mubr.msk.bf16.mxu1 %vm382_vm0, %v341_v38 }
  0x1d   : > { %619 = vmatmul.mubr.msk.bf16.vlgmr.msra.gmra.mrb[0].mxu1 %vm382_vm0, %v342_v41 }
  0xee   : > { %v616_v43 = vpop.f32.mrb[0].mxu0 }
  0xef   : > { %v438_v45 = vadd.f32 %v616_v43, %v585_v42  ;;  %v429_v47 = vpop.f32.mrb[1].mxu0 }
  0xf0   : > { %v620_v44 = vpop.f32.mrb[0].mxu1  ;;  %v430_v49 = vadd.f32 %v585_v42, %v429_v47  ;;  %v617_v51 = vpop.f32.mrb[2].mxu0 }
  0xf1   : > { %v454_v46 = vadd.f32 %v620_v44, %v585_v42  ;;  %v445_v48 = vpop.f32.mrb[1].mxu1  ;;  %463 = vst.msk [vmem:[%s290_s23 + $0x10] sm:$0xff] %vm460_vm1, %v438_v45  ;;  %v441_v53 = vadd.f32 %v617_v51, %v585_v42  ;;  %v432_v55 = vpop.f32.mrb[3].mxu0 }
  0xf2   : > { %v446_v50 = vadd.f32 %v585_v42, %v445_v48  ;;  %v621_v52 = vpop.f32.mrb[2].mxu1  ;;  %461 = vst.msk [vmem:[%s290_s23] sm:$0xff] %vm460_vm1, %v430_v49  ;;  %v433_v57 = vadd.f32 %v585_v42, %v432_v55 }
  0xf3   : > { %467 = vst.msk [vmem:[%s290_s23 + $0x30] sm:$0xff] %vm460_vm1, %v454_v46  ;;  %v457_v54 = vadd.f32 %v621_v52, %v585_v42  ;;  %v448_v56 = vpop.f32.mrb[3].mxu1  ;;  %464 = vst.msk [vmem:[%s290_s23 + $0x18] sm:$0xff] %vm460_vm1, %v441_v53 }
  0xf4   : > { %465 = vst.msk [vmem:[%s290_s23 + $0x20] sm:$0xff] %vm460_vm1, %v446_v50  ;;  %v449_v58 = vadd.f32 %v585_v42, %v448_v56  ;;  %462 = vst.msk [vmem:[%s290_s23 + $0x8] sm:$0xff] %vm460_vm1, %v433_v57 }
  0xf5   : > { %468 = vst.msk [vmem:[%s290_s23 + $0x38] sm:$0xff] %vm460_vm1, %v457_v54 }
  0xf6   : > { %466 = vst.msk [vmem:[%s290_s23 + $0x28] sm:$0xff] %vm460_vm1, %v449_v58 }
  0xf7 PF: > { %s15_s20 = sadd.s32 1, %s680_s20   ;;  %s789_s18 = smov %s676_s19 }
  0xf8   : > { %p12_p5 = scmp.ge.s32.totalorder %s15_s20, 4   ;;  %s790_s19 = smov %s792_s21 }
  0xfa   :  { %14 = sbr.rel (!%p12_p5) target bundleno = 2 (0x2), region = 76 }

// kernel: oanet_forward.346
= control target key start
LH: loop header
LB: loop body
LE: loop exit
PB: predicated region body
PF: predicated region fallthrough
CT: control target
= control target key end

     0   :  { %s537_s14 = smov 0   ;;  %s539_s15 = smov 0   ;;  %s588_s0 = inlined_call_operand.vmem [shape: f32[2,64,32], index: 0, kind: input, shape index: {}]   ;;  %s589_s1 = inlined_call_operand.vmem [shape: bf16[32,1], index: 1, kind: input, shape index: {}]   ;;  %s590_s2 = inlined_call_operand.<no memory space> [shape: f32[1,1], index: 2, kind: input, shape index: {}]   ;;  %s591_s3 = inlined_call_operand.vmem [shape: f32[2,64,1], index: 3, kind: output, shape index: {}]  }
   0x1   :  { %v8_v0 = vstv %s590_s2  ;;  %s541_s16 = smov 0  }
   0x2   :  { %9 = vst [vmem:[#allocation2] sm:$0x1] %v8_v0 }
   0x3 LB: > { %s27_s2 = sadd.s32 1, %s508_s15  ;;  %p426_p0 = scmp.ge.s32.totalorder %s512_s16, 1  ;;  %s512_s16 = sphi %s541_s16, %s15_s16   ;;  %s508_s15 = sphi %s539_s15, %s593_s15   ;;  %s504_s14 = sphi %s537_s14, %s592_s14  }
   0x4   : > { %p29_p1 = scmp.ge.s32.totalorder %s27_s2, 2  ;;  %p160_p2 = scmp.lt.s32.totalorder %s512_s16, 3 }
   0x6   : > { %s595_s2 = smov (%p29_p1, %s27_s2), 0  ;;  %p161_p3 = pnand %p426_p0, %p160_p2 }
   0x7   : > { %v488_v1 = vld [vmem:[%s589_s1] sm:$0xff] (!%p161_p3)   ;;  %p193_p4 = scmp.lt.s32.totalorder (!%p161_p3), %s504_s14, 1  ;;  %v489_v2 = vld [vmem:[%s589_s1 + $0x8] sm:$0xff] (!%p161_p3)   ;;  %vm248_vm0 = vcmask (!%p161_p3), 261120   ;;  %vm326_vm1 = vcmask (!%p161_p3), 7168  }
   0x8   : > { %164 = sbr.rel (%p161_p3) target bundleno = 241 (0xf1), region = 32  ;;  %448 = vmatprep.subr.bf16.mxu0 (!%p161_p3), %v488_v1  ;;  %460 = vmatprep.subr.bf16.mxu1 (!%p161_p3), %v488_v1 }
   0x9   : > { %449 = vmatpush3.bf16.msra.mxu0 (!%p161_p3), %v488_v1  ;;  %462 = vmatpush3.bf16.msra.mxu1 (!%p161_p3), %v488_v1  ;;  %v431_v15 = vld [vmem:[#allocation2] ss:$0 sm:$0xff] (!%p161_p3) }
   0xa   : > { %450 = vmatprep.subr.bf16.mxu0 (!%p161_p3), %v489_v2  ;;  %461 = vmatprep.subr.bf16.mxu1 (!%p161_p3), %v489_v2 }
   0xd   : > { %451 = vmatpush3.bf16.msra.mxu0 (!%p161_p3), %v489_v2  ;;  %463 = vmatpush3.bf16.msra.mxu1 (!%p161_p3), %v489_v2 }
   0xf   : > { %s597_s14 = smov (!%p193_p4, %s504_s14), 1 }
  0x10   : > { %s440_s21 = sshll.u32 %s597_s14, 6 }
  0x11   : > { %s200_s24 = scalar_lea.vmem %s588_s0, %s440_s21  ;;  %s210_s27 = scalar_lea.vmem %s591_s3, %s440_s21 }
  0x12   : > { %v213_v3 = vld [vmem:[%s200_s24] sm:$0xff]  ;;  %v214_v4 = vld [vmem:[%s200_s24 + $0x8] sm:$0xff]  ;;  %v215_v8 = vld [vmem:[%s200_s24 + $0x10] sm:$0xff] }
  0x13   : > { %v217_v5 = vld [vmem:[%s200_s24 + $0x20] sm:$0xff]  ;;  %v221_v6 = vpack.c.bf16 %v214_v4, %v213_v3  ;;  %v218_v7 = vld [vmem:[%s200_s24 + $0x28] sm:$0xff]  ;;  %v216_v9 = vld [vmem:[%s200_s24 + $0x18] sm:$0xff] }
  0x14   : > { %v223_v10 = vpack.c.bf16 %v218_v7, %v217_v5  ;;  %v222_v11 = vpack.c.bf16 %v216_v9, %v215_v8  ;;  %v219_v12 = vld [vmem:[%s200_s24 + $0x30] sm:$0xff]  ;;  %v220_v13 = vld [vmem:[%s200_s24 + $0x38] sm:$0xff] }
  0x15   : > { %452 = vmatprep.mubr.msk.bf16.mxu0 %vm248_vm0, %v221_v6  ;;  %v224_v14 = vpack.c.bf16 %v220_v13, %v219_v12 }
  0x16   : > { %456 = vmatprep.mubr.msk.bf16.mxu1 %vm248_vm0, %v223_v10  ;;  %453 = vmatmul.mubr.msk.bf16.vlgmr.msra.gmra.mrb[0].mxu0 %vm248_vm0, %v222_v11 }
  0x17   : > { %457 = vmatmul.mubr.msk.bf16.vlgmr.msra.gmra.mrb[0].mxu1 %vm248_vm0, %v224_v14 }
  0xe9   : > { %v454_v16 = vpop.f32.mrb[0].mxu0 }
  0xea   : > { %v304_v17 = vadd.f32 %v454_v16, %v431_v15  ;;  %v458_v18 = vpop.f32.mrb[0].mxu1  ;;  %v295_v19 = vpop.f32.mrb[1].mxu0 }
  0xeb   : > { %v320_v20 = vadd.f32 %v458_v18, %v431_v15  ;;  %v296_v21 = vadd.f32 %v431_v15, %v295_v19  ;;  %v311_v22 = vpop.f32.mrb[1].mxu1  ;;  %v455_v23 = vpop.f32.mrb[2].mxu0 }
  0xec   : > { %329 = vst.msk [vmem:[%s210_s27 + $0x10] sm:$0xff] %vm326_vm1, %v304_v17  ;;  %v312_v24 = vadd.f32 %v431_v15, %v311_v22  ;;  %v307_v25 = vadd.f32 %v455_v23, %v431_v15  ;;  %v459_v26 = vpop.f32.mrb[2].mxu1  ;;  %v298_v27 = vpop.f32.mrb[3].mxu0 }
  0xed   : > { %333 = vst.msk [vmem:[%s210_s27 + $0x30] sm:$0xff] %vm326_vm1, %v320_v20  ;;  %327 = vst.msk [vmem:[%s210_s27] sm:$0xff] %vm326_vm1, %v296_v21  ;;  %v323_v28 = vadd.f32 %v459_v26, %v431_v15  ;;  %v299_v29 = vadd.f32 %v431_v15, %v298_v27  ;;  %v314_v30 = vpop.f32.mrb[3].mxu1 }
  0xee   : > { %331 = vst.msk [vmem:[%s210_s27 + $0x20] sm:$0xff] %vm326_vm1, %v312_v24  ;;  %330 = vst.msk [vmem:[%s210_s27 + $0x18] sm:$0xff] %vm326_vm1, %v307_v25  ;;  %v315_v31 = vadd.f32 %v431_v15, %v314_v30 }
  0xef   : > { %334 = vst.msk [vmem:[%s210_s27 + $0x38] sm:$0xff] %vm326_vm1, %v323_v28  ;;  %328 = vst.msk [vmem:[%s210_s27 + $0x8] sm:$0xff] %vm326_vm1, %v299_v29 }
  0xf0   : > { %332 = vst.msk [vmem:[%s210_s27 + $0x28] sm:$0xff] %vm326_vm1, %v315_v31 }
  0xf1 PF: > { %s15_s16 = sadd.s32 1, %s512_s16   ;;  %s592_s14 = smov %s508_s15 }
  0xf2   : > { %p12_p5 = scmp.ge.s32.totalorder %s15_s16, 4   ;;  %s593_s15 = smov %s595_s2 }
  0xf4   :  { %14 = sbr.rel (!%p12_p5) target bundleno = 3 (0x3), region = 62 }

// kernel: custom-call.3
= control target key start
LH: loop header
LB: loop body
LE: loop exit
PB: predicated region body
PF: predicated region fallthrough
CT: control target
= control target key end

     0   :  { %s1672_s30 = smov 0   ;;  %s1674_s10 = smov 0   ;;  %s1999_s0 = inlined_call_operand.vmem [shape: f32[2,5,5], index: 0, kind: input, shape index: {}]   ;;  %s2000_s1 = inlined_call_operand.vmem [shape: f32[2,5,5], index: 1, kind: input, shape index: {}]   ;;  %s2001_s2 = inlined_call_operand.vmem [shape: f32[2,5,5], index: 2, kind: input, shape index: {}]   ;;  %s2002_s3 = inlined_call_operand.vmem [shape: f32[2,5,5], index: 3, kind: input, shape index: {}]   ;;  %s2003_s4 = inlined_call_operand.vmem [shape: f32[2,5], index: 4, kind: output, shape index: {0}]   ;;  %s2004_s5 = inlined_call_operand.vmem [shape: f32[2,5], index: 5, kind: output, shape index: {1}]   ;;  %s2005_s6 = inlined_call_operand.vmem [shape: f32[2,5,5], index: 6, kind: output, shape index: {2}]   ;;  %s2006_s7 = inlined_call_operand.vmem [shape: f32[2,5,5], index: 7, kind: output, shape index: {3}]   ;;  %s2007_s8 = inlined_call_operand.vmem [shape: f32[2,5,5], index: 8, kind: output, shape index: {4}]   ;;  %s2008_s9 = inlined_call_operand.vmem [shape: f32[2,5,5], index: 9, kind: output, shape index: {5}]  }
   0x1   :  { %s1676_s11 = smov 0  }
   0x2 LB: > { %s1688_s12 = sadd.s32 4294967295, %s1609_s11   ;;  %s1691_s13 = sadd.s32 1, %s1609_s11   ;;  %s1609_s11 = sphi %s1676_s11, %s2017_s11   ;;  %s1605_s10 = sphi %s1674_s10, %s2016_s10   ;;  %s1601_s30 = sphi %s1672_s30, %s2015_s30  }
   0x3   : > { %s20_s14 = sshrl.u32 %s1609_s11, 3  ;;  %s21_s15 = sshrl.u32 %s1691_s13, 3 }
   0x4   : > { %s22_s16 = ssub.s32 %s20_s14, %s21_s15  ;;  %s25_s17 = sadd.s32 1, %s1605_s10 }
   0x5   : > { %p23_p0 = scmp.eq.s32.totalorder %s22_s16, 0  ;;  %p35_p1 = scmp.ne.s32.totalorder %s1605_s10, %s1601_s30 }
   0x6   : > { %p36_p2 = scmp.eq.s32.totalorder %s1688_s12, 1  ;;  %p1470_p4 = scmp.ge.s32.totalorder %s1609_s11, 2 }
   0x7   : > { %s1700_s18 = scalar_select %p23_p0, %s1605_s10, %s25_s17  }
   0x8   : > { %p1702_p3 = por %p36_p2, %p35_p1  ;;  %86 = sbr.rel (%p1470_p4) target bundleno = 17 (0x11), region = 16 }
   0x9   : > { %2009 = sst [smem:[#allocation25_spill]] %s1700_s18  ;;  %s88_s20 = sand.u32 (!%p1470_p4), 1, %s1609_s11  }
   0xa   : > { %s1472_s21 = sshll.u32 (!%p1470_p4), %s1609_s11, 3  ;;  %s1471_s22 = sshll.u32 (!%p1470_p4), %s88_s20, 3 }
   0xb   : > { %s92_s25 = scalar_lea.vmem (!%p1470_p4), %s1999_s0, %s1472_s21  ;;  %s90_s26 = scalar_lea.vmem (!%p1470_p4), [#allocation0], %s1471_s22 }
   0xc   : > { %v120_v0 = vld [vmem:[%s92_s25] sm:$0xff] (!%p1470_p4)  ;;  %s130_s29 = scalar_lea.vmem (!%p1470_p4), %s2000_s1, %s1472_s21  ;;  %s168_s16 = scalar_lea.vmem (!%p1470_p4), %s2001_s2, %s1472_s21 }
   0xd   : > { %121 = vst [vmem:[%s90_s26] sm:$0xff] (!%p1470_p4), %v120_v0  ;;  %v158_v1 = vld [vmem:[%s130_s29] sm:$0xff] (!%p1470_p4)  ;;  %s128_s17 = scalar_lea.vmem (!%p1470_p4), [#allocation1], %s1471_s22  ;;  %s206_s23 = scalar_lea.vmem (!%p1470_p4), %s2002_s3, %s1472_s21 }
   0xe   : > { %159 = vst [vmem:[%s128_s17] sm:$0xff] (!%p1470_p4), %v158_v1  ;;  %v196_v2 = vld [vmem:[%s168_s16] sm:$0xff] (!%p1470_p4)  ;;  %s166_s24 = scalar_lea.vmem (!%p1470_p4), [#allocation2], %s1471_s22  ;;  %s204_s25 = scalar_lea.vmem (!%p1470_p4), [#allocation3], %s1471_s22 }
   0xf   : > { %197 = vst [vmem:[%s166_s24] sm:$0xff] %v196_v2  ;;  %v234_v3 = vld [vmem:[%s206_s23] sm:$0xff] }
  0x10   : > { %235 = vst [vmem:[%s204_s25] sm:$0xff] %v234_v3 }
  0x11 PF: > { %p1479_p5 = scmp.ge.s32.totalorder %s1609_s11, 1  ;;  %p240_p6 = scmp.lt.s32.totalorder %s1609_s11, 3 }
  0x13   : > { %p241_p7 = pnand %p1479_p5, %p240_p6 }
  0x15   : > { %244 = sbr.rel (%p241_p7) target bundleno = 992 (0x3e0), region = 156 }
  0x1c   : > { %s247_s26 = sand.u32 1, %s1688_s12   ;;  %s281_s27 = sand.u32 1, %s1601_s30   ;;  %v325_v4 = vlaneseq  ;;  %v1619_v11 = vmov 0.0  }
  0x1d   : > { %s1480_s28 = sshll.u32 %s247_s26, 3  ;;  %s1725_s18 = sshll.u32 %s281_s27, 1 }
  0x1e   : > { %v1727_v5 = vand.u32 127, %v325_v4  ;;  %v1729_v6 = vshrl.u32 %v325_v4, 7  ;;  %s249_s21 = scalar_lea.vmem [#allocation0], %s1480_s28  ;;  %s253_s22 = scalar_lea.vmem [#allocation1], %s1480_s28 }
  0x1f   : > { %v309_v7 = vld [vmem:[%s249_s21] sm:$0xff]  ;;  %v312_v8 = vld [vmem:[%s253_s22] sm:$0xff]  ;;  %s257_s29 = scalar_lea.vmem [#allocation2], %s1480_s28  ;;  %s261_s11 = scalar_lea.vmem [#allocation3], %s1480_s28 }
  0x20   : > { %v315_v9 = vld [vmem:[%s257_s29] sm:$0xff]  ;;  %v318_v10 = vld [vmem:[%s261_s11] sm:$0xff]  ;;  %s1731_s14 = scalar_lea.vmem [#allocation8], %s1480_s28  ;;  %s1734_s30 = scalar_lea.vmem [#allocation9], %s1480_s28  ;;  %v327_v5 = vmov %v1727_v5  ;;  %v330_v6 = vmov %v1729_v6  ;;  %vm1359_vm2 = vcmp.lt.s32.totalorder %v1727_v5, 5 }
  0x21   : > { %320 = vst [vmem:[%s1731_s14] sm:$0xff] %v1619_v11  ;;  %321 = vst [vmem:[%s1734_s30] sm:$0xff] %v1619_v11  ;;  %s308_s15 = smov [#allocation12]  ;;  %s311_s16 = smov [#allocation13]  ;;  %v340_v5 = vmov %v1727_v5  ;;  %v343_v6 = vmov %v1729_v6  ;;  %vm334_vm0 = vcmp.eq.s32.totalorder %v330_v6, %v327_v5 }
  0x22   : > { %s1737_s17 = scalar_lea.vmem [#allocation10], %s1480_s28  ;;  %s1740_s20 = scalar_lea.vmem [#allocation11], %s1480_s28  ;;  %310 = vst [vmem:[%s308_s15] sm:$0xff] %v309_v7  ;;  %313 = vst [vmem:[%s311_s16] sm:$0xff] %v312_v8  ;;  %vm347_vm1 = vcmp.eq.s32.totalorder %v343_v6, %v340_v5  ;;  %v1351_v5 = vmov %v1727_v5  ;;  %v1354_v6 = vmov %v1729_v6 }
  0x23   : > { %322 = vst [vmem:[%s1737_s17] sm:$0xff] %v1619_v11  ;;  %323 = vst [vmem:[%s1740_s20] sm:$0xff] %v1619_v11  ;;  %s314_s23 = smov [#allocation14]  ;;  %s317_s24 = smov [#allocation15]  ;;  %vm1364_vm3 = vcmp.eq.s32.totalorder %v1354_v6, %v1351_v5  ;;  %v1402_v5 = vmov %v1727_v5  ;;  %v1371_v6 = vmov %v1729_v6 }
  0x24   : > { %316 = vst [vmem:[%s314_s23] sm:$0xff] %v315_v9  ;;  %319 = vst [vmem:[%s317_s24] sm:$0xff] %v318_v10  ;;  %s324_s14 = smov %s1731_s14  ;;  %s337_s20 = smov %s1740_s20  ;;  %v1368_v5 = vmov %v1727_v5  ;;  %v1405_v6 = vmov %v1729_v6 }
  0x25   : > { %s283_s25 = scalar_lea.vmem [#allocation5], %s1725_s18  ;;  %s1355_s27 = smov [#allocation12]  ;;  %v1385_v5 = vmov %v1727_v5  ;;  %v1388_v6 = vmov %v1729_v6  ;;  %vm1415_vm4 = vcmp.eq.s32.totalorder %v1405_v6, %v1402_v5 }
  0x26   : > { %s1372_s28 = smov [#allocation13]  ;;  %s1389_s21 = smov [#allocation14] }
  0x27   : > { %s1406_s22 = smov [#allocation15] }
  0x28   : > { %v331_v12 = vld [vmem:[%s324_s14] sm:$0x1f] }
  0x29   : > { %v335_v13 = vsel %vm334_vm0, 1.0, %v331_v12  ;;  %v1361_v16 = vld [vmem:[%s1355_s27] sm:$0x1f] }
  0x2a   : > { %v344_v14 = vld [vmem:[%s337_s20] sm:$0x1f]  ;;  %336 = vst [vmem:[%s324_s14] sm:$0x1f] %v335_v13  ;;  %v1362_v18 = vsel %vm1359_vm2, %v1361_v16, 0.0 }
  0x2b   : > { %v348_v15 = vsel %vm347_vm1, 1.0, %v344_v14  ;;  %v1378_v17 = vld [vmem:[%s1372_s28] sm:$0x1f]  ;;  %v1363_v22 = vmul.f32 %v1362_v18, %v1362_v18 }
  0x2c   : > { %349 = vst [vmem:[%s337_s20] sm:$0x1f] %v348_v15  ;;  %v1379_v19 = vsel %vm1359_vm2, %v1378_v17, 0.0  ;;  %v1395_v20 = vld [vmem:[%s1389_s21] sm:$0x1f] }
  0x2d   : > { %v1412_v21 = vld [vmem:[%s1406_s22] sm:$0x1f]  ;;  %v1380_v23 = vmul.f32 %v1379_v19, %v1379_v19  ;;  %v1396_v24 = vsel %vm1359_vm2, %v1395_v20, 0.0  ;;  %v1365_v29 = vsel %vm1364_vm3, 0.0, %v1363_v22 }
  0x2e   : > { %v1413_v25 = vsel %vm1359_vm2, %v1412_v21, 0.0  ;;  %v1397_v26 = vmul.f32 %v1396_v24, %v1396_v24 }
  0x2f   : > { %v1382_v27 = vadd.f32 %v1380_v23, %v1363_v22  ;;  %v1414_v28 = vmul.f32 %v1413_v25, %v1413_v25  ;;  %v1381_v30 = vadd.f32 %v1380_v23, %v1365_v29 }
  0x31   : > { %v1399_v31 = vadd.f32 %v1397_v26, %v1382_v27  ;;  %v1398_v32 = vadd.f32 %v1397_v26, %v1381_v30  ;;  %v1416_v33 = vsel %vm1415_vm4, 0.0, %v1414_v28 }
  0x33   : > { %v1418_v34 = vadd.f32 %v1414_v28, %v1399_v31  ;;  %v1417_v35 = vadd.f32 %v1416_v33, %v1398_v32 }
  0x35   : > { %1419 = vadd.xlane.f32.xlu0 %v1418_v34 }
  0x39   : > { %1427 = vadd.xlane.f32.xlu0 %v1417_v35 }
  0xc2   : > { %v1420_v36 = vpop.xlane.xlu0 %1419 }
  0xc3   : > { %v1421_v37 = vrot.slane %v1420_v36, 4 }
  0xc5   : > { %v1422_v38 = vadd.f32 %v1421_v37, %v1420_v36 }
  0xc6   : > { %v1428_v39 = vpop.xlane.xlu0 %1427 }
  0xc7   : > { %v1423_v40 = vrot.slane %v1422_v38, 2  ;;  %v1429_v41 = vrot.slane %v1428_v39, 4 }
  0xc9   : > { %v1430_v42 = vadd.f32 %v1429_v41, %v1428_v39  ;;  %v1424_v43 = vadd.f32 %v1423_v40, %v1422_v38 }
  0xcb   : > { %v1431_v44 = vrot.slane %v1430_v42, 2  ;;  %v1425_v46 = vrot.slane %v1424_v43, 1 }
  0xcd   : > { %v1432_v45 = vadd.f32 %v1431_v44, %v1430_v42  ;;  %v1426_v49 = vadd.f32 %v1425_v46, %v1424_v43 }
  0xcf   : > { %v1433_v47 = vrot.slane %v1432_v45, 1 }
  0xd1   : > { %v1434_v48 = vadd.f32 %v1433_v47, %v1432_v45 }
  0xd3   : > { %1520 = vpush %v1434_v48 }
  0xd4   : > { %1522 = vpush %v1426_v49 }
 0x104   : > { %s1521_s29 = spop %1520 }
 0x105   : > { %s1523_s11 = spop %1522 }
 0x106   : > { %s1437_s15 = smul.f32 1e-10, %s1523_s11 }
 0x108   : > { %p1438_p8 = scmp.le.f32.partialorder %s1521_s29, %s1437_s15 }
 0x109   : > { %s1769_s16 = smov (!%p1438_p8), 0  }
 0x10a   : > { %1441 = sbr.rel (%p1438_p8) target bundleno = 948 (0x3b4), region = 499 }
 0x111 LB: >> { %s1774_s23 = smov 0   ;;  %s1613_s16 = sphi %s1769_s16, %s2011_s16  }
 0x112 LB: >>> { %s454_s24 = smov [#allocation12]  ;;  %v458_v5 = vmov %v1727_v5  ;;  %v461_v6 = vmov %v1729_v6  ;;  %s474_s27 = smov [#allocation13]  ;;  %vm777_vm14 = vcmp.eq.s32.totalorder %v1729_v6, 0  ;;  %vm789_vm15 = vcmp.eq.s32.totalorder %v1729_v6, 4  ;;  %s1617_s23 = sphi %s1774_s23, %s453_s23  }
 0x113   : >>> { %v478_v5 = vmov %v1727_v5  ;;  %v481_v6 = vmov %v1729_v6  ;;  %v462_v50 = vld [vmem:[%s454_s24] sm:$0x1f]  ;;  %vm465_vm5 = vcmp.eq.s32.totalorder %v461_v6, %v458_v5  ;;  %s494_s28 = smov [#allocation15]  ;;  %s455_s21 = smov [#allocation16] }
 0x114   : >>> { %vm485_vm6 = vcmp.eq.s32.totalorder %v481_v6, %v478_v5  ;;  %v498_v5 = vmov %v1727_v5  ;;  %v501_v6 = vmov %v1729_v6  ;;  %v466_v51 = vsel %vm465_vm5, %v462_v50, 0.0  ;;  %v482_v52 = vld [vmem:[%s474_s27] sm:$0x1f]  ;;  %s475_s22 = smov [#allocation17]  ;;  %s495_s29 = smov [#allocation18] }
 0x115   : >>> { %vm505_vm7 = vcmp.eq.s32.totalorder %v501_v6, %v498_v5  ;;  %v467_v53 = vrot.slane %v466_v51, 4  ;;  %v486_v54 = vsel %vm485_vm6, %v482_v52, 0.0  ;;  %v502_v55 = vld [vmem:[%s494_s28] sm:$0x1f]  ;;  %s518_s11 = smov [#allocation17]  ;;  %s516_s15 = smov [#allocation16]  ;;  %v567_v5 = vmov %v1727_v5 }
 0x116   : >>> { %v487_v56 = vrot.slane %v486_v54, 4  ;;  %v506_v57 = vsel %vm505_vm7, %v502_v55, 0.0  ;;  %s520_s24 = smov [#allocation18]  ;;  %s555_s27 = smov [#allocation19]  ;;  %v570_v6 = vmov %v1729_v6  ;;  %v582_v5 = vmov %v1727_v5 }
 0x117   : >>> { %v468_v58 = vadd.f32 %v467_v53, %v466_v51  ;;  %v507_v59 = vrot.slane %v506_v57, 4  ;;  %s557_s28 = smov [#allocation20]  ;;  %v585_v6 = vmov %v1729_v6  ;;  %vm572_vm12 = vcmp.eq.s32.totalorder %v570_v6, %v567_v5  ;;  %s1798_s14 = smov %s1731_s14 }
 0x118   : >>> { %v488_v60 = vadd.f32 %v487_v56, %v486_v54  ;;  %vm587_vm13 = vcmp.eq.s32.totalorder %v585_v6, %v582_v5  ;;  %s1801_s30 = smov %s1734_s30  ;;  %s1804_s17 = smov %s1737_s17  ;;  %v825_v53 = vld [vmem:[%s1798_s14] sm:$0x1f]  ;;  %v680_v5 = vmov %v1727_v5  ;;  %v683_v6 = vmov %v1729_v6 }
 0x119   : >>> { %v469_v61 = vrot.slane %v468_v58, 2  ;;  %v508_v62 = vadd.f32 %v507_v59, %v506_v57  ;;  %s1809_s20 = smov %s1740_s20  ;;  %v826_v54 = vld [vmem:[%s1801_s30] sm:$0x1f]  ;;  %s819_s26 = smov [#allocation24]  ;;  %v694_v5 = vmov %v1727_v5  ;;  %v697_v6 = vmov %v1729_v6 }
 0x11a   : >>> { %v489_v63 = vrot.slane %v488_v60, 2  ;;  %v827_v55 = vld [vmem:[%s1804_s17] sm:$0x1f]  ;;  %vm687_vm0 = vcmp.eq.s32.totalorder %v683_v6, %v680_v5  ;;  %v653_v5 = vmov %v1727_v5  ;;  %v656_v6 = vmov %v1729_v6  ;;  %s453_s23 = sadd.s32 1, %s1617_s23  }
 0x11b   : >>> { %v470_v0 = vadd.f32 %v469_v61, %v468_v58  ;;  %v509_v1 = vrot.slane %v508_v62, 2  ;;  %v828_v57 = vld [vmem:[%s1809_s20] sm:$0x1f]  ;;  %v667_v5 = vmov %v1727_v5  ;;  %v670_v6 = vmov %v1729_v6  ;;  %p450_p9 = scmp.ge.s32.totalorder %s453_s23, 9  }
 0x11c   : >>> { %v490_v2 = vadd.f32 %v489_v63, %v488_v60  ;;  %vm702_vm1 = vcmp.eq.s32.totalorder %v697_v6, %v694_v5  ;;  %vm661_vm3 = vcmp.eq.s32.totalorder %v656_v6, %v653_v5  ;;  %vm674_vm4 = vcmp.eq.s32.totalorder %v670_v6, %v667_v5 }
 0x11d   : >>> { %v471_v3 = vrot.slane %v470_v0, 1  ;;  %v510_v4 = vadd.f32 %v509_v1, %v508_v62  ;;  %vm716_vm5 = vcmp.eq.s32.totalorder %v1727_v5, 0  ;;  %vm720_vm6 = vcmp.eq.s32.totalorder %v1727_v5, 1 }
 0x11e   : >>> { %v491_v7 = vrot.slane %v490_v2, 1  ;;  %vm733_vm7 = vcmp.eq.s32.totalorder %v1727_v5, 4  ;;  %v354_v5 = vmov (%p450_p9), %v1727_v5  ;;  %v357_v6 = vmov (%p450_p9), %v1729_v6 }
 0x11f   : >>> { %v472_v8 = vadd.f32 %v471_v3, %v470_v0  ;;  %v511_v9 = vrot.slane %v510_v4, 1  ;;  %v407_v5 = vmov (%p450_p9), %v1727_v5 }
 0x120   : >>> { %v492_v10 = vadd.f32 %v491_v7, %v490_v2 }
 0x121   : >>> { %473 = vst [vmem:[%s455_s21] sm:$0x1] %v472_v8  ;;  %v512_v11 = vadd.f32 %v511_v9, %v510_v4  ;;  %s514_s21 = smov [#allocation21] }
 0x122   : >>> { %493 = vst [vmem:[%s475_s22] sm:$0x1] %v492_v10  ;;  %s515_s22 = smov [#allocation22]  ;;  %s559_s21 = smov %s514_s21 }
 0x123   : >>> { %513 = vst [vmem:[%s495_s29] sm:$0x1] %v512_v11  ;;  %s561_s22 = smov %s515_s22  ;;  %s563_s29 = smov [#allocation21] }
 0x128   : >>> { %v517_v14 = vld [vmem:[%s516_s15] sm:$0xff]  ;;  %s576_s15 = smov [#allocation23] }
 0x129   : >>> { %v519_v12 = vld [vmem:[%s518_s11] sm:$0xff]  ;;  %v540_v27 = vand.u32 2147483647, %v517_v14  ;;  %s578_s11 = smov [#allocation22] }
 0x12a   : >>> { %v523_v13 = vmul.f32 2.0, %v519_v12  ;;  %v521_v15 = vld [vmem:[%s520_s24] sm:$0xff]  ;;  %v541_v32 = vand.u32 2147483647, %v519_v12  ;;  %s593_s24 = smov [#allocation23] }
 0x12b   : >>> { %v522_v16 = vsub.f32 %v521_v15, %v517_v14  ;;  %v542_v28 = vand.u32 2147483647, %v521_v15 }
 0x12c   : >>> { %1571 = vrcp.f32 %v523_v13 }
 0x12d   : >>> { %v543_v31 = vmin.f32 %v540_v27, %v542_v28 }
 0x12f   : >>> { %v544_v33 = vmul.f32 1.1920929e-08, %v543_v31 }
 0x131   : >>> { %vm545_vm11 = vcmp.le.f32.partialorder %v541_v32, %v544_v33 }
 0x136   : >>> { %v1572_v17 = vpop.eup %1571 }
 0x137   : >>> { %v525_v18 = vmul.f32 %v1572_v17, %v522_v16 }
 0x139   : >>> { %v527_v19 = vmul.f32 %v525_v18, %v525_v18  ;;  %vm526_vm10 = vcmp.ge.f32.partialorder %v525_v18, 0.0 }
 0x13b   : >>> { %v528_v20 = vadd.f32 1.0, %v527_v19 }
 0x13d   : >>> { %1573 = vrsqrt.f32 %v528_v20  ;;  %vm531_vm8 = vcmp.eq.f32.partialorder %v528_v20, inf  ;;  %v534_v22 = vand.u32 2147483648, %v528_v20  ;;  %vm533_vm9 = vcmp.eq.f32.partialorder %v528_v20, 0.0 }
 0x147   : >>> { %v1574_v21 = vpop.eup %1573 }
 0x148   : >>> { %v530_v23 = vmul.f32 %v1574_v21, %v528_v20 }
 0x14a   : >>> { %v532_v24 = vsel %vm531_vm8, %v528_v20, %v530_v23  ;;  %vm369_vm8 = vcmp.eq.s32.totalorder (%p450_p9), %v357_v6, %v354_v5  ;;  %v410_v6 = vmov (%p450_p9), %v1729_v6  ;;  %v373_v5 = vmov (%p450_p9), %v1727_v5 }
 0x14b   : >>> { %v535_v25 = vsel %vm533_vm9, %v534_v22, %v532_v24  ;;  %v376_v6 = vmov (%p450_p9), %v1729_v6  ;;  %v390_v5 = vmov (%p450_p9), %v1727_v5  ;;  %vm422_vm9 = vcmp.eq.s32.totalorder (%p450_p9), %v410_v6, %v407_v5 }
 0x14c   : >>> { %v536_v26 = vxor.u32 2147483648, %v535_v25  ;;  %v393_v6 = vmov (%p450_p9), %v1729_v6 }
 0x14e   : >>> { %v537_v29 = vsel %vm526_vm10, %v535_v25, %v536_v26 }
 0x14f   : >>> { %v538_v30 = vadd.f32 %v537_v29, %v525_v18 }
 0x151   : >>> { %1575 = vrcp.f32 %v538_v30 }
 0x15b   : >>> { %v1576_v34 = vpop.eup %1575 }
 0x15c   : >>> { %v546_v35 = vsel %vm545_vm11, 0.0, %v1576_v34 }
 0x15d   : >>> { %v547_v36 = vmul.f32 %v546_v35, %v546_v35  ;;  %v551_v37 = vmul.f32 %v546_v35, %v519_v12 }
 0x15f   : >>> { %v548_v38 = vadd.f32 1.0, %v547_v36  ;;  %v552_v39 = vsub.f32 %v517_v14, %v551_v37  ;;  %v554_v40 = vadd.f32 %v551_v37, %v521_v15 }
 0x161   : >>> { %1577 = vrsqrt.f32 %v548_v38  ;;  %556 = vst [vmem:[%s555_s27] sm:$0xff] %v552_v39  ;;  %558 = vst [vmem:[%s557_s28] sm:$0xff] %v554_v40  ;;  %s1789_s27 = smov [#allocation12]  ;;  %s591_s28 = smov [#allocation24] }
 0x162   : >>> { %v601_v49 = vld [vmem:[%s1789_s27] sm:$0x1f] }
 0x16b   : >>> { %v1578_v41 = vpop.eup %1577 }
 0x16c   : >>> { %560 = vst [vmem:[%s559_s21] sm:$0xff] %v1578_v41  ;;  %v550_v42 = vmul.f32 %v1578_v41, %v546_v35  ;;  %s1791_s21 = smov [#allocation13] }
 0x16d   : >>> { %v602_v50 = vld [vmem:[%s1791_s21] sm:$0x1f] }
 0x16e   : >>> { %562 = vst [vmem:[%s561_s22] sm:$0xff] %v550_v42  ;;  %s1793_s22 = smov [#allocation14] }
 0x16f   : >>> { %v603_v51 = vld [vmem:[%s1793_s22] sm:$0x1f] }
 0x173   : >>> { %v564_v43 = vld [vmem:[%s563_s29] ss:$0 sm:$0xff]  ;;  %s1795_s29 = smov [#allocation15] }
 0x174   : >>> { %v573_v44 = vsel %vm572_vm12, %v564_v43, 0.0  ;;  %v604_v52 = vld [vmem:[%s1795_s29] sm:$0x1f] }
 0x175   : >>> { %574 = vadd.xlane.f32.xlu0 %v573_v44  ;;  %v579_v45 = vld [vmem:[%s578_s11] ss:$0 sm:$0xff]  ;;  %s817_s11 = smov [#allocation23] }
 0x176   : >>> { %v588_v46 = vsel %vm587_vm13, %v579_v45, 0.0 }
 0x179   : >>> { %589 = vadd.xlane.f32.xlu0 %v588_v46 }
 0x202   : >>> { %v575_v47 = vpop.xlane.xlu0 %574 }
 0x203   : >>> { %577 = vst [vmem:[%s576_s15] sm:$0xff] %v575_v47  ;;  %s595_s15 = smov [#allocation24] }
 0x206   : >>> { %v590_v48 = vpop.xlane.xlu0 %589 }
 0x207   : >>> { %592 = vst [vmem:[%s591_s28] sm:$0xff] %v590_v48  ;;  %s1825_s28 = smov [#allocation14] }
 0x20a   : >>> { %v594_v56 = vld [vmem:[%s593_s24] sm:$0xff]  ;;  %s623_s24 = smov [#allocation22] }
 0x20b   : >>> { %v818_v58 = vld [vmem:[%s817_s11] sm:$0xff]  ;;  %v605_v59 = vmul.f32 %v601_v49, %v594_v56  ;;  %v608_v60 = vmul.f32 %v602_v50, %v594_v56  ;;  %v612_v61 = vmul.f32 %v603_v51, %v594_v56  ;;  %v615_v62 = vmul.f32 %v604_v52, %v594_v56  ;;  %s1827_s11 = smov [#allocation15] }
 0x20c   : >>> { %v829_v63 = vmul.f32 %v825_v53, %v818_v58  ;;  %v832_v0 = vmul.f32 %v826_v54, %v818_v58  ;;  %v836_v1 = vmul.f32 %v827_v55, %v818_v58  ;;  %v839_v2 = vmul.f32 %v828_v57, %v818_v58  ;;  %v624_v24 = vld [vmem:[%s623_s24] ss:$0 sm:$0xff]  ;;  %s649_s24 = smov [#allocation12] }
 0x20e   : >>> { %v596_v3 = vld [vmem:[%s595_s15] sm:$0xff]  ;;  %s1829_s15 = smov [#allocation12] }
 0x20f   : >>> { %v820_v4 = vld [vmem:[%s819_s26] sm:$0xff]  ;;  %v606_v7 = vmul.f32 %v603_v51, %v596_v3  ;;  %v609_v8 = vmul.f32 %v604_v52, %v596_v3  ;;  %v611_v9 = vmul.f32 %v601_v49, %v596_v3  ;;  %v614_v10 = vmul.f32 %v602_v50, %v596_v3  ;;  %s621_s26 = smov [#allocation21] }
 0x210   : >>> { %v830_v11 = vmul.f32 %v827_v55, %v820_v4  ;;  %v833_v12 = vmul.f32 %v828_v57, %v820_v4  ;;  %v835_v13 = vmul.f32 %v825_v53, %v820_v4  ;;  %v838_v14 = vmul.f32 %v826_v54, %v820_v4  ;;  %v622_v23 = vld [vmem:[%s621_s26] ss:$0 sm:$0xff]  ;;  %s650_s26 = smov [#allocation19] }
 0x211   : >>> { %v607_v15 = vsub.f32 %v605_v59, %v606_v7  ;;  %v610_v16 = vsub.f32 %v608_v60, %v609_v8  ;;  %v613_v17 = vadd.f32 %v612_v61, %v611_v9  ;;  %v616_v18 = vadd.f32 %v615_v62, %v614_v10  ;;  %v657_v59 = vld [vmem:[%s650_s26] ss:$0 sm:$0xff]  ;;  %s769_s26 = smov [#allocation12] }
 0x212   : >>> { %v831_v19 = vsub.f32 %v829_v63, %v830_v11  ;;  %v834_v20 = vsub.f32 %v832_v0, %v833_v12  ;;  %v837_v21 = vadd.f32 %v836_v1, %v835_v13  ;;  %v840_v22 = vadd.f32 %v839_v2, %v838_v14 }
 0x213   : >>> { %618 = vst [vmem:[%s1791_s21] sm:$0x1f] %v610_v16  ;;  %620 = vst [vmem:[%s1795_s29] sm:$0x1f] %v616_v18  ;;  %s691_s21 = smov [#allocation20]  ;;  %s690_s29 = smov [#allocation15] }
 0x214   : >>> { %617 = vst [vmem:[%s1789_s27] sm:$0x1f] %v607_v15  ;;  %619 = vst [vmem:[%s1793_s22] sm:$0x1f] %v613_v17  ;;  %s1842_s27 = smov [#allocation13]  ;;  %s677_s22 = smov [#allocation14]  ;;  %v698_v55 = vld [vmem:[%s691_s21] ss:$0 sm:$0xff] }
 0x215   : >>> { %841 = vst [vmem:[%s1798_s14] sm:$0x1f] %v831_v19  ;;  %842 = vst [vmem:[%s1801_s30] sm:$0x1f] %v834_v20  ;;  %s1832_s14 = smov %s1731_s14  ;;  %s1840_s30 = smov %s1734_s30 }
 0x216   : >>> { %843 = vst [vmem:[%s1804_s17] sm:$0x1f] %v837_v21  ;;  %844 = vst [vmem:[%s1809_s20] sm:$0x1f] %v840_v22  ;;  %s1835_s17 = smov %s1737_s17  ;;  %s1845_s20 = smov %s1740_s20 }
 0x217   : >>> { %s706_s21 = smov [#allocation13] }
 0x21a   : >>> { %v632_v26 = vld [vmem:[%s1827_s11] sm:$0x1f] }
 0x21b   : >>> { %v631_v25 = vld [vmem:[%s1825_s28] sm:$0x1f]  ;;  %v640_v32 = vmul.f32 %v632_v26, %v624_v24  ;;  %v643_v38 = vmul.f32 %v632_v26, %v622_v23 }
 0x21c   : >>> { %v629_v27 = vld [vmem:[%s1829_s15] sm:$0x1f]  ;;  %v639_v31 = vmul.f32 %v631_v25, %v622_v23  ;;  %v642_v33 = vmul.f32 %v631_v25, %v624_v24 }
 0x21d   : >>> { %v847_v28 = vld [vmem:[%s1832_s14] ss:$0 sm:$0xff]  ;;  %v1499_v30 = vld [vmem:[%s1832_s14 + $0x4] ss:$0 sm:$0xff]  ;;  %v633_v44 = vmul.f32 %v629_v27, %v622_v23  ;;  %v636_v45 = vmul.f32 %v629_v27, %v624_v24 }
 0x21e   : >>> { %v1498_v29 = vld [vmem:[%s1832_s14 - $0x1] sm:$0x1e]  ;;  %v1503_v41 = vld [vmem:[%s1840_s30 + $0x4] ss:$0 sm:$0xff]  ;;  %v641_v43 = vsub.f32 %v639_v31, %v640_v32  ;;  %v644_v49 = vadd.f32 %v643_v38, %v642_v33 }
 0x21f   : >>> { %v854_v34 = vsel %vm777_vm14, %v847_v28, %v1498_v29  ;;  %v858_v35 = vld [vmem:[%s1835_s17] ss:$0 sm:$0xff]  ;;  %v1501_v36 = vld [vmem:[%s1835_s17 + $0x1] sm:$0xf] }
 0x220   : >>> { %v871_v37 = vld [vmem:[%s1840_s30] ss:$0 sm:$0xff]  ;;  %857 = vst [vmem:[%s1832_s14] sm:$0x1f] %v854_v34  ;;  %v866_v39 = vsel %vm789_vm15, %v1499_v30, %v1501_v36  ;;  %v1505_v47 = vld [vmem:[%s1845_s20 + $0x1] sm:$0xf]  ;;  %647 = vst [vmem:[%s1825_s28] sm:$0x1f] %v641_v43 }
 0x221   : >>> { %v1502_v40 = vld [vmem:[%s1840_s30 - $0x1] sm:$0x1e]  ;;  %1500 = vst [vmem:[%s1832_s14 + $0x1] sm:$0x1] %v858_v35  ;;  %868 = vst [vmem:[%s1835_s17] sm:$0x1f] %v866_v39  ;;  %v890_v50 = vsel %vm789_vm15, %v1503_v41, %v1505_v47  ;;  %s664_s28 = smov [#allocation13] }
 0x222   : >>> { %v882_v42 = vld [vmem:[%s1845_s20] ss:$0 sm:$0xff]  ;;  %v878_v46 = vsel %vm777_vm14, %v871_v37, %v1502_v40  ;;  %648 = vst [vmem:[%s1827_s11] sm:$0x1f] %v644_v49  ;;  %s1887_s11 = smov [#allocation14] }
 0x223   : >>> { %v630_v48 = vld [vmem:[%s1842_s27] sm:$0x1f]  ;;  %881 = vst [vmem:[%s1840_s30] sm:$0x1f] %v878_v46  ;;  %892 = vst [vmem:[%s1845_s20] sm:$0x1f] %v890_v50 }
 0x224   : >>> { %v634_v51 = vmul.f32 %v630_v48, %v624_v24  ;;  %v637_v52 = vmul.f32 %v630_v48, %v622_v23  ;;  %1504 = vst [vmem:[%s1840_s30 + $0x1] sm:$0x1] %v882_v42 }
 0x226   : >>> { %v635_v53 = vsub.f32 %v633_v44, %v634_v51  ;;  %v638_v54 = vadd.f32 %v637_v52, %v636_v45 }
 0x227   : >>> { %v684_v56 = vld [vmem:[%s677_s22] sm:$0x1f] }
 0x228   : >>> { %645 = vst [vmem:[%s1829_s15] sm:$0x1f] %v635_v53  ;;  %646 = vst [vmem:[%s1842_s27] sm:$0x1f] %v638_v54  ;;  %v688_v57 = vsel %vm687_vm0, 0.0, %v684_v56  ;;  %s1620_s15 = smov 1   ;;  %s705_s27 = smov [#allocation12] }
 0x229   : >>> { %v699_v58 = vld [vmem:[%s690_s29] sm:$0x1f]  ;;  %689 = vst [vmem:[%s677_s22] sm:$0x1f] %v688_v57  ;;  %s1621_s22 = smov 127  }
 0x22a   : >>> { %v703_v60 = vsel %vm702_vm1, %v698_v55, %v699_v58 }
 0x22b   : >>> { %704 = vst [vmem:[%s690_s29] sm:$0x1f] %v703_v60  ;;  %s1890_s29 = smov [#allocation15] }
 0x22f   : >>> { %v658_v61 = vld [vmem:[%s649_s24] sm:$0x1f] }
 0x230   : >>> { %v671_v62 = vld [vmem:[%s664_s28] sm:$0x1f]  ;;  %v662_v63 = vsel %vm661_vm3, %v657_v59, %v658_v61 }
 0x231   : >>> { %v675_v0 = vsel %vm674_vm4, 0.0, %v671_v62  ;;  %663 = vst [vmem:[%s649_s24] sm:$0x1f] %v662_v63  ;;  %v743_v1 = vld [vmem:[%s1887_s11] sm:$0x1f]  ;;  %s793_s24 = smov [#allocation13] }
 0x232   : >>> { %676 = vst [vmem:[%s664_s28] sm:$0x1f] %v675_v0  ;;  %744 = vrot.lane.b32.xlu0 %v743_v1, %s1620_s15  ;;  %v739_v7 = vld [vmem:[%s1890_s29] sm:$0x1f]  ;;  %s770_s28 = smov [#allocation14] }
 0x233   : >>> { %v760_v8 = vld [vmem:[%s1890_s29] sm:$0x1f] }
 0x234   : >>> { %v742_v26 = vld [vmem:[%s1887_s11] sm:$0x1f] }
 0x238   : >>> { %v711_v2 = vld [vmem:[%s705_s27] sm:$0x1f] }
 0x239   : >>> { %712 = vrot.lane.b32.xlu1 %v711_v2, %s1620_s15  ;;  %v707_v3 = vld [vmem:[%s706_s21] sm:$0x1f] }
 0x23a   : >>> { %v728_v4 = vld [vmem:[%s706_s21] sm:$0x1f] }
 0x23b   : >>> { %v710_v14 = vld [vmem:[%s705_s27] sm:$0x1f] }
 0x23d   : >>> { %708 = vrot.lane.b32.xlu1 %v707_v3, %s1620_s15 }
 0x241   : >>> { %729 = vrot.lane.b32.xlu1 %v728_v4, %s1621_s22 }
 0x245   : >>> { %740 = vrot.lane.b32.xlu1 %v739_v7, %s1620_s15  ;;  %s794_s15 = smov [#allocation15] }
 0x249   : >>> { %761 = vrot.lane.b32.xlu1 %v760_v8, %s1621_s22  ;;  %s394_s22 = smov (%p450_p9), [#allocation14] }
 0x2a4   : >>> { %v745_v16 = vpop.permute.xlu0 %744 }
 0x2a5   : >>> { %v749_v18 = vsel %vm716_vm5, %v743_v1, %v745_v16 }
 0x2ab   : >>> { %v713_v9 = vpop.permute.xlu1 %712 }
 0x2ac   : >>> { %v717_v10 = vsel %vm716_vm5, %v711_v2, %v713_v9 }
 0x2af   : >>> { %v709_v11 = vpop.permute.xlu1 %708 }
 0x2b0   : >>> { %v721_v12 = vsel %vm720_vm6, %v709_v11, %v717_v10 }
 0x2b1   : >>> { %v727_v13 = vsel %vm1359_vm2, %v721_v12, 0.0 }
 0x2b2   : >>> { %735 = vst [vmem:[%s705_s27] sm:$0x1f] %v727_v13  ;;  %s358_s27 = smov (%p450_p9), [#allocation12] }
 0x2b3   : >>> { %v730_v15 = vpop.permute.xlu1 %729 }
 0x2b4   : >>> { %v734_v17 = vsel %vm733_vm7, %v710_v14, %v730_v15 }
 0x2b5   : >>> { %736 = vst [vmem:[%s706_s21] sm:$0x1f] %v734_v17  ;;  %s377_s21 = smov (%p450_p9), [#allocation13] }
 0x2b7   : >>> { %v741_v19 = vpop.permute.xlu1 %740 }
 0x2b8   : >>> { %v753_v20 = vsel %vm720_vm6, %v741_v19, %v749_v18 }
 0x2b9   : >>> { %v771_v21 = vld [vmem:[%s769_s26] ss:$0 sm:$0xff]  ;;  %v1491_v23 = vld [vmem:[%s769_s26 + $0x4] ss:$0 sm:$0xff]  ;;  %v759_v25 = vsel %vm1359_vm2, %v753_v20, 0.0 }
 0x2ba   : >>> { %v1490_v22 = vld [vmem:[%s769_s26 - $0x1] sm:$0x1e]  ;;  %767 = vst [vmem:[%s1887_s11] sm:$0x1f] %v759_v25  ;;  %s893_s11 = sadd.s32 (%p450_p9), 1, %s1613_s16  }
 0x2bb   : >>> { %v778_v24 = vsel %vm777_vm14, %v771_v21, %v1490_v22  ;;  %v762_v27 = vpop.permute.xlu1 %761  ;;  %p446_p10 = scmp.ge.s32.totalorder (%p450_p9), %s893_s11, 15  ;;  %s2011_s16 = smov (%p450_p9), %s893_s11 }
 0x2bc   : >>> { %781 = vst [vmem:[%s769_s26] sm:$0x1f] %v778_v24  ;;  %v795_v28 = vld [vmem:[%s793_s24] ss:$0 sm:$0xff]  ;;  %v1495_v30 = vld [vmem:[%s793_s24 + $0x4] ss:$0 sm:$0xff]  ;;  %v766_v31 = vsel %vm733_vm7, %v742_v26, %v762_v27 }
 0x2bd   : >>> { %v1494_v29 = vld [vmem:[%s793_s24 - $0x1] sm:$0x1e]  ;;  %768 = vst [vmem:[%s1890_s29] sm:$0x1f] %v766_v31  ;;  %s411_s29 = smov (%p450_p9), [#allocation15] }
 0x2be   : >>> { %v802_v32 = vsel %vm777_vm14, %v795_v28, %v1494_v29 }
 0x2bf   : >>> { %805 = vst [vmem:[%s793_s24] sm:$0x1f] %v802_v32 }
 0x2c1   : >>> { %v782_v33 = vld [vmem:[%s770_s28] ss:$0 sm:$0xff]  ;;  %v1493_v34 = vld [vmem:[%s770_s28 + $0x1] sm:$0xf] }
 0x2c2   : >>> { %1492 = vst [vmem:[%s769_s26 + $0x1] sm:$0x1] %v782_v33  ;;  %v790_v35 = vsel %vm789_vm15, %v1491_v23, %v1493_v34  ;;  %452 = sbr.rel (!%p450_p9) target bundleno = 274 (0x112), region = 494 }
 0x2c3   : >>> { %792 = vst [vmem:[%s770_s28] sm:$0x1f] %v790_v35 }
 0x2c4   : >>> { %v806_v36 = vld [vmem:[%s794_s15] ss:$0 sm:$0xff]  ;;  %v1497_v37 = vld [vmem:[%s794_s15 + $0x1] sm:$0xf] }
 0x2c5   : >>> { %1496 = vst [vmem:[%s793_s24 + $0x1] sm:$0x1] %v806_v36  ;;  %v814_v38 = vsel %vm789_vm15, %v1495_v30, %v1497_v37 }
 0x2c6   : >>> { %816 = vst [vmem:[%s794_s15] sm:$0x1f] %v814_v38 }
 0x2c9   : >> { %v364_v39 = vld [vmem:[%s358_s27] sm:$0x1f] }
 0x2ca   : >> { %v365_v41 = vsel %vm1359_vm2, %v364_v39, 0.0  ;;  %v400_v43 = vld [vmem:[%s394_s22] sm:$0x1f] }
 0x2cb   : >> { %v366_v45 = vmul.f32 %v365_v41, %v365_v41  ;;  %v401_v47 = vsel %vm1359_vm2, %v400_v43, 0.0 }
 0x2cc   : >> { %v383_v40 = vld [vmem:[%s377_s21] sm:$0x1f]  ;;  %v402_v49 = vmul.f32 %v401_v47, %v401_v47 }
 0x2cd   : >> { %v384_v42 = vsel %vm1359_vm2, %v383_v40, 0.0  ;;  %v417_v44 = vld [vmem:[%s411_s29] sm:$0x1f]  ;;  %v370_v52 = vsel %vm369_vm8, 0.0, %v366_v45 }
 0x2ce   : >> { %v385_v46 = vmul.f32 %v384_v42, %v384_v42  ;;  %v418_v48 = vsel %vm1359_vm2, %v417_v44, 0.0 }
 0x2cf   : >> { %v419_v51 = vmul.f32 %v418_v48, %v418_v48 }
 0x2d0   : >> { %v387_v50 = vadd.f32 %v385_v46, %v366_v45  ;;  %v386_v53 = vadd.f32 %v385_v46, %v370_v52 }
 0x2d1   : >> { %v423_v56 = vsel %vm422_vm9, 0.0, %v419_v51 }
 0x2d2   : >> { %v404_v54 = vadd.f32 %v402_v49, %v387_v50  ;;  %v403_v55 = vadd.f32 %v402_v49, %v386_v53 }
 0x2d4   : >> { %v425_v57 = vadd.f32 %v419_v51, %v404_v54  ;;  %v424_v58 = vadd.f32 %v423_v56, %v403_v55 }
 0x2d6   : >> { %426 = vadd.xlane.f32.xlu0 %v425_v57 }
 0x2da   : >> { %434 = vadd.xlane.f32.xlu0 %v424_v58 }
 0x363   : >> { %v427_v59 = vpop.xlane.xlu0 %426 }
 0x364   : >> { %v428_v60 = vrot.slane %v427_v59, 4 }
 0x366   : >> { %v429_v61 = vadd.f32 %v428_v60, %v427_v59 }
 0x367   : >> { %v435_v62 = vpop.xlane.xlu0 %434 }
 0x368   : >> { %v430_v63 = vrot.slane %v429_v61, 2  ;;  %v436_v0 = vrot.slane %v435_v62, 4 }
 0x36a   : >> { %v437_v1 = vadd.f32 %v436_v0, %v435_v62  ;;  %v431_v2 = vadd.f32 %v430_v63, %v429_v61 }
 0x36c   : >> { %v438_v3 = vrot.slane %v437_v1, 2  ;;  %v432_v7 = vrot.slane %v431_v2, 1 }
 0x36e   : >> { %v439_v4 = vadd.f32 %v438_v3, %v437_v1  ;;  %v433_v10 = vadd.f32 %v432_v7, %v431_v2 }
 0x370   : >> { %v440_v8 = vrot.slane %v439_v4, 1 }
 0x372   : >> { %v441_v9 = vadd.f32 %v440_v8, %v439_v4 }
 0x374   : >> { %1524 = vpush %v441_v9 }
 0x375   : >> { %1526 = vpush %v433_v10 }
 0x3a5   : >> { %s1525_s23 = spop %1524 }
 0x3a6   : >> { %s1527_s26 = spop %1526 }
 0x3a7   : >> { %s444_s24 = smul.f32 1e-10, %s1527_s26 }
 0x3a9   : >> { %p445_p11 = scmp.le.f32.partialorder %s1525_s23, %s444_s24 }
 0x3ab   : >> { %p447_p12 = por %p446_p10, %p445_p11 }
 0x3ad   : > { %895 = sbr.rel (!%p447_p12) target bundleno = 273 (0x111), region = 505 }
 0x3b4 PF: > { %s900_s28 = smov [#allocation12]  ;;  %v904_v5 = vmov %v1727_v5  ;;  %v907_v6 = vmov %v1729_v6  ;;  %s920_s15 = smov [#allocation15] }
 0x3b5   : > { %v924_v5 = vmov %v1727_v5  ;;  %v927_v6 = vmov %v1729_v6  ;;  %v908_v11 = vld [vmem:[%s900_s28] sm:$0x1f]  ;;  %vm911_vm10 = vcmp.eq.s32.totalorder %v907_v6, %v904_v5  ;;  %s896_s16 = sand.u32 7, %s1688_s12   ;;  %s2012_s21 = scalar_lea.vmem [#allocation7], %s1725_s18 }
 0x3b6   : > { %vm931_vm11 = vcmp.eq.s32.totalorder %v927_v6, %v924_v5  ;;  %v912_v12 = vsel %vm911_vm10, %v908_v11, 0.0  ;;  %v928_v14 = vld [vmem:[%s920_s15] sm:$0x1f]  ;;  %s897_s11 = scalar_lea.vmem [#allocation4], %s896_s16  ;;  %s899_s27 = scalar_lea.vmem [#allocation6], %s896_s16 }
 0x3b7   : > { %v913_v13 = vrot.slane %v912_v12, 4  ;;  %v932_v15 = vsel %vm931_vm11, %v928_v14, 0.0  ;;  %s901_s11 = smov %s897_s11  ;;  %s921_s27 = smov %s899_s27 }
 0x3b8   : > { %v933_v17 = vrot.slane %v932_v15, 4  ;;  %s979_s22 = sshrl.u32 (%p1702_p3), %s1688_s12, 3 }
 0x3b9   : > { %v914_v16 = vadd.f32 %v913_v13, %v912_v12  ;;  %s1512_s29 = sshll.u32 (%p1702_p3), %s979_s22, 1 }
 0x3ba   : > { %v934_v19 = vadd.f32 %v933_v17, %v932_v15  ;;  %s981_s24 = scalar_lea.vmem (%p1702_p3), %s2003_s4, %s1512_s29 }
 0x3bb   : > { %v915_v18 = vrot.slane %v914_v16, 2 }
 0x3bc   : > { %v935_v21 = vrot.slane %v934_v19, 2 }
 0x3bd   : > { %v916_v20 = vadd.f32 %v915_v18, %v914_v16 }
 0x3be   : > { %v936_v23 = vadd.f32 %v935_v21, %v934_v19 }
 0x3bf   : > { %v917_v22 = vrot.slane %v916_v20, 1 }
 0x3c0   : > { %v937_v5 = vrot.slane %v936_v23, 1 }
 0x3c1   : > { %v918_v24 = vadd.f32 %v917_v22, %v916_v20 }
 0x3c2   : > { %v938_v6 = vadd.f32 %v937_v5, %v936_v23 }
 0x3c3   : > { %919 = vst [vmem:[%s901_s11] sm:$0x1] %v918_v24 }
 0x3c4   : > { %939 = vst [vmem:[%s921_s27] sm:$0x1] %v938_v6 }
 0x3c6   : > { %978 = sbr.rel (!%p1702_p3) target bundleno = 980 (0x3d4), region = 174 }
 0x3ca   : > { %v943_v25 = vld [vmem:[#allocation4] sm:$0x3] }
 0x3cb   : > { %945 = vst [vmem:[%s283_s25] sm:$0x3] %v943_v25  ;;  %v949_v26 = vld [vmem:[#allocation6] sm:$0x3] }
 0x3cc   : > { %951 = vst [vmem:[%s2012_s21] sm:$0x3] %v949_v26 }
 0x3d2   : > { %v997_v27 = vld [vmem:[%s283_s25] sm:$0x3] }
 0x3d3   : > { %998 = vst [vmem:[%s981_s24] sm:$0x3] %v997_v27 }
 0x3d4 PF: > { %1015 = sbr.rel (!%p1702_p3) target bundleno = 988 (0x3dc), region = 208  ;;  %s1016_s28 = sshrl.u32 (%p1702_p3), %s1688_s12, 3 }
 0x3d5   : > { %s2013_s15 = scalar_lea.vmem (%p1702_p3), [#allocation7], %s1725_s18  ;;  %s1513_s16 = sshll.u32 (%p1702_p3), %s1016_s28, 1 }
 0x3d6   : > { %s1018_s25 = scalar_lea.vmem (%p1702_p3), %s2004_s5, %s1513_s16 }
 0x3da   : > { %v1034_v28 = vld [vmem:[%s2013_s15] sm:$0x3] (%p1702_p3) }
 0x3db   : > { %1035 = vst [vmem:[%s1018_s25] sm:$0x3] %v1034_v28 }
 0x3dc PF: > { %s1514_s21 = sshll.u32 %s1688_s12, 3  ;;  %v1079_v29 = vld [vmem:[%s1731_s14] sm:$0xff]  ;;  %v1113_v30 = vld [vmem:[%s1734_s30] sm:$0xff] }
 0x3dd   : > { %v1147_v31 = vld [vmem:[%s1737_s17] sm:$0xff]  ;;  %s1051_s18 = scalar_lea.vmem %s2005_s6, %s1514_s21  ;;  %s1085_s26 = scalar_lea.vmem %s2006_s7, %s1514_s21  ;;  %v1181_v32 = vld [vmem:[%s1740_s20] sm:$0xff] }
 0x3de   : > { %1080 = vst [vmem:[%s1051_s18] sm:$0xff] %v1079_v29  ;;  %1114 = vst [vmem:[%s1085_s26] sm:$0xff] %v1113_v30  ;;  %s1119_s15 = scalar_lea.vmem %s2007_s8, %s1514_s21  ;;  %s1153_s14 = scalar_lea.vmem %s2008_s9, %s1514_s21 }
 0x3df   : > { %1148 = vst [vmem:[%s1119_s15] sm:$0xff] %v1147_v31  ;;  %1182 = vst [vmem:[%s1153_s14] sm:$0xff] %v1181_v32 }
 0x3e0 PF: > { %s2014_s17 = sld [smem:[#allocation25_spill]]  ;;  %p13_p13 = scmp.ge.s32.totalorder %s1691_s13, 4  }
 0x3e1   : > { %s2015_s30 = smov %s1605_s10  ;;  %s2017_s11 = smov %s1691_s13 }
 0x3e2   :  { %15 = sbr.rel (!%p13_p13) target bundleno = 2 (0x2), region = 516 }
 0x3e6   : > { %s2016_s10 = smov %s2014_s17 }

// kernel: oanet_forward.347
= control target key start
LH: loop header
LB: loop body
LE: loop exit
PB: predicated region body
PF: predicated region fallthrough
CT: control target
= control target key end

     0   :  { %s394_s9 = smov 0   ;;  %s418_s0 = inlined_call_operand.vmem [shape: f32[2,9,64], index: 0, kind: input, shape index: {}]   ;;  %s419_s1 = inlined_call_operand.vmem [shape: f32[2,1,64], index: 1, kind: input, shape index: {}]   ;;  %s420_s2 = inlined_call_operand.vmem [shape: f32[2,9,9], index: 2, kind: output, shape index: {}]  }
   0x1 LB: > { %s327_s10 = sadd.s32 4294967295, %s377_s9   ;;  %p331_p0 = scmp.ge.s32.totalorder %s377_s9, 1  ;;  %s377_s9 = sphi %s394_s9, %s12_s9  }
   0x2   : > { %p120_p1 = scmp.lt.s32.totalorder %s377_s9, 3 }
   0x4   : > { %p121_p2 = pnand %p331_p0, %p120_p1 }
   0x5   : > { %p145_p3 = scmp.lt.s32.totalorder (!%p121_p2), %s327_s10, 1  ;;  %vm171_vm0 = vcmask (!%p121_p2), 523264   ;;  %v164_v3 = vlaneseq (!%p121_p2)  ;;  %vm261_vm2 = vcmask (!%p121_p2), 65536   ;;  %vm259_vm3 = vcmask (!%p121_p2), 72704  }
   0x6   : > { %124 = sbr.rel (%p121_p2) target bundleno = 248 (0xf8), region = 28  ;;  %vm356_vm1 = vmpackc.low (!%p121_p2), %vm171_vm0, %vm171_vm0 }
   0x7   : > { %v165_v5 = vshrl.u32 (!%p121_p2), %v164_v3, 7 }
   0x9   : > { %v166_v6 = vsub.s32 (!%p121_p2), 0, %v165_v5 }
   0xd   : > { %s422_s10 = smov (!%p145_p3, %s327_s10), 1 }
   0xe   : > { %s342_s11 = sshll.u32 %s422_s10, 4  ;;  %s152_s14 = scalar_lea.vmem %s419_s1, %s422_s10 }
   0xf   : > { %s149_s17 = scalar_lea.vmem %s418_s0, %s342_s11  ;;  %v160_v0 = vld [vmem:[%s152_s14] sm:$0x1]  ;;  %s157_s20 = scalar_lea.vmem %s420_s2, %s342_s11 }
  0x10   : > { %v158_v1 = vld [vmem:[%s149_s17] sm:$0xff]  ;;  %v159_v2 = vld [vmem:[%s149_s17 + $0x8] sm:$0x1]  ;;  %369 = vtanh.f32 %v160_v0 }
  0x11   : > { %v355_v4 = vpack.c.bf16 %v159_v2, %v158_v1 }
  0x13   : > { %357 = vmatprep.subr.msk.bf16.mxu0 %vm356_vm1, %v355_v4 }
  0x14   : > { %360 = vmatpush3.bf16.xpose.msk.msra.mxu0 %vm356_vm1, %v355_v4 }
  0x1a   : > { %v370_v7 = vpop.eup %369 }
  0x1b   : > { %v162_v8 = vmax.f32 %v370_v7, 0.0 }
  0x1d   : > { %v167_v9 = vrot.slane %v162_v8, %v166_v6 }
  0x1f   : > { %v170_v10 = vmul.f32 %v167_v9, %v159_v2  ;;  %v169_v11 = vmul.f32 %v167_v9, %v158_v1 }
  0x21   : > { %352 = vmatprep.mubr.msk.f32.mxu0 %vm171_vm0, %v169_v11 }
  0x22   : > { %353 = vmatmul.mubr.msk.f32.vlgmr.msra.gmra.mrb[0].mxu0 %vm171_vm0, %v170_v10 }
  0xf5   : > { %v354_v12 = vpop.f32.mrb[0].mxu0 }
  0xf6   : > { %262 = vst.msk [vmem:[%s157_s20 + $0x8] sm:$0x1] %vm261_vm2, %v354_v12  ;;  %v250_v13 = vpop.f32.mrb[1].mxu0 }
  0xf7   : > { %260 = vst.msk [vmem:[%s157_s20] sm:$0xff] %vm259_vm3, %v250_v13 }
  0xf8 PF: > { %s12_s9 = sadd.s32 1, %s377_s9  }
  0xf9   : > { %p9_p4 = scmp.ge.s32.totalorder %s12_s9, 4  }
  0xfb   :  { %11 = sbr.rel (!%p9_p4) target bundleno = 1 (0x1), region = 61 }

// kernel: oanet_forward.348
= control target key start
LH: loop header
LB: loop body
LE: loop exit
PB: predicated region body
PF: predicated region fallthrough
CT: control target
= control target key end

     0   :  { %s514_s12 = smov 0   ;;  %s516_s13 = smov 0   ;;  %s561_s0 = inlined_call_operand.vmem [shape: f32[2,64,6], index: 0, kind: input, shape index: {}]   ;;  %s562_s1 = inlined_call_operand.vmem [shape: bf16[6,32], index: 1, kind: input, shape index: {}]   ;;  %s563_s2 = inlined_call_operand.vmem [shape: f32[1,32], index: 2, kind: input, shape index: {}]   ;;  %s564_s3 = inlined_call_operand.vmem [shape: f32[2,64,32], index: 3, kind: output, shape index: {}]  }
   0x1   :  { %s518_s14 = smov 0  }
   0x2 LB: > { %s25_s15 = sadd.s32 1, %s488_s13  ;;  %p413_p0 = scmp.ge.s32.totalorder %s492_s14, 1  ;;  %s492_s14 = sphi %s518_s14, %s13_s14   ;;  %s488_s13 = sphi %s516_s13, %s566_s13   ;;  %s484_s12 = sphi %s514_s12, %s565_s12  }
   0x3   : > { %p27_p1 = scmp.ge.s32.totalorder %s25_s15, 2  ;;  %p158_p2 = scmp.lt.s32.totalorder %s492_s14, 3 }
   0x5   : > { %s568_s15 = smov (%p27_p1, %s25_s15), 0  ;;  %p159_p3 = pnand %p413_p0, %p158_p2 }
   0x6   : > { %v223_v0 = vld [vmem:[%s562_s1] sm:$0x7] (!%p159_p3)  ;;  %vm244_vm0 = vcmask (!%p159_p3), 1042432   ;;  %p191_p4 = scmp.lt.s32.totalorder (!%p159_p3), %s484_s12, 1  ;;  %vm231_vm1 = vcmask (!%p159_p3), 48128   ;;  %vm313_vm2 = vcmask (!%p159_p3), 261120  }
   0x7   : > { %162 = sbr.rel (%p159_p3) target bundleno = 240 (0xf0), region = 32  ;;  %444 = vmatprep.subr.msk.bf16.mxu0 (!%p159_p3), %vm244_vm0, %v223_v0  ;;  %445 = vmatprep.subr.msk.bf16.mxu1 (!%p159_p3), %vm244_vm0, %v223_v0  ;;  %v246_v1 = vsel (!%p159_p3), %vm244_vm0, %v223_v0, 0  ;;  %v418_v14 = vld [vmem:[%s563_s2] ss:$0 sm:$0xff] (!%p159_p3) }
   0x8   : > { %433 = vmatpush3.bf16.msra.mxu0 (!%p159_p3), %v246_v1  ;;  %443 = vmatpush3.bf16.msra.mxu1 (!%p159_p3), %v246_v1 }
   0xe   : > { %s570_s12 = smov (!%p191_p4, %s484_s12), 1 }
   0xf   : > { %s425_s18 = sshll.u32 %s570_s12, 6 }
  0x10   : > { %s198_s21 = scalar_lea.vmem %s561_s0, %s425_s18  ;;  %s208_s26 = scalar_lea.vmem %s564_s3, %s425_s18 }
  0x11   : > { %v211_v2 = vld [vmem:[%s198_s21] sm:$0xff]  ;;  %v212_v3 = vld [vmem:[%s198_s21 + $0x8] sm:$0xff]  ;;  %v213_v7 = vld [vmem:[%s198_s21 + $0x10] sm:$0xff] }
  0x12   : > { %v215_v4 = vld [vmem:[%s198_s21 + $0x20] sm:$0xff]  ;;  %v219_v5 = vpack.c.bf16 %v212_v3, %v211_v2  ;;  %v216_v6 = vld [vmem:[%s198_s21 + $0x28] sm:$0xff]  ;;  %v214_v8 = vld [vmem:[%s198_s21 + $0x18] sm:$0xff] }
  0x13   : > { %v221_v9 = vpack.c.bf16 %v216_v6, %v215_v4  ;;  %v220_v10 = vpack.c.bf16 %v214_v8, %v213_v7  ;;  %v217_v11 = vld [vmem:[%s198_s21 + $0x30] sm:$0xff]  ;;  %v218_v12 = vld [vmem:[%s198_s21 + $0x38] sm:$0xff] }
  0x14   : > { %434 = vmatprep.mubr.msk.bf16.mxu0 %vm231_vm1, %v219_v5  ;;  %v222_v13 = vpack.c.bf16 %v218_v12, %v217_v11 }
  0x15   : > { %438 = vmatprep.mubr.msk.bf16.mxu1 %vm231_vm1, %v221_v9  ;;  %435 = vmatmul.mubr.msk.bf16.vlgmr.msra.gmra.mrb[0].mxu0 %vm231_vm1, %v220_v10 }
  0x16   : > { %439 = vmatmul.mubr.msk.bf16.vlgmr.msra.gmra.mrb[0].mxu1 %vm231_vm1, %v222_v13 }
  0xe8   : > { %v436_v15 = vpop.f32.mrb[0].mxu0 }
  0xe9   : > { %v291_v16 = vadd.f32 %v436_v15, %v418_v14  ;;  %v440_v17 = vpop.f32.mrb[0].mxu1  ;;  %v282_v18 = vpop.f32.mrb[1].mxu0 }
  0xea   : > { %v307_v19 = vadd.f32 %v440_v17, %v418_v14  ;;  %v283_v20 = vadd.f32 %v418_v14, %v282_v18  ;;  %v298_v21 = vpop.f32.mrb[1].mxu1  ;;  %v437_v22 = vpop.f32.mrb[2].mxu0 }
  0xeb   : > { %316 = vst.msk [vmem:[%s208_s26 + $0x10] sm:$0xff] %vm313_vm2, %v291_v16  ;;  %v299_v23 = vadd.f32 %v418_v14, %v298_v21  ;;  %v294_v24 = vadd.f32 %v437_v22, %v418_v14  ;;  %v441_v25 = vpop.f32.mrb[2].mxu1  ;;  %v285_v26 = vpop.f32.mrb[3].mxu0 }
  0xec   : > { %320 = vst.msk [vmem:[%s208_s26 + $0x30] sm:$0xff] %vm313_vm2, %v307_v19  ;;  %314 = vst.msk [vmem:[%s208_s26] sm:$0xff] %vm313_vm2, %v283_v20  ;;  %v310_v27 = vadd.f32 %v441_v25, %v418_v14  ;;  %v286_v28 = vadd.f32 %v418_v14, %v285_v26  ;;  %v301_v29 = vpop.f32.mrb[3].mxu1 }
  0xed   : > { %318 = vst.msk [vmem:[%s208_s26 + $0x20] sm:$0xff] %vm313_vm2, %v299_v23  ;;  %317 = vst.msk [vmem:[%s208_s26 + $0x18] sm:$0xff] %vm313_vm2, %v294_v24  ;;  %v302_v30 = vadd.f32 %v418_v14, %v301_v29 }
  0xee   : > { %321 = vst.msk [vmem:[%s208_s26 + $0x38] sm:$0xff] %vm313_vm2, %v310_v27  ;;  %315 = vst.msk [vmem:[%s208_s26 + $0x8] sm:$0xff] %vm313_vm2, %v286_v28 }
  0xef   : > { %319 = vst.msk [vmem:[%s208_s26 + $0x28] sm:$0xff] %vm313_vm2, %v302_v30 }
  0xf0 PF: > { %s13_s14 = sadd.s32 1, %s492_s14   ;;  %s565_s12 = smov %s488_s13 }
  0xf1   : > { %p10_p5 = scmp.ge.s32.totalorder %s13_s14, 4   ;;  %s566_s13 = smov %s568_s15 }
  0xf3   :  { %12 = sbr.rel (!%p10_p5) target bundleno = 2 (0x2), region = 62 }

</bundles_post_ra>
